<compile_context>
chip_gen: v5e
topology: v5e:2x2
jax: 0.10.0
libtpu: 0.0.40
codegen_flags: <defaults>
</compile_context>

<pallas_src>
import functools

import jax
import jax.numpy as jnp
import numpy as np
from jax.experimental import pallas as pl
from jax.experimental.pallas import tpu as pltpu

_BN_EPS = 1e-5
_BN_SCALE = 1.0 / np.sqrt(1.0 + _BN_EPS)   # eval-mode BN with default stats

_LANE = 128
_MM_IN_DTYPE = jnp.bfloat16   # matmul operands (MXU accumulation stays f32)
_ACT_DTYPE = jnp.bfloat16     # intermediate activation storage dtype
_TINY_M = 32                  # output rows below this -> plain XLA dot
_TINY_HW = 64                 # spatial pixels below this -> XLA upsample


def _cdiv(a, b):
    return -(-a // b)


def _round_up(x, m):
    return _cdiv(x, m) * m


def _pick_divisor_tile(total, cap):
    """Largest 128-multiple <= cap that divides `total` (a 128-multiple)."""
    for cand in range(min(total, cap), 0, -_LANE):
        if total % cand == 0:
            return cand
    return _LANE


def _pad_to(x, shape):
    pads = [(0, t - s) for s, t in zip(x.shape, shape)]
    if any(p[1] for p in pads):
        return jnp.pad(x, pads)
    return x


def _vmem_limit_bytes():
    # v5e/v6e: 128 MiB physical -> 96 MiB scoped; v7x: 64 MiB -> 48 MiB.
    default = 64 * 1024 * 1024
    try:
        cap = int(getattr(pltpu.get_tpu_info(), "vmem_capacity_bytes", default))
    except Exception:
        cap = default
    return int(min(max(cap * 3 // 4, 32 * 1024 * 1024), 100 * 1024 * 1024))


_VMEM_LIMIT = _vmem_limit_bytes()


# ---------------------------------------------------------------------------
# Pallas kernels
# ---------------------------------------------------------------------------
def _mm_kernel(a_ref, b_ref, bias_ref, *rest, n_res, relu_in, relu_out, l2norm):
    """K-tiled MXU matmul with an f32 VMEM accumulator across the (innermost,
    "arbitrary") K grid axis.  bias / relu / residual-add / row L2 norm are
    fused into the final K step's epilogue."""
    o_ref = rest[n_res]
    acc_ref = rest[n_res + 1]
    k = pl.program_id(2)

    @pl.when(k == 0)
    def _():
        acc_ref[...] = jnp.zeros_like(acc_ref)

    a = a_ref[...]
    if relu_in:                      # relu commutes with im2col (zero pad -> 0)
        a = jnp.maximum(a, 0)
    acc_ref[...] += jnp.dot(a, b_ref[...], preferred_element_type=jnp.float32)

    @pl.when(k == pl.num_programs(2) - 1)
    def _():
        acc = acc_ref[...] + bias_ref[...]
        if relu_out:
            acc = jnp.maximum(acc, 0.0)
        for r in rest[:n_res]:       # fused skip connections
            acc = acc + r[...].astype(jnp.float32)
        if l2norm:
            # Padded N columns of B / bias are exact zeros -> norm unaffected.
            ssq = jnp.sum(acc * acc, axis=-1, keepdims=True)
            acc = acc * jax.lax.rsqrt(ssq)   # matches x / x.norm() (no eps)
        o_ref[...] = acc.astype(o_ref.dtype)


def _bmm_kernel(a_ref, x_ref, o_ref, *, nb):
    """o[b] = A @ x[b] for a small static block of batch rows."""
    a = a_ref[...]
    for b in range(nb):
        o_ref[b] = jnp.dot(a, x_ref[b],
                           preferred_element_type=jnp.float32).astype(o_ref.dtype)


# ---------------------------------------------------------------------------
# Pallas wrappers
# ---------------------------------------------------------------------------
def pallas_matmul(a, b, bias=None, *, relu_in=False, relu_out=False,
                  residuals=(), l2norm=False, out_dtype=jnp.float32):
    """a:(M,K) @ b:(K,N) + bias, with fused elementwise epilogues.

    Grid (M-tiles, N-tiles, K-tiles).  M/N use cdiv tiling (ragged edge blocks,
    masked stores -> no M pad / output slice).  K blocks tile the (zero-padded)
    K exactly so no OOB garbage ever reaches the accumulator."""
    M, K = a.shape
    K2, N = b.shape
    assert K == K2, (K, K2)

    if M < _TINY_M:                 # launch/step overhead dominates: XLA path
        af = a.astype(jnp.float32)
        if relu_in:
            af = jnp.maximum(af, 0.0)
        out = af @ b.astype(jnp.float32)
        if bias is not None:
            out = out + bias.astype(jnp.float32)
        if relu_out:
            out = jnp.maximum(out, 0.0)
        for r in residuals:
            out = out + r.astype(jnp.float32)
        if l2norm:
            out = out * jax.lax.rsqrt(jnp.sum(out * out, -1, keepdims=True))
        return out.astype(out_dtype)

    # --- K blocking (must divide exactly: accumulator correctness) ---
    if K % _LANE == 0:
        Kp = K
    elif K <= 1024:
        Kp = K                       # single full-K block (block == array dim)
    else:
        Kp = _round_up(K, _LANE)
        a = _pad_to(a, (M, Kp))      # explicit zero pad -> contributes 0
    bk = _pick_divisor_tile(Kp, 1024) if Kp % _LANE == 0 else Kp
    gk = Kp // bk

    # --- N blocking (lane-dense, cdiv/ragged) ---
    Np = _round_up(N, _LANE)
    bn = Np if l2norm else min(Np, 512)
    gn = _cdiv(Np, bn)

    # --- M blocking (bf16-friendly multiples of 16, up to 512 rows) ---
    bm = min(512, _round_up(M, 16))
    gm = _cdiv(M, bm)
    if gm * gn == 1 and M > 16:
        # keep >=2 blocks on a parallel axis (v7x has 2 TensorCores per chip)
        bm = _round_up(_cdiv(M, 2), 16)
        gm = _cdiv(M, bm)

    a_p = a if a.dtype == _MM_IN_DTYPE else a.astype(_MM_IN_DTYPE)
    # zero K pad (correctness) and zero N pad (needed by the l2norm epilogue)
    b_p = _pad_to(b.astype(_MM_IN_DTYPE), (Kp, Np))
    if bias is None:
        bias_p = jnp.zeros((1, Np), jnp.float32)
    else:
        bias_p = _pad_to(bias.astype(jnp.float32).reshape(1, N), (1, Np))

    kernel = functools.partial(_mm_kernel, n_res=len(residuals),
                               relu_in=relu_in, relu_out=relu_out, l2norm=l2norm)
    return pl.pallas_call(
        kernel,
        out_shape=jax.ShapeDtypeStruct((M, N), out_dtype),
        grid=(gm, gn, gk),
        in_specs=[
            pl.BlockSpec((bm, bk), lambda i, j, k: (i, k)),
            pl.BlockSpec((bk, bn), lambda i, j, k: (k, j)),
            pl.BlockSpec((1, bn), lambda i, j, k: (0, j)),
        ] + [pl.BlockSpec((bm, bn), lambda i, j, k: (i, j)) for _ in residuals],
        out_specs=pl.BlockSpec((bm, bn), lambda i, j, k: (i, j)),
        scratch_shapes=[pltpu.VMEM((bm, bn), jnp.float32)],
        compiler_params=pltpu.CompilerParams(
            dimension_semantics=("parallel", "parallel", "arbitrary"),
            vmem_limit_bytes=_VMEM_LIMIT),
    )(a_p, b_p, bias_p, *residuals)


def pallas_bmatmul_left(A, X, out_dtype=jnp.float32):
    """out[n] = A @ X[n];  A:(Mo,K), X:(B,K,C) -> (B,Mo,C).

    C stays on the lane axis (lane-dense stores); batch rows are processed in
    small static blocks inside the kernel.  Operands run in bf16."""
    Mo, K = A.shape
    B, K2, C = X.shape
    assert K == K2
    K8 = _round_up(K, 8)
    Cp = _round_up(C, _LANE)
    bc = min(Cp, 512)
    bb = min(B, 4)
    gb, gc = _cdiv(B, bb), _cdiv(Cp, bc)
    if gb * gc == 1:                 # keep >=2 parallel blocks when possible
        if bb > 1:
            bb = _cdiv(bb, 2)
            gb = _cdiv(B, bb)
        elif bc > _LANE:
            bc //= 2
            gc = _cdiv(Cp, bc)

    A_p = _pad_to(A, (Mo, K8)).astype(_MM_IN_DTYPE)
    X_p = _pad_to(X.astype(_MM_IN_DTYPE), (B, K8, C))   # zero K pad only

    return pl.pallas_call(
        functools.partial(_bmm_kernel, nb=bb),
        out_shape=jax.ShapeDtypeStruct((B, Mo, C), out_dtype),
        grid=(gb, gc),
        in_specs=[
            pl.BlockSpec((Mo, K8), lambda i, j: (0, 0)),
            pl.BlockSpec((bb, K8, bc), lambda i, j: (i, 0, j)),
        ],
        out_specs=pl.BlockSpec((bb, Mo, bc), lambda i, j: (i, 0, j)),
        compiler_params=pltpu.CompilerParams(
            dimension_semantics=("parallel", "parallel"),
            vmem_limit_bytes=_VMEM_LIMIT),
    )(A_p, X_p)


# ---------------------------------------------------------------------------
# Conv / upsample building blocks
# ---------------------------------------------------------------------------
def conv2d(x, w, b=None, *, stride=1, pad=0, relu_in=False, relu_out=False,
           residuals=(), l2norm=False, out_dtype=_ACT_DTYPE):
    """x:(N,H,W,Cin) NHWC; w:(kh,kw,Cin,Cout) HWIO; b:(Cout,)|None.

    1x1 convs are a pure reshape + matmul; kxk convs build a bf16, lane-aligned
    im2col (zero K pad folded into the concat) + one fused K-tiled matmul."""
    N, H, W, C = x.shape
    kh, kw, _, Cout = w.shape
    Ho = (H + 2 * pad - kh) // stride + 1
    Wo = (W + 2 * pad - kw) // stride + 1
    M = N * Ho * Wo

    xb = x if x.dtype == _MM_IN_DTYPE else x.astype(_MM_IN_DTYPE)
    if kh == 1 and kw == 1 and stride == 1 and pad == 0:
        patches = xb.reshape(M, C)
        wf = w.reshape(C, Cout)
    else:
        xp = jnp.pad(xb, ((0, 0), (pad, pad), (pad, pad), (0, 0))) if pad else xb
        cols = [xp[:, i:i + stride * Ho:stride, j:j + stride * Wo:stride, :]
                for i in range(kh) for j in range(kw)]
        K = kh * kw * C
        Kp = _round_up(K, _LANE)
        if Kp > K:   # fold the lane-alignment zero pad into the im2col concat
            cols.append(jnp.zeros((N, Ho, Wo, Kp - K), xb.dtype))
        patches = jnp.concatenate(cols, axis=-1).reshape(M, Kp)
        wf = w.reshape(K, Cout)
        if Kp > K:
            wf = jnp.pad(wf, ((0, Kp - K), (0, 0)))

    res2 = tuple(r.reshape(M, Cout) for r in residuals)
    out = pallas_matmul(patches, wf, b, relu_in=relu_in, relu_out=relu_out,
                        residuals=res2, l2norm=l2norm, out_dtype=out_dtype)
    return out.reshape(N, Ho, Wo, Cout)


def _interp_matrix(n_in, n_out):
    """1D linear interpolation matrix, align_corners=True semantics."""
    if n_in == 1:
        return jnp.ones((n_out, 1), jnp.float32)
    src = np.arange(n_out, dtype=np.float64) * (n_in - 1) / (n_out - 1)
    lo = np.clip(np.floor(src).astype(np.int64), 0, n_in - 2)
    frac = (src - lo).astype(np.float32)
    A = np.zeros((n_out, n_in), dtype=np.float32)
    A[np.arange(n_out), lo] += 1.0 - frac
    A[np.arange(n_out), lo + 1] += frac
    return jnp.asarray(A)


def upsample2x_bilinear_ac(x, out_dtype=_ACT_DTYPE):
    """(N,H,W,C) -> (N,2H,2W,C); bilinear, align_corners=True.

    Separable interpolation as two batched Pallas matmuls with NO transposes:
    the H pass contracts H with W*C lanes; the W pass contracts W with C lanes
    on a contiguous reshaped view of the intermediate."""
    N, H, W, C = x.shape
    Ah = _interp_matrix(H, 2 * H)
    Aw = _interp_matrix(W, 2 * W)
    if H * W < _TINY_HW:             # tiny pyramid levels: overhead-dominated
        y = jnp.einsum('oh,nhwc->nowc', Ah, x.astype(jnp.float32))
        y = jnp.einsum('ow,nhwc->nhoc', Aw, y)
        return y.astype(out_dtype)
    y = pallas_bmatmul_left(Ah, x.reshape(N, H, W * C), out_dtype=_ACT_DTYPE)
    y = y.reshape(N * 2 * H, W, C)
    z = pallas_bmatmul_left(Aw, y, out_dtype=out_dtype)
    return z.reshape(N, 2 * H, 2 * W, C)


# ---------------------------------------------------------------------------
# Network pieces: ResidualConvUnit_custom / FeatureFusionBlock_custom
# ---------------------------------------------------------------------------
def residual_conv_unit(x, p, extra_residuals=()):
    """bn2(conv2(relu(bn1(conv1(relu(x)))))) + x (+ extra fused skip tensors).

    BN folded into weights (eval default stats); leading relu, mid relu and
    all skip adds fused into the two conv matmul kernels."""
    h = conv2d(x, p["w1"] * _BN_SCALE, None, stride=1, pad=1,
               relu_in=True, relu_out=True)
    return conv2d(h, p["w2"] * _BN_SCALE, None, stride=1, pad=1,
                  residuals=(x,) + tuple(extra_residuals))


def feature_fusion_block(p, x0, x1=None):
    # output = rcu2(x0 + rcu1(x1)); 1x1 out_conv; x2 bilinear upsample.
    # out_conv (1x1, bias) commutes exactly with align_corners bilinear interp
    # (interp weights sum to 1), so it runs BEFORE the upsample: 4x fewer
    # pixels for its MACs and HBM traffic.
    if x1 is not None:
        out = residual_conv_unit(x1, p["rcu1"], extra_residuals=(x0,))
    else:
        out = x0
    out = residual_conv_unit(out, p["rcu2"])
    out = conv2d(out, p["out_w"], p["out_b"])
    return upsample2x_bilinear_ac(out)


# ---------------------------------------------------------------------------
# Parameters (deterministic synthetic init)
# ---------------------------------------------------------------------------
def init_params(key, in_ch=3, feat=32, out_c=512, bb_ch=(16, 24, 32, 40)):
    keys = iter(jax.random.split(key, 128))

    def rnd(shape, scale=0.05):
        return jax.random.normal(next(keys), shape, jnp.float32) * scale

    def rcu():
        return {"w1": rnd((3, 3, feat, feat)), "w2": rnd((3, 3, feat, feat))}

    def ffb():
        return {
            "rcu1": rcu(),
            "rcu2": rcu(),
            "out_w": rnd((1, 1, feat, feat)),
            "out_b": rnd((feat,), 0.01),
        }

    c1, c2, c3, c4 = bb_ch
    return {
        # synthetic "pretrained" backbone layers (multi-scale pyramid)
        "bb1_w": rnd((3, 3, in_ch, c1)), "bb1_b": rnd((c1,), 0.01),
        "bb2_w": rnd((3, 3, c1, c2)),    "bb2_b": rnd((c2,), 0.01),
        "bb3_w": rnd((3, 3, c2, c3)),    "bb3_b": rnd((c3,), 0.01),
        "bb4_w": rnd((3, 3, c3, c4)),    "bb4_b": rnd((c4,), 0.01),
        # scratch.layerN_rn : 3x3 conv, bias=False
        "rn1_w": rnd((3, 3, c1, feat)),
        "rn2_w": rnd((3, 3, c2, feat)),
        "rn3_w": rnd((3, 3, c3, feat)),
        "rn4_w": rnd((3, 3, c4, feat)),
        # refinenets
        "ref1": ffb(), "ref2": ffb(), "ref3": ffb(), "ref4": ffb(),
        # scratch.head1 : 1x1 conv feat -> out_c
        "head_w": rnd((1, 1, feat, out_c)),
        "head_b": rnd((out_c,), 0.01),
    }


# ---------------------------------------------------------------------------
# Full forward (mirrors LSegNetZS.forward)
# ---------------------------------------------------------------------------
def lseg_forward(params, x_nchw):
    x = jnp.transpose(x_nchw, (0, 2, 3, 1))                     # NCHW -> NHWC

    # TODO(synk): real CLIP/ViT backbone is external; modeled as strided convs.
    layer_1 = conv2d(x, params["bb1_w"], params["bb1_b"], stride=4, pad=1)
    layer_2 = conv2d(layer_1, params["bb2_w"], params["bb2_b"], stride=2, pad=1)
    layer_3 = conv2d(layer_2, params["bb3_w"], params["bb3_b"], stride=2, pad=1)
    layer_4 = conv2d(layer_3, params["bb4_w"], params["bb4_b"], stride=2, pad=1)

    layer_1_rn = conv2d(layer_1, params["rn1_w"], None, stride=1, pad=1)
    layer_2_rn = conv2d(layer_2, params["rn2_w"], None, stride=1, pad=1)
    layer_3_rn = conv2d(layer_3, params["rn3_w"], None, stride=1, pad=1)
    layer_4_rn = conv2d(layer_4, params["rn4_w"], None, stride=1, pad=1)

    path_4 = feature_fusion_block(params["ref4"], layer_4_rn)
    path_3 = feature_fusion_block(params["ref3"], path_4, layer_3_rn)
    path_2 = feature_fusion_block(params["ref2"], path_3, layer_2_rn)
    path_1 = feature_fusion_block(params["ref1"], path_2, layer_1_rn)

    # scratch.head1 (1x1 conv) with the per-pixel L2 normalization fused as a
    # kernel epilogue (x / ||x||, no eps -- matches the PyTorch reference).
    image_features = conv2d(path_1, params["head_w"], params["head_b"],
                            l2norm=True, out_dtype=jnp.float32)

    # scratch.output_conv : x2 bilinear upsample (align_corners=True)
    image_features = upsample2x_bilinear_ac(image_features, out_dtype=jnp.float32)
    return jnp.transpose(image_features, (0, 3, 1, 2))          # NHWC -> NCHW


# ---------------------------------------------------------------------------
if __name__ == "__main__":
    key = jax.random.PRNGKey(0)
    pkey, xkey = jax.random.split(key)

    OUT_C = 512     # default backbone (clip_vitl16_384) -> out_c = 512
    FEAT = 32       # small synthetic stand-in for features=256

    params = init_params(pkey, in_ch=3, feat=FEAT, out_c=OUT_C)
    x = jax.random.normal(xkey, (2, 3, 32, 32), jnp.float32)    # NCHW input

    fwd = jax.jit(lseg_forward)
    out = fwd(params, x)
    jax.block_until_ready(out)

    assert out.shape == (2, OUT_C, 32, 32), out.shape
    assert out.dtype == jnp.float32
    assert bool(jnp.isfinite(out).all())
    print("KERNEL_OK")
</pallas_src>

<mosaic_0001>
module attributes {stable_mosaic.version = 11 : i64} {
  func.func @_mm_kernel(%arg0: i32, %arg1: i32, %arg2: i32, %arg3: memref<64x128xbf16, #tpu.memory_space<vmem>>, %arg4: memref<128x128xbf16, #tpu.memory_space<vmem>>, %arg5: memref<1x128xf32, #tpu.memory_space<vmem>>, %arg6: memref<64x128xbf16, #tpu.memory_space<vmem>>, %arg7: memref<64x128xf32, #tpu.memory_space<vmem>>) attributes {dimension_semantics = [#tpu.dimension_semantics<parallel>, #tpu.dimension_semantics<parallel>, #tpu.dimension_semantics<arbitrary>], iteration_bounds = array<i64: 2, 1, 1>, scalar_prefetch = 0 : i64, scratch_operands = 1 : i64, tpu.core_type = #tpu.core_type<tc>, window_params = [{transform_indices = @transform_0, window_bounds = array<i64: 64, 128>}, {transform_indices = @transform_1, window_bounds = array<i64: 128, 128>}, {transform_indices = @transform_2, window_bounds = array<i64: 1, 128>}, {transform_indices = @transform_3, window_bounds = array<i64: 64, 128>}]} {
    %c0_i32 = arith.constant 0 : i32
    %0 = arith.cmpi eq, %arg2, %c0_i32 : i32
    %1 = arith.extui %0 : i1 to i32
    %c0_i32_0 = arith.constant 0 : i32
    %2 = arith.cmpi ne, %1, %c0_i32_0 : i32
    scf.if %2 {
      %cst_10 = arith.constant 0.000000e+00 : f32
      %12 = vector.broadcast %cst_10 : f32 to vector<64x128xf32>
      %c0_11 = arith.constant 0 : index
      %c0_12 = arith.constant 0 : index
      %13 = vector.load %arg7[%c0_11, %c0_12] : memref<64x128xf32, #tpu.memory_space<vmem>>, vector<64x128xf32>
      tpu.vector_store %arg7[%c0_11, %c0_12], %12 {strides = array<i32>} : memref<64x128xf32, #tpu.memory_space<vmem>>, vector<64x128xf32>,
    } else {
    }
    %c0 = arith.constant 0 : index
    %c0_1 = arith.constant 0 : index
    %3 = vector.load %arg3[%c0, %c0_1] : memref<64x128xbf16, #tpu.memory_space<vmem>>, vector<64x128xbf16>
    %c0_2 = arith.constant 0 : index
    %c0_3 = arith.constant 0 : index
    %4 = vector.load %arg7[%c0_2, %c0_3] : memref<64x128xf32, #tpu.memory_space<vmem>>, vector<64x128xf32>
    %c0_4 = arith.constant 0 : index
    %c0_5 = arith.constant 0 : index
    %5 = vector.load %arg4[%c0_4, %c0_5] : memref<128x128xbf16, #tpu.memory_space<vmem>>, vector<128x128xbf16>
    %cst = arith.constant dense<0.000000e+00> : vector<64x128xf32>
    %6 = tpu.matmul %3, %5, %cst {dimension_numbers = #tpu.dot_dimension_numbers<[1], [0], [0], [1], [0, 0, 1, 1], [], []>} : vector<64x128xbf16>, vector<128x128xbf16>, vector<64x128xf32> -> vector<64x128xf32>
    %7 = arith.addf %4, %6 : vector<64x128xf32>
    %c0_6 = arith.constant 0 : index
    %c0_7 = arith.constant 0 : index
    %8 = vector.load %arg7[%c0_6, %c0_7] : memref<64x128xf32, #tpu.memory_space<vmem>>, vector<64x128xf32>
    tpu.vector_store %arg7[%c0_6, %c0_7], %7 {strides = array<i32>} : memref<64x128xf32, #tpu.memory_space<vmem>>, vector<64x128xf32>,
    %c0_i32_8 = arith.constant 0 : i32
    %9 = arith.cmpi eq, %arg2, %c0_i32_8 : i32
    %10 = arith.extui %9 : i1 to i32
    %c0_i32_9 = arith.constant 0 : i32
    %11 = arith.cmpi ne, %10, %c0_i32_9 : i32
    scf.if %11 {
      %c0_10 = arith.constant 0 : index
      %c0_11 = arith.constant 0 : index
      %12 = vector.load %arg7[%c0_10, %c0_11] : memref<64x128xf32, #tpu.memory_space<vmem>>, vector<64x128xf32>
      %c0_12 = arith.constant 0 : index
      %c0_13 = arith.constant 0 : index
      %13 = vector.load %arg5[%c0_12, %c0_13] : memref<1x128xf32, #tpu.memory_space<vmem>>, vector<1x128xf32>
      %14 = vector.broadcast %13 : vector<1x128xf32> to vector<64x128xf32>
      %15 = arith.addf %12, %14 : vector<64x128xf32>
      %16 = arith.truncf %15 : vector<64x128xf32> to vector<64x128xbf16>
      %c0_14 = arith.constant 0 : index
      %c0_15 = arith.constant 0 : index
      %17 = vector.load %arg6[%c0_14, %c0_15] : memref<64x128xbf16, #tpu.memory_space<vmem>>, vector<64x128xbf16>
      tpu.vector_store %arg6[%c0_14, %c0_15], %16 {strides = array<i32>} : memref<64x128xbf16, #tpu.memory_space<vmem>>, vector<64x128xbf16>,
    } else {
    }
    return
  }
  func.func @transform_0(%arg0: i32, %arg1: i32, %arg2: i32) -> (i32, i32) {
    %c0_i32 = arith.constant 0 : i32
    return %arg0, %arg2 : i32, i32
  }
  func.func @transform_1(%arg0: i32, %arg1: i32, %arg2: i32) -> (i32, i32) {
    %c0_i32 = arith.constant 0 : i32
    return %arg2, %arg1 : i32, i32
  }
  func.func @transform_2(%arg0: i32, %arg1: i32, %arg2: i32) -> (i32, i32) {
    %c0_i32 = arith.constant 0 : i32
    %c0_i32_0 = arith.constant 0 : i32
    return %c0_i32, %arg1 : i32, i32
  }
  func.func @transform_3(%arg0: i32, %arg1: i32, %arg2: i32) -> (i32, i32) {
    %c0_i32 = arith.constant 0 : i32
    return %arg0, %arg1 : i32, i32
  }
}

module attributes {stable_mosaic.version = 11 : i64} {
  func.func @_mm_kernel(%arg0: i32, %arg1: i32, %arg2: i32, %arg3: memref<16x256xbf16, #tpu.memory_space<vmem>>, %arg4: memref<256x128xbf16, #tpu.memory_space<vmem>>, %arg5: memref<1x128xf32, #tpu.memory_space<vmem>>, %arg6: memref<16x128xbf16, #tpu.memory_space<vmem>>, %arg7: memref<16x128xf32, #tpu.memory_space<vmem>>) attributes {dimension_semantics = [#tpu.dimension_semantics<parallel>, #tpu.dimension_semantics<parallel>, #tpu.dimension_semantics<arbitrary>], iteration_bounds = array<i64: 2, 1, 1>, scalar_prefetch = 0 : i64, scratch_operands = 1 : i64, tpu.core_type = #tpu.core_type<tc>, window_params = [{transform_indices = @transform_0, window_bounds = array<i64: 16, 256>}, {transform_indices = @transform_1, window_bounds = array<i64: 256, 128>}, {transform_indices = @transform_2, window_bounds = array<i64: 1, 128>}, {transform_indices = @transform_3, window_bounds = array<i64: 16, 128>}]} {
    %c0_i32 = arith.constant 0 : i32
    %0 = arith.cmpi eq, %arg2, %c0_i32 : i32
    %1 = arith.extui %0 : i1 to i32
    %c0_i32_0 = arith.constant 0 : i32
    %2 = arith.cmpi ne, %1, %c0_i32_0 : i32
    scf.if %2 {
      %cst_10 = arith.constant 0.000000e+00 : f32
      %12 = vector.broadcast %cst_10 : f32 to vector<16x128xf32>
      %c0_11 = arith.constant 0 : index
      %c0_12 = arith.constant 0 : index
      %13 = vector.load %arg7[%c0_11, %c0_12] : memref<16x128xf32, #tpu.memory_space<vmem>>, vector<16x128xf32>
      tpu.vector_store %arg7[%c0_11, %c0_12], %12 {strides = array<i32>} : memref<16x128xf32, #tpu.memory_space<vmem>>, vector<16x128xf32>,
    } else {
    }
    %c0 = arith.constant 0 : index
    %c0_1 = arith.constant 0 : index
    %3 = vector.load %arg3[%c0, %c0_1] : memref<16x256xbf16, #tpu.memory_space<vmem>>, vector<16x256xbf16>
    %c0_2 = arith.constant 0 : index
    %c0_3 = arith.constant 0 : index
    %4 = vector.load %arg7[%c0_2, %c0_3] : memref<16x128xf32, #tpu.memory_space<vmem>>, vector<16x128xf32>
    %c0_4 = arith.constant 0 : index
    %c0_5 = arith.constant 0 : index
    %5 = vector.load %arg4[%c0_4, %c0_5] : memref<256x128xbf16, #tpu.memory_space<vmem>>, vector<256x128xbf16>
    %cst = arith.constant dense<0.000000e+00> : vector<16x128xf32>
    %6 = tpu.matmul %3, %5, %cst {dimension_numbers = #tpu.dot_dimension_numbers<[1], [0], [0], [1], [0, 0, 1, 1], [], []>} : vector<16x256xbf16>, vector<256x128xbf16>, vector<16x128xf32> -> vector<16x128xf32>
    %7 = arith.addf %4, %6 : vector<16x128xf32>
    %c0_6 = arith.constant 0 : index
    %c0_7 = arith.constant 0 : index
    %8 = vector.load %arg7[%c0_6, %c0_7] : memref<16x128xf32, #tpu.memory_space<vmem>>, vector<16x128xf32>
    tpu.vector_store %arg7[%c0_6, %c0_7], %7 {strides = array<i32>} : memref<16x128xf32, #tpu.memory_space<vmem>>, vector<16x128xf32>,
    %c0_i32_8 = arith.constant 0 : i32
    %9 = arith.cmpi eq, %arg2, %c0_i32_8 : i32
    %10 = arith.extui %9 : i1 to i32
    %c0_i32_9 = arith.constant 0 : i32
    %11 = arith.cmpi ne, %10, %c0_i32_9 : i32
    scf.if %11 {
      %c0_10 = arith.constant 0 : index
      %c0_11 = arith.constant 0 : index
      %12 = vector.load %arg7[%c0_10, %c0_11] : memref<16x128xf32, #tpu.memory_space<vmem>>, vector<16x128xf32>
      %c0_12 = arith.constant 0 : index
      %c0_13 = arith.constant 0 : index
      %13 = vector.load %arg5[%c0_12, %c0_13] : memref<1x128xf32, #tpu.memory_space<vmem>>, vector<1x128xf32>
      %14 = vector.broadcast %13 : vector<1x128xf32> to vector<16x128xf32>
      %15 = arith.addf %12, %14 : vector<16x128xf32>
      %16 = arith.truncf %15 : vector<16x128xf32> to vector<16x128xbf16>
      %c0_14 = arith.constant 0 : index
      %c0_15 = arith.constant 0 : index
      %17 = vector.load %arg6[%c0_14, %c0_15] : memref<16x128xbf16, #tpu.memory_space<vmem>>, vector<16x128xbf16>
      tpu.vector_store %arg6[%c0_14, %c0_15], %16 {strides = array<i32>} : memref<16x128xbf16, #tpu.memory_space<vmem>>, vector<16x128xbf16>,
    } else {
    }
    return
  }
  func.func @transform_0(%arg0: i32, %arg1: i32, %arg2: i32) -> (i32, i32) {
    %c0_i32 = arith.constant 0 : i32
    return %arg0, %arg2 : i32, i32
  }
  func.func @transform_1(%arg0: i32, %arg1: i32, %arg2: i32) -> (i32, i32) {
    %c0_i32 = arith.constant 0 : i32
    return %arg2, %arg1 : i32, i32
  }
  func.func @transform_2(%arg0: i32, %arg1: i32, %arg2: i32) -> (i32, i32) {
    %c0_i32 = arith.constant 0 : i32
    %c0_i32_0 = arith.constant 0 : i32
    return %c0_i32, %arg1 : i32, i32
  }
  func.func @transform_3(%arg0: i32, %arg1: i32, %arg2: i32) -> (i32, i32) {
    %c0_i32 = arith.constant 0 : i32
    return %arg0, %arg1 : i32, i32
  }
}

module attributes {stable_mosaic.version = 11 : i64} {
  func.func @_mm_kernel(%arg0: i32, %arg1: i32, %arg2: i32, %arg3: memref<16x256xbf16, #tpu.memory_space<vmem>>, %arg4: memref<256x128xbf16, #tpu.memory_space<vmem>>, %arg5: memref<1x128xf32, #tpu.memory_space<vmem>>, %arg6: memref<16x128xbf16, #tpu.memory_space<vmem>>, %arg7: memref<16x128xf32, #tpu.memory_space<vmem>>) attributes {dimension_semantics = [#tpu.dimension_semantics<parallel>, #tpu.dimension_semantics<parallel>, #tpu.dimension_semantics<arbitrary>], iteration_bounds = array<i64: 2, 1, 1>, scalar_prefetch = 0 : i64, scratch_operands = 1 : i64, tpu.core_type = #tpu.core_type<tc>, window_params = [{transform_indices = @transform_0, window_bounds = array<i64: 16, 256>}, {transform_indices = @transform_1, window_bounds = array<i64: 256, 128>}, {transform_indices = @transform_2, window_bounds = array<i64: 1, 128>}, {transform_indices = @transform_3, window_bounds = array<i64: 16, 128>}]} {
    %c0_i32 = arith.constant 0 : i32
    %0 = arith.cmpi eq, %arg2, %c0_i32 : i32
    %1 = arith.extui %0 : i1 to i32
    %c0_i32_0 = arith.constant 0 : i32
    %2 = arith.cmpi ne, %1, %c0_i32_0 : i32
    scf.if %2 {
      %cst_10 = arith.constant 0.000000e+00 : f32
      %12 = vector.broadcast %cst_10 : f32 to vector<16x128xf32>
      %c0_11 = arith.constant 0 : index
      %c0_12 = arith.constant 0 : index
      %13 = vector.load %arg7[%c0_11, %c0_12] : memref<16x128xf32, #tpu.memory_space<vmem>>, vector<16x128xf32>
      tpu.vector_store %arg7[%c0_11, %c0_12], %12 {strides = array<i32>} : memref<16x128xf32, #tpu.memory_space<vmem>>, vector<16x128xf32>,
    } else {
    }
    %c0 = arith.constant 0 : index
    %c0_1 = arith.constant 0 : index
    %3 = vector.load %arg3[%c0, %c0_1] : memref<16x256xbf16, #tpu.memory_space<vmem>>, vector<16x256xbf16>
    %c0_2 = arith.constant 0 : index
    %c0_3 = arith.constant 0 : index
    %4 = vector.load %arg7[%c0_2, %c0_3] : memref<16x128xf32, #tpu.memory_space<vmem>>, vector<16x128xf32>
    %c0_4 = arith.constant 0 : index
    %c0_5 = arith.constant 0 : index
    %5 = vector.load %arg4[%c0_4, %c0_5] : memref<256x128xbf16, #tpu.memory_space<vmem>>, vector<256x128xbf16>
    %cst = arith.constant dense<0.000000e+00> : vector<16x128xf32>
    %6 = tpu.matmul %3, %5, %cst {dimension_numbers = #tpu.dot_dimension_numbers<[1], [0], [0], [1], [0, 0, 1, 1], [], []>} : vector<16x256xbf16>, vector<256x128xbf16>, vector<16x128xf32> -> vector<16x128xf32>
    %7 = arith.addf %4, %6 : vector<16x128xf32>
    %c0_6 = arith.constant 0 : index
    %c0_7 = arith.constant 0 : index
    %8 = vector.load %arg7[%c0_6, %c0_7] : memref<16x128xf32, #tpu.memory_space<vmem>>, vector<16x128xf32>
    tpu.vector_store %arg7[%c0_6, %c0_7], %7 {strides = array<i32>} : memref<16x128xf32, #tpu.memory_space<vmem>>, vector<16x128xf32>,
    %c0_i32_8 = arith.constant 0 : i32
    %9 = arith.cmpi eq, %arg2, %c0_i32_8 : i32
    %10 = arith.extui %9 : i1 to i32
    %c0_i32_9 = arith.constant 0 : i32
    %11 = arith.cmpi ne, %10, %c0_i32_9 : i32
    scf.if %11 {
      %c0_10 = arith.constant 0 : index
      %c0_11 = arith.constant 0 : index
      %12 = vector.load %arg7[%c0_10, %c0_11] : memref<16x128xf32, #tpu.memory_space<vmem>>, vector<16x128xf32>
      %c0_12 = arith.constant 0 : index
      %c0_13 = arith.constant 0 : index
      %13 = vector.load %arg5[%c0_12, %c0_13] : memref<1x128xf32, #tpu.memory_space<vmem>>, vector<1x128xf32>
      %14 = vector.broadcast %13 : vector<1x128xf32> to vector<16x128xf32>
      %15 = arith.addf %12, %14 : vector<16x128xf32>
      %16 = arith.truncf %15 : vector<16x128xf32> to vector<16x128xbf16>
      %c0_14 = arith.constant 0 : index
      %c0_15 = arith.constant 0 : index
      %17 = vector.load %arg6[%c0_14, %c0_15] : memref<16x128xbf16, #tpu.memory_space<vmem>>, vector<16x128xbf16>
      tpu.vector_store %arg6[%c0_14, %c0_15], %16 {strides = array<i32>} : memref<16x128xbf16, #tpu.memory_space<vmem>>, vector<16x128xbf16>,
    } else {
    }
    return
  }
  func.func @transform_0(%arg0: i32, %arg1: i32, %arg2: i32) -> (i32, i32) {
    %c0_i32 = arith.constant 0 : i32
    return %arg0, %arg2 : i32, i32
  }
  func.func @transform_1(%arg0: i32, %arg1: i32, %arg2: i32) -> (i32, i32) {
    %c0_i32 = arith.constant 0 : i32
    return %arg2, %arg1 : i32, i32
  }
  func.func @transform_2(%arg0: i32, %arg1: i32, %arg2: i32) -> (i32, i32) {
    %c0_i32 = arith.constant 0 : i32
    %c0_i32_0 = arith.constant 0 : i32
    return %c0_i32, %arg1 : i32, i32
  }
  func.func @transform_3(%arg0: i32, %arg1: i32, %arg2: i32) -> (i32, i32) {
    %c0_i32 = arith.constant 0 : i32
    return %arg0, %arg1 : i32, i32
  }
}

module attributes {stable_mosaic.version = 11 : i64} {
  func.func @_mm_kernel(%arg0: i32, %arg1: i32, %arg2: i32, %arg3: memref<16x384xbf16, #tpu.memory_space<vmem>>, %arg4: memref<384x128xbf16, #tpu.memory_space<vmem>>, %arg5: memref<1x128xf32, #tpu.memory_space<vmem>>, %arg6: memref<16x128xbf16, #tpu.memory_space<vmem>>, %arg7: memref<16x128xf32, #tpu.memory_space<vmem>>) attributes {dimension_semantics = [#tpu.dimension_semantics<parallel>, #tpu.dimension_semantics<parallel>, #tpu.dimension_semantics<arbitrary>], iteration_bounds = array<i64: 2, 1, 1>, scalar_prefetch = 0 : i64, scratch_operands = 1 : i64, tpu.core_type = #tpu.core_type<tc>, window_params = [{transform_indices = @transform_0, window_bounds = array<i64: 16, 384>}, {transform_indices = @transform_1, window_bounds = array<i64: 384, 128>}, {transform_indices = @transform_2, window_bounds = array<i64: 1, 128>}, {transform_indices = @transform_3, window_bounds = array<i64: 16, 128>}]} {
    %c0_i32 = arith.constant 0 : i32
    %0 = arith.cmpi eq, %arg2, %c0_i32 : i32
    %1 = arith.extui %0 : i1 to i32
    %c0_i32_0 = arith.constant 0 : i32
    %2 = arith.cmpi ne, %1, %c0_i32_0 : i32
    scf.if %2 {
      %cst_11 = arith.constant 0.000000e+00 : f32
      %14 = vector.broadcast %cst_11 : f32 to vector<16x128xf32>
      %c0_12 = arith.constant 0 : index
      %c0_13 = arith.constant 0 : index
      %15 = vector.load %arg7[%c0_12, %c0_13] : memref<16x128xf32, #tpu.memory_space<vmem>>, vector<16x128xf32>
      tpu.vector_store %arg7[%c0_12, %c0_13], %14 {strides = array<i32>} : memref<16x128xf32, #tpu.memory_space<vmem>>, vector<16x128xf32>,
    } else {
    }
    %c0 = arith.constant 0 : index
    %c0_1 = arith.constant 0 : index
    %3 = vector.load %arg3[%c0, %c0_1] : memref<16x384xbf16, #tpu.memory_space<vmem>>, vector<16x384xbf16>
    %cst = arith.constant 0.000000e+00 : bf16
    %4 = vector.broadcast %cst : bf16 to vector<16x384xbf16>
    %5 = arith.maximumf %3, %4 : vector<16x384xbf16>
    %c0_2 = arith.constant 0 : index
    %c0_3 = arith.constant 0 : index
    %6 = vector.load %arg7[%c0_2, %c0_3] : memref<16x128xf32, #tpu.memory_space<vmem>>, vector<16x128xf32>
    %c0_4 = arith.constant 0 : index
    %c0_5 = arith.constant 0 : index
    %7 = vector.load %arg4[%c0_4, %c0_5] : memref<384x128xbf16, #tpu.memory_space<vmem>>, vector<384x128xbf16>
    %cst_6 = arith.constant dense<0.000000e+00> : vector<16x128xf32>
    %8 = tpu.matmul %5, %7, %cst_6 {dimension_numbers = #tpu.dot_dimension_numbers<[1], [0], [0], [1], [0, 0, 1, 1], [], []>} : vector<16x384xbf16>, vector<384x128xbf16>, vector<16x128xf32> -> vector<16x128xf32>
    %9 = arith.addf %6, %8 : vector<16x128xf32>
    %c0_7 = arith.constant 0 : index
    %c0_8 = arith.constant 0 : index
    %10 = vector.load %arg7[%c0_7, %c0_8] : memref<16x128xf32, #tpu.memory_space<vmem>>, vector<16x128xf32>
    tpu.vector_store %arg7[%c0_7, %c0_8], %9 {strides = array<i32>} : memref<16x128xf32, #tpu.memory_space<vmem>>, vector<16x128xf32>,
    %c0_i32_9 = arith.constant 0 : i32
    %11 = arith.cmpi eq, %arg2, %c0_i32_9 : i32
    %12 = arith.extui %11 : i1 to i32
    %c0_i32_10 = arith.constant 0 : i32
    %13 = arith.cmpi ne, %12, %c0_i32_10 : i32
    scf.if %13 {
      %c0_11 = arith.constant 0 : index
      %c0_12 = arith.constant 0 : index
      %14 = vector.load %arg7[%c0_11, %c0_12] : memref<16x128xf32, #tpu.memory_space<vmem>>, vector<16x128xf32>
      %c0_13 = arith.constant 0 : index
      %c0_14 = arith.constant 0 : index
      %15 = vector.load %arg5[%c0_13, %c0_14] : memref<1x128xf32, #tpu.memory_space<vmem>>, vector<1x128xf32>
      %16 = vector.broadcast %15 : vector<1x128xf32> to vector<16x128xf32>
      %17 = arith.addf %14, %16 : vector<16x128xf32>
      %cst_15 = arith.constant 0.000000e+00 : f32
      %18 = vector.broadcast %cst_15 : f32 to vector<16x128xf32>
      %19 = arith.maximumf %17, %18 : vector<16x128xf32>
      %20 = arith.truncf %19 : vector<16x128xf32> to vector<16x128xbf16>
      %c0_16 = arith.constant 0 : index
      %c0_17 = arith.constant 0 : index
      %21 = vector.load %arg6[%c0_16, %c0_17] : memref<16x128xbf16, #tpu.memory_space<vmem>>, vector<16x128xbf16>
      tpu.vector_store %arg6[%c0_16, %c0_17], %20 {strides = array<i32>} : memref<16x128xbf16, #tpu.memory_space<vmem>>, vector<16x128xbf16>,
    } else {
    }
    return
  }
  func.func @transform_0(%arg0: i32, %arg1: i32, %arg2: i32) -> (i32, i32) {
    %c0_i32 = arith.constant 0 : i32
    return %arg0, %arg2 : i32, i32
  }
  func.func @transform_1(%arg0: i32, %arg1: i32, %arg2: i32) -> (i32, i32) {
    %c0_i32 = arith.constant 0 : i32
    return %arg2, %arg1 : i32, i32
  }
  func.func @transform_2(%arg0: i32, %arg1: i32, %arg2: i32) -> (i32, i32) {
    %c0_i32 = arith.constant 0 : i32
    %c0_i32_0 = arith.constant 0 : i32
    return %c0_i32, %arg1 : i32, i32
  }
  func.func @transform_3(%arg0: i32, %arg1: i32, %arg2: i32) -> (i32, i32) {
    %c0_i32 = arith.constant 0 : i32
    return %arg0, %arg1 : i32, i32
  }
}

module attributes {stable_mosaic.version = 11 : i64} {
  func.func @_mm_kernel(%arg0: i32, %arg1: i32, %arg2: i32, %arg3: memref<16x384xbf16, #tpu.memory_space<vmem>>, %arg4: memref<384x128xbf16, #tpu.memory_space<vmem>>, %arg5: memref<1x128xf32, #tpu.memory_space<vmem>>, %arg6: memref<16x128xbf16, #tpu.memory_space<vmem>>, %arg7: memref<16x128xbf16, #tpu.memory_space<vmem>>, %arg8: memref<16x128xf32, #tpu.memory_space<vmem>>) attributes {dimension_semantics = [#tpu.dimension_semantics<parallel>, #tpu.dimension_semantics<parallel>, #tpu.dimension_semantics<arbitrary>], iteration_bounds = array<i64: 2, 1, 1>, scalar_prefetch = 0 : i64, scratch_operands = 1 : i64, tpu.core_type = #tpu.core_type<tc>, window_params = [{transform_indices = @transform_0, window_bounds = array<i64: 16, 384>}, {transform_indices = @transform_1, window_bounds = array<i64: 384, 128>}, {transform_indices = @transform_2, window_bounds = array<i64: 1, 128>}, {transform_indices = @transform_3, window_bounds = array<i64: 16, 128>}, {transform_indices = @transform_4, window_bounds = array<i64: 16, 128>}]} {
    %c0_i32 = arith.constant 0 : i32
    %0 = arith.cmpi eq, %arg2, %c0_i32 : i32
    %1 = arith.extui %0 : i1 to i32
    %c0_i32_0 = arith.constant 0 : i32
    %2 = arith.cmpi ne, %1, %c0_i32_0 : i32
    scf.if %2 {
      %cst_10 = arith.constant 0.000000e+00 : f32
      %12 = vector.broadcast %cst_10 : f32 to vector<16x128xf32>
      %c0_11 = arith.constant 0 : index
      %c0_12 = arith.constant 0 : index
      %13 = vector.load %arg8[%c0_11, %c0_12] : memref<16x128xf32, #tpu.memory_space<vmem>>, vector<16x128xf32>
      tpu.vector_store %arg8[%c0_11, %c0_12], %12 {strides = array<i32>} : memref<16x128xf32, #tpu.memory_space<vmem>>, vector<16x128xf32>,
    } else {
    }
    %c0 = arith.constant 0 : index
    %c0_1 = arith.constant 0 : index
    %3 = vector.load %arg3[%c0, %c0_1] : memref<16x384xbf16, #tpu.memory_space<vmem>>, vector<16x384xbf16>
    %c0_2 = arith.constant 0 : index
    %c0_3 = arith.constant 0 : index
    %4 = vector.load %arg8[%c0_2, %c0_3] : memref<16x128xf32, #tpu.memory_space<vmem>>, vector<16x128xf32>
    %c0_4 = arith.constant 0 : index
    %c0_5 = arith.constant 0 : index
    %5 = vector.load %arg4[%c0_4, %c0_5] : memref<384x128xbf16, #tpu.memory_space<vmem>>, vector<384x128xbf16>
    %cst = arith.constant dense<0.000000e+00> : vector<16x128xf32>
    %6 = tpu.matmul %3, %5, %cst {dimension_numbers = #tpu.dot_dimension_numbers<[1], [0], [0], [1], [0, 0, 1, 1], [], []>} : vector<16x384xbf16>, vector<384x128xbf16>, vector<16x128xf32> -> vector<16x128xf32>
    %7 = arith.addf %4, %6 : vector<16x128xf32>
    %c0_6 = arith.constant 0 : index
    %c0_7 = arith.constant 0 : index
    %8 = vector.load %arg8[%c0_6, %c0_7] : memref<16x128xf32, #tpu.memory_space<vmem>>, vector<16x128xf32>
    tpu.vector_store %arg8[%c0_6, %c0_7], %7 {strides = array<i32>} : memref<16x128xf32, #tpu.memory_space<vmem>>, vector<16x128xf32>,
    %c0_i32_8 = arith.constant 0 : i32
    %9 = arith.cmpi eq, %arg2, %c0_i32_8 : i32
    %10 = arith.extui %9 : i1 to i32
    %c0_i32_9 = arith.constant 0 : i32
    %11 = arith.cmpi ne, %10, %c0_i32_9 : i32
    scf.if %11 {
      %c0_10 = arith.constant 0 : index
      %c0_11 = arith.constant 0 : index
      %12 = vector.load %arg8[%c0_10, %c0_11] : memref<16x128xf32, #tpu.memory_space<vmem>>, vector<16x128xf32>
      %c0_12 = arith.constant 0 : index
      %c0_13 = arith.constant 0 : index
      %13 = vector.load %arg5[%c0_12, %c0_13] : memref<1x128xf32, #tpu.memory_space<vmem>>, vector<1x128xf32>
      %14 = vector.broadcast %13 : vector<1x128xf32> to vector<16x128xf32>
      %15 = arith.addf %12, %14 : vector<16x128xf32>
      %c0_14 = arith.constant 0 : index
      %c0_15 = arith.constant 0 : index
      %16 = vector.load %arg6[%c0_14, %c0_15] : memref<16x128xbf16, #tpu.memory_space<vmem>>, vector<16x128xbf16>
      %17 = arith.extf %16 : vector<16x128xbf16> to vector<16x128xf32>
      %18 = arith.addf %15, %17 : vector<16x128xf32>
      %19 = arith.truncf %18 : vector<16x128xf32> to vector<16x128xbf16>
      %c0_16 = arith.constant 0 : index
      %c0_17 = arith.constant 0 : index
      %20 = vector.load %arg7[%c0_16, %c0_17] : memref<16x128xbf16, #tpu.memory_space<vmem>>, vector<16x128xbf16>
      tpu.vector_store %arg7[%c0_16, %c0_17], %19 {strides = array<i32>} : memref<16x128xbf16, #tpu.memory_space<vmem>>, vector<16x128xbf16>,
    } else {
    }
    return
  }
  func.func @transform_0(%arg0: i32, %arg1: i32, %arg2: i32) -> (i32, i32) {
    %c0_i32 = arith.constant 0 : i32
    return %arg0, %arg2 : i32, i32
  }
  func.func @transform_1(%arg0: i32, %arg1: i32, %arg2: i32) -> (i32, i32) {
    %c0_i32 = arith.constant 0 : i32
    return %arg2, %arg1 : i32, i32
  }
  func.func @transform_2(%arg0: i32, %arg1: i32, %arg2: i32) -> (i32, i32) {
    %c0_i32 = arith.constant 0 : i32
    %c0_i32_0 = arith.constant 0 : i32
    return %c0_i32, %arg1 : i32, i32
  }
  func.func @transform_3(%arg0: i32, %arg1: i32, %arg2: i32) -> (i32, i32) {
    %c0_i32 = arith.constant 0 : i32
    return %arg0, %arg1 : i32, i32
  }
  func.func @transform_4(%arg0: i32, %arg1: i32, %arg2: i32) -> (i32, i32) {
    %c0_i32 = arith.constant 0 : i32
    return %arg0, %arg1 : i32, i32
  }
}

module attributes {stable_mosaic.version = 11 : i64} {
  func.func @_mm_kernel(%arg0: i32, %arg1: i32, %arg2: i32, %arg3: memref<16x384xbf16, #tpu.memory_space<vmem>>, %arg4: memref<384x128xbf16, #tpu.memory_space<vmem>>, %arg5: memref<1x128xf32, #tpu.memory_space<vmem>>, %arg6: memref<16x128xbf16, #tpu.memory_space<vmem>>, %arg7: memref<16x128xbf16, #tpu.memory_space<vmem>>, %arg8: memref<16x128xbf16, #tpu.memory_space<vmem>>, %arg9: memref<16x128xf32, #tpu.memory_space<vmem>>) attributes {dimension_semantics = [#tpu.dimension_semantics<parallel>, #tpu.dimension_semantics<parallel>, #tpu.dimension_semantics<arbitrary>], iteration_bounds = array<i64: 2, 1, 1>, scalar_prefetch = 0 : i64, scratch_operands = 1 : i64, tpu.core_type = #tpu.core_type<tc>, window_params = [{transform_indices = @transform_0, window_bounds = array<i64: 16, 384>}, {transform_indices = @transform_1, window_bounds = array<i64: 384, 128>}, {transform_indices = @transform_2, window_bounds = array<i64: 1, 128>}, {transform_indices = @transform_3, window_bounds = array<i64: 16, 128>}, {transform_indices = @transform_4, window_bounds = array<i64: 16, 128>}, {transform_indices = @transform_5, window_bounds = array<i64: 16, 128>}]} {
    %c0_i32 = arith.constant 0 : i32
    %0 = arith.cmpi eq, %arg2, %c0_i32 : i32
    %1 = arith.extui %0 : i1 to i32
    %c0_i32_0 = arith.constant 0 : i32
    %2 = arith.cmpi ne, %1, %c0_i32_0 : i32
    scf.if %2 {
      %cst_10 = arith.constant 0.000000e+00 : f32
      %12 = vector.broadcast %cst_10 : f32 to vector<16x128xf32>
      %c0_11 = arith.constant 0 : index
      %c0_12 = arith.constant 0 : index
      %13 = vector.load %arg9[%c0_11, %c0_12] : memref<16x128xf32, #tpu.memory_space<vmem>>, vector<16x128xf32>
      tpu.vector_store %arg9[%c0_11, %c0_12], %12 {strides = array<i32>} : memref<16x128xf32, #tpu.memory_space<vmem>>, vector<16x128xf32>,
    } else {
    }
    %c0 = arith.constant 0 : index
    %c0_1 = arith.constant 0 : index
    %3 = vector.load %arg3[%c0, %c0_1] : memref<16x384xbf16, #tpu.memory_space<vmem>>, vector<16x384xbf16>
    %c0_2 = arith.constant 0 : index
    %c0_3 = arith.constant 0 : index
    %4 = vector.load %arg9[%c0_2, %c0_3] : memref<16x128xf32, #tpu.memory_space<vmem>>, vector<16x128xf32>
    %c0_4 = arith.constant 0 : index
    %c0_5 = arith.constant 0 : index
    %5 = vector.load %arg4[%c0_4, %c0_5] : memref<384x128xbf16, #tpu.memory_space<vmem>>, vector<384x128xbf16>
    %cst = arith.constant dense<0.000000e+00> : vector<16x128xf32>
    %6 = tpu.matmul %3, %5, %cst {dimension_numbers = #tpu.dot_dimension_numbers<[1], [0], [0], [1], [0, 0, 1, 1], [], []>} : vector<16x384xbf16>, vector<384x128xbf16>, vector<16x128xf32> -> vector<16x128xf32>
    %7 = arith.addf %4, %6 : vector<16x128xf32>
    %c0_6 = arith.constant 0 : index
    %c0_7 = arith.constant 0 : index
    %8 = vector.load %arg9[%c0_6, %c0_7] : memref<16x128xf32, #tpu.memory_space<vmem>>, vector<16x128xf32>
    tpu.vector_store %arg9[%c0_6, %c0_7], %7 {strides = array<i32>} : memref<16x128xf32, #tpu.memory_space<vmem>>, vector<16x128xf32>,
    %c0_i32_8 = arith.constant 0 : i32
    %9 = arith.cmpi eq, %arg2, %c0_i32_8 : i32
    %10 = arith.extui %9 : i1 to i32
    %c0_i32_9 = arith.constant 0 : i32
    %11 = arith.cmpi ne, %10, %c0_i32_9 : i32
    scf.if %11 {
      %c0_10 = arith.constant 0 : index
      %c0_11 = arith.constant 0 : index
      %12 = vector.load %arg9[%c0_10, %c0_11] : memref<16x128xf32, #tpu.memory_space<vmem>>, vector<16x128xf32>
      %c0_12 = arith.constant 0 : index
      %c0_13 = arith.constant 0 : index
      %13 = vector.load %arg5[%c0_12, %c0_13] : memref<1x128xf32, #tpu.memory_space<vmem>>, vector<1x128xf32>
      %14 = vector.broadcast %13 : vector<1x128xf32> to vector<16x128xf32>
      %15 = arith.addf %12, %14 : vector<16x128xf32>
      %c0_14 = arith.constant 0 : index
      %c0_15 = arith.constant 0 : index
      %16 = vector.load %arg6[%c0_14, %c0_15] : memref<16x128xbf16, #tpu.memory_space<vmem>>, vector<16x128xbf16>
      %17 = arith.extf %16 : vector<16x128xbf16> to vector<16x128xf32>
      %18 = arith.addf %15, %17 : vector<16x128xf32>
      %c0_16 = arith.constant 0 : index
      %c0_17 = arith.constant 0 : index
      %19 = vector.load %arg7[%c0_16, %c0_17] : memref<16x128xbf16, #tpu.memory_space<vmem>>, vector<16x128xbf16>
      %20 = arith.extf %19 : vector<16x128xbf16> to vector<16x128xf32>
      %21 = arith.addf %18, %20 : vector<16x128xf32>
      %22 = arith.truncf %21 : vector<16x128xf32> to vector<16x128xbf16>
      %c0_18 = arith.constant 0 : index
      %c0_19 = arith.constant 0 : index
      %23 = vector.load %arg8[%c0_18, %c0_19] : memref<16x128xbf16, #tpu.memory_space<vmem>>, vector<16x128xbf16>
      tpu.vector_store %arg8[%c0_18, %c0_19], %22 {strides = array<i32>} : memref<16x128xbf16, #tpu.memory_space<vmem>>, vector<16x128xbf16>,
    } else {
    }
    return
  }
  func.func @transform_0(%arg0: i32, %arg1: i32, %arg2: i32) -> (i32, i32) {
    %c0_i32 = arith.constant 0 : i32
    return %arg0, %arg2 : i32, i32
  }
  func.func @transform_1(%arg0: i32, %arg1: i32, %arg2: i32) -> (i32, i32) {
    %c0_i32 = arith.constant 0 : i32
    return %arg2, %arg1 : i32, i32
  }
  func.func @transform_2(%arg0: i32, %arg1: i32, %arg2: i32) -> (i32, i32) {
    %c0_i32 = arith.constant 0 : i32
    %c0_i32_0 = arith.constant 0 : i32
    return %c0_i32, %arg1 : i32, i32
  }
  func.func @transform_3(%arg0: i32, %arg1: i32, %arg2: i32) -> (i32, i32) {
    %c0_i32 = arith.constant 0 : i32
    return %arg0, %arg1 : i32, i32
  }
  func.func @transform_4(%arg0: i32, %arg1: i32, %arg2: i32) -> (i32, i32) {
    %c0_i32 = arith.constant 0 : i32
    return %arg0, %arg1 : i32, i32
  }
  func.func @transform_5(%arg0: i32, %arg1: i32, %arg2: i32) -> (i32, i32) {
    %c0_i32 = arith.constant 0 : i32
    return %arg0, %arg1 : i32, i32
  }
}

module attributes {stable_mosaic.version = 11 : i64} {
  func.func @_mm_kernel(%arg0: i32, %arg1: i32, %arg2: i32, %arg3: memref<16x32xbf16, #tpu.memory_space<vmem>>, %arg4: memref<32x128xbf16, #tpu.memory_space<vmem>>, %arg5: memref<1x128xf32, #tpu.memory_space<vmem>>, %arg6: memref<16x128xbf16, #tpu.memory_space<vmem>>, %arg7: memref<16x128xf32, #tpu.memory_space<vmem>>) attributes {dimension_semantics = [#tpu.dimension_semantics<parallel>, #tpu.dimension_semantics<parallel>, #tpu.dimension_semantics<arbitrary>], iteration_bounds = array<i64: 2, 1, 1>, scalar_prefetch = 0 : i64, scratch_operands = 1 : i64, tpu.core_type = #tpu.core_type<tc>, window_params = [{transform_indices = @transform_0, window_bounds = array<i64: 16, 32>}, {transform_indices = @transform_1, window_bounds = array<i64: 32, 128>}, {transform_indices = @transform_2, window_bounds = array<i64: 1, 128>}, {transform_indices = @transform_3, window_bounds = array<i64: 16, 128>}]} {
    %c0_i32 = arith.constant 0 : i32
    %0 = arith.cmpi eq, %arg2, %c0_i32 : i32
    %1 = arith.extui %0 : i1 to i32
    %c0_i32_0 = arith.constant 0 : i32
    %2 = arith.cmpi ne, %1, %c0_i32_0 : i32
    scf.if %2 {
      %cst_10 = arith.constant 0.000000e+00 : f32
      %12 = vector.broadcast %cst_10 : f32 to vector<16x128xf32>
      %c0_11 = arith.constant 0 : index
      %c0_12 = arith.constant 0 : index
      %13 = vector.load %arg7[%c0_11, %c0_12] : memref<16x128xf32, #tpu.memory_space<vmem>>, vector<16x128xf32>
      tpu.vector_store %arg7[%c0_11, %c0_12], %12 {strides = array<i32>} : memref<16x128xf32, #tpu.memory_space<vmem>>, vector<16x128xf32>,
    } else {
    }
    %c0 = arith.constant 0 : index
    %c0_1 = arith.constant 0 : index
    %3 = vector.load %arg3[%c0, %c0_1] : memref<16x32xbf16, #tpu.memory_space<vmem>>, vector<16x32xbf16>
    %c0_2 = arith.constant 0 : index
    %c0_3 = arith.constant 0 : index
    %4 = vector.load %arg7[%c0_2, %c0_3] : memref<16x128xf32, #tpu.memory_space<vmem>>, vector<16x128xf32>
    %c0_4 = arith.constant 0 : index
    %c0_5 = arith.constant 0 : index
    %5 = vector.load %arg4[%c0_4, %c0_5] : memref<32x128xbf16, #tpu.memory_space<vmem>>, vector<32x128xbf16>
    %cst = arith.constant dense<0.000000e+00> : vector<16x128xf32>
    %6 = tpu.matmul %3, %5, %cst {dimension_numbers = #tpu.dot_dimension_numbers<[1], [0], [0], [1], [0, 0, 1, 1], [], []>} : vector<16x32xbf16>, vector<32x128xbf16>, vector<16x128xf32> -> vector<16x128xf32>
    %7 = arith.addf %4, %6 : vector<16x128xf32>
    %c0_6 = arith.constant 0 : index
    %c0_7 = arith.constant 0 : index
    %8 = vector.load %arg7[%c0_6, %c0_7] : memref<16x128xf32, #tpu.memory_space<vmem>>, vector<16x128xf32>
    tpu.vector_store %arg7[%c0_6, %c0_7], %7 {strides = array<i32>} : memref<16x128xf32, #tpu.memory_space<vmem>>, vector<16x128xf32>,
    %c0_i32_8 = arith.constant 0 : i32
    %9 = arith.cmpi eq, %arg2, %c0_i32_8 : i32
    %10 = arith.extui %9 : i1 to i32
    %c0_i32_9 = arith.constant 0 : i32
    %11 = arith.cmpi ne, %10, %c0_i32_9 : i32
    scf.if %11 {
      %c0_10 = arith.constant 0 : index
      %c0_11 = arith.constant 0 : index
      %12 = vector.load %arg7[%c0_10, %c0_11] : memref<16x128xf32, #tpu.memory_space<vmem>>, vector<16x128xf32>
      %c0_12 = arith.constant 0 : index
      %c0_13 = arith.constant 0 : index
      %13 = vector.load %arg5[%c0_12, %c0_13] : memref<1x128xf32, #tpu.memory_space<vmem>>, vector<1x128xf32>
      %14 = vector.broadcast %13 : vector<1x128xf32> to vector<16x128xf32>
      %15 = arith.addf %12, %14 : vector<16x128xf32>
      %16 = arith.truncf %15 : vector<16x128xf32> to vector<16x128xbf16>
      %c0_14 = arith.constant 0 : index
      %c0_15 = arith.constant 0 : index
      %17 = vector.load %arg6[%c0_14, %c0_15] : memref<16x128xbf16, #tpu.memory_space<vmem>>, vector<16x128xbf16>
      tpu.vector_store %arg6[%c0_14, %c0_15], %16 {strides = array<i32>} : memref<16x128xbf16, #tpu.memory_space<vmem>>, vector<16x128xbf16>,
    } else {
    }
    return
  }
  func.func @transform_0(%arg0: i32, %arg1: i32, %arg2: i32) -> (i32, i32) {
    %c0_i32 = arith.constant 0 : i32
    return %arg0, %arg2 : i32, i32
  }
  func.func @transform_1(%arg0: i32, %arg1: i32, %arg2: i32) -> (i32, i32) {
    %c0_i32 = arith.constant 0 : i32
    return %arg2, %arg1 : i32, i32
  }
  func.func @transform_2(%arg0: i32, %arg1: i32, %arg2: i32) -> (i32, i32) {
    %c0_i32 = arith.constant 0 : i32
    %c0_i32_0 = arith.constant 0 : i32
    return %c0_i32, %arg1 : i32, i32
  }
  func.func @transform_3(%arg0: i32, %arg1: i32, %arg2: i32) -> (i32, i32) {
    %c0_i32 = arith.constant 0 : i32
    return %arg0, %arg1 : i32, i32
  }
}

module attributes {stable_mosaic.version = 11 : i64} {
  func.func @_mm_kernel(%arg0: i32, %arg1: i32, %arg2: i32, %arg3: memref<64x256xbf16, #tpu.memory_space<vmem>>, %arg4: memref<256x128xbf16, #tpu.memory_space<vmem>>, %arg5: memref<1x128xf32, #tpu.memory_space<vmem>>, %arg6: memref<64x128xbf16, #tpu.memory_space<vmem>>, %arg7: memref<64x128xf32, #tpu.memory_space<vmem>>) attributes {dimension_semantics = [#tpu.dimension_semantics<parallel>, #tpu.dimension_semantics<parallel>, #tpu.dimension_semantics<arbitrary>], iteration_bounds = array<i64: 2, 1, 1>, scalar_prefetch = 0 : i64, scratch_operands = 1 : i64, tpu.core_type = #tpu.core_type<tc>, window_params = [{transform_indices = @transform_0, window_bounds = array<i64: 64, 256>}, {transform_indices = @transform_1, window_bounds = array<i64: 256, 128>}, {transform_indices = @transform_2, window_bounds = array<i64: 1, 128>}, {transform_indices = @transform_3, window_bounds = array<i64: 64, 128>}]} {
    %c0_i32 = arith.constant 0 : i32
    %0 = arith.cmpi eq, %arg2, %c0_i32 : i32
    %1 = arith.extui %0 : i1 to i32
    %c0_i32_0 = arith.constant 0 : i32
    %2 = arith.cmpi ne, %1, %c0_i32_0 : i32
    scf.if %2 {
      %cst_10 = arith.constant 0.000000e+00 : f32
      %12 = vector.broadcast %cst_10 : f32 to vector<64x128xf32>
      %c0_11 = arith.constant 0 : index
      %c0_12 = arith.constant 0 : index
      %13 = vector.load %arg7[%c0_11, %c0_12] : memref<64x128xf32, #tpu.memory_space<vmem>>, vector<64x128xf32>
      tpu.vector_store %arg7[%c0_11, %c0_12], %12 {strides = array<i32>} : memref<64x128xf32, #tpu.memory_space<vmem>>, vector<64x128xf32>,
    } else {
    }
    %c0 = arith.constant 0 : index
    %c0_1 = arith.constant 0 : index
    %3 = vector.load %arg3[%c0, %c0_1] : memref<64x256xbf16, #tpu.memory_space<vmem>>, vector<64x256xbf16>
    %c0_2 = arith.constant 0 : index
    %c0_3 = arith.constant 0 : index
    %4 = vector.load %arg7[%c0_2, %c0_3] : memref<64x128xf32, #tpu.memory_space<vmem>>, vector<64x128xf32>
    %c0_4 = arith.constant 0 : index
    %c0_5 = arith.constant 0 : index
    %5 = vector.load %arg4[%c0_4, %c0_5] : memref<256x128xbf16, #tpu.memory_space<vmem>>, vector<256x128xbf16>
    %cst = arith.constant dense<0.000000e+00> : vector<64x128xf32>
    %6 = tpu.matmul %3, %5, %cst {dimension_numbers = #tpu.dot_dimension_numbers<[1], [0], [0], [1], [0, 0, 1, 1], [], []>} : vector<64x256xbf16>, vector<256x128xbf16>, vector<64x128xf32> -> vector<64x128xf32>
    %7 = arith.addf %4, %6 : vector<64x128xf32>
    %c0_6 = arith.constant 0 : index
    %c0_7 = arith.constant 0 : index
    %8 = vector.load %arg7[%c0_6, %c0_7] : memref<64x128xf32, #tpu.memory_space<vmem>>, vector<64x128xf32>
    tpu.vector_store %arg7[%c0_6, %c0_7], %7 {strides = array<i32>} : memref<64x128xf32, #tpu.memory_space<vmem>>, vector<64x128xf32>,
    %c0_i32_8 = arith.constant 0 : i32
    %9 = arith.cmpi eq, %arg2, %c0_i32_8 : i32
    %10 = arith.extui %9 : i1 to i32
    %c0_i32_9 = arith.constant 0 : i32
    %11 = arith.cmpi ne, %10, %c0_i32_9 : i32
    scf.if %11 {
      %c0_10 = arith.constant 0 : index
      %c0_11 = arith.constant 0 : index
      %12 = vector.load %arg7[%c0_10, %c0_11] : memref<64x128xf32, #tpu.memory_space<vmem>>, vector<64x128xf32>
      %c0_12 = arith.constant 0 : index
      %c0_13 = arith.constant 0 : index
      %13 = vector.load %arg5[%c0_12, %c0_13] : memref<1x128xf32, #tpu.memory_space<vmem>>, vector<1x128xf32>
      %14 = vector.broadcast %13 : vector<1x128xf32> to vector<64x128xf32>
      %15 = arith.addf %12, %14 : vector<64x128xf32>
      %16 = arith.truncf %15 : vector<64x128xf32> to vector<64x128xbf16>
      %c0_14 = arith.constant 0 : index
      %c0_15 = arith.constant 0 : index
      %17 = vector.load %arg6[%c0_14, %c0_15] : memref<64x128xbf16, #tpu.memory_space<vmem>>, vector<64x128xbf16>
      tpu.vector_store %arg6[%c0_14, %c0_15], %16 {strides = array<i32>} : memref<64x128xbf16, #tpu.memory_space<vmem>>, vector<64x128xbf16>,
    } else {
    }
    return
  }
  func.func @transform_0(%arg0: i32, %arg1: i32, %arg2: i32) -> (i32, i32) {
    %c0_i32 = arith.constant 0 : i32
    return %arg0, %arg2 : i32, i32
  }
  func.func @transform_1(%arg0: i32, %arg1: i32, %arg2: i32) -> (i32, i32) {
    %c0_i32 = arith.constant 0 : i32
    return %arg2, %arg1 : i32, i32
  }
  func.func @transform_2(%arg0: i32, %arg1: i32, %arg2: i32) -> (i32, i32) {
    %c0_i32 = arith.constant 0 : i32
    %c0_i32_0 = arith.constant 0 : i32
    return %c0_i32, %arg1 : i32, i32
  }
  func.func @transform_3(%arg0: i32, %arg1: i32, %arg2: i32) -> (i32, i32) {
    %c0_i32 = arith.constant 0 : i32
    return %arg0, %arg1 : i32, i32
  }
}

module attributes {stable_mosaic.version = 11 : i64} {
  func.func @_mm_kernel(%arg0: i32, %arg1: i32, %arg2: i32, %arg3: memref<64x384xbf16, #tpu.memory_space<vmem>>, %arg4: memref<384x128xbf16, #tpu.memory_space<vmem>>, %arg5: memref<1x128xf32, #tpu.memory_space<vmem>>, %arg6: memref<64x128xbf16, #tpu.memory_space<vmem>>, %arg7: memref<64x128xf32, #tpu.memory_space<vmem>>) attributes {dimension_semantics = [#tpu.dimension_semantics<parallel>, #tpu.dimension_semantics<parallel>, #tpu.dimension_semantics<arbitrary>], iteration_bounds = array<i64: 2, 1, 1>, scalar_prefetch = 0 : i64, scratch_operands = 1 : i64, tpu.core_type = #tpu.core_type<tc>, window_params = [{transform_indices = @transform_0, window_bounds = array<i64: 64, 384>}, {transform_indices = @transform_1, window_bounds = array<i64: 384, 128>}, {transform_indices = @transform_2, window_bounds = array<i64: 1, 128>}, {transform_indices = @transform_3, window_bounds = array<i64: 64, 128>}]} {
    %c0_i32 = arith.constant 0 : i32
    %0 = arith.cmpi eq, %arg2, %c0_i32 : i32
    %1 = arith.extui %0 : i1 to i32
    %c0_i32_0 = arith.constant 0 : i32
    %2 = arith.cmpi ne, %1, %c0_i32_0 : i32
    scf.if %2 {
      %cst_11 = arith.constant 0.000000e+00 : f32
      %14 = vector.broadcast %cst_11 : f32 to vector<64x128xf32>
      %c0_12 = arith.constant 0 : index
      %c0_13 = arith.constant 0 : index
      %15 = vector.load %arg7[%c0_12, %c0_13] : memref<64x128xf32, #tpu.memory_space<vmem>>, vector<64x128xf32>
      tpu.vector_store %arg7[%c0_12, %c0_13], %14 {strides = array<i32>} : memref<64x128xf32, #tpu.memory_space<vmem>>, vector<64x128xf32>,
    } else {
    }
    %c0 = arith.constant 0 : index
    %c0_1 = arith.constant 0 : index
    %3 = vector.load %arg3[%c0, %c0_1] : memref<64x384xbf16, #tpu.memory_space<vmem>>, vector<64x384xbf16>
    %cst = arith.constant 0.000000e+00 : bf16
    %4 = vector.broadcast %cst : bf16 to vector<64x384xbf16>
    %5 = arith.maximumf %3, %4 : vector<64x384xbf16>
    %c0_2 = arith.constant 0 : index
    %c0_3 = arith.constant 0 : index
    %6 = vector.load %arg7[%c0_2, %c0_3] : memref<64x128xf32, #tpu.memory_space<vmem>>, vector<64x128xf32>
    %c0_4 = arith.constant 0 : index
    %c0_5 = arith.constant 0 : index
    %7 = vector.load %arg4[%c0_4, %c0_5] : memref<384x128xbf16, #tpu.memory_space<vmem>>, vector<384x128xbf16>
    %cst_6 = arith.constant dense<0.000000e+00> : vector<64x128xf32>
    %8 = tpu.matmul %5, %7, %cst_6 {dimension_numbers = #tpu.dot_dimension_numbers<[1], [0], [0], [1], [0, 0, 1, 1], [], []>} : vector<64x384xbf16>, vector<384x128xbf16>, vector<64x128xf32> -> vector<64x128xf32>
    %9 = arith.addf %6, %8 : vector<64x128xf32>
    %c0_7 = arith.constant 0 : index
    %c0_8 = arith.constant 0 : index
    %10 = vector.load %arg7[%c0_7, %c0_8] : memref<64x128xf32, #tpu.memory_space<vmem>>, vector<64x128xf32>
    tpu.vector_store %arg7[%c0_7, %c0_8], %9 {strides = array<i32>} : memref<64x128xf32, #tpu.memory_space<vmem>>, vector<64x128xf32>,
    %c0_i32_9 = arith.constant 0 : i32
    %11 = arith.cmpi eq, %arg2, %c0_i32_9 : i32
    %12 = arith.extui %11 : i1 to i32
    %c0_i32_10 = arith.constant 0 : i32
    %13 = arith.cmpi ne, %12, %c0_i32_10 : i32
    scf.if %13 {
      %c0_11 = arith.constant 0 : index
      %c0_12 = arith.constant 0 : index
      %14 = vector.load %arg7[%c0_11, %c0_12] : memref<64x128xf32, #tpu.memory_space<vmem>>, vector<64x128xf32>
      %c0_13 = arith.constant 0 : index
      %c0_14 = arith.constant 0 : index
      %15 = vector.load %arg5[%c0_13, %c0_14] : memref<1x128xf32, #tpu.memory_space<vmem>>, vector<1x128xf32>
      %16 = vector.broadcast %15 : vector<1x128xf32> to vector<64x128xf32>
      %17 = arith.addf %14, %16 : vector<64x128xf32>
      %cst_15 = arith.constant 0.000000e+00 : f32
      %18 = vector.broadcast %cst_15 : f32 to vector<64x128xf32>
      %19 = arith.maximumf %17, %18 : vector<64x128xf32>
      %20 = arith.truncf %19 : vector<64x128xf32> to vector<64x128xbf16>
      %c0_16 = arith.constant 0 : index
      %c0_17 = arith.constant 0 : index
      %21 = vector.load %arg6[%c0_16, %c0_17] : memref<64x128xbf16, #tpu.memory_space<vmem>>, vector<64x128xbf16>
      tpu.vector_store %arg6[%c0_16, %c0_17], %20 {strides = array<i32>} : memref<64x128xbf16, #tpu.memory_space<vmem>>, vector<64x128xbf16>,
    } else {
    }
    return
  }
  func.func @transform_0(%arg0: i32, %arg1: i32, %arg2: i32) -> (i32, i32) {
    %c0_i32 = arith.constant 0 : i32
    return %arg0, %arg2 : i32, i32
  }
  func.func @transform_1(%arg0: i32, %arg1: i32, %arg2: i32) -> (i32, i32) {
    %c0_i32 = arith.constant 0 : i32
    return %arg2, %arg1 : i32, i32
  }
  func.func @transform_2(%arg0: i32, %arg1: i32, %arg2: i32) -> (i32, i32) {
    %c0_i32 = arith.constant 0 : i32
    %c0_i32_0 = arith.constant 0 : i32
    return %c0_i32, %arg1 : i32, i32
  }
  func.func @transform_3(%arg0: i32, %arg1: i32, %arg2: i32) -> (i32, i32) {
    %c0_i32 = arith.constant 0 : i32
    return %arg0, %arg1 : i32, i32
  }
}

module attributes {stable_mosaic.version = 11 : i64} {
  func.func @_mm_kernel(%arg0: i32, %arg1: i32, %arg2: i32, %arg3: memref<64x384xbf16, #tpu.memory_space<vmem>>, %arg4: memref<384x128xbf16, #tpu.memory_space<vmem>>, %arg5: memref<1x128xf32, #tpu.memory_space<vmem>>, %arg6: memref<64x128xbf16, #tpu.memory_space<vmem>>, %arg7: memref<64x128xbf16, #tpu.memory_space<vmem>>, %arg8: memref<64x128xbf16, #tpu.memory_space<vmem>>, %arg9: memref<64x128xf32, #tpu.memory_space<vmem>>) attributes {dimension_semantics = [#tpu.dimension_semantics<parallel>, #tpu.dimension_semantics<parallel>, #tpu.dimension_semantics<arbitrary>], iteration_bounds = array<i64: 2, 1, 1>, scalar_prefetch = 0 : i64, scratch_operands = 1 : i64, tpu.core_type = #tpu.core_type<tc>, window_params = [{transform_indices = @transform_0, window_bounds = array<i64: 64, 384>}, {transform_indices = @transform_1, window_bounds = array<i64: 384, 128>}, {transform_indices = @transform_2, window_bounds = array<i64: 1, 128>}, {transform_indices = @transform_3, window_bounds = array<i64: 64, 128>}, {transform_indices = @transform_4, window_bounds = array<i64: 64, 128>}, {transform_indices = @transform_5, window_bounds = array<i64: 64, 128>}]} {
    %c0_i32 = arith.constant 0 : i32
    %0 = arith.cmpi eq, %arg2, %c0_i32 : i32
    %1 = arith.extui %0 : i1 to i32
    %c0_i32_0 = arith.constant 0 : i32
    %2 = arith.cmpi ne, %1, %c0_i32_0 : i32
    scf.if %2 {
      %cst_10 = arith.constant 0.000000e+00 : f32
      %12 = vector.broadcast %cst_10 : f32 to vector<64x128xf32>
      %c0_11 = arith.constant 0 : index
      %c0_12 = arith.constant 0 : index
      %13 = vector.load %arg9[%c0_11, %c0_12] : memref<64x128xf32, #tpu.memory_space<vmem>>, vector<64x128xf32>
      tpu.vector_store %arg9[%c0_11, %c0_12], %12 {strides = array<i32>} : memref<64x128xf32, #tpu.memory_space<vmem>>, vector<64x128xf32>,
    } else {
    }
    %c0 = arith.constant 0 : index
    %c0_1 = arith.constant 0 : index
    %3 = vector.load %arg3[%c0, %c0_1] : memref<64x384xbf16, #tpu.memory_space<vmem>>, vector<64x384xbf16>
    %c0_2 = arith.constant 0 : index
    %c0_3 = arith.constant 0 : index
    %4 = vector.load %arg9[%c0_2, %c0_3] : memref<64x128xf32, #tpu.memory_space<vmem>>, vector<64x128xf32>
    %c0_4 = arith.constant 0 : index
    %c0_5 = arith.constant 0 : index
    %5 = vector.load %arg4[%c0_4, %c0_5] : memref<384x128xbf16, #tpu.memory_space<vmem>>, vector<384x128xbf16>
    %cst = arith.constant dense<0.000000e+00> : vector<64x128xf32>
    %6 = tpu.matmul %3, %5, %cst {dimension_numbers = #tpu.dot_dimension_numbers<[1], [0], [0], [1], [0, 0, 1, 1], [], []>} : vector<64x384xbf16>, vector<384x128xbf16>, vector<64x128xf32> -> vector<64x128xf32>
    %7 = arith.addf %4, %6 : vector<64x128xf32>
    %c0_6 = arith.constant 0 : index
    %c0_7 = arith.constant 0 : index
    %8 = vector.load %arg9[%c0_6, %c0_7] : memref<64x128xf32, #tpu.memory_space<vmem>>, vector<64x128xf32>
    tpu.vector_store %arg9[%c0_6, %c0_7], %7 {strides = array<i32>} : memref<64x128xf32, #tpu.memory_space<vmem>>, vector<64x128xf32>,
    %c0_i32_8 = arith.constant 0 : i32
    %9 = arith.cmpi eq, %arg2, %c0_i32_8 : i32
    %10 = arith.extui %9 : i1 to i32
    %c0_i32_9 = arith.constant 0 : i32
    %11 = arith.cmpi ne, %10, %c0_i32_9 : i32
    scf.if %11 {
      %c0_10 = arith.constant 0 : index
      %c0_11 = arith.constant 0 : index
      %12 = vector.load %arg9[%c0_10, %c0_11] : memref<64x128xf32, #tpu.memory_space<vmem>>, vector<64x128xf32>
      %c0_12 = arith.constant 0 : index
      %c0_13 = arith.constant 0 : index
      %13 = vector.load %arg5[%c0_12, %c0_13] : memref<1x128xf32, #tpu.memory_space<vmem>>, vector<1x128xf32>
      %14 = vector.broadcast %13 : vector<1x128xf32> to vector<64x128xf32>
      %15 = arith.addf %12, %14 : vector<64x128xf32>
      %c0_14 = arith.constant 0 : index
      %c0_15 = arith.constant 0 : index
      %16 = vector.load %arg6[%c0_14, %c0_15] : memref<64x128xbf16, #tpu.memory_space<vmem>>, vector<64x128xbf16>
      %17 = arith.extf %16 : vector<64x128xbf16> to vector<64x128xf32>
      %18 = arith.addf %15, %17 : vector<64x128xf32>
      %c0_16 = arith.constant 0 : index
      %c0_17 = arith.constant 0 : index
      %19 = vector.load %arg7[%c0_16, %c0_17] : memref<64x128xbf16, #tpu.memory_space<vmem>>, vector<64x128xbf16>
      %20 = arith.extf %19 : vector<64x128xbf16> to vector<64x128xf32>
      %21 = arith.addf %18, %20 : vector<64x128xf32>
      %22 = arith.truncf %21 : vector<64x128xf32> to vector<64x128xbf16>
      %c0_18 = arith.constant 0 : index
      %c0_19 = arith.constant 0 : index
      %23 = vector.load %arg8[%c0_18, %c0_19] : memref<64x128xbf16, #tpu.memory_space<vmem>>, vector<64x128xbf16>
      tpu.vector_store %arg8[%c0_18, %c0_19], %22 {strides = array<i32>} : memref<64x128xbf16, #tpu.memory_space<vmem>>, vector<64x128xbf16>,
    } else {
    }
    return
  }
  func.func @transform_0(%arg0: i32, %arg1: i32, %arg2: i32) -> (i32, i32) {
    %c0_i32 = arith.constant 0 : i32
    return %arg0, %arg2 : i32, i32
  }
  func.func @transform_1(%arg0: i32, %arg1: i32, %arg2: i32) -> (i32, i32) {
    %c0_i32 = arith.constant 0 : i32
    return %arg2, %arg1 : i32, i32
  }
  func.func @transform_2(%arg0: i32, %arg1: i32, %arg2: i32) -> (i32, i32) {
    %c0_i32 = arith.constant 0 : i32
    %c0_i32_0 = arith.constant 0 : i32
    return %c0_i32, %arg1 : i32, i32
  }
  func.func @transform_3(%arg0: i32, %arg1: i32, %arg2: i32) -> (i32, i32) {
    %c0_i32 = arith.constant 0 : i32
    return %arg0, %arg1 : i32, i32
  }
  func.func @transform_4(%arg0: i32, %arg1: i32, %arg2: i32) -> (i32, i32) {
    %c0_i32 = arith.constant 0 : i32
    return %arg0, %arg1 : i32, i32
  }
  func.func @transform_5(%arg0: i32, %arg1: i32, %arg2: i32) -> (i32, i32) {
    %c0_i32 = arith.constant 0 : i32
    return %arg0, %arg1 : i32, i32
  }
}

module attributes {stable_mosaic.version = 11 : i64} {
  func.func @_mm_kernel(%arg0: i32, %arg1: i32, %arg2: i32, %arg3: memref<64x384xbf16, #tpu.memory_space<vmem>>, %arg4: memref<384x128xbf16, #tpu.memory_space<vmem>>, %arg5: memref<1x128xf32, #tpu.memory_space<vmem>>, %arg6: memref<64x128xbf16, #tpu.memory_space<vmem>>, %arg7: memref<64x128xbf16, #tpu.memory_space<vmem>>, %arg8: memref<64x128xf32, #tpu.memory_space<vmem>>) attributes {dimension_semantics = [#tpu.dimension_semantics<parallel>, #tpu.dimension_semantics<parallel>, #tpu.dimension_semantics<arbitrary>], iteration_bounds = array<i64: 2, 1, 1>, scalar_prefetch = 0 : i64, scratch_operands = 1 : i64, tpu.core_type = #tpu.core_type<tc>, window_params = [{transform_indices = @transform_0, window_bounds = array<i64: 64, 384>}, {transform_indices = @transform_1, window_bounds = array<i64: 384, 128>}, {transform_indices = @transform_2, window_bounds = array<i64: 1, 128>}, {transform_indices = @transform_3, window_bounds = array<i64: 64, 128>}, {transform_indices = @transform_4, window_bounds = array<i64: 64, 128>}]} {
    %c0_i32 = arith.constant 0 : i32
    %0 = arith.cmpi eq, %arg2, %c0_i32 : i32
    %1 = arith.extui %0 : i1 to i32
    %c0_i32_0 = arith.constant 0 : i32
    %2 = arith.cmpi ne, %1, %c0_i32_0 : i32
    scf.if %2 {
      %cst_10 = arith.constant 0.000000e+00 : f32
      %12 = vector.broadcast %cst_10 : f32 to vector<64x128xf32>
      %c0_11 = arith.constant 0 : index
      %c0_12 = arith.constant 0 : index
      %13 = vector.load %arg8[%c0_11, %c0_12] : memref<64x128xf32, #tpu.memory_space<vmem>>, vector<64x128xf32>
      tpu.vector_store %arg8[%c0_11, %c0_12], %12 {strides = array<i32>} : memref<64x128xf32, #tpu.memory_space<vmem>>, vector<64x128xf32>,
    } else {
    }
    %c0 = arith.constant 0 : index
    %c0_1 = arith.constant 0 : index
    %3 = vector.load %arg3[%c0, %c0_1] : memref<64x384xbf16, #tpu.memory_space<vmem>>, vector<64x384xbf16>
    %c0_2 = arith.constant 0 : index
    %c0_3 = arith.constant 0 : index
    %4 = vector.load %arg8[%c0_2, %c0_3] : memref<64x128xf32, #tpu.memory_space<vmem>>, vector<64x128xf32>
    %c0_4 = arith.constant 0 : index
    %c0_5 = arith.constant 0 : index
    %5 = vector.load %arg4[%c0_4, %c0_5] : memref<384x128xbf16, #tpu.memory_space<vmem>>, vector<384x128xbf16>
    %cst = arith.constant dense<0.000000e+00> : vector<64x128xf32>
    %6 = tpu.matmul %3, %5, %cst {dimension_numbers = #tpu.dot_dimension_numbers<[1], [0], [0], [1], [0, 0, 1, 1], [], []>} : vector<64x384xbf16>, vector<384x128xbf16>, vector<64x128xf32> -> vector<64x128xf32>
    %7 = arith.addf %4, %6 : vector<64x128xf32>
    %c0_6 = arith.constant 0 : index
    %c0_7 = arith.constant 0 : index
    %8 = vector.load %arg8[%c0_6, %c0_7] : memref<64x128xf32, #tpu.memory_space<vmem>>, vector<64x128xf32>
    tpu.vector_store %arg8[%c0_6, %c0_7], %7 {strides = array<i32>} : memref<64x128xf32, #tpu.memory_space<vmem>>, vector<64x128xf32>,
    %c0_i32_8 = arith.constant 0 : i32
    %9 = arith.cmpi eq, %arg2, %c0_i32_8 : i32
    %10 = arith.extui %9 : i1 to i32
    %c0_i32_9 = arith.constant 0 : i32
    %11 = arith.cmpi ne, %10, %c0_i32_9 : i32
    scf.if %11 {
      %c0_10 = arith.constant 0 : index
      %c0_11 = arith.constant 0 : index
      %12 = vector.load %arg8[%c0_10, %c0_11] : memref<64x128xf32, #tpu.memory_space<vmem>>, vector<64x128xf32>
      %c0_12 = arith.constant 0 : index
      %c0_13 = arith.constant 0 : index
      %13 = vector.load %arg5[%c0_12, %c0_13] : memref<1x128xf32, #tpu.memory_space<vmem>>, vector<1x128xf32>
      %14 = vector.broadcast %13 : vector<1x128xf32> to vector<64x128xf32>
      %15 = arith.addf %12, %14 : vector<64x128xf32>
      %c0_14 = arith.constant 0 : index
      %c0_15 = arith.constant 0 : index
      %16 = vector.load %arg6[%c0_14, %c0_15] : memref<64x128xbf16, #tpu.memory_space<vmem>>, vector<64x128xbf16>
      %17 = arith.extf %16 : vector<64x128xbf16> to vector<64x128xf32>
      %18 = arith.addf %15, %17 : vector<64x128xf32>
      %19 = arith.truncf %18 : vector<64x128xf32> to vector<64x128xbf16>
      %c0_16 = arith.constant 0 : index
      %c0_17 = arith.constant 0 : index
      %20 = vector.load %arg7[%c0_16, %c0_17] : memref<64x128xbf16, #tpu.memory_space<vmem>>, vector<64x128xbf16>
      tpu.vector_store %arg7[%c0_16, %c0_17], %19 {strides = array<i32>} : memref<64x128xbf16, #tpu.memory_space<vmem>>, vector<64x128xbf16>,
    } else {
    }
    return
  }
  func.func @transform_0(%arg0: i32, %arg1: i32, %arg2: i32) -> (i32, i32) {
    %c0_i32 = arith.constant 0 : i32
    return %arg0, %arg2 : i32, i32
  }
  func.func @transform_1(%arg0: i32, %arg1: i32, %arg2: i32) -> (i32, i32) {
    %c0_i32 = arith.constant 0 : i32
    return %arg2, %arg1 : i32, i32
  }
  func.func @transform_2(%arg0: i32, %arg1: i32, %arg2: i32) -> (i32, i32) {
    %c0_i32 = arith.constant 0 : i32
    %c0_i32_0 = arith.constant 0 : i32
    return %c0_i32, %arg1 : i32, i32
  }
  func.func @transform_3(%arg0: i32, %arg1: i32, %arg2: i32) -> (i32, i32) {
    %c0_i32 = arith.constant 0 : i32
    return %arg0, %arg1 : i32, i32
  }
  func.func @transform_4(%arg0: i32, %arg1: i32, %arg2: i32) -> (i32, i32) {
    %c0_i32 = arith.constant 0 : i32
    return %arg0, %arg1 : i32, i32
  }
}

module attributes {stable_mosaic.version = 11 : i64} {
  func.func @_mm_kernel(%arg0: i32, %arg1: i32, %arg2: i32, %arg3: memref<64x32xbf16, #tpu.memory_space<vmem>>, %arg4: memref<32x128xbf16, #tpu.memory_space<vmem>>, %arg5: memref<1x128xf32, #tpu.memory_space<vmem>>, %arg6: memref<64x128xbf16, #tpu.memory_space<vmem>>, %arg7: memref<64x128xf32, #tpu.memory_space<vmem>>) attributes {dimension_semantics = [#tpu.dimension_semantics<parallel>, #tpu.dimension_semantics<parallel>, #tpu.dimension_semantics<arbitrary>], iteration_bounds = array<i64: 2, 1, 1>, scalar_prefetch = 0 : i64, scratch_operands = 1 : i64, tpu.core_type = #tpu.core_type<tc>, window_params = [{transform_indices = @transform_0, window_bounds = array<i64: 64, 32>}, {transform_indices = @transform_1, window_bounds = array<i64: 32, 128>}, {transform_indices = @transform_2, window_bounds = array<i64: 1, 128>}, {transform_indices = @transform_3, window_bounds = array<i64: 64, 128>}]} {
    %c0_i32 = arith.constant 0 : i32
    %0 = arith.cmpi eq, %arg2, %c0_i32 : i32
    %1 = arith.extui %0 : i1 to i32
    %c0_i32_0 = arith.constant 0 : i32
    %2 = arith.cmpi ne, %1, %c0_i32_0 : i32
    scf.if %2 {
      %cst_10 = arith.constant 0.000000e+00 : f32
      %12 = vector.broadcast %cst_10 : f32 to vector<64x128xf32>
      %c0_11 = arith.constant 0 : index
      %c0_12 = arith.constant 0 : index
      %13 = vector.load %arg7[%c0_11, %c0_12] : memref<64x128xf32, #tpu.memory_space<vmem>>, vector<64x128xf32>
      tpu.vector_store %arg7[%c0_11, %c0_12], %12 {strides = array<i32>} : memref<64x128xf32, #tpu.memory_space<vmem>>, vector<64x128xf32>,
    } else {
    }
    %c0 = arith.constant 0 : index
    %c0_1 = arith.constant 0 : index
    %3 = vector.load %arg3[%c0, %c0_1] : memref<64x32xbf16, #tpu.memory_space<vmem>>, vector<64x32xbf16>
    %c0_2 = arith.constant 0 : index
    %c0_3 = arith.constant 0 : index
    %4 = vector.load %arg7[%c0_2, %c0_3] : memref<64x128xf32, #tpu.memory_space<vmem>>, vector<64x128xf32>
    %c0_4 = arith.constant 0 : index
    %c0_5 = arith.constant 0 : index
    %5 = vector.load %arg4[%c0_4, %c0_5] : memref<32x128xbf16, #tpu.memory_space<vmem>>, vector<32x128xbf16>
    %cst = arith.constant dense<0.000000e+00> : vector<64x128xf32>
    %6 = tpu.matmul %3, %5, %cst {dimension_numbers = #tpu.dot_dimension_numbers<[1], [0], [0], [1], [0, 0, 1, 1], [], []>} : vector<64x32xbf16>, vector<32x128xbf16>, vector<64x128xf32> -> vector<64x128xf32>
    %7 = arith.addf %4, %6 : vector<64x128xf32>
    %c0_6 = arith.constant 0 : index
    %c0_7 = arith.constant 0 : index
    %8 = vector.load %arg7[%c0_6, %c0_7] : memref<64x128xf32, #tpu.memory_space<vmem>>, vector<64x128xf32>
    tpu.vector_store %arg7[%c0_6, %c0_7], %7 {strides = array<i32>} : memref<64x128xf32, #tpu.memory_space<vmem>>, vector<64x128xf32>,
    %c0_i32_8 = arith.constant 0 : i32
    %9 = arith.cmpi eq, %arg2, %c0_i32_8 : i32
    %10 = arith.extui %9 : i1 to i32
    %c0_i32_9 = arith.constant 0 : i32
    %11 = arith.cmpi ne, %10, %c0_i32_9 : i32
    scf.if %11 {
      %c0_10 = arith.constant 0 : index
      %c0_11 = arith.constant 0 : index
      %12 = vector.load %arg7[%c0_10, %c0_11] : memref<64x128xf32, #tpu.memory_space<vmem>>, vector<64x128xf32>
      %c0_12 = arith.constant 0 : index
      %c0_13 = arith.constant 0 : index
      %13 = vector.load %arg5[%c0_12, %c0_13] : memref<1x128xf32, #tpu.memory_space<vmem>>, vector<1x128xf32>
      %14 = vector.broadcast %13 : vector<1x128xf32> to vector<64x128xf32>
      %15 = arith.addf %12, %14 : vector<64x128xf32>
      %16 = arith.truncf %15 : vector<64x128xf32> to vector<64x128xbf16>
      %c0_14 = arith.constant 0 : index
      %c0_15 = arith.constant 0 : index
      %17 = vector.load %arg6[%c0_14, %c0_15] : memref<64x128xbf16, #tpu.memory_space<vmem>>, vector<64x128xbf16>
      tpu.vector_store %arg6[%c0_14, %c0_15], %16 {strides = array<i32>} : memref<64x128xbf16, #tpu.memory_space<vmem>>, vector<64x128xbf16>,
    } else {
    }
    return
  }
  func.func @transform_0(%arg0: i32, %arg1: i32, %arg2: i32) -> (i32, i32) {
    %c0_i32 = arith.constant 0 : i32
    return %arg0, %arg2 : i32, i32
  }
  func.func @transform_1(%arg0: i32, %arg1: i32, %arg2: i32) -> (i32, i32) {
    %c0_i32 = arith.constant 0 : i32
    return %arg2, %arg1 : i32, i32
  }
  func.func @transform_2(%arg0: i32, %arg1: i32, %arg2: i32) -> (i32, i32) {
    %c0_i32 = arith.constant 0 : i32
    %c0_i32_0 = arith.constant 0 : i32
    return %c0_i32, %arg1 : i32, i32
  }
  func.func @transform_3(%arg0: i32, %arg1: i32, %arg2: i32) -> (i32, i32) {
    %c0_i32 = arith.constant 0 : i32
    return %arg0, %arg1 : i32, i32
  }
}

module attributes {stable_mosaic.version = 11 : i64} {
  func.func @_bmm_kernel(%arg0: i32, %arg1: i32, %arg2: memref<16x8xbf16, #tpu.memory_space<vmem>>, %arg3: memref<1x8x256xbf16, #tpu.memory_space<vmem>>, %arg4: memref<1x16x256xbf16, #tpu.memory_space<vmem>>) attributes {dimension_semantics = [#tpu.dimension_semantics<parallel>, #tpu.dimension_semantics<parallel>], iteration_bounds = array<i64: 2, 1>, scalar_prefetch = 0 : i64, scratch_operands = 0 : i64, tpu.core_type = #tpu.core_type<tc>, window_params = [{pipeline_mode = #tpu.pipeline_mode<synchronous>, transform_indices = @transform_0, window_bounds = array<i64: 16, 8>}, {transform_indices = @transform_1, window_bounds = array<i64: 1, 8, 256>}, {transform_indices = @transform_2, window_bounds = array<i64: 1, 16, 256>}]} {
    %c0 = arith.constant 0 : index
    %c0_0 = arith.constant 0 : index
    %0 = vector.load %arg2[%c0, %c0_0] : memref<16x8xbf16, #tpu.memory_space<vmem>>, vector<16x8xbf16>
    %c0_1 = arith.constant 0 : index
    %c0_2 = arith.constant 0 : index
    %c0_3 = arith.constant 0 : index
    %1 = vector.load %arg3[%c0_1, %c0_2, %c0_3] : memref<1x8x256xbf16, #tpu.memory_space<vmem>>, vector<1x8x256xbf16>
    %2 = vector.shape_cast %1 : vector<1x8x256xbf16> to vector<8x256xbf16>
    %cst = arith.constant dense<0.000000e+00> : vector<16x256xf32>
    %3 = tpu.matmul %0, %2, %cst {dimension_numbers = #tpu.dot_dimension_numbers<[1], [0], [0], [1], [0, 0, 1, 1], [], []>} : vector<16x8xbf16>, vector<8x256xbf16>, vector<16x256xf32> -> vector<16x256xf32>
    %4 = arith.truncf %3 : vector<16x256xf32> to vector<16x256xbf16>
    %c0_4 = arith.constant 0 : index
    %c0_5 = arith.constant 0 : index
    %c0_6 = arith.constant 0 : index
    %5 = vector.load %arg4[%c0_4, %c0_5, %c0_6] : memref<1x16x256xbf16, #tpu.memory_space<vmem>>, vector<1x16x256xbf16>
    %6 = vector.shape_cast %5 : vector<1x16x256xbf16> to vector<16x256xbf16>
    %7 = vector.shape_cast %4 : vector<16x256xbf16> to vector<1x16x256xbf16>
    tpu.vector_store %arg4[%c0_4, %c0_5, %c0_6], %7 {strides = array<i32>} : memref<1x16x256xbf16, #tpu.memory_space<vmem>>, vector<1x16x256xbf16>,
    return
  }
  func.func @transform_0(%arg0: i32, %arg1: i32) -> (i32, i32) {
    %c0_i32 = arith.constant 0 : i32
    %c0_i32_0 = arith.constant 0 : i32
    %c0_i32_1 = arith.constant 0 : i32
    return %c0_i32, %c0_i32_0 : i32, i32
  }
  func.func @transform_1(%arg0: i32, %arg1: i32) -> (i32, i32, i32) {
    %c0_i32 = arith.constant 0 : i32
    %c0_i32_0 = arith.constant 0 : i32
    return %arg0, %c0_i32, %arg1 : i32, i32, i32
  }
  func.func @transform_2(%arg0: i32, %arg1: i32) -> (i32, i32, i32) {
    %c0_i32 = arith.constant 0 : i32
    %c0_i32_0 = arith.constant 0 : i32
    return %arg0, %c0_i32, %arg1 : i32, i32, i32
  }
}

module attributes {stable_mosaic.version = 11 : i64} {
  func.func @_bmm_kernel(%arg0: i32, %arg1: i32, %arg2: memref<16x8xbf16, #tpu.memory_space<vmem>>, %arg3: memref<4x8x128xbf16, #tpu.memory_space<vmem>>, %arg4: memref<4x16x128xbf16, #tpu.memory_space<vmem>>) attributes {dimension_semantics = [#tpu.dimension_semantics<parallel>, #tpu.dimension_semantics<parallel>], iteration_bounds = array<i64: 8, 1>, scalar_prefetch = 0 : i64, scratch_operands = 0 : i64, tpu.core_type = #tpu.core_type<tc>, window_params = [{pipeline_mode = #tpu.pipeline_mode<synchronous>, transform_indices = @transform_0, window_bounds = array<i64: 16, 8>}, {transform_indices = @transform_1, window_bounds = array<i64: 4, 8, 128>}, {transform_indices = @transform_2, window_bounds = array<i64: 4, 16, 128>}]} {
    %c0 = arith.constant 0 : index
    %c0_0 = arith.constant 0 : index
    %0 = vector.load %arg2[%c0, %c0_0] : memref<16x8xbf16, #tpu.memory_space<vmem>>, vector<16x8xbf16>
    %c0_1 = arith.constant 0 : index
    %c0_2 = arith.constant 0 : index
    %c0_3 = arith.constant 0 : index
    %1 = vector.load %arg3[%c0_1, %c0_2, %c0_3] : memref<4x8x128xbf16, #tpu.memory_space<vmem>>, vector<1x8x128xbf16>
    %2 = vector.shape_cast %1 : vector<1x8x128xbf16> to vector<8x128xbf16>
    %cst = arith.constant dense<0.000000e+00> : vector<16x128xf32>
    %3 = tpu.matmul %0, %2, %cst {dimension_numbers = #tpu.dot_dimension_numbers<[1], [0], [0], [1], [0, 0, 1, 1], [], []>} : vector<16x8xbf16>, vector<8x128xbf16>, vector<16x128xf32> -> vector<16x128xf32>
    %4 = arith.truncf %3 : vector<16x128xf32> to vector<16x128xbf16>
    %c0_4 = arith.constant 0 : index
    %c0_5 = arith.constant 0 : index
    %c0_6 = arith.constant 0 : index
    %5 = vector.load %arg4[%c0_4, %c0_5, %c0_6] : memref<4x16x128xbf16, #tpu.memory_space<vmem>>, vector<1x16x128xbf16>
    %6 = vector.shape_cast %5 : vector<1x16x128xbf16> to vector<16x128xbf16>
    %7 = vector.shape_cast %4 : vector<16x128xbf16> to vector<1x16x128xbf16>
    tpu.vector_store %arg4[%c0_4, %c0_5, %c0_6], %7 {strides = array<i32>} : memref<4x16x128xbf16, #tpu.memory_space<vmem>>, vector<1x16x128xbf16>,
    %c1 = arith.constant 1 : index
    %c0_7 = arith.constant 0 : index
    %c0_8 = arith.constant 0 : index
    %8 = vector.load %arg3[%c1, %c0_7, %c0_8] : memref<4x8x128xbf16, #tpu.memory_space<vmem>>, vector<1x8x128xbf16>
    %9 = vector.shape_cast %8 : vector<1x8x128xbf16> to vector<8x128xbf16>
    %cst_9 = arith.constant dense<0.000000e+00> : vector<16x128xf32>
    %10 = tpu.matmul %0, %9, %cst_9 {dimension_numbers = #tpu.dot_dimension_numbers<[1], [0], [0], [1], [0, 0, 1, 1], [], []>} : vector<16x8xbf16>, vector<8x128xbf16>, vector<16x128xf32> -> vector<16x128xf32>
    %11 = arith.truncf %10 : vector<16x128xf32> to vector<16x128xbf16>
    %c1_10 = arith.constant 1 : index
    %c0_11 = arith.constant 0 : index
    %c0_12 = arith.constant 0 : index
    %12 = vector.load %arg4[%c1_10, %c0_11, %c0_12] : memref<4x16x128xbf16, #tpu.memory_space<vmem>>, vector<1x16x128xbf16>
    %13 = vector.shape_cast %12 : vector<1x16x128xbf16> to vector<16x128xbf16>
    %14 = vector.shape_cast %11 : vector<16x128xbf16> to vector<1x16x128xbf16>
    tpu.vector_store %arg4[%c1_10, %c0_11, %c0_12], %14 {strides = array<i32>} : memref<4x16x128xbf16, #tpu.memory_space<vmem>>, vector<1x16x128xbf16>,
    %c2 = arith.constant 2 : index
    %c0_13 = arith.constant 0 : index
    %c0_14 = arith.constant 0 : index
    %15 = vector.load %arg3[%c2, %c0_13, %c0_14] : memref<4x8x128xbf16, #tpu.memory_space<vmem>>, vector<1x8x128xbf16>
    %16 = vector.shape_cast %15 : vector<1x8x128xbf16> to vector<8x128xbf16>
    %cst_15 = arith.constant dense<0.000000e+00> : vector<16x128xf32>
    %17 = tpu.matmul %0, %16, %cst_15 {dimension_numbers = #tpu.dot_dimension_numbers<[1], [0], [0], [1], [0, 0, 1, 1], [], []>} : vector<16x8xbf16>, vector<8x128xbf16>, vector<16x128xf32> -> vector<16x128xf32>
    %18 = arith.truncf %17 : vector<16x128xf32> to vector<16x128xbf16>
    %c2_16 = arith.constant 2 : index
    %c0_17 = arith.constant 0 : index
    %c0_18 = arith.constant 0 : index
    %19 = vector.load %arg4[%c2_16, %c0_17, %c0_18] : memref<4x16x128xbf16, #tpu.memory_space<vmem>>, vector<1x16x128xbf16>
    %20 = vector.shape_cast %19 : vector<1x16x128xbf16> to vector<16x128xbf16>
    %21 = vector.shape_cast %18 : vector<16x128xbf16> to vector<1x16x128xbf16>
    tpu.vector_store %arg4[%c2_16, %c0_17, %c0_18], %21 {strides = array<i32>} : memref<4x16x128xbf16, #tpu.memory_space<vmem>>, vector<1x16x128xbf16>,
    %c3 = arith.constant 3 : index
    %c0_19 = arith.constant 0 : index
    %c0_20 = arith.constant 0 : index
    %22 = vector.load %arg3[%c3, %c0_19, %c0_20] : memref<4x8x128xbf16, #tpu.memory_space<vmem>>, vector<1x8x128xbf16>
    %23 = vector.shape_cast %22 : vector<1x8x128xbf16> to vector<8x128xbf16>
    %cst_21 = arith.constant dense<0.000000e+00> : vector<16x128xf32>
    %24 = tpu.matmul %0, %23, %cst_21 {dimension_numbers = #tpu.dot_dimension_numbers<[1], [0], [0], [1], [0, 0, 1, 1], [], []>} : vector<16x8xbf16>, vector<8x128xbf16>, vector<16x128xf32> -> vector<16x128xf32>
    %25 = arith.truncf %24 : vector<16x128xf32> to vector<16x128xbf16>
    %c3_22 = arith.constant 3 : index
    %c0_23 = arith.constant 0 : index
    %c0_24 = arith.constant 0 : index
    %26 = vector.load %arg4[%c3_22, %c0_23, %c0_24] : memref<4x16x128xbf16, #tpu.memory_space<vmem>>, vector<1x16x128xbf16>
    %27 = vector.shape_cast %26 : vector<1x16x128xbf16> to vector<16x128xbf16>
    %28 = vector.shape_cast %25 : vector<16x128xbf16> to vector<1x16x128xbf16>
    tpu.vector_store %arg4[%c3_22, %c0_23, %c0_24], %28 {strides = array<i32>} : memref<4x16x128xbf16, #tpu.memory_space<vmem>>, vector<1x16x128xbf16>,
    return
  }
  func.func @transform_0(%arg0: i32, %arg1: i32) -> (i32, i32) {
    %c0_i32 = arith.constant 0 : i32
    %c0_i32_0 = arith.constant 0 : i32
    %c0_i32_1 = arith.constant 0 : i32
    return %c0_i32, %c0_i32_0 : i32, i32
  }
  func.func @transform_1(%arg0: i32, %arg1: i32) -> (i32, i32, i32) {
    %c0_i32 = arith.constant 0 : i32
    %c0_i32_0 = arith.constant 0 : i32
    return %arg0, %c0_i32, %arg1 : i32, i32, i32
  }
  func.func @transform_2(%arg0: i32, %arg1: i32) -> (i32, i32, i32) {
    %c0_i32 = arith.constant 0 : i32
    %c0_i32_0 = arith.constant 0 : i32
    return %arg0, %c0_i32, %arg1 : i32, i32, i32
  }
}

module attributes {stable_mosaic.version = 11 : i64} {
  func.func @_mm_kernel(%arg0: i32, %arg1: i32, %arg2: i32, %arg3: memref<256x32xbf16, #tpu.memory_space<vmem>>, %arg4: memref<32x512xbf16, #tpu.memory_space<vmem>>, %arg5: memref<1x512xf32, #tpu.memory_space<vmem>>, %arg6: memref<256x512xf32, #tpu.memory_space<vmem>>, %arg7: memref<256x512xf32, #tpu.memory_space<vmem>>) attributes {dimension_semantics = [#tpu.dimension_semantics<parallel>, #tpu.dimension_semantics<parallel>, #tpu.dimension_semantics<arbitrary>], iteration_bounds = array<i64: 2, 1, 1>, scalar_prefetch = 0 : i64, scratch_operands = 1 : i64, tpu.core_type = #tpu.core_type<tc>, window_params = [{transform_indices = @transform_0, window_bounds = array<i64: 256, 32>}, {transform_indices = @transform_1, window_bounds = array<i64: 32, 512>}, {transform_indices = @transform_2, window_bounds = array<i64: 1, 512>}, {transform_indices = @transform_3, window_bounds = array<i64: 256, 512>}]} {
    %c0_i32 = arith.constant 0 : i32
    %0 = arith.cmpi eq, %arg2, %c0_i32 : i32
    %1 = arith.extui %0 : i1 to i32
    %c0_i32_0 = arith.constant 0 : i32
    %2 = arith.cmpi ne, %1, %c0_i32_0 : i32
    scf.if %2 {
      %cst_10 = arith.constant 0.000000e+00 : f32
      %12 = vector.broadcast %cst_10 : f32 to vector<256x512xf32>
      %c0_11 = arith.constant 0 : index
      %c0_12 = arith.constant 0 : index
      %13 = vector.load %arg7[%c0_11, %c0_12] : memref<256x512xf32, #tpu.memory_space<vmem>>, vector<256x512xf32>
      tpu.vector_store %arg7[%c0_11, %c0_12], %12 {strides = array<i32>} : memref<256x512xf32, #tpu.memory_space<vmem>>, vector<256x512xf32>,
    } else {
    }
    %c0 = arith.constant 0 : index
    %c0_1 = arith.constant 0 : index
    %3 = vector.load %arg3[%c0, %c0_1] : memref<256x32xbf16, #tpu.memory_space<vmem>>, vector<256x32xbf16>
    %c0_2 = arith.constant 0 : index
    %c0_3 = arith.constant 0 : index
    %4 = vector.load %arg7[%c0_2, %c0_3] : memref<256x512xf32, #tpu.memory_space<vmem>>, vector<256x512xf32>
    %c0_4 = arith.constant 0 : index
    %c0_5 = arith.constant 0 : index
    %5 = vector.load %arg4[%c0_4, %c0_5] : memref<32x512xbf16, #tpu.memory_space<vmem>>, vector<32x512xbf16>
    %cst = arith.constant dense<0.000000e+00> : vector<256x512xf32>
    %6 = tpu.matmul %3, %5, %cst {dimension_numbers = #tpu.dot_dimension_numbers<[1], [0], [0], [1], [0, 0, 1, 1], [], []>} : vector<256x32xbf16>, vector<32x512xbf16>, vector<256x512xf32> -> vector<256x512xf32>
    %7 = arith.addf %4, %6 : vector<256x512xf32>
    %c0_6 = arith.constant 0 : index
    %c0_7 = arith.constant 0 : index
    %8 = vector.load %arg7[%c0_6, %c0_7] : memref<256x512xf32, #tpu.memory_space<vmem>>, vector<256x512xf32>
    tpu.vector_store %arg7[%c0_6, %c0_7], %7 {strides = array<i32>} : memref<256x512xf32, #tpu.memory_space<vmem>>, vector<256x512xf32>,
    %c0_i32_8 = arith.constant 0 : i32
    %9 = arith.cmpi eq, %arg2, %c0_i32_8 : i32
    %10 = arith.extui %9 : i1 to i32
    %c0_i32_9 = arith.constant 0 : i32
    %11 = arith.cmpi ne, %10, %c0_i32_9 : i32
    scf.if %11 {
      %c0_10 = arith.constant 0 : index
      %c0_11 = arith.constant 0 : index
      %12 = vector.load %arg7[%c0_10, %c0_11] : memref<256x512xf32, #tpu.memory_space<vmem>>, vector<256x512xf32>
      %c0_12 = arith.constant 0 : index
      %c0_13 = arith.constant 0 : index
      %13 = vector.load %arg5[%c0_12, %c0_13] : memref<1x512xf32, #tpu.memory_space<vmem>>, vector<1x512xf32>
      %14 = vector.broadcast %13 : vector<1x512xf32> to vector<256x512xf32>
      %15 = arith.addf %12, %14 : vector<256x512xf32>
      %16 = arith.mulf %15, %15 : vector<256x512xf32>
      %cst_14 = arith.constant dense<0.000000e+00> : vector<256xf32>
      %17 = vector.multi_reduction <add>, %16, %cst_14 [1] : vector<256x512xf32> to vector<256xf32>
      %18 = vector.shape_cast %17 : vector<256xf32> to vector<256x1xf32>
      %19 = math.rsqrt %18 : vector<256x1xf32>
      %20 = vector.broadcast %19 : vector<256x1xf32> to vector<256x512xf32>
      %21 = arith.mulf %15, %20 : vector<256x512xf32>
      %c0_15 = arith.constant 0 : index
      %c0_16 = arith.constant 0 : index
      %22 = vector.load %arg6[%c0_15, %c0_16] : memref<256x512xf32, #tpu.memory_space<vmem>>, vector<256x512xf32>
      tpu.vector_store %arg6[%c0_15, %c0_16], %21 {strides = array<i32>} : memref<256x512xf32, #tpu.memory_space<vmem>>, vector<256x512xf32>,
    } else {
    }
    return
  }
  func.func @transform_0(%arg0: i32, %arg1: i32, %arg2: i32) -> (i32, i32) {
    %c0_i32 = arith.constant 0 : i32
    return %arg0, %arg2 : i32, i32
  }
  func.func @transform_1(%arg0: i32, %arg1: i32, %arg2: i32) -> (i32, i32) {
    %c0_i32 = arith.constant 0 : i32
    return %arg2, %arg1 : i32, i32
  }
  func.func @transform_2(%arg0: i32, %arg1: i32, %arg2: i32) -> (i32, i32) {
    %c0_i32 = arith.constant 0 : i32
    %c0_i32_0 = arith.constant 0 : i32
    return %c0_i32, %arg1 : i32, i32
  }
  func.func @transform_3(%arg0: i32, %arg1: i32, %arg2: i32) -> (i32, i32) {
    %c0_i32 = arith.constant 0 : i32
    return %arg0, %arg1 : i32, i32
  }
}

module attributes {stable_mosaic.version = 11 : i64} {
  func.func @_bmm_kernel(%arg0: i32, %arg1: i32, %arg2: memref<32x16xbf16, #tpu.memory_space<vmem>>, %arg3: memref<2x16x512xbf16, #tpu.memory_space<vmem>>, %arg4: memref<2x32x512xbf16, #tpu.memory_space<vmem>>) attributes {dimension_semantics = [#tpu.dimension_semantics<parallel>, #tpu.dimension_semantics<parallel>], iteration_bounds = array<i64: 1, 16>, scalar_prefetch = 0 : i64, scratch_operands = 0 : i64, tpu.core_type = #tpu.core_type<tc>, window_params = [{pipeline_mode = #tpu.pipeline_mode<synchronous>, transform_indices = @transform_0, window_bounds = array<i64: 32, 16>}, {transform_indices = @transform_1, window_bounds = array<i64: 2, 16, 512>}, {transform_indices = @transform_2, window_bounds = array<i64: 2, 32, 512>}]} {
    %c0 = arith.constant 0 : index
    %c0_0 = arith.constant 0 : index
    %0 = vector.load %arg2[%c0, %c0_0] : memref<32x16xbf16, #tpu.memory_space<vmem>>, vector<32x16xbf16>
    %c0_1 = arith.constant 0 : index
    %c0_2 = arith.constant 0 : index
    %c0_3 = arith.constant 0 : index
    %1 = vector.load %arg3[%c0_1, %c0_2, %c0_3] : memref<2x16x512xbf16, #tpu.memory_space<vmem>>, vector<1x16x512xbf16>
    %2 = vector.shape_cast %1 : vector<1x16x512xbf16> to vector<16x512xbf16>
    %cst = arith.constant dense<0.000000e+00> : vector<32x512xf32>
    %3 = tpu.matmul %0, %2, %cst {dimension_numbers = #tpu.dot_dimension_numbers<[1], [0], [0], [1], [0, 0, 1, 1], [], []>} : vector<32x16xbf16>, vector<16x512xbf16>, vector<32x512xf32> -> vector<32x512xf32>
    %4 = arith.truncf %3 : vector<32x512xf32> to vector<32x512xbf16>
    %c0_4 = arith.constant 0 : index
    %c0_5 = arith.constant 0 : index
    %c0_6 = arith.constant 0 : index
    %5 = vector.load %arg4[%c0_4, %c0_5, %c0_6] : memref<2x32x512xbf16, #tpu.memory_space<vmem>>, vector<1x32x512xbf16>
    %6 = vector.shape_cast %5 : vector<1x32x512xbf16> to vector<32x512xbf16>
    %7 = vector.shape_cast %4 : vector<32x512xbf16> to vector<1x32x512xbf16>
    tpu.vector_store %arg4[%c0_4, %c0_5, %c0_6], %7 {strides = array<i32>} : memref<2x32x512xbf16, #tpu.memory_space<vmem>>, vector<1x32x512xbf16>,
    %c1 = arith.constant 1 : index
    %c0_7 = arith.constant 0 : index
    %c0_8 = arith.constant 0 : index
    %8 = vector.load %arg3[%c1, %c0_7, %c0_8] : memref<2x16x512xbf16, #tpu.memory_space<vmem>>, vector<1x16x512xbf16>
    %9 = vector.shape_cast %8 : vector<1x16x512xbf16> to vector<16x512xbf16>
    %cst_9 = arith.constant dense<0.000000e+00> : vector<32x512xf32>
    %10 = tpu.matmul %0, %9, %cst_9 {dimension_numbers = #tpu.dot_dimension_numbers<[1], [0], [0], [1], [0, 0, 1, 1], [], []>} : vector<32x16xbf16>, vector<16x512xbf16>, vector<32x512xf32> -> vector<32x512xf32>
    %11 = arith.truncf %10 : vector<32x512xf32> to vector<32x512xbf16>
    %c1_10 = arith.constant 1 : index
    %c0_11 = arith.constant 0 : index
    %c0_12 = arith.constant 0 : index
    %12 = vector.load %arg4[%c1_10, %c0_11, %c0_12] : memref<2x32x512xbf16, #tpu.memory_space<vmem>>, vector<1x32x512xbf16>
    %13 = vector.shape_cast %12 : vector<1x32x512xbf16> to vector<32x512xbf16>
    %14 = vector.shape_cast %11 : vector<32x512xbf16> to vector<1x32x512xbf16>
    tpu.vector_store %arg4[%c1_10, %c0_11, %c0_12], %14 {strides = array<i32>} : memref<2x32x512xbf16, #tpu.memory_space<vmem>>, vector<1x32x512xbf16>,
    return
  }
  func.func @transform_0(%arg0: i32, %arg1: i32) -> (i32, i32) {
    %c0_i32 = arith.constant 0 : i32
    %c0_i32_0 = arith.constant 0 : i32
    %c0_i32_1 = arith.constant 0 : i32
    return %c0_i32, %c0_i32_0 : i32, i32
  }
  func.func @transform_1(%arg0: i32, %arg1: i32) -> (i32, i32, i32) {
    %c0_i32 = arith.constant 0 : i32
    %c0_i32_0 = arith.constant 0 : i32
    return %arg0, %c0_i32, %arg1 : i32, i32, i32
  }
  func.func @transform_2(%arg0: i32, %arg1: i32) -> (i32, i32, i32) {
    %c0_i32 = arith.constant 0 : i32
    %c0_i32_0 = arith.constant 0 : i32
    return %arg0, %c0_i32, %arg1 : i32, i32, i32
  }
}

module attributes {stable_mosaic.version = 11 : i64} {
  func.func @_bmm_kernel(%arg0: i32, %arg1: i32, %arg2: memref<32x16xbf16, #tpu.memory_space<vmem>>, %arg3: memref<4x16x512xbf16, #tpu.memory_space<vmem>>, %arg4: memref<4x32x512xf32, #tpu.memory_space<vmem>>) attributes {dimension_semantics = [#tpu.dimension_semantics<parallel>, #tpu.dimension_semantics<parallel>], iteration_bounds = array<i64: 16, 1>, scalar_prefetch = 0 : i64, scratch_operands = 0 : i64, tpu.core_type = #tpu.core_type<tc>, window_params = [{pipeline_mode = #tpu.pipeline_mode<synchronous>, transform_indices = @transform_0, window_bounds = array<i64: 32, 16>}, {transform_indices = @transform_1, window_bounds = array<i64: 4, 16, 512>}, {transform_indices = @transform_2, window_bounds = array<i64: 4, 32, 512>}]} {
    %c0 = arith.constant 0 : index
    %c0_0 = arith.constant 0 : index
    %0 = vector.load %arg2[%c0, %c0_0] : memref<32x16xbf16, #tpu.memory_space<vmem>>, vector<32x16xbf16>
    %c0_1 = arith.constant 0 : index
    %c0_2 = arith.constant 0 : index
    %c0_3 = arith.constant 0 : index
    %1 = vector.load %arg3[%c0_1, %c0_2, %c0_3] : memref<4x16x512xbf16, #tpu.memory_space<vmem>>, vector<1x16x512xbf16>
    %2 = vector.shape_cast %1 : vector<1x16x512xbf16> to vector<16x512xbf16>
    %cst = arith.constant dense<0.000000e+00> : vector<32x512xf32>
    %3 = tpu.matmul %0, %2, %cst {dimension_numbers = #tpu.dot_dimension_numbers<[1], [0], [0], [1], [0, 0, 1, 1], [], []>} : vector<32x16xbf16>, vector<16x512xbf16>, vector<32x512xf32> -> vector<32x512xf32>
    %c0_4 = arith.constant 0 : index
    %c0_5 = arith.constant 0 : index
    %c0_6 = arith.constant 0 : index
    %4 = vector.load %arg4[%c0_4, %c0_5, %c0_6] : memref<4x32x512xf32, #tpu.memory_space<vmem>>, vector<1x32x512xf32>
    %5 = vector.shape_cast %4 : vector<1x32x512xf32> to vector<32x512xf32>
    %6 = vector.shape_cast %3 : vector<32x512xf32> to vector<1x32x512xf32>
    tpu.vector_store %arg4[%c0_4, %c0_5, %c0_6], %6 {strides = array<i32>} : memref<4x32x512xf32, #tpu.memory_space<vmem>>, vector<1x32x512xf32>,
    %c1 = arith.constant 1 : index
    %c0_7 = arith.constant 0 : index
    %c0_8 = arith.constant 0 : index
    %7 = vector.load %arg3[%c1, %c0_7, %c0_8] : memref<4x16x512xbf16, #tpu.memory_space<vmem>>, vector<1x16x512xbf16>
    %8 = vector.shape_cast %7 : vector<1x16x512xbf16> to vector<16x512xbf16>
    %cst_9 = arith.constant dense<0.000000e+00> : vector<32x512xf32>
    %9 = tpu.matmul %0, %8, %cst_9 {dimension_numbers = #tpu.dot_dimension_numbers<[1], [0], [0], [1], [0, 0, 1, 1], [], []>} : vector<32x16xbf16>, vector<16x512xbf16>, vector<32x512xf32> -> vector<32x512xf32>
    %c1_10 = arith.constant 1 : index
    %c0_11 = arith.constant 0 : index
    %c0_12 = arith.constant 0 : index
    %10 = vector.load %arg4[%c1_10, %c0_11, %c0_12] : memref<4x32x512xf32, #tpu.memory_space<vmem>>, vector<1x32x512xf32>
    %11 = vector.shape_cast %10 : vector<1x32x512xf32> to vector<32x512xf32>
    %12 = vector.shape_cast %9 : vector<32x512xf32> to vector<1x32x512xf32>
    tpu.vector_store %arg4[%c1_10, %c0_11, %c0_12], %12 {strides = array<i32>} : memref<4x32x512xf32, #tpu.memory_space<vmem>>, vector<1x32x512xf32>,
    %c2 = arith.constant 2 : index
    %c0_13 = arith.constant 0 : index
    %c0_14 = arith.constant 0 : index
    %13 = vector.load %arg3[%c2, %c0_13, %c0_14] : memref<4x16x512xbf16, #tpu.memory_space<vmem>>, vector<1x16x512xbf16>
    %14 = vector.shape_cast %13 : vector<1x16x512xbf16> to vector<16x512xbf16>
    %cst_15 = arith.constant dense<0.000000e+00> : vector<32x512xf32>
    %15 = tpu.matmul %0, %14, %cst_15 {dimension_numbers = #tpu.dot_dimension_numbers<[1], [0], [0], [1], [0, 0, 1, 1], [], []>} : vector<32x16xbf16>, vector<16x512xbf16>, vector<32x512xf32> -> vector<32x512xf32>
    %c2_16 = arith.constant 2 : index
    %c0_17 = arith.constant 0 : index
    %c0_18 = arith.constant 0 : index
    %16 = vector.load %arg4[%c2_16, %c0_17, %c0_18] : memref<4x32x512xf32, #tpu.memory_space<vmem>>, vector<1x32x512xf32>
    %17 = vector.shape_cast %16 : vector<1x32x512xf32> to vector<32x512xf32>
    %18 = vector.shape_cast %15 : vector<32x512xf32> to vector<1x32x512xf32>
    tpu.vector_store %arg4[%c2_16, %c0_17, %c0_18], %18 {strides = array<i32>} : memref<4x32x512xf32, #tpu.memory_space<vmem>>, vector<1x32x512xf32>,
    %c3 = arith.constant 3 : index
    %c0_19 = arith.constant 0 : index
    %c0_20 = arith.constant 0 : index
    %19 = vector.load %arg3[%c3, %c0_19, %c0_20] : memref<4x16x512xbf16, #tpu.memory_space<vmem>>, vector<1x16x512xbf16>
    %20 = vector.shape_cast %19 : vector<1x16x512xbf16> to vector<16x512xbf16>
    %cst_21 = arith.constant dense<0.000000e+00> : vector<32x512xf32>
    %21 = tpu.matmul %0, %20, %cst_21 {dimension_numbers = #tpu.dot_dimension_numbers<[1], [0], [0], [1], [0, 0, 1, 1], [], []>} : vector<32x16xbf16>, vector<16x512xbf16>, vector<32x512xf32> -> vector<32x512xf32>
    %c3_22 = arith.constant 3 : index
    %c0_23 = arith.constant 0 : index
    %c0_24 = arith.constant 0 : index
    %22 = vector.load %arg4[%c3_22, %c0_23, %c0_24] : memref<4x32x512xf32, #tpu.memory_space<vmem>>, vector<1x32x512xf32>
    %23 = vector.shape_cast %22 : vector<1x32x512xf32> to vector<32x512xf32>
    %24 = vector.shape_cast %21 : vector<32x512xf32> to vector<1x32x512xf32>
    tpu.vector_store %arg4[%c3_22, %c0_23, %c0_24], %24 {strides = array<i32>} : memref<4x32x512xf32, #tpu.memory_space<vmem>>, vector<1x32x512xf32>,
    return
  }
  func.func @transform_0(%arg0: i32, %arg1: i32) -> (i32, i32) {
    %c0_i32 = arith.constant 0 : i32
    %c0_i32_0 = arith.constant 0 : i32
    %c0_i32_1 = arith.constant 0 : i32
    return %c0_i32, %c0_i32_0 : i32, i32
  }
  func.func @transform_1(%arg0: i32, %arg1: i32) -> (i32, i32, i32) {
    %c0_i32 = arith.constant 0 : i32
    %c0_i32_0 = arith.constant 0 : i32
    return %arg0, %c0_i32, %arg1 : i32, i32, i32
  }
  func.func @transform_2(%arg0: i32, %arg1: i32) -> (i32, i32, i32) {
    %c0_i32 = arith.constant 0 : i32
    %c0_i32_0 = arith.constant 0 : i32
    return %arg0, %c0_i32, %arg1 : i32, i32, i32
  }
}

</mosaic_0001>

<bundles_post_ra>
// kernel: lseg_forward.19
= control target key start
LH: loop header
LB: loop body
LE: loop exit
PB: predicated region body
PF: predicated region fallthrough
CT: control target
= control target key end

     0   :  { %s759_s12 = smov 0   ;;  %s761_s13 = smov 0   ;;  %s829_s0 = inlined_call_operand.vmem [shape: bf16[128,128], index: 0, kind: input, shape index: {}]   ;;  %s830_s1 = inlined_call_operand.vmem [shape: bf16[128,128], index: 1, kind: input, shape index: {}]   ;;  %s831_s2 = inlined_call_operand.vmem [shape: f32[1,128], index: 2, kind: input, shape index: {}]   ;;  %s832_s3 = inlined_call_operand.vmem [shape: bf16[128,16], index: 3, kind: output, shape index: {}]  }
   0x1   :  { %s763_s14 = smov 0  }
   0x2 LB: > { %s32_s15 = sadd.s32 1, %s733_s13  ;;  %p576_p0 = scmp.ge.s32.totalorder %s737_s14, 1  ;;  %s737_s14 = sphi %s763_s14, %s13_s14   ;;  %s733_s13 = sphi %s761_s13, %s834_s13   ;;  %s729_s12 = sphi %s759_s12, %s833_s12  }
   0x3   : > { %p34_p1 = scmp.ge.s32.totalorder %s32_s15, 2  ;;  %p188_p2 = scmp.lt.s32.totalorder %s737_s14, 3 }
   0x5   : > { %s836_s15 = smov (%p34_p1, %s32_s15), 0  ;;  %p189_p3 = pnand %p576_p0, %p188_p2 }
   0x6   : > { %s577_s24 = sshll.u32 (!%p189_p3), %s729_s12, 3 }
   0x7   : > { %192 = sbr.rel (%p189_p3) target bundleno = 191 (0xbf), region = 32  ;;  %p230_p4 = scmp.lt.s32.totalorder (!%p189_p3), %s577_s24, 15 }
   0xc   : > { %v642_v0 = vld [vmem:[%s830_s1 + $0x38] sm:$0xff]  ;;  %v641_v1 = vld [vmem:[%s830_s1 + $0x30] sm:$0xff]  ;;  %v640_v2 = vld [vmem:[%s830_s1 + $0x28] sm:$0xff]  ;;  %s838_s24 = smov (!%p230_p4, %s577_s24), 15 }
   0xd   : > { %375 = vmatpush.bf16.msra.mxu0 %v642_v0  ;;  %666 = vmatpush.bf16.msra.mxu1 %v642_v0  ;;  %v639_v3 = vld [vmem:[%s830_s1 + $0x20] sm:$0xff]  ;;  %v638_v4 = vld [vmem:[%s830_s1 + $0x18] sm:$0xff]  ;;  %v637_v5 = vld [vmem:[%s830_s1 + $0x10] sm:$0xff]  ;;  %s578_s4 = sshll.u32 %s838_s24, 2 }
   0xe   : > { %667 = vmatpush.bf16.msra.mxu2 %v642_v0  ;;  %668 = vmatpush.bf16.msra.mxu3 %v642_v0  ;;  %v636_v6 = vld [vmem:[%s830_s1 + $0x8] sm:$0xff]  ;;  %v635_v7 = vld [vmem:[%s830_s1] sm:$0xff]  ;;  %s236_s9 = scalar_lea.vmem %s829_s0, %s578_s4  ;;  %s257_s17 = scalar_lea.vmem %s832_s3, %s578_s4 }
   0xf   : > { %v631_v8 = vld [vmem:[%s236_s9] sm:$0xff]  ;;  %v632_v9 = vld [vmem:[%s236_s9 + $0x8] sm:$0xff]  ;;  %v633_v10 = vld [vmem:[%s236_s9 + $0x10] sm:$0xff] }
  0x10   : > { %v634_v11 = vld [vmem:[%s236_s9 + $0x18] sm:$0xff]  ;;  %v714_v14 = vld [vmem:[%s831_s2] ss:$0 sm:$0xff] }
  0x11   : > { %376 = vmatpush.bf16.msra.mxu0 %v641_v1  ;;  %669 = vmatpush.bf16.msra.mxu1 %v641_v1 }
  0x12   : > { %670 = vmatpush.bf16.msra.mxu2 %v641_v1  ;;  %671 = vmatpush.bf16.msra.mxu3 %v641_v1 }
  0x15   : > { %377 = vmatpush.bf16.msra.mxu0 %v640_v2  ;;  %672 = vmatpush.bf16.msra.mxu1 %v640_v2 }
  0x16   : > { %673 = vmatpush.bf16.msra.mxu2 %v640_v2  ;;  %674 = vmatpush.bf16.msra.mxu3 %v640_v2 }
  0x19   : > { %378 = vmatpush.bf16.msra.mxu0 %v639_v3  ;;  %675 = vmatpush.bf16.msra.mxu1 %v639_v3 }
  0x1a   : > { %676 = vmatpush.bf16.msra.mxu2 %v639_v3  ;;  %677 = vmatpush.bf16.msra.mxu3 %v639_v3 }
  0x1d   : > { %379 = vmatpush.bf16.msra.mxu0 %v638_v4  ;;  %678 = vmatpush.bf16.msra.mxu1 %v638_v4 }
  0x1e   : > { %679 = vmatpush.bf16.msra.mxu2 %v638_v4  ;;  %680 = vmatpush.bf16.msra.mxu3 %v638_v4 }
  0x21   : > { %380 = vmatpush.bf16.msra.mxu0 %v637_v5  ;;  %681 = vmatpush.bf16.msra.mxu1 %v637_v5 }
  0x22   : > { %682 = vmatpush.bf16.msra.mxu2 %v637_v5  ;;  %683 = vmatpush.bf16.msra.mxu3 %v637_v5 }
  0x25   : > { %381 = vmatpush.bf16.msra.mxu0 %v636_v6  ;;  %684 = vmatpush.bf16.msra.mxu1 %v636_v6 }
  0x26   : > { %685 = vmatpush.bf16.msra.mxu2 %v636_v6  ;;  %686 = vmatpush.bf16.msra.mxu3 %v636_v6 }
  0x29   : > { %382 = vmatpush.bf16.msra.mxu0 %v635_v7  ;;  %687 = vmatpush.bf16.msra.mxu1 %v635_v7 }
  0x2a   : > { %688 = vmatpush.bf16.msra.mxu2 %v635_v7  ;;  %689 = vmatpush.bf16.msra.mxu3 %v635_v7 }
  0x2c   : > { %383 = vmatmul.bf16.vlgmr.msra.gmra.mxu0 %v631_v8  ;;  %388 = vmatmul.bf16.vlgmr.msra.gmra.mxu1 %v632_v9 }
  0x2d   : > { %393 = vmatmul.bf16.vlgmr.msra.gmra.mxu2 %v633_v10  ;;  %398 = vmatmul.bf16.vlgmr.msra.gmra.mxu3 %v634_v11 }
  0xa9   : > { %v384_v12 = vpop.f32.mrf.mxu0  ;;  %v389_v13 = vpop.f32.mrf.mxu1 }
  0xaa   : > { %v435_v19 = vadd.f32 %v714_v14, %v384_v12  ;;  %v437_v20 = vadd.f32 %v714_v14, %v389_v13 }
  0xb0   : > { %v394_v15 = vpop.f32.mrf.mxu2  ;;  %v399_v16 = vpop.f32.mrf.mxu3 }
  0xb1   : > { %v386_v17 = vpop.f32.mrf.mxu0  ;;  %v391_v18 = vpop.f32.mrf.mxu1  ;;  %v439_v27 = vadd.f32 %v714_v14, %v394_v15  ;;  %v441_v28 = vadd.f32 %v714_v14, %v399_v16 }
  0xb2   : > { %v436_v21 = vadd.f32 %v714_v14, %v386_v17  ;;  %v438_v22 = vadd.f32 %v714_v14, %v391_v18 }
  0xb4   : > { %v646_v23 = vpack.c.bf16 %v436_v21, %v435_v19  ;;  %v651_v24 = vpack.c.bf16 %v438_v22, %v437_v20 }
  0xb6   : > { %647 = vst [vmem:[%s257_s17] sm:$0xff] %v646_v23  }
  0xb7   : > { %663 = vst [vmem:[%s257_s17 + $0x8] sm:$0xff] %v651_v24  }
  0xb8   : > { %v396_v25 = vpop.f32.mrf.mxu2  ;;  %v401_v26 = vpop.f32.mrf.mxu3 }
  0xb9   : > { %v440_v29 = vadd.f32 %v714_v14, %v396_v25  ;;  %v442_v30 = vadd.f32 %v714_v14, %v401_v26 }
  0xbb   : > { %v656_v31 = vpack.c.bf16 %v440_v29, %v439_v27  ;;  %v661_v32 = vpack.c.bf16 %v442_v30, %v441_v28 }
  0xbd   : > { %664 = vst [vmem:[%s257_s17 + $0x10] sm:$0xff] %v656_v31  }
  0xbe   : > { %665 = vst [vmem:[%s257_s17 + $0x18] sm:$0xff] %v661_v32  }
  0xbf PF: > { %s13_s14 = sadd.s32 1, %s737_s14   ;;  %s833_s12 = smov %s733_s13 }
  0xc0   : > { %p10_p5 = scmp.ge.s32.totalorder %s13_s14, 4   ;;  %s834_s13 = smov %s836_s15 }
  0xc2   :  { %12 = sbr.rel (!%p10_p5) target bundleno = 2 (0x2), region = 76 }

// kernel: lseg_forward.20
= control target key start
LH: loop header
LB: loop body
LE: loop exit
PB: predicated region body
PF: predicated region fallthrough
CT: control target
= control target key end

     0   :  { %s755_s12 = smov 0   ;;  %s757_s13 = smov 0   ;;  %s846_s0 = inlined_call_operand.vmem [shape: bf16[32,256], index: 0, kind: input, shape index: {}]   ;;  %s847_s1 = inlined_call_operand.vmem [shape: bf16[256,128], index: 1, kind: input, shape index: {}]   ;;  %s848_s2 = inlined_call_operand.vmem [shape: f32[1,128], index: 2, kind: input, shape index: {}]   ;;  %s849_s3 = inlined_call_operand.vmem [shape: bf16[32,24], index: 3, kind: output, shape index: {}]  }
   0x1   :  { %s759_s14 = smov 0  }
   0x2 LB: > { %s32_s15 = sadd.s32 1, %s729_s13  ;;  %p582_p0 = scmp.ge.s32.totalorder %s733_s14, 1  ;;  %s733_s14 = sphi %s759_s14, %s13_s14   ;;  %s729_s13 = sphi %s757_s13, %s851_s13   ;;  %s725_s12 = sphi %s755_s12, %s850_s12  }
   0x3   : > { %p34_p1 = scmp.ge.s32.totalorder %s32_s15, 2  ;;  %p191_p2 = scmp.lt.s32.totalorder %s733_s14, 3 }
   0x5   : > { %s853_s15 = smov (%p34_p1, %s32_s15), 0  ;;  %p192_p3 = pnand %p582_p0, %p191_p2 }
   0x6   : > { %s583_s28 = sshll.u32 (!%p192_p3), %s725_s12, 1 }
   0x7   : > { %195 = sbr.rel (%p192_p3) target bundleno = 186 (0xba), region = 32  ;;  %p236_p4 = scmp.lt.s32.totalorder (!%p192_p3), %s583_s28, 3 }
   0xc   : > { %v672_v0 = vld [vmem:[%s847_s1 + $0x38] sm:$0xff]  ;;  %v671_v2 = vld [vmem:[%s847_s1 + $0x30] sm:$0xff]  ;;  %v670_v4 = vld [vmem:[%s847_s1 + $0x28] sm:$0xff]  ;;  %s855_s28 = smov (!%p236_p4, %s583_s28), 3 }
   0xd   : > { %v680_v1 = vld [vmem:[%s847_s1 + $0x78] sm:$0xff]  ;;  %415 = vmatpush.bf16.msra.mxu0 %v672_v0  ;;  %v679_v3 = vld [vmem:[%s847_s1 + $0x70] sm:$0xff]  ;;  %v678_v5 = vld [vmem:[%s847_s1 + $0x68] sm:$0xff]  ;;  %s662_s17 = sshll.u32 %s855_s28, 3  ;;  %s587_s5 = sshll.u32 %s855_s28, 2 }
   0xe   : > { %429 = vmatpush.bf16.msra.mxu1 %v680_v1  ;;  %v669_v6 = vld [vmem:[%s847_s1 + $0x20] sm:$0xff]  ;;  %v668_v8 = vld [vmem:[%s847_s1 + $0x18] sm:$0xff]  ;;  %v667_v10 = vld [vmem:[%s847_s1 + $0x10] sm:$0xff]  ;;  %s243_s24 = scalar_lea.vmem %s846_s0, %s662_s17  ;;  %s265_s8 = scalar_lea.vmem %s849_s3, %s587_s5 }
   0xf   : > { %v677_v7 = vld [vmem:[%s847_s1 + $0x60] sm:$0xff]  ;;  %v676_v9 = vld [vmem:[%s847_s1 + $0x58] sm:$0xff]  ;;  %v675_v11 = vld [vmem:[%s847_s1 + $0x50] sm:$0xff] }
  0x10   : > { %v666_v12 = vld [vmem:[%s847_s1 + $0x8] sm:$0xff]  ;;  %v665_v14 = vld [vmem:[%s847_s1] sm:$0xff] }
  0x11   : > { %416 = vmatpush.bf16.msra.mxu0 %v671_v2  ;;  %v674_v13 = vld [vmem:[%s847_s1 + $0x48] sm:$0xff]  ;;  %v673_v15 = vld [vmem:[%s847_s1 + $0x40] sm:$0xff] }
  0x12   : > { %430 = vmatpush.bf16.msra.mxu1 %v679_v3  ;;  %v590_v16 = vld [vmem:[%s243_s24] sm:$0xf]  ;;  %v664_v17 = vld [vmem:[%s243_s24 + $0x4] sm:$0xf0]  ;;  %v663_v18 = vld [vmem:[%s243_s24 + $0x4] sm:$0xf] }
  0x13   : > { %v592_v19 = vld [vmem:[%s243_s24 + $0x8] sm:$0xf0]  ;;  %v591_v20 = vor.u32 %v664_v17, %v590_v16  ;;  %v710_v25 = vld [vmem:[%s848_s2] ss:$0 sm:$0xff] }
  0x14   : > { %v595_v21 = vor.u32 %v663_v18, %v592_v19 }
  0x15   : > { %417 = vmatpush.bf16.msra.mxu0 %v670_v4 }
  0x16   : > { %431 = vmatpush.bf16.msra.mxu1 %v678_v5 }
  0x19   : > { %418 = vmatpush.bf16.msra.mxu0 %v669_v6 }
  0x1a   : > { %432 = vmatpush.bf16.msra.mxu1 %v677_v7 }
  0x1d   : > { %419 = vmatpush.bf16.msra.mxu0 %v668_v8 }
  0x1e   : > { %433 = vmatpush.bf16.msra.mxu1 %v676_v9 }
  0x21   : > { %420 = vmatpush.bf16.msra.mxu0 %v667_v10 }
  0x22   : > { %434 = vmatpush.bf16.msra.mxu1 %v675_v11 }
  0x25   : > { %421 = vmatpush.bf16.msra.mxu0 %v666_v12 }
  0x26   : > { %435 = vmatpush.bf16.msra.mxu1 %v674_v13 }
  0x29   : > { %422 = vmatpush.bf16.msra.mxu0 %v665_v14 }
  0x2a   : > { %436 = vmatpush.bf16.msra.mxu1 %v673_v15 }
  0x2c   : > { %423 = vmatmul.bf16.vlgmr.msra.gmra.mxu0 %v591_v20 }
  0x2d   : > { %437 = vmatmul.bf16.vlgmr.msra.gmra.mxu1 %v595_v21 }
  0xa9   : > { %v424_v22 = vpop.f32.mrf.mxu0 }
  0xaa   : > { %v438_v23 = vpop.f32.mrf.mxu1 }
  0xab   : > { %v439_v24 = vadd.f32 %v438_v23, %v424_v22 }
  0xad   : > { %v456_v29 = vadd.f32 %v710_v25, %v439_v24 }
  0xb1   : > { %v426_v26 = vpop.f32.mrf.mxu0 }
  0xb2   : > { %v440_v27 = vpop.f32.mrf.mxu1 }
  0xb3   : > { %v441_v28 = vadd.f32 %v440_v27, %v426_v26 }
  0xb5   : > { %v457_v30 = vadd.f32 %v710_v25, %v441_v28 }
  0xb7   : > { %v684_v31 = vpack.c.bf16 %v457_v30, %v456_v29 }
  0xb9   : > { %685 = vst [vmem:[%s265_s8] sm:$0xff] %v684_v31  }
  0xba PF: > { %s13_s14 = sadd.s32 1, %s733_s14   ;;  %s850_s12 = smov %s729_s13 }
  0xbb   : > { %p10_p5 = scmp.ge.s32.totalorder %s13_s14, 4   ;;  %s851_s13 = smov %s853_s15 }
  0xbd   :  { %12 = sbr.rel (!%p10_p5) target bundleno = 2 (0x2), region = 76 }

// kernel: lseg_forward.22
= control target key start
LH: loop header
LB: loop body
LE: loop exit
PB: predicated region body
PF: predicated region fallthrough
CT: control target
= control target key end

     0   :  { %s755_s12 = smov 0   ;;  %s757_s13 = smov 0   ;;  %s846_s0 = inlined_call_operand.vmem [shape: bf16[32,256], index: 0, kind: input, shape index: {}]   ;;  %s847_s1 = inlined_call_operand.vmem [shape: bf16[256,128], index: 1, kind: input, shape index: {}]   ;;  %s848_s2 = inlined_call_operand.vmem [shape: f32[1,128], index: 2, kind: input, shape index: {}]   ;;  %s849_s3 = inlined_call_operand.vmem [shape: bf16[32,32], index: 3, kind: output, shape index: {}]  }
   0x1   :  { %s759_s14 = smov 0  }
   0x2 LB: > { %s32_s15 = sadd.s32 1, %s729_s13  ;;  %p582_p0 = scmp.ge.s32.totalorder %s733_s14, 1  ;;  %s733_s14 = sphi %s759_s14, %s13_s14   ;;  %s729_s13 = sphi %s757_s13, %s851_s13   ;;  %s725_s12 = sphi %s755_s12, %s850_s12  }
   0x3   : > { %p34_p1 = scmp.ge.s32.totalorder %s32_s15, 2  ;;  %p191_p2 = scmp.lt.s32.totalorder %s733_s14, 3 }
   0x5   : > { %s853_s15 = smov (%p34_p1, %s32_s15), 0  ;;  %p192_p3 = pnand %p582_p0, %p191_p2 }
   0x6   : > { %s583_s28 = sshll.u32 (!%p192_p3), %s725_s12, 1 }
   0x7   : > { %195 = sbr.rel (%p192_p3) target bundleno = 186 (0xba), region = 32  ;;  %p236_p4 = scmp.lt.s32.totalorder (!%p192_p3), %s583_s28, 3 }
   0xc   : > { %v672_v0 = vld [vmem:[%s847_s1 + $0x38] sm:$0xff]  ;;  %v671_v2 = vld [vmem:[%s847_s1 + $0x30] sm:$0xff]  ;;  %v670_v4 = vld [vmem:[%s847_s1 + $0x28] sm:$0xff]  ;;  %s855_s28 = smov (!%p236_p4, %s583_s28), 3 }
   0xd   : > { %v680_v1 = vld [vmem:[%s847_s1 + $0x78] sm:$0xff]  ;;  %415 = vmatpush.bf16.msra.mxu0 %v672_v0  ;;  %v679_v3 = vld [vmem:[%s847_s1 + $0x70] sm:$0xff]  ;;  %v678_v5 = vld [vmem:[%s847_s1 + $0x68] sm:$0xff]  ;;  %s662_s17 = sshll.u32 %s855_s28, 3  ;;  %s587_s5 = sshll.u32 %s855_s28, 2 }
   0xe   : > { %429 = vmatpush.bf16.msra.mxu1 %v680_v1  ;;  %v669_v6 = vld [vmem:[%s847_s1 + $0x20] sm:$0xff]  ;;  %v668_v8 = vld [vmem:[%s847_s1 + $0x18] sm:$0xff]  ;;  %v667_v10 = vld [vmem:[%s847_s1 + $0x10] sm:$0xff]  ;;  %s243_s24 = scalar_lea.vmem %s846_s0, %s662_s17  ;;  %s265_s8 = scalar_lea.vmem %s849_s3, %s587_s5 }
   0xf   : > { %v677_v7 = vld [vmem:[%s847_s1 + $0x60] sm:$0xff]  ;;  %v676_v9 = vld [vmem:[%s847_s1 + $0x58] sm:$0xff]  ;;  %v675_v11 = vld [vmem:[%s847_s1 + $0x50] sm:$0xff] }
  0x10   : > { %v666_v12 = vld [vmem:[%s847_s1 + $0x8] sm:$0xff]  ;;  %v665_v14 = vld [vmem:[%s847_s1] sm:$0xff] }
  0x11   : > { %416 = vmatpush.bf16.msra.mxu0 %v671_v2  ;;  %v674_v13 = vld [vmem:[%s847_s1 + $0x48] sm:$0xff]  ;;  %v673_v15 = vld [vmem:[%s847_s1 + $0x40] sm:$0xff] }
  0x12   : > { %430 = vmatpush.bf16.msra.mxu1 %v679_v3  ;;  %v590_v16 = vld [vmem:[%s243_s24] sm:$0xf]  ;;  %v664_v17 = vld [vmem:[%s243_s24 + $0x4] sm:$0xf0]  ;;  %v663_v18 = vld [vmem:[%s243_s24 + $0x4] sm:$0xf] }
  0x13   : > { %v592_v19 = vld [vmem:[%s243_s24 + $0x8] sm:$0xf0]  ;;  %v591_v20 = vor.u32 %v664_v17, %v590_v16  ;;  %v710_v25 = vld [vmem:[%s848_s2] ss:$0 sm:$0xff] }
  0x14   : > { %v595_v21 = vor.u32 %v663_v18, %v592_v19 }
  0x15   : > { %417 = vmatpush.bf16.msra.mxu0 %v670_v4 }
  0x16   : > { %431 = vmatpush.bf16.msra.mxu1 %v678_v5 }
  0x19   : > { %418 = vmatpush.bf16.msra.mxu0 %v669_v6 }
  0x1a   : > { %432 = vmatpush.bf16.msra.mxu1 %v677_v7 }
  0x1d   : > { %419 = vmatpush.bf16.msra.mxu0 %v668_v8 }
  0x1e   : > { %433 = vmatpush.bf16.msra.mxu1 %v676_v9 }
  0x21   : > { %420 = vmatpush.bf16.msra.mxu0 %v667_v10 }
  0x22   : > { %434 = vmatpush.bf16.msra.mxu1 %v675_v11 }
  0x25   : > { %421 = vmatpush.bf16.msra.mxu0 %v666_v12 }
  0x26   : > { %435 = vmatpush.bf16.msra.mxu1 %v674_v13 }
  0x29   : > { %422 = vmatpush.bf16.msra.mxu0 %v665_v14 }
  0x2a   : > { %436 = vmatpush.bf16.msra.mxu1 %v673_v15 }
  0x2c   : > { %423 = vmatmul.bf16.vlgmr.msra.gmra.mxu0 %v591_v20 }
  0x2d   : > { %437 = vmatmul.bf16.vlgmr.msra.gmra.mxu1 %v595_v21 }
  0xa9   : > { %v424_v22 = vpop.f32.mrf.mxu0 }
  0xaa   : > { %v438_v23 = vpop.f32.mrf.mxu1 }
  0xab   : > { %v439_v24 = vadd.f32 %v438_v23, %v424_v22 }
  0xad   : > { %v456_v29 = vadd.f32 %v710_v25, %v439_v24 }
  0xb1   : > { %v426_v26 = vpop.f32.mrf.mxu0 }
  0xb2   : > { %v440_v27 = vpop.f32.mrf.mxu1 }
  0xb3   : > { %v441_v28 = vadd.f32 %v440_v27, %v426_v26 }
  0xb5   : > { %v457_v30 = vadd.f32 %v710_v25, %v441_v28 }
  0xb7   : > { %v684_v31 = vpack.c.bf16 %v457_v30, %v456_v29 }
  0xb9   : > { %685 = vst [vmem:[%s265_s8] sm:$0xff] %v684_v31  }
  0xba PF: > { %s13_s14 = sadd.s32 1, %s733_s14   ;;  %s850_s12 = smov %s729_s13 }
  0xbb   : > { %p10_p5 = scmp.ge.s32.totalorder %s13_s14, 4   ;;  %s851_s13 = smov %s853_s15 }
  0xbd   :  { %12 = sbr.rel (!%p10_p5) target bundleno = 2 (0x2), region = 76 }

// kernel: lseg_forward.23
= control target key start
LH: loop header
LB: loop body
LE: loop exit
PB: predicated region body
PF: predicated region fallthrough
CT: control target
= control target key end

     0   :  { %s871_s12 = smov 0   ;;  %s873_s13 = smov 0   ;;  %s983_s0 = inlined_call_operand.vmem [shape: bf16[32,384], index: 0, kind: input, shape index: {}]   ;;  %s984_s1 = inlined_call_operand.vmem [shape: bf16[384,128], index: 1, kind: input, shape index: {}]   ;;  %s985_s2 = inlined_call_operand.vmem [shape: f32[1,128], index: 2, kind: input, shape index: {}]   ;;  %s986_s3 = inlined_call_operand.vmem [shape: bf16[32,32], index: 3, kind: output, shape index: {}]  }
   0x1   :  { %s875_s14 = smov 0  }
   0x2 LB: > { %s32_s15 = sadd.s32 1, %s845_s13  ;;  %p669_p0 = scmp.ge.s32.totalorder %s849_s14, 1  ;;  %s849_s14 = sphi %s875_s14, %s13_s14   ;;  %s845_s13 = sphi %s873_s13, %s988_s13   ;;  %s841_s12 = sphi %s871_s12, %s987_s12  }
   0x3   : > { %p34_p1 = scmp.ge.s32.totalorder %s32_s15, 2  ;;  %p191_p2 = scmp.lt.s32.totalorder %s849_s14, 3 }
   0x5   : > { %s990_s15 = smov (%p34_p1, %s32_s15), 0  ;;  %p192_p3 = pnand %p669_p0, %p191_p2 }
   0x6   : > { %s670_s22 = sshll.u32 (!%p192_p3), %s841_s12, 1 }
   0x7   : > { %195 = sbr.rel (%p192_p3) target bundleno = 195 (0xc3), region = 32  ;;  %p236_p4 = scmp.lt.s32.totalorder (!%p192_p3), %s670_s22, 3 }
   0xc   : > { %v779_v0 = vld [vmem:[%s984_s1 + $0x38] sm:$0xff]  ;;  %v778_v3 = vld [vmem:[%s984_s1 + $0x30] sm:$0xff]  ;;  %v777_v6 = vld [vmem:[%s984_s1 + $0x28] sm:$0xff]  ;;  %s992_s22 = smov (!%p236_p4, %s670_s22), 3 }
   0xd   : > { %v787_v1 = vld [vmem:[%s984_s1 + $0x78] sm:$0xff]  ;;  %486 = vmatpush.bf16.msra.mxu0 %v779_v0  ;;  %v786_v4 = vld [vmem:[%s984_s1 + $0x70] sm:$0xff]  ;;  %v785_v7 = vld [vmem:[%s984_s1 + $0x68] sm:$0xff]  ;;  %s801_s17 = smul.u32 12, %s992_s22  ;;  %s673_s25 = sshll.u32 %s992_s22, 2 }
   0xe   : > { %v795_v2 = vld [vmem:[%s984_s1 + $0xb8] sm:$0xff]  ;;  %500 = vmatpush.bf16.msra.mxu1 %v787_v1  ;;  %v794_v5 = vld [vmem:[%s984_s1 + $0xb0] sm:$0xff]  ;;  %v793_v8 = vld [vmem:[%s984_s1 + $0xa8] sm:$0xff]  ;;  %s265_s28 = scalar_lea.vmem %s986_s3, %s673_s25 }
   0xf   : > { %514 = vmatpush.bf16.msra.mxu2 %v795_v2  ;;  %v776_v9 = vld [vmem:[%s984_s1 + $0x20] sm:$0xff]  ;;  %v775_v12 = vld [vmem:[%s984_s1 + $0x18] sm:$0xff]  ;;  %s243_s27 = scalar_lea.vmem %s983_s0, %s801_s17  ;;  %v774_v15 = vld [vmem:[%s984_s1 + $0x10] sm:$0xff] }
  0x10   : > { %v784_v10 = vld [vmem:[%s984_s1 + $0x60] sm:$0xff]  ;;  %v783_v13 = vld [vmem:[%s984_s1 + $0x58] sm:$0xff]  ;;  %v782_v16 = vld [vmem:[%s984_s1 + $0x50] sm:$0xff] }
  0x11   : > { %487 = vmatpush.bf16.msra.mxu0 %v778_v3  ;;  %v792_v11 = vld [vmem:[%s984_s1 + $0xa0] sm:$0xff]  ;;  %v791_v14 = vld [vmem:[%s984_s1 + $0x98] sm:$0xff]  ;;  %v275_v18 = vld [vmem:[%s243_s27 + $0xc] sm:$0xff] }
  0x12   : > { %501 = vmatpush.bf16.msra.mxu1 %v786_v4  ;;  %v273_v17 = vld [vmem:[%s243_s27] sm:$0xff]  ;;  %v790_v19 = vld [vmem:[%s984_s1 + $0x90] sm:$0xff]  ;;  %v274_v20 = vld [vmem:[%s243_s27 + $0x8] sm:$0xf]  ;;  %v280_v23 = vunpack.c.l.bf16 %v275_v18  ;;  %v281_v25 = vunpack.c.h.bf16 %v275_v18 }
  0x13   : > { %515 = vmatpush.bf16.msra.mxu2 %v794_v5  ;;  %v276_v21 = vld [vmem:[%s243_s27 + $0x14] sm:$0xf]  ;;  %v277_v22 = vunpack.c.l.bf16 %v273_v17  ;;  %v278_v24 = vunpack.c.h.bf16 %v273_v17  ;;  %v773_v26 = vld [vmem:[%s984_s1 + $0x8] sm:$0xff]  ;;  %v279_v28 = vunpack.c.l.bf16 %v274_v20  ;;  %v772_v35 = vld [vmem:[%s984_s1] sm:$0xff] }
  0x14   : > { %v781_v27 = vld [vmem:[%s984_s1 + $0x48] sm:$0xff]  ;;  %v282_v29 = vunpack.c.l.bf16 %v276_v21  ;;  %v286_v32 = vmax.f32 %v280_v23, 0.0  ;;  %v287_v34 = vmax.f32 %v281_v25, 0.0  ;;  %v780_v36 = vld [vmem:[%s984_s1 + $0x40] sm:$0xff] }
  0x15   : > { %488 = vmatpush.bf16.msra.mxu0 %v777_v6  ;;  %v789_v30 = vld [vmem:[%s984_s1 + $0x88] sm:$0xff]  ;;  %v283_v31 = vmax.f32 %v277_v22, 0.0  ;;  %v284_v33 = vmax.f32 %v278_v24, 0.0  ;;  %v285_v37 = vmax.f32 %v279_v28, 0.0  ;;  %v788_v39 = vld [vmem:[%s984_s1 + $0x80] sm:$0xff] }
  0x16   : > { %502 = vmatpush.bf16.msra.mxu1 %v785_v7  ;;  %v288_v38 = vmax.f32 %v282_v29, 0.0  ;;  %v826_v50 = vld [vmem:[%s985_s2] ss:$0 sm:$0xff] }
  0x17   : > { %516 = vmatpush.bf16.msra.mxu2 %v793_v8  ;;  %v289_v40 = vpack.c.bf16 %v286_v32, %v283_v31  ;;  %v290_v41 = vpack.c.bf16 %v287_v34, %v284_v33 }
  0x18   : > { %v291_v42 = vpack.c.bf16 %v288_v38, %v285_v37 }
  0x19   : > { %489 = vmatpush.bf16.msra.mxu0 %v776_v9 }
  0x1a   : > { %503 = vmatpush.bf16.msra.mxu1 %v784_v10 }
  0x1b   : > { %517 = vmatpush.bf16.msra.mxu2 %v792_v11 }
  0x1d   : > { %490 = vmatpush.bf16.msra.mxu0 %v775_v12 }
  0x1e   : > { %504 = vmatpush.bf16.msra.mxu1 %v783_v13 }
  0x1f   : > { %518 = vmatpush.bf16.msra.mxu2 %v791_v14 }
  0x21   : > { %491 = vmatpush.bf16.msra.mxu0 %v774_v15 }
  0x22   : > { %505 = vmatpush.bf16.msra.mxu1 %v782_v16 }
  0x23   : > { %519 = vmatpush.bf16.msra.mxu2 %v790_v19 }
  0x25   : > { %492 = vmatpush.bf16.msra.mxu0 %v773_v26 }
  0x26   : > { %506 = vmatpush.bf16.msra.mxu1 %v781_v27 }
  0x27   : > { %520 = vmatpush.bf16.msra.mxu2 %v789_v30 }
  0x29   : > { %493 = vmatpush.bf16.msra.mxu0 %v772_v35 }
  0x2a   : > { %507 = vmatpush.bf16.msra.mxu1 %v780_v36 }
  0x2b   : > { %521 = vmatpush.bf16.msra.mxu2 %v788_v39 }
  0x2c   : > { %494 = vmatmul.bf16.vlgmr.msra.gmra.mxu0 %v289_v40 }
  0x2d   : > { %508 = vmatmul.bf16.vlgmr.msra.gmra.mxu1 %v290_v41 }
  0x2e   : > { %522 = vmatmul.bf16.vlgmr.msra.gmra.mxu2 %v291_v42 }
  0xa9   : > { %v495_v43 = vpop.f32.mrf.mxu0 }
  0xaa   : > { %v509_v44 = vpop.f32.mrf.mxu1 }
  0xab   : > { %v510_v46 = vadd.f32 %v509_v44, %v495_v43 }
  0xb1   : > { %v523_v45 = vpop.f32.mrf.mxu2  ;;  %v497_v47 = vpop.f32.mrf.mxu0 }
  0xb2   : > { %v511_v48 = vpop.f32.mrf.mxu1  ;;  %v524_v49 = vadd.f32 %v523_v45, %v510_v46 }
  0xb3   : > { %v512_v51 = vadd.f32 %v511_v48, %v497_v47 }
  0xb4   : > { %v541_v53 = vadd.f32 %v826_v50, %v524_v49 }
  0xb6   : > { %v543_v56 = vmax.f32 %v541_v53, 0.0 }
  0xb9   : > { %v525_v52 = vpop.f32.mrf.mxu2 }
  0xba   : > { %v526_v54 = vadd.f32 %v525_v52, %v512_v51 }
  0xbc   : > { %v542_v55 = vadd.f32 %v826_v50, %v526_v54 }
  0xbe   : > { %v544_v57 = vmax.f32 %v542_v55, 0.0 }
  0xc0   : > { %v799_v58 = vpack.c.bf16 %v544_v57, %v543_v56 }
  0xc2   : > { %800 = vst [vmem:[%s265_s28] sm:$0xff] %v799_v58  }
  0xc3 PF: > { %s13_s14 = sadd.s32 1, %s849_s14   ;;  %s987_s12 = smov %s845_s13 }
  0xc4   : > { %p10_p5 = scmp.ge.s32.totalorder %s13_s14, 4   ;;  %s988_s13 = smov %s990_s15 }
  0xc6   :  { %12 = sbr.rel (!%p10_p5) target bundleno = 2 (0x2), region = 76 }

// kernel: lseg_forward.26
= control target key start
LH: loop header
LB: loop body
LE: loop exit
PB: predicated region body
PF: predicated region fallthrough
CT: control target
= control target key end

     0   :  { %s977_s15 = smov 0   ;;  %s979_s16 = smov 0   ;;  %s1095_s0 = inlined_call_operand.vmem [shape: bf16[32,384], index: 0, kind: input, shape index: {}]   ;;  %s1096_s1 = inlined_call_operand.vmem [shape: bf16[384,128], index: 1, kind: input, shape index: {}]   ;;  %s1097_s2 = inlined_call_operand.vmem [shape: f32[1,128], index: 2, kind: input, shape index: {}]   ;;  %s1098_s3 = inlined_call_operand.vmem [shape: bf16[32,32], index: 3, kind: input, shape index: {}]   ;;  %s1099_s4 = inlined_call_operand.vmem [shape: bf16[32,32], index: 4, kind: output, shape index: {}]  }
   0x1   :  { %s981_s17 = smov 0  }
   0x2 LB: > { %s33_s18 = sadd.s32 1, %s946_s16  ;;  %p749_p0 = scmp.ge.s32.totalorder %s950_s17, 1  ;;  %s950_s17 = sphi %s981_s17, %s14_s17   ;;  %s946_s16 = sphi %s979_s16, %s1101_s16   ;;  %s942_s15 = sphi %s977_s15, %s1100_s15  }
   0x3   : > { %p35_p1 = scmp.ge.s32.totalorder %s33_s18, 2  ;;  %p232_p2 = scmp.lt.s32.totalorder %s950_s17, 3 }
   0x5   : > { %s1103_s18 = smov (%p35_p1, %s33_s18), 0  ;;  %p233_p3 = pnand %p749_p0, %p232_p2 }
   0x6   : > { %s750_s11 = sshll.u32 (!%p233_p3), %s942_s15, 1 }
   0x7   : > { %236 = sbr.rel (%p233_p3) target bundleno = 195 (0xc3), region = 36  ;;  %p287_p4 = scmp.lt.s32.totalorder (!%p233_p3), %s750_s11, 3 }
   0xc   : > { %v876_v0 = vld [vmem:[%s1096_s1 + $0x38] sm:$0xff]  ;;  %v875_v3 = vld [vmem:[%s1096_s1 + $0x30] sm:$0xff]  ;;  %v874_v6 = vld [vmem:[%s1096_s1 + $0x28] sm:$0xff]  ;;  %s1105_s11 = smov (!%p287_p4, %s750_s11), 3 }
   0xd   : > { %v884_v1 = vld [vmem:[%s1096_s1 + $0x78] sm:$0xff]  ;;  %547 = vmatpush.bf16.msra.mxu0 %v876_v0  ;;  %v883_v4 = vld [vmem:[%s1096_s1 + $0x70] sm:$0xff]  ;;  %v882_v7 = vld [vmem:[%s1096_s1 + $0x68] sm:$0xff]  ;;  %s902_s5 = smul.u32 12, %s1105_s11  ;;  %s753_s27 = sshll.u32 %s1105_s11, 2 }
   0xe   : > { %v892_v2 = vld [vmem:[%s1096_s1 + $0xb8] sm:$0xff]  ;;  %561 = vmatpush.bf16.msra.mxu1 %v884_v1  ;;  %v891_v5 = vld [vmem:[%s1096_s1 + $0xb0] sm:$0xff]  ;;  %v890_v8 = vld [vmem:[%s1096_s1 + $0xa8] sm:$0xff]  ;;  %s316_s30 = scalar_lea.vmem %s1098_s3, %s753_s27  ;;  %s325_s8 = scalar_lea.vmem %s1099_s4, %s753_s27 }
   0xf   : > { %575 = vmatpush.bf16.msra.mxu2 %v892_v2  ;;  %v873_v9 = vld [vmem:[%s1096_s1 + $0x20] sm:$0xff]  ;;  %v872_v12 = vld [vmem:[%s1096_s1 + $0x18] sm:$0xff]  ;;  %v871_v15 = vld [vmem:[%s1096_s1 + $0x10] sm:$0xff]  ;;  %s294_s19 = scalar_lea.vmem %s1095_s0, %s902_s5 }
  0x10   : > { %v881_v10 = vld [vmem:[%s1096_s1 + $0x60] sm:$0xff]  ;;  %v880_v13 = vld [vmem:[%s1096_s1 + $0x58] sm:$0xff]  ;;  %v879_v16 = vld [vmem:[%s1096_s1 + $0x50] sm:$0xff] }
  0x11   : > { %548 = vmatpush.bf16.msra.mxu0 %v875_v3  ;;  %v889_v11 = vld [vmem:[%s1096_s1 + $0xa0] sm:$0xff]  ;;  %v888_v14 = vld [vmem:[%s1096_s1 + $0x98] sm:$0xff]  ;;  %v887_v17 = vld [vmem:[%s1096_s1 + $0x90] sm:$0xff] }
  0x12   : > { %562 = vmatpush.bf16.msra.mxu1 %v883_v4  ;;  %v870_v18 = vld [vmem:[%s1096_s1 + $0x8] sm:$0xff]  ;;  %v869_v21 = vld [vmem:[%s1096_s1] sm:$0xff]  ;;  %v760_v26 = vld [vmem:[%s294_s19 + $0xc] sm:$0xf0] }
  0x13   : > { %576 = vmatpush.bf16.msra.mxu2 %v891_v5  ;;  %v878_v19 = vld [vmem:[%s1096_s1 + $0x48] sm:$0xff]  ;;  %v877_v22 = vld [vmem:[%s1096_s1 + $0x40] sm:$0xff]  ;;  %v868_v29 = vld [vmem:[%s294_s19 + $0x10] sm:$0xf0] }
  0x14   : > { %v886_v20 = vld [vmem:[%s1096_s1 + $0x88] sm:$0xff]  ;;  %v758_v23 = vld [vmem:[%s294_s19] sm:$0xf]  ;;  %v866_v25 = vld [vmem:[%s294_s19 + $0x4] sm:$0xf] }
  0x15   : > { %549 = vmatpush.bf16.msra.mxu0 %v874_v6  ;;  %v867_v24 = vld [vmem:[%s294_s19 + $0x8] sm:$0xf0]  ;;  %v885_v27 = vld [vmem:[%s1096_s1 + $0x80] sm:$0xff]  ;;  %v766_v28 = vld [vmem:[%s294_s19 + $0x8] sm:$0xf]  ;;  %v763_v31 = vor.u32 %v866_v25, %v760_v26 }
  0x16   : > { %563 = vmatpush.bf16.msra.mxu1 %v882_v7  ;;  %v759_v30 = vor.u32 %v867_v24, %v758_v23  ;;  %v767_v32 = vor.u32 %v868_v29, %v766_v28  ;;  %v927_v40 = vld [vmem:[%s1097_s2] ss:$0 sm:$0xff] }
  0x17   : > { %577 = vmatpush.bf16.msra.mxu2 %v890_v8  ;;  %v894_v41 = vld [vmem:[%s316_s30] sm:$0xff]  }
  0x18   : > { %v895_v45 = vunpack.c.l.bf16 %v894_v41  ;;  %v896_v47 = vunpack.c.h.bf16 %v894_v41 }
  0x19   : > { %550 = vmatpush.bf16.msra.mxu0 %v873_v9 }
  0x1a   : > { %564 = vmatpush.bf16.msra.mxu1 %v881_v10 }
  0x1b   : > { %578 = vmatpush.bf16.msra.mxu2 %v889_v11 }
  0x1d   : > { %551 = vmatpush.bf16.msra.mxu0 %v872_v12 }
  0x1e   : > { %565 = vmatpush.bf16.msra.mxu1 %v880_v13 }
  0x1f   : > { %579 = vmatpush.bf16.msra.mxu2 %v888_v14 }
  0x21   : > { %552 = vmatpush.bf16.msra.mxu0 %v871_v15 }
  0x22   : > { %566 = vmatpush.bf16.msra.mxu1 %v879_v16 }
  0x23   : > { %580 = vmatpush.bf16.msra.mxu2 %v887_v17 }
  0x25   : > { %553 = vmatpush.bf16.msra.mxu0 %v870_v18 }
  0x26   : > { %567 = vmatpush.bf16.msra.mxu1 %v878_v19 }
  0x27   : > { %581 = vmatpush.bf16.msra.mxu2 %v886_v20 }
  0x29   : > { %554 = vmatpush.bf16.msra.mxu0 %v869_v21 }
  0x2a   : > { %568 = vmatpush.bf16.msra.mxu1 %v877_v22 }
  0x2b   : > { %582 = vmatpush.bf16.msra.mxu2 %v885_v27 }
  0x2c   : > { %555 = vmatmul.bf16.vlgmr.msra.gmra.mxu0 %v759_v30 }
  0x2d   : > { %569 = vmatmul.bf16.vlgmr.msra.gmra.mxu1 %v763_v31 }
  0x2e   : > { %583 = vmatmul.bf16.vlgmr.msra.gmra.mxu2 %v767_v32 }
  0xa9   : > { %v556_v33 = vpop.f32.mrf.mxu0 }
  0xaa   : > { %v570_v34 = vpop.f32.mrf.mxu1 }
  0xab   : > { %v571_v36 = vadd.f32 %v570_v34, %v556_v33 }
  0xb1   : > { %v584_v35 = vpop.f32.mrf.mxu2  ;;  %v558_v37 = vpop.f32.mrf.mxu0 }
  0xb2   : > { %v572_v38 = vpop.f32.mrf.mxu1  ;;  %v585_v39 = vadd.f32 %v584_v35, %v571_v36 }
  0xb3   : > { %v573_v42 = vadd.f32 %v572_v38, %v558_v37 }
  0xb4   : > { %v602_v44 = vadd.f32 %v927_v40, %v585_v39 }
  0xb6   : > { %v608_v49 = vadd.f32 %v895_v45, %v602_v44 }
  0xb9   : > { %v586_v43 = vpop.f32.mrf.mxu2 }
  0xba   : > { %v587_v46 = vadd.f32 %v586_v43, %v573_v42 }
  0xbc   : > { %v603_v48 = vadd.f32 %v927_v40, %v587_v46 }
  0xbe   : > { %v609_v50 = vadd.f32 %v896_v47, %v603_v48 }
  0xc0   : > { %v900_v51 = vpack.c.bf16 %v609_v50, %v608_v49 }
  0xc2   : > { %901 = vst [vmem:[%s325_s8] sm:$0xff] %v900_v51  }
  0xc3 PF: > { %s14_s17 = sadd.s32 1, %s950_s17   ;;  %s1100_s15 = smov %s946_s16 }
  0xc4   : > { %p11_p5 = scmp.ge.s32.totalorder %s14_s17, 4   ;;  %s1101_s16 = smov %s1103_s18 }
  0xc6   :  { %13 = sbr.rel (!%p11_p5) target bundleno = 2 (0x2), region = 83 }

// kernel: lseg_forward.27
= control target key start
LH: loop header
LB: loop body
LE: loop exit
PB: predicated region body
PF: predicated region fallthrough
CT: control target
= control target key end

     0   :  { %s542_s12 = smov 0   ;;  %s544_s13 = smov 0   ;;  %s581_s0 = inlined_call_operand.vmem [shape: bf16[32,32], index: 0, kind: input, shape index: {}]   ;;  %s582_s1 = inlined_call_operand.vmem [shape: bf16[32,128], index: 1, kind: input, shape index: {}]   ;;  %s583_s2 = inlined_call_operand.vmem [shape: f32[1,128], index: 2, kind: input, shape index: {}]   ;;  %s584_s3 = inlined_call_operand.vmem [shape: bf16[32,32], index: 3, kind: output, shape index: {}]  }
   0x1   :  { %s546_s14 = smov 0  }
   0x2 LB: > { %s32_s15 = sadd.s32 1, %s516_s13  ;;  %p445_p0 = scmp.ge.s32.totalorder %s520_s14, 1  ;;  %s520_s14 = sphi %s546_s14, %s13_s14   ;;  %s516_s13 = sphi %s544_s13, %s586_s13   ;;  %s512_s12 = sphi %s542_s12, %s585_s12  }
   0x3   : > { %p34_p1 = scmp.ge.s32.totalorder %s32_s15, 2  ;;  %p188_p2 = scmp.lt.s32.totalorder %s520_s14, 3 }
   0x5   : > { %s588_s15 = smov (%p34_p1, %s32_s15), 0  ;;  %p189_p3 = pnand %p445_p0, %p188_p2 }
   0x6   : > { %s446_s18 = sshll.u32 (!%p189_p3), %s512_s12, 1 }
   0x7   : > { %192 = sbr.rel (%p189_p3) target bundleno = 159 (0x9f), region = 32  ;;  %p230_p4 = scmp.lt.s32.totalorder (!%p189_p3), %s446_s18, 3 }
   0xc   : > { %v467_v0 = vld [vmem:[%s582_s1 + $0x8] sm:$0xff]  ;;  %v466_v1 = vld [vmem:[%s582_s1] sm:$0xff]  ;;  %s590_s18 = smov (!%p230_p4, %s446_s18), 3  ;;  %vm291_vm0 = vcmask 261120  }
   0xd   : > { %301 = vmatpush.bf16.msra.mxu0 %v467_v0  ;;  %s447_s21 = sshll.u32 %s590_s18, 2  ;;  %v497_v4 = vld [vmem:[%s583_s2] ss:$0 sm:$0xff] }
   0xe   : > { %s236_s24 = scalar_lea.vmem %s581_s0, %s447_s21  ;;  %s257_s29 = scalar_lea.vmem %s584_s3, %s447_s21 }
   0xf   : > { %v465_v2 = vld [vmem:[%s236_s24] sm:$0xff] }
  0x11   : > { %302 = vmatpush.bf16.msra.mxu0 %v466_v1 }
  0x14   : > { %462 = vmatmul.msk.bf16.vlgmr.msra.gmra.mxu0 %vm291_vm0, %v465_v2 }
  0x91   : > { %v304_v3 = vpop.f32.mrf.mxu0 }
  0x92   : > { %v322_v6 = vadd.f32 %v497_v4, %v304_v3 }
  0x99   : > { %v306_v5 = vpop.f32.mrf.mxu0 }
  0x9a   : > { %v323_v7 = vadd.f32 %v497_v4, %v306_v5 }
  0x9c   : > { %v471_v8 = vpack.c.bf16 %v323_v7, %v322_v6 }
  0x9e   : > { %472 = vst [vmem:[%s257_s29] sm:$0xff] %v471_v8  }
  0x9f PF: > { %s13_s14 = sadd.s32 1, %s520_s14   ;;  %s585_s12 = smov %s516_s13 }
  0xa0   : > { %p10_p5 = scmp.ge.s32.totalorder %s13_s14, 4   ;;  %s586_s13 = smov %s588_s15 }
  0xa2   :  { %12 = sbr.rel (!%p10_p5) target bundleno = 2 (0x2), region = 76 }

// kernel: lseg_forward.24
= control target key start
LH: loop header
LB: loop body
LE: loop exit
PB: predicated region body
PF: predicated region fallthrough
CT: control target
= control target key end

     0   :  { %s1069_s18 = smov 0   ;;  %s1071_s19 = smov 0   ;;  %s1190_s0 = inlined_call_operand.vmem [shape: bf16[32,384], index: 0, kind: input, shape index: {}]   ;;  %s1191_s1 = inlined_call_operand.vmem [shape: bf16[384,128], index: 1, kind: input, shape index: {}]   ;;  %s1192_s2 = inlined_call_operand.vmem [shape: f32[1,128], index: 2, kind: input, shape index: {}]   ;;  %s1193_s3 = inlined_call_operand.vmem [shape: bf16[32,32], index: 3, kind: input, shape index: {}]   ;;  %s1194_s4 = inlined_call_operand.vmem [shape: bf16[32,32], index: 4, kind: input, shape index: {}]   ;;  %s1195_s5 = inlined_call_operand.vmem [shape: bf16[32,32], index: 5, kind: output, shape index: {}]  }
   0x1   :  { %s1073_s20 = smov 0  }
   0x2 LB: > { %s34_s21 = sadd.s32 1, %s1033_s19  ;;  %p830_p0 = scmp.ge.s32.totalorder %s1037_s20, 1  ;;  %s1037_s20 = sphi %s1073_s20, %s15_s20   ;;  %s1033_s19 = sphi %s1071_s19, %s1197_s19   ;;  %s1029_s18 = sphi %s1069_s18, %s1196_s18  }
   0x3   : > { %p36_p1 = scmp.ge.s32.totalorder %s34_s21, 2  ;;  %p273_p2 = scmp.lt.s32.totalorder %s1037_s20, 3 }
   0x5   : > { %s1199_s21 = smov (%p36_p1, %s34_s21), 0  ;;  %p274_p3 = pnand %p830_p0, %p273_p2 }
   0x6   : > { %s831_s15 = sshll.u32 (!%p274_p3), %s1029_s18, 1 }
   0x7   : > { %277 = sbr.rel (%p274_p3) target bundleno = 197 (0xc5), region = 40  ;;  %p338_p4 = scmp.lt.s32.totalorder (!%p274_p3), %s831_s15, 3 }
   0xc   : > { %v959_v0 = vld [vmem:[%s1191_s1 + $0x38] sm:$0xff]  ;;  %v958_v3 = vld [vmem:[%s1191_s1 + $0x30] sm:$0xff]  ;;  %v957_v6 = vld [vmem:[%s1191_s1 + $0x28] sm:$0xff]  ;;  %s1201_s15 = smov (!%p338_p4, %s831_s15), 3 }
   0xd   : > { %v967_v1 = vld [vmem:[%s1191_s1 + $0x78] sm:$0xff]  ;;  %607 = vmatpush.bf16.msra.mxu0 %v959_v0  ;;  %v966_v4 = vld [vmem:[%s1191_s1 + $0x70] sm:$0xff]  ;;  %v965_v7 = vld [vmem:[%s1191_s1 + $0x68] sm:$0xff]  ;;  %s989_s10 = smul.u32 12, %s1201_s15  ;;  %s834_s7 = sshll.u32 %s1201_s15, 2 }
   0xe   : > { %v975_v2 = vld [vmem:[%s1191_s1 + $0xb8] sm:$0xff]  ;;  %621 = vmatpush.bf16.msra.mxu1 %v967_v1  ;;  %v974_v5 = vld [vmem:[%s1191_s1 + $0xb0] sm:$0xff]  ;;  %v973_v8 = vld [vmem:[%s1191_s1 + $0xa8] sm:$0xff]  ;;  %s376_s16 = scalar_lea.vmem %s1194_s4, %s834_s7  ;;  %s385_s22 = scalar_lea.vmem %s1195_s5, %s834_s7 }
   0xf   : > { %635 = vmatpush.bf16.msra.mxu2 %v975_v2  ;;  %v956_v9 = vld [vmem:[%s1191_s1 + $0x20] sm:$0xff]  ;;  %v955_v12 = vld [vmem:[%s1191_s1 + $0x18] sm:$0xff]  ;;  %v954_v15 = vld [vmem:[%s1191_s1 + $0x10] sm:$0xff]  ;;  %s345_s24 = scalar_lea.vmem %s1190_s0, %s989_s10  ;;  %s367_s10 = scalar_lea.vmem %s1193_s3, %s834_s7 }
  0x10   : > { %v964_v10 = vld [vmem:[%s1191_s1 + $0x60] sm:$0xff]  ;;  %v963_v13 = vld [vmem:[%s1191_s1 + $0x58] sm:$0xff]  ;;  %v962_v16 = vld [vmem:[%s1191_s1 + $0x50] sm:$0xff] }
  0x11   : > { %608 = vmatpush.bf16.msra.mxu0 %v958_v3  ;;  %v972_v11 = vld [vmem:[%s1191_s1 + $0xa0] sm:$0xff]  ;;  %v971_v14 = vld [vmem:[%s1191_s1 + $0x98] sm:$0xff]  ;;  %v970_v17 = vld [vmem:[%s1191_s1 + $0x90] sm:$0xff] }
  0x12   : > { %622 = vmatpush.bf16.msra.mxu1 %v966_v4  ;;  %v953_v18 = vld [vmem:[%s1191_s1 + $0x8] sm:$0xff]  ;;  %v952_v21 = vld [vmem:[%s1191_s1] sm:$0xff]  ;;  %v843_v26 = vld [vmem:[%s345_s24 + $0xc] sm:$0xf0] }
  0x13   : > { %636 = vmatpush.bf16.msra.mxu2 %v974_v5  ;;  %v961_v19 = vld [vmem:[%s1191_s1 + $0x48] sm:$0xff]  ;;  %v960_v22 = vld [vmem:[%s1191_s1 + $0x40] sm:$0xff]  ;;  %v951_v29 = vld [vmem:[%s345_s24 + $0x10] sm:$0xf0] }
  0x14   : > { %v969_v20 = vld [vmem:[%s1191_s1 + $0x88] sm:$0xff]  ;;  %v841_v23 = vld [vmem:[%s345_s24] sm:$0xf]  ;;  %v949_v25 = vld [vmem:[%s345_s24 + $0x4] sm:$0xf] }
  0x15   : > { %609 = vmatpush.bf16.msra.mxu0 %v957_v6  ;;  %v950_v24 = vld [vmem:[%s345_s24 + $0x8] sm:$0xf0]  ;;  %v968_v27 = vld [vmem:[%s1191_s1 + $0x80] sm:$0xff]  ;;  %v849_v28 = vld [vmem:[%s345_s24 + $0x8] sm:$0xf]  ;;  %v846_v31 = vor.u32 %v949_v25, %v843_v26 }
  0x16   : > { %623 = vmatpush.bf16.msra.mxu1 %v965_v7  ;;  %v842_v30 = vor.u32 %v950_v24, %v841_v23  ;;  %v850_v32 = vor.u32 %v951_v29, %v849_v28  ;;  %v1014_v38 = vld [vmem:[%s1192_s2] ss:$0 sm:$0xff] }
  0x17   : > { %637 = vmatpush.bf16.msra.mxu2 %v973_v8  ;;  %v977_v39 = vld [vmem:[%s367_s10] sm:$0xff]  }
  0x18   : > { %v978_v43 = vunpack.c.l.bf16 %v977_v39  ;;  %v981_v45 = vld [vmem:[%s376_s16] sm:$0xff]   ;;  %v979_v48 = vunpack.c.h.bf16 %v977_v39 }
  0x19   : > { %610 = vmatpush.bf16.msra.mxu0 %v956_v9  ;;  %v982_v50 = vunpack.c.l.bf16 %v981_v45  ;;  %v983_v52 = vunpack.c.h.bf16 %v981_v45 }
  0x1a   : > { %624 = vmatpush.bf16.msra.mxu1 %v964_v10 }
  0x1b   : > { %638 = vmatpush.bf16.msra.mxu2 %v972_v11 }
  0x1d   : > { %611 = vmatpush.bf16.msra.mxu0 %v955_v12 }
  0x1e   : > { %625 = vmatpush.bf16.msra.mxu1 %v963_v13 }
  0x1f   : > { %639 = vmatpush.bf16.msra.mxu2 %v971_v14 }
  0x21   : > { %612 = vmatpush.bf16.msra.mxu0 %v954_v15 }
  0x22   : > { %626 = vmatpush.bf16.msra.mxu1 %v962_v16 }
  0x23   : > { %640 = vmatpush.bf16.msra.mxu2 %v970_v17 }
  0x25   : > { %613 = vmatpush.bf16.msra.mxu0 %v953_v18 }
  0x26   : > { %627 = vmatpush.bf16.msra.mxu1 %v961_v19 }
  0x27   : > { %641 = vmatpush.bf16.msra.mxu2 %v969_v20 }
  0x29   : > { %614 = vmatpush.bf16.msra.mxu0 %v952_v21 }
  0x2a   : > { %628 = vmatpush.bf16.msra.mxu1 %v960_v22 }
  0x2b   : > { %642 = vmatpush.bf16.msra.mxu2 %v968_v27 }
  0x2c   : > { %615 = vmatmul.bf16.vlgmr.msra.gmra.mxu0 %v842_v30 }
  0x2d   : > { %629 = vmatmul.bf16.vlgmr.msra.gmra.mxu1 %v846_v31 }
  0x2e   : > { %643 = vmatmul.bf16.vlgmr.msra.gmra.mxu2 %v850_v32 }
  0xa9   : > { %v616_v33 = vpop.f32.mrf.mxu0 }
  0xaa   : > { %v630_v34 = vpop.f32.mrf.mxu1 }
  0xab   : > { %v631_v35 = vadd.f32 %v630_v34, %v616_v33 }
  0xb1   : > { %v644_v36 = vpop.f32.mrf.mxu2  ;;  %v618_v40 = vpop.f32.mrf.mxu0 }
  0xb2   : > { %v645_v37 = vadd.f32 %v644_v36, %v631_v35  ;;  %v632_v41 = vpop.f32.mrf.mxu1 }
  0xb3   : > { %v633_v44 = vadd.f32 %v632_v41, %v618_v40 }
  0xb4   : > { %v662_v42 = vadd.f32 %v1014_v38, %v645_v37 }
  0xb6   : > { %v668_v49 = vadd.f32 %v978_v43, %v662_v42 }
  0xb8   : > { %v674_v54 = vadd.f32 %v982_v50, %v668_v49 }
  0xb9   : > { %v646_v46 = vpop.f32.mrf.mxu2 }
  0xba   : > { %v647_v47 = vadd.f32 %v646_v46, %v633_v44 }
  0xbc   : > { %v663_v51 = vadd.f32 %v1014_v38, %v647_v47 }
  0xbe   : > { %v669_v53 = vadd.f32 %v979_v48, %v663_v51 }
  0xc0   : > { %v675_v55 = vadd.f32 %v983_v52, %v669_v53 }
  0xc2   : > { %v987_v56 = vpack.c.bf16 %v675_v55, %v674_v54 }
  0xc4   : > { %988 = vst [vmem:[%s385_s22] sm:$0xff] %v987_v56  }
  0xc5 PF: > { %s15_s20 = sadd.s32 1, %s1037_s20   ;;  %s1196_s18 = smov %s1033_s19 }
  0xc6   : > { %p12_p5 = scmp.ge.s32.totalorder %s15_s20, 4   ;;  %s1197_s19 = smov %s1199_s21 }
  0xc8   :  { %14 = sbr.rel (!%p12_p5) target bundleno = 2 (0x2), region = 90 }

// kernel: lseg_forward.21
= control target key start
LH: loop header
LB: loop body
LE: loop exit
PB: predicated region body
PF: predicated region fallthrough
CT: control target
= control target key end

     0   :  { %s933_s12 = smov 0   ;;  %s935_s13 = smov 0   ;;  %s1042_s0 = inlined_call_operand.vmem [shape: bf16[128,256], index: 0, kind: input, shape index: {}]   ;;  %s1043_s1 = inlined_call_operand.vmem [shape: bf16[256,128], index: 1, kind: input, shape index: {}]   ;;  %s1044_s2 = inlined_call_operand.vmem [shape: f32[1,128], index: 2, kind: input, shape index: {}]   ;;  %s1045_s3 = inlined_call_operand.vmem [shape: bf16[128,32], index: 3, kind: output, shape index: {}]  }
   0x1   :  { %s937_s14 = smov 0  }
   0x2 LB: > { %s32_s15 = sadd.s32 1, %s907_s13  ;;  %p696_p0 = scmp.ge.s32.totalorder %s911_s14, 1  ;;  %s911_s14 = sphi %s937_s14, %s13_s14   ;;  %s907_s13 = sphi %s935_s13, %s1047_s13   ;;  %s903_s12 = sphi %s933_s12, %s1046_s12  }
   0x3   : > { %p34_p1 = scmp.ge.s32.totalorder %s32_s15, 2  ;;  %p191_p2 = scmp.lt.s32.totalorder %s911_s14, 3 }
   0x5   : > { %s1049_s15 = smov (%p34_p1, %s32_s15), 0  ;;  %p192_p3 = pnand %p696_p0, %p191_p2 }
   0x6   : > { %s697_s28 = sshll.u32 (!%p192_p3), %s903_s12, 3 }
   0x7   : > { %195 = sbr.rel (%p192_p3) target bundleno = 208 (0xd0), region = 32  ;;  %p236_p4 = scmp.lt.s32.totalorder (!%p192_p3), %s697_s28, 15 }
   0xc   : > { %v816_v0 = vld [vmem:[%s1043_s1 + $0x38] sm:$0xff]  ;;  %v815_v2 = vld [vmem:[%s1043_s1 + $0x30] sm:$0xff]  ;;  %v814_v4 = vld [vmem:[%s1043_s1 + $0x28] sm:$0xff]  ;;  %s1051_s28 = smov (!%p236_p4, %s697_s28), 15 }
   0xd   : > { %v824_v1 = vld [vmem:[%s1043_s1 + $0x78] sm:$0xff]  ;;  %463 = vmatpush.bf16.msra.mxu0 %v816_v0  ;;  %848 = vmatpush.bf16.msra.mxu2 %v816_v0  ;;  %v823_v3 = vld [vmem:[%s1043_s1 + $0x70] sm:$0xff]  ;;  %v822_v5 = vld [vmem:[%s1043_s1 + $0x68] sm:$0xff]  ;;  %s800_s17 = sshll.u32 %s1051_s28, 3  ;;  %s701_s5 = sshll.u32 %s1051_s28, 2 }
   0xe   : > { %492 = vmatpush.bf16.msra.mxu1 %v824_v1  ;;  %856 = vmatpush.bf16.msra.mxu3 %v824_v1  ;;  %v813_v6 = vld [vmem:[%s1043_s1 + $0x20] sm:$0xff]  ;;  %v812_v8 = vld [vmem:[%s1043_s1 + $0x18] sm:$0xff]  ;;  %v811_v10 = vld [vmem:[%s1043_s1 + $0x10] sm:$0xff]  ;;  %s999_s22 = scalar_lea.vmem %s1042_s0, %s800_s17  ;;  %s265_s8 = scalar_lea.vmem %s1045_s3, %s701_s5 }
   0xf   : > { %v821_v7 = vld [vmem:[%s1043_s1 + $0x60] sm:$0xff]  ;;  %v820_v9 = vld [vmem:[%s1043_s1 + $0x58] sm:$0xff]  ;;  %v819_v11 = vld [vmem:[%s1043_s1 + $0x50] sm:$0xff] }
  0x10   : > { %v810_v12 = vld [vmem:[%s1043_s1 + $0x8] sm:$0xff]  ;;  %v809_v14 = vld [vmem:[%s1043_s1] sm:$0xff]  ;;  %v712_v28 = vld [vmem:[%s999_s22 + $0x10] sm:$0xf] }
  0x11   : > { %464 = vmatpush.bf16.msra.mxu0 %v815_v2  ;;  %849 = vmatpush.bf16.msra.mxu2 %v815_v2  ;;  %v818_v13 = vld [vmem:[%s1043_s1 + $0x48] sm:$0xff]  ;;  %v817_v15 = vld [vmem:[%s1043_s1 + $0x40] sm:$0xff]  ;;  %v804_v29 = vld [vmem:[%s999_s22 + $0x14] sm:$0xf0] }
  0x12   : > { %493 = vmatpush.bf16.msra.mxu1 %v823_v3  ;;  %857 = vmatpush.bf16.msra.mxu3 %v823_v3  ;;  %v704_v16 = vld [vmem:[%s999_s22] sm:$0xf]  ;;  %v802_v17 = vld [vmem:[%s999_s22 + $0x4] sm:$0xf0]  ;;  %v801_v20 = vld [vmem:[%s999_s22 + $0x4] sm:$0xf]  ;;  %v713_v36 = vor.u32 %v804_v29, %v712_v28 }
  0x13   : > { %v720_v18 = vld [vmem:[%s999_s22 + $0x20] sm:$0xf]  ;;  %v806_v19 = vld [vmem:[%s999_s22 + $0x24] sm:$0xf0]  ;;  %v706_v21 = vld [vmem:[%s999_s22 + $0x8] sm:$0xf0]  ;;  %v705_v24 = vor.u32 %v802_v17, %v704_v16 }
  0x14   : > { %v805_v22 = vld [vmem:[%s999_s22 + $0x24] sm:$0xf]  ;;  %v722_v23 = vld [vmem:[%s999_s22 + $0x28] sm:$0xf0]  ;;  %v721_v25 = vor.u32 %v806_v19, %v720_v18  ;;  %v709_v26 = vor.u32 %v801_v20, %v706_v21  ;;  %v728_v30 = vld [vmem:[%s999_s22 + $0x30] sm:$0xf] }
  0x15   : > { %465 = vmatpush.bf16.msra.mxu0 %v814_v4  ;;  %850 = vmatpush.bf16.msra.mxu2 %v814_v4  ;;  %v725_v27 = vor.u32 %v805_v22, %v722_v23  ;;  %v808_v31 = vld [vmem:[%s999_s22 + $0x34] sm:$0xf0]  ;;  %v803_v32 = vld [vmem:[%s999_s22 + $0x14] sm:$0xf]  ;;  %v714_v33 = vld [vmem:[%s999_s22 + $0x18] sm:$0xf0] }
  0x16   : > { %494 = vmatpush.bf16.msra.mxu1 %v822_v5  ;;  %858 = vmatpush.bf16.msra.mxu3 %v822_v5  ;;  %v807_v34 = vld [vmem:[%s999_s22 + $0x34] sm:$0xf]  ;;  %v730_v35 = vld [vmem:[%s999_s22 + $0x38] sm:$0xf0]  ;;  %v729_v37 = vor.u32 %v808_v31, %v728_v30  ;;  %v717_v38 = vor.u32 %v803_v32, %v714_v33  ;;  %v888_v45 = vld [vmem:[%s1044_s2] ss:$0 sm:$0xff] }
  0x17   : > { %v733_v39 = vor.u32 %v807_v34, %v730_v35 }
  0x19   : > { %466 = vmatpush.bf16.msra.mxu0 %v813_v6  ;;  %851 = vmatpush.bf16.msra.mxu2 %v813_v6 }
  0x1a   : > { %495 = vmatpush.bf16.msra.mxu1 %v821_v7  ;;  %859 = vmatpush.bf16.msra.mxu3 %v821_v7 }
  0x1d   : > { %467 = vmatpush.bf16.msra.mxu0 %v812_v8  ;;  %852 = vmatpush.bf16.msra.mxu2 %v812_v8 }
  0x1e   : > { %496 = vmatpush.bf16.msra.mxu1 %v820_v9  ;;  %860 = vmatpush.bf16.msra.mxu3 %v820_v9 }
  0x21   : > { %468 = vmatpush.bf16.msra.mxu0 %v811_v10  ;;  %853 = vmatpush.bf16.msra.mxu2 %v811_v10 }
  0x22   : > { %497 = vmatpush.bf16.msra.mxu1 %v819_v11  ;;  %861 = vmatpush.bf16.msra.mxu3 %v819_v11 }
  0x25   : > { %469 = vmatpush.bf16.msra.mxu0 %v810_v12  ;;  %854 = vmatpush.bf16.msra.mxu2 %v810_v12 }
  0x26   : > { %498 = vmatpush.bf16.msra.mxu1 %v818_v13  ;;  %862 = vmatpush.bf16.msra.mxu3 %v818_v13 }
  0x29   : > { %470 = vmatpush.bf16.msra.mxu0 %v809_v14  ;;  %855 = vmatpush.bf16.msra.mxu2 %v809_v14 }
  0x2a   : > { %499 = vmatpush.bf16.msra.mxu1 %v817_v15  ;;  %863 = vmatpush.bf16.msra.mxu3 %v817_v15 }
  0x2c   : > { %471 = vmatmul.bf16.vlgmr.msra.gmra.mxu0 %v705_v24  ;;  %481 = vmatmul.bf16.vlgmr.msra.gmra.mxu2 %v721_v25 }
  0x2d   : > { %500 = vmatmul.bf16.vlgmr.msra.gmra.mxu1 %v709_v26  ;;  %510 = vmatmul.bf16.vlgmr.msra.gmra.mxu3 %v725_v27 }
  0x3c   : > { %476 = vmatmul.bf16.gmra.mxu0 %v713_v36  ;;  %486 = vmatmul.bf16.gmra.mxu2 %v729_v37 }
  0x3d   : > { %505 = vmatmul.bf16.gmra.mxu1 %v717_v38  ;;  %515 = vmatmul.bf16.gmra.mxu3 %v733_v39 }
  0xa9   : > { %v472_v40 = vpop.f32.mrf.mxu0 }
  0xaa   : > { %v501_v41 = vpop.f32.mrf.mxu1 }
  0xab   : > { %v502_v44 = vadd.f32 %v501_v41, %v472_v40 }
  0xad   : > { %v552_v49 = vadd.f32 %v888_v45, %v502_v44 }
  0xaf   : > { %v482_v42 = vpop.f32.mrf.mxu2 }
  0xb0   : > { %v511_v43 = vpop.f32.mrf.mxu3 }
  0xb1   : > { %v474_v46 = vpop.f32.mrf.mxu0  ;;  %v512_v51 = vadd.f32 %v511_v43, %v482_v42 }
  0xb2   : > { %v503_v47 = vpop.f32.mrf.mxu1 }
  0xb3   : > { %v504_v48 = vadd.f32 %v503_v47, %v474_v46  ;;  %v556_v58 = vadd.f32 %v888_v45, %v512_v51 }
  0xb5   : > { %v553_v50 = vadd.f32 %v888_v45, %v504_v48 }
  0xb7   : > { %v828_v52 = vpack.c.bf16 %v553_v50, %v552_v49  ;;  %v484_v53 = vpop.f32.mrf.mxu2 }
  0xb8   : > { %v513_v54 = vpop.f32.mrf.mxu3 }
  0xb9   : > { %829 = vst [vmem:[%s265_s8] sm:$0xff] %v828_v52   ;;  %v514_v55 = vadd.f32 %v513_v54, %v484_v53  ;;  %v477_v56 = vpop.f32.mrf.mxu0 }
  0xba   : > { %v506_v57 = vpop.f32.mrf.mxu1 }
  0xbb   : > { %v557_v59 = vadd.f32 %v888_v45, %v514_v55  ;;  %v507_v63 = vadd.f32 %v506_v57, %v477_v56 }
  0xbd   : > { %v838_v60 = vpack.c.bf16 %v557_v59, %v556_v58  ;;  %v554_v3 = vadd.f32 %v888_v45, %v507_v63 }
  0xbf   : > { %846 = vst [vmem:[%s265_s8 + $0x10] sm:$0xff] %v838_v60   ;;  %v487_v61 = vpop.f32.mrf.mxu2 }
  0xc0   : > { %v516_v62 = vpop.f32.mrf.mxu3 }
  0xc1   : > { %v479_v0 = vpop.f32.mrf.mxu0  ;;  %v517_v5 = vadd.f32 %v516_v62, %v487_v61 }
  0xc2   : > { %v508_v1 = vpop.f32.mrf.mxu1 }
  0xc3   : > { %v509_v2 = vadd.f32 %v508_v1, %v479_v0  ;;  %v558_v10 = vadd.f32 %v888_v45, %v517_v5 }
  0xc5   : > { %v555_v4 = vadd.f32 %v888_v45, %v509_v2 }
  0xc7   : > { %v833_v6 = vpack.c.bf16 %v555_v4, %v554_v3  ;;  %v489_v7 = vpop.f32.mrf.mxu2 }
  0xc8   : > { %v518_v8 = vpop.f32.mrf.mxu3 }
  0xc9   : > { %845 = vst [vmem:[%s265_s8 + $0x8] sm:$0xff] %v833_v6   ;;  %v519_v9 = vadd.f32 %v518_v8, %v489_v7 }
  0xcb   : > { %v559_v11 = vadd.f32 %v888_v45, %v519_v9 }
  0xcd   : > { %v843_v12 = vpack.c.bf16 %v559_v11, %v558_v10 }
  0xcf   : > { %847 = vst [vmem:[%s265_s8 + $0x18] sm:$0xff] %v843_v12  }
  0xd0 PF: > { %s13_s14 = sadd.s32 1, %s911_s14   ;;  %s1046_s12 = smov %s907_s13 }
  0xd1   : > { %p10_p5 = scmp.ge.s32.totalorder %s13_s14, 4   ;;  %s1047_s13 = smov %s1049_s15 }
  0xd3   :  { %12 = sbr.rel (!%p10_p5) target bundleno = 2 (0x2), region = 76 }

// kernel: lseg_forward.28
= control target key start
LH: loop header
LB: loop body
LE: loop exit
PB: predicated region body
PF: predicated region fallthrough
CT: control target
= control target key end

     0   :  { %s1053_s12 = smov 0   ;;  %s1055_s13 = smov 0   ;;  %s1192_s0 = inlined_call_operand.vmem [shape: bf16[128,384], index: 0, kind: input, shape index: {}]   ;;  %s1193_s1 = inlined_call_operand.vmem [shape: bf16[384,128], index: 1, kind: input, shape index: {}]   ;;  %s1194_s2 = inlined_call_operand.vmem [shape: f32[1,128], index: 2, kind: input, shape index: {}]   ;;  %s1195_s3 = inlined_call_operand.vmem [shape: bf16[128,32], index: 3, kind: output, shape index: {}]  }
   0x1   :  { %s1057_s14 = smov 0  }
   0x2 LB: > { %s32_s15 = sadd.s32 1, %s1027_s13  ;;  %p825_p0 = scmp.ge.s32.totalorder %s1031_s14, 1  ;;  %s1031_s14 = sphi %s1057_s14, %s13_s14   ;;  %s1027_s13 = sphi %s1055_s13, %s1197_s13   ;;  %s1023_s12 = sphi %s1053_s12, %s1196_s12  }
   0x3   : > { %p34_p1 = scmp.ge.s32.totalorder %s32_s15, 2  ;;  %p191_p2 = scmp.lt.s32.totalorder %s1031_s14, 3 }
   0x5   : > { %s1199_s15 = smov (%p34_p1, %s32_s15), 0  ;;  %p192_p3 = pnand %p825_p0, %p191_p2 }
   0x6   : > { %s826_s22 = sshll.u32 (!%p192_p3), %s1023_s12, 3 }
   0x7   : > { %195 = sbr.rel (%p192_p3) target bundleno = 243 (0xf3), region = 32  ;;  %p236_p4 = scmp.lt.s32.totalorder (!%p192_p3), %s826_s22, 15 }
   0xc   : > { %v935_v0 = vld [vmem:[%s1193_s1 + $0x38] sm:$0xff]  ;;  %v934_v3 = vld [vmem:[%s1193_s1 + $0x30] sm:$0xff]  ;;  %v933_v6 = vld [vmem:[%s1193_s1 + $0x28] sm:$0xff]  ;;  %s1201_s22 = smov (!%p236_p4, %s826_s22), 15 }
   0xd   : > { %v943_v1 = vld [vmem:[%s1193_s1 + $0x78] sm:$0xff]  ;;  %555 = vmatpush.bf16.msra.mxu0 %v935_v0  ;;  %v942_v4 = vld [vmem:[%s1193_s1 + $0x70] sm:$0xff]  ;;  %975 = vmatpush.bf16.msra.mxu3 %v935_v0  ;;  %v941_v7 = vld [vmem:[%s1193_s1 + $0x68] sm:$0xff]  ;;  %s983_s17 = smul.u32 12, %s1201_s22  ;;  %s829_s25 = sshll.u32 %s1201_s22, 2 }
   0xe   : > { %v951_v2 = vld [vmem:[%s1193_s1 + $0xb8] sm:$0xff]  ;;  %584 = vmatpush.bf16.msra.mxu1 %v943_v1  ;;  %v950_v5 = vld [vmem:[%s1193_s1 + $0xb0] sm:$0xff]  ;;  %v949_v8 = vld [vmem:[%s1193_s1 + $0xa8] sm:$0xff]  ;;  %s1177_s28 = scalar_lea.vmem %s1195_s3, %s829_s25 }
   0xf   : > { %613 = vmatpush.bf16.msra.mxu2 %v951_v2  ;;  %v932_v9 = vld [vmem:[%s1193_s1 + $0x20] sm:$0xff]  ;;  %v931_v12 = vld [vmem:[%s1193_s1 + $0x18] sm:$0xff]  ;;  %s1125_s27 = scalar_lea.vmem %s1192_s0, %s983_s17  ;;  %v930_v15 = vld [vmem:[%s1193_s1 + $0x10] sm:$0xff] }
  0x10   : > { %v940_v10 = vld [vmem:[%s1193_s1 + $0x60] sm:$0xff]  ;;  %v939_v13 = vld [vmem:[%s1193_s1 + $0x58] sm:$0xff]  ;;  %v938_v16 = vld [vmem:[%s1193_s1 + $0x50] sm:$0xff] }
  0x11   : > { %556 = vmatpush.bf16.msra.mxu0 %v934_v3  ;;  %976 = vmatpush.bf16.msra.mxu3 %v934_v3  ;;  %v948_v11 = vld [vmem:[%s1193_s1 + $0xa0] sm:$0xff]  ;;  %v947_v14 = vld [vmem:[%s1193_s1 + $0x98] sm:$0xff]  ;;  %v946_v17 = vld [vmem:[%s1193_s1 + $0x90] sm:$0xff] }
  0x12   : > { %585 = vmatpush.bf16.msra.mxu1 %v942_v4  ;;  %v279_v18 = vld [vmem:[%s1125_s27] sm:$0xff]  ;;  %v281_v19 = vld [vmem:[%s1125_s27 + $0xc] sm:$0xff]  ;;  %v280_v20 = vld [vmem:[%s1125_s27 + $0x8] sm:$0xf] }
  0x13   : > { %614 = vmatpush.bf16.msra.mxu2 %v950_v5  ;;  %v282_v21 = vld [vmem:[%s1125_s27 + $0x14] sm:$0xf]  ;;  %v283_v22 = vld [vmem:[%s1125_s27 + $0x18] sm:$0xff]  ;;  %v285_v23 = vld [vmem:[%s1125_s27 + $0x24] sm:$0xff]  ;;  %v295_v24 = vunpack.c.l.bf16 %v279_v18  ;;  %v298_v25 = vunpack.c.l.bf16 %v281_v19  ;;  %v296_v26 = vunpack.c.h.bf16 %v279_v18  ;;  %v299_v27 = vunpack.c.h.bf16 %v281_v19 }
  0x14   : > { %v929_v28 = vld [vmem:[%s1193_s1 + $0x8] sm:$0xff]  ;;  %v297_v30 = vunpack.c.l.bf16 %v280_v20  ;;  %v300_v31 = vunpack.c.l.bf16 %v282_v21  ;;  %v301_v32 = vunpack.c.l.bf16 %v283_v22  ;;  %v304_v33 = vunpack.c.l.bf16 %v285_v23  ;;  %v928_v39 = vld [vmem:[%s1193_s1] sm:$0xff]  ;;  %v287_v52 = vld [vmem:[%s1125_s27 + $0x30] sm:$0xff] }
  0x15   : > { %557 = vmatpush.bf16.msra.mxu0 %v933_v6  ;;  %977 = vmatpush.bf16.msra.mxu3 %v933_v6  ;;  %v937_v29 = vld [vmem:[%s1193_s1 + $0x48] sm:$0xff]  ;;  %v319_v35 = vmax.f32 %v295_v24, 0.0  ;;  %v322_v36 = vmax.f32 %v298_v25, 0.0  ;;  %v320_v37 = vmax.f32 %v296_v26, 0.0  ;;  %v323_v38 = vmax.f32 %v299_v27, 0.0  ;;  %v936_v40 = vld [vmem:[%s1193_s1 + $0x40] sm:$0xff] }
  0x16   : > { %586 = vmatpush.bf16.msra.mxu1 %v941_v7  ;;  %v945_v34 = vld [vmem:[%s1193_s1 + $0x88] sm:$0xff]  ;;  %v321_v41 = vmax.f32 %v297_v30, 0.0  ;;  %v324_v42 = vmax.f32 %v300_v31, 0.0  ;;  %v325_v43 = vmax.f32 %v301_v32, 0.0  ;;  %v328_v44 = vmax.f32 %v304_v33, 0.0  ;;  %v944_v45 = vld [vmem:[%s1193_s1 + $0x80] sm:$0xff] }
  0x17   : > { %615 = vmatpush.bf16.msra.mxu2 %v949_v8  ;;  %v343_v46 = vpack.c.bf16 %v322_v36, %v319_v35  ;;  %v344_v47 = vpack.c.bf16 %v323_v38, %v320_v37  ;;  %v284_v50 = vld [vmem:[%s1125_s27 + $0x20] sm:$0xf]  ;;  %v286_v51 = vld [vmem:[%s1125_s27 + $0x2c] sm:$0xf]  ;;  %v302_v54 = vunpack.c.h.bf16 %v283_v22  ;;  %v305_v55 = vunpack.c.h.bf16 %v285_v23  ;;  %v288_v5 = vld [vmem:[%s1125_s27 + $0x38] sm:$0xf] }
  0x18   : > { %v345_v48 = vpack.c.bf16 %v324_v42, %v321_v41  ;;  %v346_v49 = vpack.c.bf16 %v328_v44, %v325_v43  ;;  %v289_v53 = vld [vmem:[%s1125_s27 + $0x3c] sm:$0xff]  ;;  %v303_v56 = vunpack.c.l.bf16 %v284_v50  ;;  %v306_v57 = vunpack.c.l.bf16 %v286_v51  ;;  %v290_v6 = vld [vmem:[%s1125_s27 + $0x44] sm:$0xf]  ;;  %v291_v7 = vld [vmem:[%s1125_s27 + $0x48] sm:$0xff] }
  0x19   : > { %558 = vmatpush.bf16.msra.mxu0 %v932_v9  ;;  %978 = vmatpush.bf16.msra.mxu3 %v932_v9  ;;  %v307_v58 = vunpack.c.l.bf16 %v287_v52  ;;  %v310_v59 = vunpack.c.l.bf16 %v289_v53  ;;  %v326_v60 = vmax.f32 %v302_v54, 0.0  ;;  %v329_v61 = vmax.f32 %v305_v55, 0.0  ;;  %v293_v8 = vld [vmem:[%s1125_s27 + $0x54] sm:$0xff]  ;;  %v292_v24 = vld [vmem:[%s1125_s27 + $0x50] sm:$0xf] }
  0x1a   : > { %587 = vmatpush.bf16.msra.mxu1 %v940_v10  ;;  %v327_v62 = vmax.f32 %v303_v56, 0.0  ;;  %v330_v63 = vmax.f32 %v306_v57, 0.0  ;;  %v308_v9 = vunpack.c.h.bf16 %v287_v52  ;;  %v311_v10 = vunpack.c.h.bf16 %v289_v53  ;;  %v294_v25 = vld [vmem:[%s1125_s27 + $0x5c] sm:$0xf]  ;;  %v1008_v44 = vld [vmem:[%s1194_s2] ss:$0 sm:$0xff] }
  0x1b   : > { %616 = vmatpush.bf16.msra.mxu2 %v948_v11  ;;  %v331_v0 = vmax.f32 %v307_v58, 0.0  ;;  %v334_v1 = vmax.f32 %v310_v59, 0.0  ;;  %v347_v2 = vpack.c.bf16 %v329_v61, %v326_v60  ;;  %v309_v11 = vunpack.c.l.bf16 %v288_v5 }
  0x1c   : > { %v348_v3 = vpack.c.bf16 %v330_v63, %v327_v62  ;;  %v314_v26 = vunpack.c.h.bf16 %v291_v7  ;;  %v317_v27 = vunpack.c.h.bf16 %v293_v8 }
  0x1d   : > { %559 = vmatpush.bf16.msra.mxu0 %v931_v12  ;;  %979 = vmatpush.bf16.msra.mxu3 %v931_v12  ;;  %v349_v4 = vpack.c.bf16 %v334_v1, %v331_v0  ;;  %v312_v12 = vunpack.c.l.bf16 %v290_v6 }
  0x1e   : > { %588 = vmatpush.bf16.msra.mxu1 %v939_v13  ;;  %v313_v13 = vunpack.c.l.bf16 %v291_v7  ;;  %v338_v30 = vmax.f32 %v314_v26, 0.0  ;;  %v341_v31 = vmax.f32 %v317_v27, 0.0 }
  0x1f   : > { %617 = vmatpush.bf16.msra.mxu2 %v947_v14  ;;  %v316_v14 = vunpack.c.l.bf16 %v293_v8  ;;  %v336_v18 = vmax.f32 %v312_v12, 0.0 }
  0x20   : > { %v337_v19 = vmax.f32 %v313_v13, 0.0 }
  0x21   : > { %560 = vmatpush.bf16.msra.mxu0 %v930_v15  ;;  %980 = vmatpush.bf16.msra.mxu3 %v930_v15  ;;  %v332_v15 = vmax.f32 %v308_v9, 0.0  ;;  %v340_v20 = vmax.f32 %v316_v14, 0.0 }
  0x22   : > { %589 = vmatpush.bf16.msra.mxu1 %v938_v16  ;;  %v335_v16 = vmax.f32 %v311_v10, 0.0 }
  0x23   : > { %618 = vmatpush.bf16.msra.mxu2 %v946_v17  ;;  %v333_v17 = vmax.f32 %v309_v11, 0.0  ;;  %v352_v23 = vpack.c.bf16 %v340_v20, %v337_v19 }
  0x24   : > { %v350_v21 = vpack.c.bf16 %v335_v16, %v332_v15 }
  0x25   : > { %561 = vmatpush.bf16.msra.mxu0 %v929_v28  ;;  %981 = vmatpush.bf16.msra.mxu3 %v929_v28  ;;  %v351_v22 = vpack.c.bf16 %v336_v18, %v333_v17  ;;  %v315_v28 = vunpack.c.l.bf16 %v292_v24 }
  0x26   : > { %590 = vmatpush.bf16.msra.mxu1 %v937_v29  ;;  %v318_v29 = vunpack.c.l.bf16 %v294_v25 }
  0x27   : > { %619 = vmatpush.bf16.msra.mxu2 %v945_v34  ;;  %v339_v32 = vmax.f32 %v315_v28, 0.0  ;;  %v353_v34 = vpack.c.bf16 %v341_v31, %v338_v30 }
  0x28   : > { %v342_v33 = vmax.f32 %v318_v29, 0.0 }
  0x29   : > { %562 = vmatpush.bf16.msra.mxu0 %v928_v39  ;;  %982 = vmatpush.bf16.msra.mxu3 %v928_v39 }
  0x2a   : > { %591 = vmatpush.bf16.msra.mxu1 %v936_v40  ;;  %v354_v35 = vpack.c.bf16 %v342_v33, %v339_v32 }
  0x2b   : > { %620 = vmatpush.bf16.msra.mxu2 %v944_v45 }
  0x2c   : > { %563 = vmatmul.bf16.vlgmr.msra.gmra.mxu0 %v343_v46  ;;  %568 = vmatmul.bf16.vlgmr.msra.gmra.mxu3 %v346_v49 }
  0x2d   : > { %592 = vmatmul.bf16.vlgmr.msra.gmra.mxu1 %v344_v47 }
  0x2e   : > { %621 = vmatmul.bf16.vlgmr.msra.gmra.mxu2 %v345_v48 }
  0x3c   : > { %573 = vmatmul.bf16.gmra.mxu3 %v349_v4 }
  0x3d   : > { %597 = vmatmul.bf16.gmra.mxu1 %v347_v2 }
  0x3e   : > { %626 = vmatmul.bf16.gmra.mxu2 %v348_v3 }
  0x4c   : > { %578 = vmatmul.bf16.gmra.mxu3 %v352_v23 }
  0x4d   : > { %602 = vmatmul.bf16.gmra.mxu1 %v350_v21 }
  0x4e   : > { %631 = vmatmul.bf16.gmra.mxu2 %v351_v22 }
  0x5d   : > { %607 = vmatmul.bf16.gmra.mxu1 %v353_v34 }
  0x5e   : > { %636 = vmatmul.bf16.gmra.mxu2 %v354_v35 }
  0xa9   : > { %v564_v37 = vpop.f32.mrf.mxu0 }
  0xaa   : > { %v593_v36 = vpop.f32.mrf.mxu1 }
  0xab   : > { %v594_v39 = vadd.f32 %v593_v36, %v564_v37 }
  0xaf   : > { %v569_v42 = vpop.f32.mrf.mxu3 }
  0xb1   : > { %v622_v38 = vpop.f32.mrf.mxu2  ;;  %v566_v41 = vpop.f32.mrf.mxu0 }
  0xb2   : > { %v595_v40 = vpop.f32.mrf.mxu1  ;;  %v623_v43 = vadd.f32 %v622_v38, %v594_v39 }
  0xb3   : > { %v596_v45 = vadd.f32 %v595_v40, %v566_v41 }
  0xb4   : > { %v673_v47 = vadd.f32 %v1008_v44, %v623_v43 }
  0xb6   : > { %v681_v51 = vmax.f32 %v673_v47, 0.0 }
  0xb7   : > { %v571_v53 = vpop.f32.mrf.mxu3 }
  0xb9   : > { %v624_v46 = vpop.f32.mrf.mxu2 }
  0xba   : > { %v625_v48 = vadd.f32 %v624_v46, %v596_v45  ;;  %v598_v49 = vpop.f32.mrf.mxu1 }
  0xbb   : > { %v599_v56 = vadd.f32 %v598_v49, %v569_v42 }
  0xbc   : > { %v674_v50 = vadd.f32 %v1008_v44, %v625_v48 }
  0xbe   : > { %v682_v52 = vmax.f32 %v674_v50, 0.0 }
  0xbf   : > { %v574_v60 = vpop.f32.mrf.mxu3 }
  0xc0   : > { %v955_v54 = vpack.c.bf16 %v682_v52, %v681_v51 }
  0xc1   : > { %v627_v55 = vpop.f32.mrf.mxu2 }
  0xc2   : > { %956 = vst [vmem:[%s1177_s28] sm:$0xff] %v955_v54   ;;  %v600_v57 = vpop.f32.mrf.mxu1  ;;  %v628_v58 = vadd.f32 %v627_v55, %v599_v56 }
  0xc3   : > { %v601_v59 = vadd.f32 %v600_v57, %v571_v53 }
  0xc4   : > { %v675_v62 = vadd.f32 %v1008_v44, %v628_v58 }
  0xc6   : > { %v683_v2 = vmax.f32 %v675_v62, 0.0 }
  0xc7   : > { %v576_v8 = vpop.f32.mrf.mxu3 }
  0xc9   : > { %v629_v61 = vpop.f32.mrf.mxu2 }
  0xca   : > { %v630_v63 = vadd.f32 %v629_v61, %v601_v59  ;;  %v603_v0 = vpop.f32.mrf.mxu1 }
  0xcb   : > { %v604_v6 = vadd.f32 %v603_v0, %v574_v60 }
  0xcc   : > { %v676_v1 = vadd.f32 %v1008_v44, %v630_v63 }
  0xce   : > { %v684_v3 = vmax.f32 %v676_v1, 0.0 }
  0xcf   : > { %v579_v16 = vpop.f32.mrf.mxu3 }
  0xd0   : > { %v960_v4 = vpack.c.bf16 %v684_v3, %v683_v2 }
  0xd1   : > { %v632_v5 = vpop.f32.mrf.mxu2 }
  0xd2   : > { %972 = vst [vmem:[%s1177_s28 + $0x8] sm:$0xff] %v960_v4   ;;  %v605_v7 = vpop.f32.mrf.mxu1  ;;  %v633_v9 = vadd.f32 %v632_v5, %v604_v6 }
  0xd3   : > { %v606_v10 = vadd.f32 %v605_v7, %v576_v8 }
  0xd4   : > { %v677_v12 = vadd.f32 %v1008_v44, %v633_v9 }
  0xd6   : > { %v685_v17 = vmax.f32 %v677_v12, 0.0 }
  0xd7   : > { %v581_v24 = vpop.f32.mrf.mxu3 }
  0xd9   : > { %v634_v11 = vpop.f32.mrf.mxu2 }
  0xda   : > { %v635_v13 = vadd.f32 %v634_v11, %v606_v10  ;;  %v608_v14 = vpop.f32.mrf.mxu1 }
  0xdb   : > { %v609_v21 = vadd.f32 %v608_v14, %v579_v16 }
  0xdc   : > { %v678_v15 = vadd.f32 %v1008_v44, %v635_v13 }
  0xde   : > { %v686_v18 = vmax.f32 %v678_v15, 0.0 }
  0xe0   : > { %v965_v19 = vpack.c.bf16 %v686_v18, %v685_v17 }
  0xe1   : > { %v637_v20 = vpop.f32.mrf.mxu2 }
  0xe2   : > { %973 = vst [vmem:[%s1177_s28 + $0x10] sm:$0xff] %v965_v19   ;;  %v610_v22 = vpop.f32.mrf.mxu1  ;;  %v638_v23 = vadd.f32 %v637_v20, %v609_v21 }
  0xe3   : > { %v611_v25 = vadd.f32 %v610_v22, %v581_v24 }
  0xe4   : > { %v679_v27 = vadd.f32 %v1008_v44, %v638_v23 }
  0xe6   : > { %v687_v30 = vmax.f32 %v679_v27, 0.0 }
  0xe9   : > { %v639_v26 = vpop.f32.mrf.mxu2 }
  0xea   : > { %v640_v28 = vadd.f32 %v639_v26, %v611_v25 }
  0xec   : > { %v680_v29 = vadd.f32 %v1008_v44, %v640_v28 }
  0xee   : > { %v688_v31 = vmax.f32 %v680_v29, 0.0 }
  0xf0   : > { %v970_v32 = vpack.c.bf16 %v688_v31, %v687_v30 }
  0xf2   : > { %974 = vst [vmem:[%s1177_s28 + $0x18] sm:$0xff] %v970_v32  }
  0xf3 PF: > { %s13_s14 = sadd.s32 1, %s1031_s14   ;;  %s1196_s12 = smov %s1027_s13 }
  0xf4   : > { %p10_p5 = scmp.ge.s32.totalorder %s13_s14, 4   ;;  %s1197_s13 = smov %s1199_s15 }
  0xf6   :  { %12 = sbr.rel (!%p10_p5) target bundleno = 2 (0x2), region = 76 }

// kernel: lseg_forward.32
= control target key start
LH: loop header
LB: loop body
LE: loop exit
PB: predicated region body
PF: predicated region fallthrough
CT: control target
= control target key end

     0   :  { %s677_s12 = smov 0   ;;  %s679_s13 = smov 0   ;;  %s719_s0 = inlined_call_operand.vmem [shape: bf16[128,32], index: 0, kind: input, shape index: {}]   ;;  %s720_s1 = inlined_call_operand.vmem [shape: bf16[32,128], index: 1, kind: input, shape index: {}]   ;;  %s721_s2 = inlined_call_operand.vmem [shape: f32[1,128], index: 2, kind: input, shape index: {}]   ;;  %s722_s3 = inlined_call_operand.vmem [shape: bf16[128,32], index: 3, kind: output, shape index: {}]  }
   0x1   :  { %s681_s14 = smov 0  }
   0x2 LB: > { %s32_s15 = sadd.s32 1, %s651_s13  ;;  %p538_p0 = scmp.ge.s32.totalorder %s655_s14, 1  ;;  %s655_s14 = sphi %s681_s14, %s13_s14   ;;  %s651_s13 = sphi %s679_s13, %s724_s13   ;;  %s647_s12 = sphi %s677_s12, %s723_s12  }
   0x3   : > { %p34_p1 = scmp.ge.s32.totalorder %s32_s15, 2  ;;  %p188_p2 = scmp.lt.s32.totalorder %s655_s14, 3 }
   0x5   : > { %s726_s15 = smov (%p34_p1, %s32_s15), 0  ;;  %p189_p3 = pnand %p538_p0, %p188_p2 }
   0x6   : > { %s539_s18 = sshll.u32 (!%p189_p3), %s647_s12, 3 }
   0x7   : > { %192 = sbr.rel (%p189_p3) target bundleno = 167 (0xa7), region = 32  ;;  %p230_p4 = scmp.lt.s32.totalorder (!%p189_p3), %s539_s18, 15 }
   0xc   : > { %v578_v0 = vld [vmem:[%s720_s1 + $0x8] sm:$0xff]  ;;  %v577_v1 = vld [vmem:[%s720_s1] sm:$0xff]  ;;  %s728_s18 = smov (!%p230_p4, %s539_s18), 15  ;;  %vm324_vm0 = vcmask 261120  }
   0xd   : > { %343 = vmatpush.bf16.msra.mxu0 %v578_v0  ;;  %602 = vmatpush.bf16.msra.mxu1 %v578_v0  ;;  %s540_s21 = sshll.u32 %s728_s18, 2  ;;  %v632_v8 = vld [vmem:[%s721_s2] ss:$0 sm:$0xff] }
   0xe   : > { %603 = vmatpush.bf16.msra.mxu2 %v578_v0  ;;  %604 = vmatpush.bf16.msra.mxu3 %v578_v0  ;;  %s236_s24 = scalar_lea.vmem %s719_s0, %s540_s21  ;;  %s257_s29 = scalar_lea.vmem %s722_s3, %s540_s21 }
   0xf   : > { %v573_v2 = vld [vmem:[%s236_s24] sm:$0xff]  ;;  %v574_v3 = vld [vmem:[%s236_s24 + $0x8] sm:$0xff]  ;;  %v575_v4 = vld [vmem:[%s236_s24 + $0x10] sm:$0xff] }
  0x10   : > { %v576_v5 = vld [vmem:[%s236_s24 + $0x18] sm:$0xff] }
  0x11   : > { %344 = vmatpush.bf16.msra.mxu0 %v577_v1  ;;  %605 = vmatpush.bf16.msra.mxu1 %v577_v1 }
  0x12   : > { %606 = vmatpush.bf16.msra.mxu2 %v577_v1  ;;  %607 = vmatpush.bf16.msra.mxu3 %v577_v1 }
  0x14   : > { %567 = vmatmul.msk.bf16.vlgmr.msra.gmra.mxu0 %vm324_vm0, %v573_v2  ;;  %568 = vmatmul.msk.bf16.vlgmr.msra.gmra.mxu1 %vm324_vm0, %v574_v3 }
  0x15   : > { %569 = vmatmul.msk.bf16.vlgmr.msra.gmra.mxu2 %vm324_vm0, %v575_v4  ;;  %570 = vmatmul.msk.bf16.vlgmr.msra.gmra.mxu3 %vm324_vm0, %v576_v5 }
  0x91   : > { %v346_v6 = vpop.f32.mrf.mxu0  ;;  %v351_v7 = vpop.f32.mrf.mxu1 }
  0x92   : > { %v397_v13 = vadd.f32 %v632_v8, %v346_v6  ;;  %v399_v14 = vadd.f32 %v632_v8, %v351_v7 }
  0x98   : > { %v356_v9 = vpop.f32.mrf.mxu2  ;;  %v361_v10 = vpop.f32.mrf.mxu3 }
  0x99   : > { %v348_v11 = vpop.f32.mrf.mxu0  ;;  %v353_v12 = vpop.f32.mrf.mxu1  ;;  %v401_v21 = vadd.f32 %v632_v8, %v356_v9  ;;  %v403_v22 = vadd.f32 %v632_v8, %v361_v10 }
  0x9a   : > { %v398_v15 = vadd.f32 %v632_v8, %v348_v11  ;;  %v400_v16 = vadd.f32 %v632_v8, %v353_v12 }
  0x9c   : > { %v582_v17 = vpack.c.bf16 %v398_v15, %v397_v13  ;;  %v587_v18 = vpack.c.bf16 %v400_v16, %v399_v14 }
  0x9e   : > { %583 = vst [vmem:[%s257_s29] sm:$0xff] %v582_v17  }
  0x9f   : > { %599 = vst [vmem:[%s257_s29 + $0x8] sm:$0xff] %v587_v18  }
  0xa0   : > { %v358_v19 = vpop.f32.mrf.mxu2  ;;  %v363_v20 = vpop.f32.mrf.mxu3 }
  0xa1   : > { %v402_v23 = vadd.f32 %v632_v8, %v358_v19  ;;  %v404_v24 = vadd.f32 %v632_v8, %v363_v20 }
  0xa3   : > { %v592_v25 = vpack.c.bf16 %v402_v23, %v401_v21  ;;  %v597_v26 = vpack.c.bf16 %v404_v24, %v403_v22 }
  0xa5   : > { %600 = vst [vmem:[%s257_s29 + $0x10] sm:$0xff] %v592_v25  }
  0xa6   : > { %601 = vst [vmem:[%s257_s29 + $0x18] sm:$0xff] %v597_v26  }
  0xa7 PF: > { %s13_s14 = sadd.s32 1, %s655_s14   ;;  %s723_s12 = smov %s651_s13 }
  0xa8   : > { %p10_p5 = scmp.ge.s32.totalorder %s13_s14, 4   ;;  %s724_s13 = smov %s726_s15 }
  0xaa   :  { %12 = sbr.rel (!%p10_p5) target bundleno = 2 (0x2), region = 76 }

// kernel: lseg_forward.31
= control target key start
LH: loop header
LB: loop body
LE: loop exit
PB: predicated region body
PF: predicated region fallthrough
CT: control target
= control target key end

     0   :  { %s1234_s15 = smov 0   ;;  %s1236_s16 = smov 0   ;;  %s1400_s0 = inlined_call_operand.vmem [shape: bf16[128,384], index: 0, kind: input, shape index: {}]   ;;  %s1401_s1 = inlined_call_operand.vmem [shape: bf16[384,128], index: 1, kind: input, shape index: {}]   ;;  %s1402_s2 = inlined_call_operand.vmem [shape: f32[1,128], index: 2, kind: input, shape index: {}]   ;;  %s1403_s3 = inlined_call_operand.vmem [shape: bf16[128,32], index: 3, kind: input, shape index: {}]   ;;  %s1404_s4 = inlined_call_operand.vmem [shape: bf16[128,32], index: 4, kind: output, shape index: {}]  }
   0x1   :  { %s1238_s17 = smov 0  }
   0x2 LB: > { %s33_s18 = sadd.s32 1, %s1203_s16  ;;  %p920_p0 = scmp.ge.s32.totalorder %s1207_s17, 1  ;;  %s1207_s17 = sphi %s1238_s17, %s14_s17   ;;  %s1203_s16 = sphi %s1236_s16, %s1406_s16   ;;  %s1199_s15 = sphi %s1234_s15, %s1405_s15  }
   0x3   : > { %p35_p1 = scmp.ge.s32.totalorder %s33_s18, 2  ;;  %p232_p2 = scmp.lt.s32.totalorder %s1207_s17, 3 }
   0x5   : > { %s1408_s18 = smov (%p35_p1, %s33_s18), 0  ;;  %p233_p3 = pnand %p920_p0, %p232_p2 }
   0x6   : > { %s921_s11 = sshll.u32 (!%p233_p3), %s1199_s15, 3 }
   0x7   : > { %236 = sbr.rel (%p233_p3) target bundleno = 243 (0xf3), region = 36  ;;  %p287_p4 = scmp.lt.s32.totalorder (!%p233_p3), %s921_s11, 15 }
   0xc   : > { %v1092_v0 = vld [vmem:[%s1401_s1 + $0x38] sm:$0xff]  ;;  %v1091_v3 = vld [vmem:[%s1401_s1 + $0x30] sm:$0xff]  ;;  %v1090_v6 = vld [vmem:[%s1401_s1 + $0x28] sm:$0xff]  ;;  %s1410_s11 = smov (!%p287_p4, %s921_s11), 15 }
   0xd   : > { %v1100_v1 = vld [vmem:[%s1401_s1 + $0x78] sm:$0xff]  ;;  %619 = vmatpush.bf16.msra.mxu0 %v1092_v0  ;;  %v1099_v4 = vld [vmem:[%s1401_s1 + $0x70] sm:$0xff]  ;;  %1151 = vmatpush.bf16.msra.mxu3 %v1092_v0  ;;  %v1098_v7 = vld [vmem:[%s1401_s1 + $0x68] sm:$0xff]  ;;  %s1159_s5 = smul.u32 12, %s1410_s11  ;;  %s924_s27 = sshll.u32 %s1410_s11, 2 }
   0xe   : > { %v1108_v2 = vld [vmem:[%s1401_s1 + $0xb8] sm:$0xff]  ;;  %648 = vmatpush.bf16.msra.mxu1 %v1100_v1  ;;  %v1107_v5 = vld [vmem:[%s1401_s1 + $0xb0] sm:$0xff]  ;;  %v1106_v8 = vld [vmem:[%s1401_s1 + $0xa8] sm:$0xff]  ;;  %s1363_s30 = scalar_lea.vmem %s1403_s3, %s924_s27  ;;  %s1376_s8 = scalar_lea.vmem %s1404_s4, %s924_s27 }
   0xf   : > { %677 = vmatpush.bf16.msra.mxu2 %v1108_v2  ;;  %v1089_v9 = vld [vmem:[%s1401_s1 + $0x20] sm:$0xff]  ;;  %v1088_v12 = vld [vmem:[%s1401_s1 + $0x18] sm:$0xff]  ;;  %v1087_v15 = vld [vmem:[%s1401_s1 + $0x10] sm:$0xff]  ;;  %s1321_s19 = scalar_lea.vmem %s1400_s0, %s1159_s5 }
  0x10   : > { %v1097_v10 = vld [vmem:[%s1401_s1 + $0x60] sm:$0xff]  ;;  %v1096_v13 = vld [vmem:[%s1401_s1 + $0x58] sm:$0xff]  ;;  %v1095_v16 = vld [vmem:[%s1401_s1 + $0x50] sm:$0xff] }
  0x11   : > { %620 = vmatpush.bf16.msra.mxu0 %v1091_v3  ;;  %1152 = vmatpush.bf16.msra.mxu3 %v1091_v3  ;;  %v1105_v11 = vld [vmem:[%s1401_s1 + $0xa0] sm:$0xff]  ;;  %v1104_v14 = vld [vmem:[%s1401_s1 + $0x98] sm:$0xff]  ;;  %v1103_v17 = vld [vmem:[%s1401_s1 + $0x90] sm:$0xff] }
  0x12   : > { %649 = vmatpush.bf16.msra.mxu1 %v1099_v4  ;;  %v1086_v18 = vld [vmem:[%s1401_s1 + $0x8] sm:$0xff]  ;;  %v1085_v21 = vld [vmem:[%s1401_s1] sm:$0xff]  ;;  %v931_v27 = vld [vmem:[%s1321_s19 + $0xc] sm:$0xf0] }
  0x13   : > { %678 = vmatpush.bf16.msra.mxu2 %v1107_v5  ;;  %v1094_v19 = vld [vmem:[%s1401_s1 + $0x48] sm:$0xff]  ;;  %v1093_v22 = vld [vmem:[%s1401_s1 + $0x40] sm:$0xff]  ;;  %v1075_v29 = vld [vmem:[%s1321_s19 + $0x10] sm:$0xf0] }
  0x14   : > { %v1102_v20 = vld [vmem:[%s1401_s1 + $0x88] sm:$0xff]  ;;  %v1101_v23 = vld [vmem:[%s1401_s1 + $0x80] sm:$0xff]  ;;  %v941_v30 = vld [vmem:[%s1321_s19 + $0x18] sm:$0xf] }
  0x15   : > { %621 = vmatpush.bf16.msra.mxu0 %v1090_v6  ;;  %1153 = vmatpush.bf16.msra.mxu3 %v1090_v6  ;;  %v929_v24 = vld [vmem:[%s1321_s19] sm:$0xf]  ;;  %v1074_v25 = vld [vmem:[%s1321_s19 + $0x8] sm:$0xf0]  ;;  %v1073_v26 = vld [vmem:[%s1321_s19 + $0x4] sm:$0xf] }
  0x16   : > { %650 = vmatpush.bf16.msra.mxu1 %v1098_v7  ;;  %v937_v28 = vld [vmem:[%s1321_s19 + $0x8] sm:$0xf]  ;;  %v1077_v31 = vld [vmem:[%s1321_s19 + $0x20] sm:$0xf0]  ;;  %v930_v32 = vor.u32 %v1074_v25, %v929_v24  ;;  %v934_v33 = vor.u32 %v1073_v26, %v931_v27  ;;  %v1076_v36 = vld [vmem:[%s1321_s19 + $0x1c] sm:$0xf] }
  0x17   : > { %679 = vmatpush.bf16.msra.mxu2 %v1106_v8  ;;  %v938_v34 = vor.u32 %v1075_v29, %v937_v28  ;;  %v942_v35 = vor.u32 %v1077_v31, %v941_v30  ;;  %v943_v37 = vld [vmem:[%s1321_s19 + $0x24] sm:$0xf0]  ;;  %v949_v38 = vld [vmem:[%s1321_s19 + $0x20] sm:$0xf]  ;;  %v1078_v39 = vld [vmem:[%s1321_s19 + $0x28] sm:$0xf0] }
  0x18   : > { %v953_v40 = vld [vmem:[%s1321_s19 + $0x30] sm:$0xf]  ;;  %v1080_v41 = vld [vmem:[%s1321_s19 + $0x38] sm:$0xf0]  ;;  %v946_v42 = vor.u32 %v1076_v36, %v943_v37  ;;  %v950_v43 = vor.u32 %v1078_v39, %v949_v38  ;;  %v1079_v45 = vld [vmem:[%s1321_s19 + $0x34] sm:$0xf] }
  0x19   : > { %622 = vmatpush.bf16.msra.mxu0 %v1089_v9  ;;  %1154 = vmatpush.bf16.msra.mxu3 %v1089_v9  ;;  %v954_v44 = vor.u32 %v1080_v41, %v953_v40  ;;  %v955_v46 = vld [vmem:[%s1321_s19 + $0x3c] sm:$0xf0]  ;;  %v961_v47 = vld [vmem:[%s1321_s19 + $0x38] sm:$0xf]  ;;  %v1081_v48 = vld [vmem:[%s1321_s19 + $0x40] sm:$0xf0] }
  0x1a   : > { %651 = vmatpush.bf16.msra.mxu1 %v1097_v10  ;;  %v965_v49 = vld [vmem:[%s1321_s19 + $0x48] sm:$0xf]  ;;  %v1083_v50 = vld [vmem:[%s1321_s19 + $0x50] sm:$0xf0]  ;;  %v958_v51 = vor.u32 %v1079_v45, %v955_v46  ;;  %v962_v52 = vor.u32 %v1081_v48, %v961_v47  ;;  %v1082_v54 = vld [vmem:[%s1321_s19 + $0x4c] sm:$0xf] }
  0x1b   : > { %680 = vmatpush.bf16.msra.mxu2 %v1105_v11  ;;  %v966_v53 = vor.u32 %v1083_v50, %v965_v49  ;;  %v967_v55 = vld [vmem:[%s1321_s19 + $0x54] sm:$0xf0]  ;;  %v973_v56 = vld [vmem:[%s1321_s19 + $0x50] sm:$0xf]  ;;  %v1084_v57 = vld [vmem:[%s1321_s19 + $0x58] sm:$0xf0] }
  0x1c   : > { %v970_v58 = vor.u32 %v1082_v54, %v967_v55  ;;  %v974_v59 = vor.u32 %v1084_v57, %v973_v56  ;;  %v1368_v4 = vld [vmem:[%s1402_s2] ss:$0 sm:$0xff]  ;;  %v1146_v40 = vld [vmem:[%s1363_s30 + $0x10] sm:$0xff]  }
  0x1d   : > { %623 = vmatpush.bf16.msra.mxu0 %v1088_v12  ;;  %1155 = vmatpush.bf16.msra.mxu3 %v1088_v12  ;;  %v1110_v5 = vld [vmem:[%s1363_s30] sm:$0xff]   ;;  %v1120_v46 = vunpack.c.h.bf16 %v1146_v40 }
  0x1e   : > { %652 = vmatpush.bf16.msra.mxu1 %v1096_v13  ;;  %v1111_v9 = vunpack.c.l.bf16 %v1110_v5  ;;  %v1112_v11 = vunpack.c.h.bf16 %v1110_v5 }
  0x1f   : > { %681 = vmatpush.bf16.msra.mxu2 %v1104_v14 }
  0x21   : > { %624 = vmatpush.bf16.msra.mxu0 %v1087_v15  ;;  %1156 = vmatpush.bf16.msra.mxu3 %v1087_v15 }
  0x22   : > { %653 = vmatpush.bf16.msra.mxu1 %v1095_v16 }
  0x23   : > { %682 = vmatpush.bf16.msra.mxu2 %v1103_v17 }
  0x25   : > { %625 = vmatpush.bf16.msra.mxu0 %v1086_v18  ;;  %1157 = vmatpush.bf16.msra.mxu3 %v1086_v18 }
  0x26   : > { %654 = vmatpush.bf16.msra.mxu1 %v1094_v19 }
  0x27   : > { %683 = vmatpush.bf16.msra.mxu2 %v1102_v20 }
  0x29   : > { %626 = vmatpush.bf16.msra.mxu0 %v1085_v21  ;;  %1158 = vmatpush.bf16.msra.mxu3 %v1085_v21 }
  0x2a   : > { %655 = vmatpush.bf16.msra.mxu1 %v1093_v22  ;;  %v1145_v22 = vld [vmem:[%s1363_s30 + $0x8] sm:$0xff]  }
  0x2b   : > { %684 = vmatpush.bf16.msra.mxu2 %v1101_v23  ;;  %v1115_v27 = vunpack.c.l.bf16 %v1145_v22  ;;  %v1116_v29 = vunpack.c.h.bf16 %v1145_v22 }
  0x2c   : > { %627 = vmatmul.bf16.vlgmr.msra.gmra.mxu0 %v930_v32  ;;  %632 = vmatmul.bf16.vlgmr.msra.gmra.mxu3 %v942_v35 }
  0x2d   : > { %656 = vmatmul.bf16.vlgmr.msra.gmra.mxu1 %v934_v33 }
  0x2e   : > { %685 = vmatmul.bf16.vlgmr.msra.gmra.mxu2 %v938_v34 }
  0x3c   : > { %637 = vmatmul.bf16.gmra.mxu3 %v954_v44  ;;  %v1119_v44 = vunpack.c.l.bf16 %v1146_v40 }
  0x3d   : > { %661 = vmatmul.bf16.gmra.mxu1 %v946_v42 }
  0x3e   : > { %690 = vmatmul.bf16.gmra.mxu2 %v950_v43 }
  0x4c   : > { %642 = vmatmul.bf16.gmra.mxu3 %v966_v53 }
  0x4d   : > { %666 = vmatmul.bf16.gmra.mxu1 %v958_v51 }
  0x4e   : > { %695 = vmatmul.bf16.gmra.mxu2 %v962_v52 }
  0x5d   : > { %671 = vmatmul.bf16.gmra.mxu1 %v970_v58  ;;  %v1147_v58 = vld [vmem:[%s1363_s30 + $0x18] sm:$0xff]  }
  0x5e   : > { %700 = vmatmul.bf16.gmra.mxu2 %v974_v59 }
  0xa9   : > { %v628_v61 = vpop.f32.mrf.mxu0 }
  0xaa   : > { %v657_v60 = vpop.f32.mrf.mxu1 }
  0xab   : > { %v658_v63 = vadd.f32 %v657_v60, %v628_v61 }
  0xaf   : > { %v633_v2 = vpop.f32.mrf.mxu3 }
  0xb1   : > { %v686_v62 = vpop.f32.mrf.mxu2  ;;  %v630_v1 = vpop.f32.mrf.mxu0 }
  0xb2   : > { %v659_v0 = vpop.f32.mrf.mxu1  ;;  %v687_v3 = vadd.f32 %v686_v62, %v658_v63  ;;  %v1123_v62 = vunpack.c.l.bf16 %v1147_v58 }
  0xb3   : > { %v660_v6 = vadd.f32 %v659_v0, %v630_v1  ;;  %v1124_v0 = vunpack.c.h.bf16 %v1147_v58 }
  0xb4   : > { %v737_v8 = vadd.f32 %v1368_v4, %v687_v3 }
  0xb6   : > { %v761_v14 = vadd.f32 %v1111_v9, %v737_v8 }
  0xb7   : > { %v635_v16 = vpop.f32.mrf.mxu3 }
  0xb9   : > { %v688_v7 = vpop.f32.mrf.mxu2 }
  0xba   : > { %v689_v10 = vadd.f32 %v688_v7, %v660_v6  ;;  %v662_v12 = vpop.f32.mrf.mxu1 }
  0xbb   : > { %v663_v19 = vadd.f32 %v662_v12, %v633_v2 }
  0xbc   : > { %v738_v13 = vadd.f32 %v1368_v4, %v689_v10 }
  0xbe   : > { %v762_v15 = vadd.f32 %v1112_v11, %v738_v13 }
  0xbf   : > { %v638_v24 = vpop.f32.mrf.mxu3 }
  0xc0   : > { %v1128_v17 = vpack.c.bf16 %v762_v15, %v761_v14 }
  0xc1   : > { %v691_v18 = vpop.f32.mrf.mxu2 }
  0xc2   : > { %1129 = vst [vmem:[%s1376_s8] sm:$0xff] %v1128_v17   ;;  %v664_v20 = vpop.f32.mrf.mxu1  ;;  %v692_v21 = vadd.f32 %v691_v18, %v663_v19 }
  0xc3   : > { %v665_v23 = vadd.f32 %v664_v20, %v635_v16 }
  0xc4   : > { %v739_v26 = vadd.f32 %v1368_v4, %v692_v21 }
  0xc6   : > { %v763_v32 = vadd.f32 %v1115_v27, %v739_v26 }
  0xc7   : > { %v640_v38 = vpop.f32.mrf.mxu3 }
  0xc9   : > { %v693_v25 = vpop.f32.mrf.mxu2 }
  0xca   : > { %v694_v28 = vadd.f32 %v693_v25, %v665_v23  ;;  %v667_v30 = vpop.f32.mrf.mxu1 }
  0xcb   : > { %v668_v36 = vadd.f32 %v667_v30, %v638_v24 }
  0xcc   : > { %v740_v31 = vadd.f32 %v1368_v4, %v694_v28 }
  0xce   : > { %v764_v33 = vadd.f32 %v1116_v29, %v740_v31 }
  0xcf   : > { %v643_v49 = vpop.f32.mrf.mxu3 }
  0xd0   : > { %v1133_v34 = vpack.c.bf16 %v764_v33, %v763_v32 }
  0xd1   : > { %v696_v35 = vpop.f32.mrf.mxu2 }
  0xd2   : > { %1148 = vst [vmem:[%s1376_s8 + $0x8] sm:$0xff] %v1133_v34   ;;  %v669_v37 = vpop.f32.mrf.mxu1  ;;  %v697_v39 = vadd.f32 %v696_v35, %v668_v36 }
  0xd3   : > { %v670_v41 = vadd.f32 %v669_v37, %v640_v38 }
  0xd4   : > { %v741_v43 = vadd.f32 %v1368_v4, %v697_v39 }
  0xd6   : > { %v765_v50 = vadd.f32 %v1119_v44, %v741_v43 }
  0xd7   : > { %v645_v57 = vpop.f32.mrf.mxu3 }
  0xd9   : > { %v698_v42 = vpop.f32.mrf.mxu2 }
  0xda   : > { %v699_v45 = vadd.f32 %v698_v42, %v670_v41  ;;  %v672_v47 = vpop.f32.mrf.mxu1 }
  0xdb   : > { %v673_v54 = vadd.f32 %v672_v47, %v643_v49 }
  0xdc   : > { %v742_v48 = vadd.f32 %v1368_v4, %v699_v45 }
  0xde   : > { %v766_v51 = vadd.f32 %v1120_v46, %v742_v48 }
  0xe0   : > { %v1138_v52 = vpack.c.bf16 %v766_v51, %v765_v50 }
  0xe1   : > { %v701_v53 = vpop.f32.mrf.mxu2 }
  0xe2   : > { %1149 = vst [vmem:[%s1376_s8 + $0x10] sm:$0xff] %v1138_v52   ;;  %v674_v55 = vpop.f32.mrf.mxu1  ;;  %v702_v56 = vadd.f32 %v701_v53, %v673_v54 }
  0xe3   : > { %v675_v59 = vadd.f32 %v674_v55, %v645_v57 }
  0xe4   : > { %v743_v61 = vadd.f32 %v1368_v4, %v702_v56 }
  0xe6   : > { %v767_v2 = vadd.f32 %v1123_v62, %v743_v61 }
  0xe9   : > { %v703_v60 = vpop.f32.mrf.mxu2 }
  0xea   : > { %v704_v63 = vadd.f32 %v703_v60, %v675_v59 }
  0xec   : > { %v744_v1 = vadd.f32 %v1368_v4, %v704_v63 }
  0xee   : > { %v768_v3 = vadd.f32 %v1124_v0, %v744_v1 }
  0xf0   : > { %v1143_v5 = vpack.c.bf16 %v768_v3, %v767_v2 }
  0xf2   : > { %1150 = vst [vmem:[%s1376_s8 + $0x18] sm:$0xff] %v1143_v5  }
  0xf3 PF: > { %s14_s17 = sadd.s32 1, %s1207_s17   ;;  %s1405_s15 = smov %s1203_s16 }
  0xf4   : > { %p11_p5 = scmp.ge.s32.totalorder %s14_s17, 4   ;;  %s1406_s16 = smov %s1408_s18 }
  0xf6   :  { %13 = sbr.rel (!%p11_p5) target bundleno = 2 (0x2), region = 83 }

// kernel: lseg_forward.29
= control target key start
LH: loop header
LB: loop body
LE: loop exit
PB: predicated region body
PF: predicated region fallthrough
CT: control target
= control target key end

     0   :  { %s1359_s18 = smov 0   ;;  %s1361_s19 = smov 0   ;;  %s1534_s0 = inlined_call_operand.vmem [shape: bf16[128,384], index: 0, kind: input, shape index: {}]   ;;  %s1535_s1 = inlined_call_operand.vmem [shape: bf16[384,128], index: 1, kind: input, shape index: {}]   ;;  %s1536_s2 = inlined_call_operand.vmem [shape: f32[1,128], index: 2, kind: input, shape index: {}]   ;;  %s1537_s3 = inlined_call_operand.vmem [shape: bf16[128,32], index: 3, kind: input, shape index: {}]   ;;  %s1538_s4 = inlined_call_operand.vmem [shape: bf16[128,32], index: 4, kind: input, shape index: {}]   ;;  %s1539_s5 = inlined_call_operand.vmem [shape: bf16[128,32], index: 5, kind: output, shape index: {}]  }
   0x1   :  { %s1363_s20 = smov 0  }
   0x2 LB: > { %s34_s21 = sadd.s32 1, %s1323_s19  ;;  %p1019_p0 = scmp.ge.s32.totalorder %s1327_s20, 1  ;;  %s1327_s20 = sphi %s1363_s20, %s15_s20   ;;  %s1323_s19 = sphi %s1361_s19, %s1541_s19   ;;  %s1319_s18 = sphi %s1359_s18, %s1540_s18  }
   0x3   : > { %p36_p1 = scmp.ge.s32.totalorder %s34_s21, 2  ;;  %p273_p2 = scmp.lt.s32.totalorder %s1327_s20, 3 }
   0x5   : > { %s1543_s21 = smov (%p36_p1, %s34_s21), 0  ;;  %p274_p3 = pnand %p1019_p0, %p273_p2 }
   0x6   : > { %s1020_s15 = sshll.u32 (!%p274_p3), %s1319_s18, 3 }
   0x7   : > { %277 = sbr.rel (%p274_p3) target bundleno = 245 (0xf5), region = 40  ;;  %p338_p4 = scmp.lt.s32.totalorder (!%p274_p3), %s1020_s15, 15 }
   0xc   : > { %v1193_v0 = vld [vmem:[%s1535_s1 + $0x38] sm:$0xff]  ;;  %v1192_v3 = vld [vmem:[%s1535_s1 + $0x30] sm:$0xff]  ;;  %v1191_v6 = vld [vmem:[%s1535_s1 + $0x28] sm:$0xff]  ;;  %s1545_s15 = smov (!%p338_p4, %s1020_s15), 15 }
   0xd   : > { %v1201_v1 = vld [vmem:[%s1535_s1 + $0x78] sm:$0xff]  ;;  %679 = vmatpush.bf16.msra.mxu0 %v1193_v0  ;;  %v1200_v4 = vld [vmem:[%s1535_s1 + $0x70] sm:$0xff]  ;;  %1271 = vmatpush.bf16.msra.mxu3 %v1193_v0  ;;  %v1199_v7 = vld [vmem:[%s1535_s1 + $0x68] sm:$0xff]  ;;  %s1279_s10 = smul.u32 12, %s1545_s15  ;;  %s1023_s7 = sshll.u32 %s1545_s15, 2 }
   0xe   : > { %v1209_v2 = vld [vmem:[%s1535_s1 + $0xb8] sm:$0xff]  ;;  %708 = vmatpush.bf16.msra.mxu1 %v1201_v1  ;;  %v1208_v5 = vld [vmem:[%s1535_s1 + $0xb0] sm:$0xff]  ;;  %v1207_v8 = vld [vmem:[%s1535_s1 + $0xa8] sm:$0xff]  ;;  %s1499_s14 = scalar_lea.vmem %s1538_s4, %s1023_s7  ;;  %s1507_s22 = scalar_lea.vmem %s1539_s5, %s1023_s7 }
   0xf   : > { %737 = vmatpush.bf16.msra.mxu2 %v1209_v2  ;;  %v1190_v9 = vld [vmem:[%s1535_s1 + $0x20] sm:$0xff]  ;;  %v1189_v12 = vld [vmem:[%s1535_s1 + $0x18] sm:$0xff]  ;;  %v1188_v15 = vld [vmem:[%s1535_s1 + $0x10] sm:$0xff]  ;;  %s1446_s24 = scalar_lea.vmem %s1534_s0, %s1279_s10  ;;  %s1488_s10 = scalar_lea.vmem %s1537_s3, %s1023_s7 }
  0x10   : > { %v1198_v10 = vld [vmem:[%s1535_s1 + $0x60] sm:$0xff]  ;;  %v1197_v13 = vld [vmem:[%s1535_s1 + $0x58] sm:$0xff]  ;;  %v1196_v16 = vld [vmem:[%s1535_s1 + $0x50] sm:$0xff] }
  0x11   : > { %680 = vmatpush.bf16.msra.mxu0 %v1192_v3  ;;  %1272 = vmatpush.bf16.msra.mxu3 %v1192_v3  ;;  %v1206_v11 = vld [vmem:[%s1535_s1 + $0xa0] sm:$0xff]  ;;  %v1205_v14 = vld [vmem:[%s1535_s1 + $0x98] sm:$0xff]  ;;  %v1204_v17 = vld [vmem:[%s1535_s1 + $0x90] sm:$0xff] }
  0x12   : > { %709 = vmatpush.bf16.msra.mxu1 %v1200_v4  ;;  %v1187_v18 = vld [vmem:[%s1535_s1 + $0x8] sm:$0xff]  ;;  %v1186_v21 = vld [vmem:[%s1535_s1] sm:$0xff]  ;;  %v1032_v27 = vld [vmem:[%s1446_s24 + $0xc] sm:$0xf0] }
  0x13   : > { %738 = vmatpush.bf16.msra.mxu2 %v1208_v5  ;;  %v1195_v19 = vld [vmem:[%s1535_s1 + $0x48] sm:$0xff]  ;;  %v1194_v22 = vld [vmem:[%s1535_s1 + $0x40] sm:$0xff]  ;;  %v1176_v29 = vld [vmem:[%s1446_s24 + $0x10] sm:$0xf0] }
  0x14   : > { %v1203_v20 = vld [vmem:[%s1535_s1 + $0x88] sm:$0xff]  ;;  %v1202_v23 = vld [vmem:[%s1535_s1 + $0x80] sm:$0xff]  ;;  %v1042_v30 = vld [vmem:[%s1446_s24 + $0x18] sm:$0xf] }
  0x15   : > { %681 = vmatpush.bf16.msra.mxu0 %v1191_v6  ;;  %1273 = vmatpush.bf16.msra.mxu3 %v1191_v6  ;;  %v1030_v24 = vld [vmem:[%s1446_s24] sm:$0xf]  ;;  %v1175_v25 = vld [vmem:[%s1446_s24 + $0x8] sm:$0xf0]  ;;  %v1174_v26 = vld [vmem:[%s1446_s24 + $0x4] sm:$0xf] }
  0x16   : > { %710 = vmatpush.bf16.msra.mxu1 %v1199_v7  ;;  %v1038_v28 = vld [vmem:[%s1446_s24 + $0x8] sm:$0xf]  ;;  %v1178_v31 = vld [vmem:[%s1446_s24 + $0x20] sm:$0xf0]  ;;  %v1031_v32 = vor.u32 %v1175_v25, %v1030_v24  ;;  %v1035_v33 = vor.u32 %v1174_v26, %v1032_v27  ;;  %v1177_v36 = vld [vmem:[%s1446_s24 + $0x1c] sm:$0xf] }
  0x17   : > { %739 = vmatpush.bf16.msra.mxu2 %v1207_v8  ;;  %v1039_v34 = vor.u32 %v1176_v29, %v1038_v28  ;;  %v1043_v35 = vor.u32 %v1178_v31, %v1042_v30  ;;  %v1044_v37 = vld [vmem:[%s1446_s24 + $0x24] sm:$0xf0]  ;;  %v1050_v38 = vld [vmem:[%s1446_s24 + $0x20] sm:$0xf]  ;;  %v1179_v39 = vld [vmem:[%s1446_s24 + $0x28] sm:$0xf0] }
  0x18   : > { %v1054_v40 = vld [vmem:[%s1446_s24 + $0x30] sm:$0xf]  ;;  %v1181_v41 = vld [vmem:[%s1446_s24 + $0x38] sm:$0xf0]  ;;  %v1047_v42 = vor.u32 %v1177_v36, %v1044_v37  ;;  %v1051_v43 = vor.u32 %v1179_v39, %v1050_v38  ;;  %v1180_v45 = vld [vmem:[%s1446_s24 + $0x34] sm:$0xf] }
  0x19   : > { %682 = vmatpush.bf16.msra.mxu0 %v1190_v9  ;;  %1274 = vmatpush.bf16.msra.mxu3 %v1190_v9  ;;  %v1055_v44 = vor.u32 %v1181_v41, %v1054_v40  ;;  %v1056_v46 = vld [vmem:[%s1446_s24 + $0x3c] sm:$0xf0]  ;;  %v1062_v47 = vld [vmem:[%s1446_s24 + $0x38] sm:$0xf]  ;;  %v1182_v48 = vld [vmem:[%s1446_s24 + $0x40] sm:$0xf0] }
  0x1a   : > { %711 = vmatpush.bf16.msra.mxu1 %v1198_v10  ;;  %v1066_v49 = vld [vmem:[%s1446_s24 + $0x48] sm:$0xf]  ;;  %v1184_v50 = vld [vmem:[%s1446_s24 + $0x50] sm:$0xf0]  ;;  %v1059_v51 = vor.u32 %v1180_v45, %v1056_v46  ;;  %v1063_v52 = vor.u32 %v1182_v48, %v1062_v47  ;;  %v1183_v54 = vld [vmem:[%s1446_s24 + $0x4c] sm:$0xf] }
  0x1b   : > { %740 = vmatpush.bf16.msra.mxu2 %v1206_v11  ;;  %v1067_v53 = vor.u32 %v1184_v50, %v1066_v49  ;;  %v1068_v55 = vld [vmem:[%s1446_s24 + $0x54] sm:$0xf0]  ;;  %v1074_v56 = vld [vmem:[%s1446_s24 + $0x50] sm:$0xf]  ;;  %v1185_v57 = vld [vmem:[%s1446_s24 + $0x58] sm:$0xf0] }
  0x1c   : > { %v1071_v58 = vor.u32 %v1183_v54, %v1068_v55  ;;  %v1075_v59 = vor.u32 %v1185_v57, %v1074_v56  ;;  %v1493_v2 = vld [vmem:[%s1536_s2] ss:$0 sm:$0xff]  ;;  %v1262_v27 = vld [vmem:[%s1488_s10 + $0x8] sm:$0xff]   ;;  %v1263_v50 = vld [vmem:[%s1488_s10 + $0x10] sm:$0xff]  }
  0x1d   : > { %683 = vmatpush.bf16.msra.mxu0 %v1189_v12  ;;  %1275 = vmatpush.bf16.msra.mxu3 %v1189_v12  ;;  %v1211_v3 = vld [vmem:[%s1488_s10] sm:$0xff]   ;;  %v1216_v29 = vunpack.c.l.bf16 %v1262_v27  ;;  %v1265_v31 = vld [vmem:[%s1499_s14 + $0x8] sm:$0xff]   ;;  %v1266_v54 = vld [vmem:[%s1499_s14 + $0x10] sm:$0xff]   ;;  %v1221_v57 = vunpack.c.h.bf16 %v1263_v50 }
  0x1e   : > { %712 = vmatpush.bf16.msra.mxu1 %v1197_v13  ;;  %v1212_v7 = vunpack.c.l.bf16 %v1211_v3  ;;  %v1227_v9 = vld [vmem:[%s1499_s14] sm:$0xff]   ;;  %v1213_v12 = vunpack.c.h.bf16 %v1211_v3  ;;  %v1232_v38 = vunpack.c.l.bf16 %v1265_v31  ;;  %v1233_v40 = vunpack.c.h.bf16 %v1265_v31 }
  0x1f   : > { %741 = vmatpush.bf16.msra.mxu2 %v1205_v14 }
  0x21   : > { %684 = vmatpush.bf16.msra.mxu0 %v1188_v15  ;;  %1276 = vmatpush.bf16.msra.mxu3 %v1188_v15  ;;  %v1228_v15 = vunpack.c.l.bf16 %v1227_v9 }
  0x22   : > { %713 = vmatpush.bf16.msra.mxu1 %v1196_v16 }
  0x23   : > { %742 = vmatpush.bf16.msra.mxu2 %v1204_v17  ;;  %v1229_v17 = vunpack.c.h.bf16 %v1227_v9 }
  0x25   : > { %685 = vmatpush.bf16.msra.mxu0 %v1187_v18  ;;  %1277 = vmatpush.bf16.msra.mxu3 %v1187_v18 }
  0x26   : > { %714 = vmatpush.bf16.msra.mxu1 %v1195_v19 }
  0x27   : > { %743 = vmatpush.bf16.msra.mxu2 %v1203_v20 }
  0x29   : > { %686 = vmatpush.bf16.msra.mxu0 %v1186_v21  ;;  %1278 = vmatpush.bf16.msra.mxu3 %v1186_v21 }
  0x2a   : > { %715 = vmatpush.bf16.msra.mxu1 %v1194_v22 }
  0x2b   : > { %744 = vmatpush.bf16.msra.mxu2 %v1202_v23 }
  0x2c   : > { %687 = vmatmul.bf16.vlgmr.msra.gmra.mxu0 %v1031_v32  ;;  %692 = vmatmul.bf16.vlgmr.msra.gmra.mxu3 %v1043_v35  ;;  %v1217_v35 = vunpack.c.h.bf16 %v1262_v27 }
  0x2d   : > { %716 = vmatmul.bf16.vlgmr.msra.gmra.mxu1 %v1035_v33 }
  0x2e   : > { %745 = vmatmul.bf16.vlgmr.msra.gmra.mxu2 %v1039_v34 }
  0x3c   : > { %697 = vmatmul.bf16.gmra.mxu3 %v1055_v44 }
  0x3d   : > { %721 = vmatmul.bf16.gmra.mxu1 %v1047_v42 }
  0x3e   : > { %750 = vmatmul.bf16.gmra.mxu2 %v1051_v43 }
  0x4c   : > { %702 = vmatmul.bf16.gmra.mxu3 %v1067_v53 }
  0x4d   : > { %726 = vmatmul.bf16.gmra.mxu1 %v1059_v51 }
  0x4e   : > { %755 = vmatmul.bf16.gmra.mxu2 %v1063_v52  ;;  %v1220_v52 = vunpack.c.l.bf16 %v1263_v50 }
  0x5d   : > { %731 = vmatmul.bf16.gmra.mxu1 %v1071_v58 }
  0x5e   : > { %760 = vmatmul.bf16.gmra.mxu2 %v1075_v59 }
  0xa9   : > { %v688_v61 = vpop.f32.mrf.mxu0 }
  0xaa   : > { %v717_v60 = vpop.f32.mrf.mxu1 }
  0xab   : > { %v718_v62 = vadd.f32 %v717_v60, %v688_v61  ;;  %v1236_v60 = vunpack.c.l.bf16 %v1266_v54 }
  0xaf   : > { %v693_v5 = vpop.f32.mrf.mxu3 }
  0xb1   : > { %v746_v63 = vpop.f32.mrf.mxu2  ;;  %v690_v4 = vpop.f32.mrf.mxu0 }
  0xb2   : > { %v719_v0 = vpop.f32.mrf.mxu1  ;;  %v747_v1 = vadd.f32 %v746_v63, %v718_v62  ;;  %v1237_v62 = vunpack.c.h.bf16 %v1266_v54 }
  0xb3   : > { %v720_v8 = vadd.f32 %v719_v0, %v690_v4 }
  0xb4   : > { %v797_v6 = vadd.f32 %v1493_v2, %v747_v1 }
  0xb6   : > { %v821_v14 = vadd.f32 %v1212_v7, %v797_v6 }
  0xb7   : > { %v695_v19 = vpop.f32.mrf.mxu3 }
  0xb8   : > { %v845_v20 = vadd.f32 %v1228_v15, %v821_v14  ;;  %v1267_v14 = vld [vmem:[%s1499_s14 + $0x18] sm:$0xff]  }
  0xb9   : > { %v748_v10 = vpop.f32.mrf.mxu2 }
  0xba   : > { %v749_v11 = vadd.f32 %v748_v10, %v720_v8  ;;  %v722_v13 = vpop.f32.mrf.mxu1  ;;  %v1264_v8 = vld [vmem:[%s1488_s10 + $0x18] sm:$0xff]  }
  0xbb   : > { %v723_v22 = vadd.f32 %v722_v13, %v693_v5 }
  0xbc   : > { %v798_v16 = vadd.f32 %v1493_v2, %v749_v11 }
  0xbe   : > { %v822_v18 = vadd.f32 %v1213_v12, %v798_v16  ;;  %v1224_v12 = vunpack.c.l.bf16 %v1264_v8 }
  0xbf   : > { %v698_v32 = vpop.f32.mrf.mxu3 }
  0xc0   : > { %v846_v21 = vadd.f32 %v1229_v17, %v822_v18  ;;  %v1225_v17 = vunpack.c.h.bf16 %v1264_v8 }
  0xc1   : > { %v751_v23 = vpop.f32.mrf.mxu2 }
  0xc2   : > { %v1245_v24 = vpack.c.bf16 %v846_v21, %v845_v20  ;;  %v724_v25 = vpop.f32.mrf.mxu1  ;;  %v752_v26 = vadd.f32 %v751_v23, %v723_v22  ;;  %v1241_v21 = vunpack.c.h.bf16 %v1267_v14 }
  0xc3   : > { %v725_v30 = vadd.f32 %v724_v25, %v695_v19  ;;  %v1240_v19 = vunpack.c.l.bf16 %v1267_v14 }
  0xc4   : > { %1246 = vst [vmem:[%s1507_s22] sm:$0xff] %v1245_v24   ;;  %v799_v28 = vadd.f32 %v1493_v2, %v752_v26 }
  0xc6   : > { %v823_v37 = vadd.f32 %v1216_v29, %v799_v28 }
  0xc7   : > { %v700_v48 = vpop.f32.mrf.mxu3 }
  0xc8   : > { %v847_v42 = vadd.f32 %v1232_v38, %v823_v37 }
  0xc9   : > { %v753_v33 = vpop.f32.mrf.mxu2 }
  0xca   : > { %v754_v34 = vadd.f32 %v753_v33, %v725_v30  ;;  %v727_v36 = vpop.f32.mrf.mxu1 }
  0xcb   : > { %v728_v44 = vadd.f32 %v727_v36, %v698_v32 }
  0xcc   : > { %v800_v39 = vadd.f32 %v1493_v2, %v754_v34 }
  0xce   : > { %v824_v41 = vadd.f32 %v1217_v35, %v800_v39 }
  0xcf   : > { %v703_v63 = vpop.f32.mrf.mxu3 }
  0xd0   : > { %v848_v43 = vadd.f32 %v1233_v40, %v824_v41 }
  0xd1   : > { %v756_v45 = vpop.f32.mrf.mxu2 }
  0xd2   : > { %v1250_v46 = vpack.c.bf16 %v848_v43, %v847_v42  ;;  %v729_v47 = vpop.f32.mrf.mxu1  ;;  %v757_v49 = vadd.f32 %v756_v45, %v728_v44 }
  0xd3   : > { %v730_v53 = vadd.f32 %v729_v47, %v700_v48 }
  0xd4   : > { %1268 = vst [vmem:[%s1507_s22 + $0x8] sm:$0xff] %v1250_v46   ;;  %v801_v51 = vadd.f32 %v1493_v2, %v757_v49 }
  0xd6   : > { %v825_v59 = vadd.f32 %v1220_v52, %v801_v51 }
  0xd7   : > { %v705_v10 = vpop.f32.mrf.mxu3 }
  0xd8   : > { %v849_v1 = vadd.f32 %v1236_v60, %v825_v59 }
  0xd9   : > { %v758_v55 = vpop.f32.mrf.mxu2 }
  0xda   : > { %v759_v56 = vadd.f32 %v758_v55, %v730_v53  ;;  %v732_v58 = vpop.f32.mrf.mxu1 }
  0xdb   : > { %v733_v4 = vadd.f32 %v732_v58, %v703_v63 }
  0xdc   : > { %v802_v61 = vadd.f32 %v1493_v2, %v759_v56 }
  0xde   : > { %v826_v0 = vadd.f32 %v1221_v57, %v802_v61 }
  0xe0   : > { %v850_v3 = vadd.f32 %v1237_v62, %v826_v0 }
  0xe1   : > { %v761_v5 = vpop.f32.mrf.mxu2 }
  0xe2   : > { %v1255_v6 = vpack.c.bf16 %v850_v3, %v849_v1  ;;  %v762_v7 = vadd.f32 %v761_v5, %v733_v4  ;;  %v734_v9 = vpop.f32.mrf.mxu1 }
  0xe3   : > { %v735_v13 = vadd.f32 %v734_v9, %v705_v10 }
  0xe4   : > { %1269 = vst [vmem:[%s1507_s22 + $0x10] sm:$0xff] %v1255_v6   ;;  %v803_v11 = vadd.f32 %v1493_v2, %v762_v7 }
  0xe6   : > { %v827_v18 = vadd.f32 %v1224_v12, %v803_v11 }
  0xe8   : > { %v851_v23 = vadd.f32 %v1240_v19, %v827_v18 }
  0xe9   : > { %v763_v15 = vpop.f32.mrf.mxu2 }
  0xea   : > { %v764_v16 = vadd.f32 %v763_v15, %v735_v13 }
  0xec   : > { %v804_v20 = vadd.f32 %v1493_v2, %v764_v16 }
  0xee   : > { %v828_v22 = vadd.f32 %v1225_v17, %v804_v20 }
  0xf0   : > { %v852_v24 = vadd.f32 %v1241_v21, %v828_v22 }
  0xf2   : > { %v1260_v25 = vpack.c.bf16 %v852_v24, %v851_v23 }
  0xf4   : > { %1270 = vst [vmem:[%s1507_s22 + $0x18] sm:$0xff] %v1260_v25  }
  0xf5 PF: > { %s15_s20 = sadd.s32 1, %s1327_s20   ;;  %s1540_s18 = smov %s1323_s19 }
  0xf6   : > { %p12_p5 = scmp.ge.s32.totalorder %s15_s20, 4   ;;  %s1541_s19 = smov %s1543_s21 }
  0xf8   :  { %14 = sbr.rel (!%p12_p5) target bundleno = 2 (0x2), region = 90 }

// kernel: lseg_forward.33
= control target key start
LH: loop header
LB: loop body
LE: loop exit
PB: predicated region body
PF: predicated region fallthrough
CT: control target
= control target key end

     0   :  { %s410_s9 = smov 0   ;;  %s412_s10 = smov 0   ;;  %s446_s0 = inlined_call_operand.vmem [shape: bf16[16,8], index: 0, kind: input, shape index: {}]   ;;  %s447_s1 = inlined_call_operand.vmem [shape: bf16[2,8,256], index: 1, kind: input, shape index: {}]   ;;  %s448_s2 = inlined_call_operand.vmem [shape: bf16[2,16,256], index: 2, kind: output, shape index: {}]  }
   0x1   :  { %s414_s11 = smov 0  }
   0x2 LB: > { %s24_s12 = sadd.s32 1, %s389_s10  ;;  %p331_p0 = scmp.ge.s32.totalorder %s393_s11, 1  ;;  %s393_s11 = sphi %s414_s11, %s12_s11   ;;  %s389_s10 = sphi %s412_s10, %s450_s10   ;;  %s385_s9 = sphi %s410_s9, %s449_s9  }
   0x3   : > { %p26_p1 = scmp.ge.s32.totalorder %s24_s12, 2  ;;  %p133_p2 = scmp.lt.s32.totalorder %s393_s11, 3 }
   0x5   : > { %s452_s12 = smov (%p26_p1, %s24_s12), 0  ;;  %p134_p3 = pnand %p331_p0, %p133_p2 }
   0x6   : > { %p164_p4 = scmp.lt.s32.totalorder (!%p134_p3), %s385_s9, 1 }
   0x7   : > { %137 = sbr.rel (%p134_p3) target bundleno = 161 (0xa1), region = 28 }
   0xc   : > { %s454_s9 = smov (!%p164_p4, %s385_s9), 1  ;;  %vm201_vm0 = vcmask 1043456   ;;  %v346_v7 = vld [vmem:[%s446_s0] sm:$0xff]  ;;  %vm197_vm1 = vcmask 64512  }
   0xd   : > { %s344_s13 = sshll.u32 %s454_s9, 3  ;;  %s345_s19 = sshll.u32 %s454_s9, 4 }
   0xe   : > { %s171_s16 = scalar_lea.vmem %s447_s1, %s344_s13  ;;  %s181_s22 = scalar_lea.vmem %s448_s2, %s345_s19 }
   0xf   : > { %v186_v0 = vld [vmem:[%s171_s16] sm:$0xff] }
  0x10   : > { %v193_v1 = vunpack.c.l.b16 %v186_v0  ;;  %v194_v2 = vunpack.c.h.b16 %v186_v0 }
  0x12   : > { %v195_v3 = vpack.c.b16 %v193_v1, %v193_v1  ;;  %v196_v4 = vpack.c.b16 %v194_v2, %v194_v2 }
  0x14   : > { %v203_v5 = vsel %vm201_vm0, %v195_v3, 0  ;;  %v206_v6 = vsel %vm201_vm0, %v196_v4, 0 }
  0x15   : > { %215 = vmatpush.bf16.msra.mxu0 %v203_v5  ;;  %229 = vmatpush.bf16.msra.mxu1 %v206_v6 }
  0x18   : > { %340 = vmatmul.msk.bf16.vlgmr.msra.gmra.mxu0 %vm197_vm1, %v346_v7  ;;  %341 = vmatmul.msk.bf16.vlgmr.msra.gmra.mxu1 %vm197_vm1, %v346_v7 }
  0x95   : > { %v217_v8 = vpop.f32.mrf.mxu0  ;;  %v231_v9 = vpop.f32.mrf.mxu1 }
  0x96   : > { %v236_v10 = vpack.c.bf16 %v231_v9, %v217_v8 }
  0x98   : > { %238 = vst [vmem:[%s181_s22] sm:$0xff] %v236_v10 }
  0x9d   : > { %v219_v11 = vpop.f32.mrf.mxu0  ;;  %v233_v12 = vpop.f32.mrf.mxu1 }
  0x9e   : > { %v237_v13 = vpack.c.bf16 %v233_v12, %v219_v11 }
  0xa0   : > { %239 = vst [vmem:[%s181_s22 + $0x8] sm:$0xff] %v237_v13 }
  0xa1 PF: > { %s12_s11 = sadd.s32 1, %s393_s11   ;;  %s449_s9 = smov %s389_s10 }
  0xa2   : > { %p9_p5 = scmp.ge.s32.totalorder %s12_s11, 4   ;;  %s450_s10 = smov %s452_s12 }
  0xa4   :  { %11 = sbr.rel (!%p9_p5) target bundleno = 2 (0x2), region = 58 }

// kernel: lseg_forward.34
= control target key start
LH: loop header
LB: loop body
LE: loop exit
PB: predicated region body
PF: predicated region fallthrough
CT: control target
= control target key end

     0   :  { %s488_s9 = smov 0   ;;  %s490_s10 = smov 0   ;;  %s524_s0 = inlined_call_operand.vmem [shape: bf16[16,8], index: 0, kind: input, shape index: {}]   ;;  %s525_s1 = inlined_call_operand.vmem [shape: bf16[32,8,32], index: 1, kind: input, shape index: {}]   ;;  %s526_s2 = inlined_call_operand.vmem [shape: bf16[32,16,32], index: 2, kind: output, shape index: {}]  }
   0x1   :  { %s492_s11 = smov 0  }
   0x2 LB: > { %s24_s12 = sadd.s32 1, %s467_s10  ;;  %p375_p0 = scmp.ge.s32.totalorder %s471_s11, 1  ;;  %s471_s11 = sphi %s492_s11, %s12_s11   ;;  %s467_s10 = sphi %s490_s10, %s528_s10   ;;  %s463_s9 = sphi %s488_s9, %s527_s9  }
   0x3   : > { %p26_p1 = scmp.ge.s32.totalorder %s24_s12, 8  ;;  %p132_p2 = scmp.lt.s32.totalorder %s471_s11, 9 }
   0x5   : > { %s530_s12 = smov (%p26_p1, %s24_s12), 0  ;;  %p133_p3 = pnand %p375_p0, %p132_p2 }
   0x6   : > { %s376_s13 = sshll.u32 (!%p133_p3), %s463_s9, 2 }
   0x7   : > { %136 = sbr.rel (%p133_p3) target bundleno = 165 (0xa5), region = 28  ;;  %p162_p4 = scmp.lt.s32.totalorder (!%p133_p3), %s376_s13, 31 }
   0xc   : > { %s532_s13 = smov (!%p162_p4, %s376_s13), 31  ;;  %vm193_vm0 = vcmask 1043456   ;;  %v401_v7 = vld [vmem:[%s524_s0] sm:$0xff]  ;;  %vm189_vm1 = vcmask 64512  }
   0xd   : > { %s377_s14 = sshll.u32 %s532_s13, 2  ;;  %s400_s20 = sshll.u32 %s532_s13, 3 }
   0xe   : > { %s168_s17 = scalar_lea.vmem %s525_s1, %s377_s14  ;;  %s178_s23 = scalar_lea.vmem %s526_s2, %s400_s20 }
   0xf   : > { %v183_v0 = vld [vmem:[%s168_s17] sm:$0xf]  ;;  %v386_v1 = vld [vmem:[%s168_s17 + $0x4] sm:$0xf]  ;;  %v390_v2 = vld [vmem:[%s168_s17 + $0x8] sm:$0xf] }
  0x10   : > { %v195_v3 = vsel %vm193_vm0, %v183_v0, 0  ;;  %v218_v4 = vsel %vm193_vm0, %v386_v1, 0  ;;  %v242_v5 = vsel %vm193_vm0, %v390_v2, 0  ;;  %v394_v6 = vld [vmem:[%s168_s17 + $0xc] sm:$0xf] }
  0x11   : > { %204 = vmatpush.bf16.msra.mxu0 %v195_v3  ;;  %227 = vmatpush.bf16.msra.mxu1 %v218_v4  ;;  %v266_v8 = vsel %vm193_vm0, %v394_v6, 0 }
  0x12   : > { %251 = vmatpush.bf16.msra.mxu2 %v242_v5  ;;  %275 = vmatpush.bf16.msra.mxu3 %v266_v8 }
  0x14   : > { %385 = vmatmul.msk.bf16.vlgmr.msra.gmra.mxu0 %vm189_vm1, %v401_v7  ;;  %387 = vmatmul.msk.bf16.vlgmr.msra.gmra.mxu1 %vm189_vm1, %v401_v7 }
  0x15   : > { %391 = vmatmul.msk.bf16.vlgmr.msra.gmra.mxu2 %vm189_vm1, %v401_v7  ;;  %395 = vmatmul.msk.bf16.vlgmr.msra.gmra.mxu3 %vm189_vm1, %v401_v7 }
  0x91   : > { %v206_v9 = vpop.f32.mrf.mxu0  ;;  %v229_v10 = vpop.f32.mrf.mxu1 }
  0x98   : > { %v253_v11 = vpop.f32.mrf.mxu2  ;;  %v277_v12 = vpop.f32.mrf.mxu3 }
  0x99   : > { %v208_v13 = vpop.f32.mrf.mxu0  ;;  %v231_v14 = vpop.f32.mrf.mxu1 }
  0x9a   : > { %v405_v15 = vpack.c.bf16 %v208_v13, %v206_v9  ;;  %v410_v16 = vpack.c.bf16 %v231_v14, %v229_v10 }
  0x9c   : > { %406 = vst [vmem:[%s178_s23] sm:$0xff] %v405_v15  }
  0x9d   : > { %422 = vst [vmem:[%s178_s23 + $0x8] sm:$0xff] %v410_v16  }
  0xa0   : > { %v255_v17 = vpop.f32.mrf.mxu2  ;;  %v279_v18 = vpop.f32.mrf.mxu3 }
  0xa1   : > { %v415_v19 = vpack.c.bf16 %v255_v17, %v253_v11  ;;  %v420_v20 = vpack.c.bf16 %v279_v18, %v277_v12 }
  0xa3   : > { %423 = vst [vmem:[%s178_s23 + $0x10] sm:$0xff] %v415_v19  }
  0xa4   : > { %424 = vst [vmem:[%s178_s23 + $0x18] sm:$0xff] %v420_v20  }
  0xa5 PF: > { %s12_s11 = sadd.s32 1, %s471_s11   ;;  %s527_s9 = smov %s467_s10 }
  0xa6   : > { %p9_p5 = scmp.ge.s32.totalorder %s12_s11, 10   ;;  %s528_s10 = smov %s530_s12 }
  0xa8   :  { %11 = sbr.rel (!%p9_p5) target bundleno = 2 (0x2), region = 64 }

// kernel: lseg_forward.36
= control target key start
LH: loop header
LB: loop body
LE: loop exit
PB: predicated region body
PF: predicated region fallthrough
CT: control target
= control target key end

     0   :  { %s772_s9 = smov 0   ;;  %s774_s10 = smov 0   ;;  %s904_s0 = inlined_call_operand.vmem [shape: bf16[32,16], index: 0, kind: input, shape index: {}]   ;;  %s905_s1 = inlined_call_operand.vmem [shape: bf16[2,16,8192], index: 1, kind: input, shape index: {}]   ;;  %s906_s2 = inlined_call_operand.vmem [shape: bf16[2,32,8192], index: 2, kind: output, shape index: {}]  }
   0x1   :  { %s776_s11 = smov 0   ;;  %s778_s12 = smov 0  }
   0x2   :  { %s780_s13 = smov 0  }
   0x3 LB: > { %s21_s14 = sadd.s32 1, %s751_s12  ;;  %s582_s15 = sadd.s32 4294967295, %s755_s13   ;;  %s755_s13 = sphi %s780_s13, %s12_s13   ;;  %s751_s12 = sphi %s778_s12, %s911_s12   ;;  %s747_s11 = sphi %s776_s11, %s910_s11   ;;  %s743_s10 = sphi %s774_s10, %s909_s10   ;;  %s739_s9 = sphi %s772_s9, %s908_s9  }
   0x4   : > { %p22_p0 = scmp.ge.s32.totalorder %s21_s14, 16  ;;  %p61_p1 = scmp.ne.s32.totalorder %s743_s10, %s739_s9 }
   0x5   : > { %p62_p2 = scmp.eq.s32.totalorder %s755_s13, 0  ;;  %p93_p4 = scmp.eq.s32.totalorder %s582_s15, 15 }
   0x6   : > { %s913_s14 = smov (%p22_p0, %s21_s14), 0  ;;  %s54_s17 = sadd.s32 1, %s743_s10 }
   0x7   : > { %p63_p3 = por %p62_p2, %p61_p1  ;;  %s50_s16 = ssub.s32 %s751_s12, %s913_s14 }
   0x8   : > { %p52_p5 = scmp.eq.s32.totalorder %s50_s16, 0  ;;  %p807_p6 = por %p93_p4, %p61_p1 }
   0x9   : > { %p585_p7 = scmp.ge.s32.totalorder %s755_s13, 16 }
   0xa   : > { %s812_s19 = scalar_select %p52_p5, %s743_s10, %s54_s17  }
   0xb   : > { %118 = sbr.rel (%p585_p7) target bundleno = 28 (0x1c), region = 20 }
  0x10   : > { %121 = sbr.rel (!%p63_p3) target bundleno = 28 (0x1c), region = 24  ;;  %s123_s20 = sand.u32 (%p63_p3), 1, %s743_s10  }
  0x11   : > { %s665_s21 = sshll.u32 (%p63_p3), %s751_s12, 4  ;;  %s586_s22 = sshll.u32 (%p63_p3), %s123_s20, 6 }
  0x12   : > { %s131_s25 = scalar_lea.vmem (%p63_p3), %s905_s1, %s665_s21  ;;  %s125_s26 = scalar_lea.vmem (%p63_p3), [#allocation2], %s586_s22 }
  0x13   : > { %v144_v0 = vld [vmem:[%s131_s25] sm:$0xff] (%p63_p3)  ;;  %v146_v1 = vld [vmem:[%s131_s25 + $0x8] sm:$0xff] (%p63_p3) }
  0x14   : > { %v148_v2 = vld [vmem:[%s131_s25 + $0x100] sm:$0xff] (%p63_p3)  ;;  %145 = vst [vmem:[%s125_s26] sm:$0xff] (%p63_p3), %v144_v0  ;;  %v150_v3 = vld [vmem:[%s131_s25 + $0x108] sm:$0xff] (%p63_p3) }
  0x15   : > { %147 = vst [vmem:[%s125_s26 + $0x8] sm:$0xff] %v146_v1  ;;  %v152_v4 = vld [vmem:[%s131_s25 + $0x200] sm:$0xff]  ;;  %v154_v5 = vld [vmem:[%s131_s25 + $0x208] sm:$0xff] }
  0x16   : > { %149 = vst [vmem:[%s125_s26 + $0x10] sm:$0xff] %v148_v2  ;;  %v156_v6 = vld [vmem:[%s131_s25 + $0x300] sm:$0xff]  ;;  %v158_v7 = vld [vmem:[%s131_s25 + $0x308] sm:$0xff] }
  0x17   : > { %151 = vst [vmem:[%s125_s26 + $0x18] sm:$0xff] %v150_v3 }
  0x18   : > { %153 = vst [vmem:[%s125_s26 + $0x20] sm:$0xff] %v152_v4 }
  0x19   : > { %155 = vst [vmem:[%s125_s26 + $0x28] sm:$0xff] %v154_v5 }
  0x1a   : > { %157 = vst [vmem:[%s125_s26 + $0x30] sm:$0xff] %v156_v6 }
  0x1b   : > { %159 = vst [vmem:[%s125_s26 + $0x38] sm:$0xff] %v158_v7 }
  0x1c PF: > { %p589_p8 = scmp.ge.s32.totalorder %s755_s13, 1  ;;  %p164_p9 = scmp.lt.s32.totalorder %s755_s13, 17 }
  0x1e   : > { %p165_p10 = pnand %p589_p8, %p164_p9 }
  0x1f   : > { %s171_s27 = sand.u32 (!%p165_p10), 1, %s739_s9  }
  0x20   : > { %168 = sbr.rel (%p165_p10) target bundleno = 245 (0xf5), region = 47  ;;  %s590_s28 = sshll.u32 (!%p165_p10), %s171_s27, 6 }
  0x21   : > { %s173_s29 = scalar_lea.vmem (!%p165_p10), [#allocation2], %s590_s28  ;;  %s591_s6 = sshll.u32 (!%p165_p10), %s171_s27, 7 }
  0x22   : > { %s849_s7 = scalar_lea.vmem (!%p165_p10), [#allocation3], %s591_s6 }
  0x25   : > { %vm234_vm0 = vcmask 130048   ;;  %v602_v8 = vld [vmem:[%s173_s29] sm:$0xf]  ;;  %v670_v9 = vld [vmem:[%s173_s29 + $0xc] sm:$0xf0]  ;;  %v667_v33 = vld [vmem:[%s904_s0 + $0x8] sm:$0xff] }
  0x26   : > { %v668_v10 = vld [vmem:[%s173_s29 + $0x4] sm:$0xf]  ;;  %v603_v12 = vor.u32 %v670_v9, %v602_v8  ;;  %v604_v13 = vld [vmem:[%s173_s29 + $0x10] sm:$0xf0]  ;;  %v610_v14 = vld [vmem:[%s173_s29 + $0x8] sm:$0xf] }
  0x27   : > { %v666_v11 = vld [vmem:[%s904_s0] sm:$0xff]  ;;  %v671_v15 = vld [vmem:[%s173_s29 + $0x14] sm:$0xf0]  ;;  %v607_v16 = vor.u32 %v668_v10, %v604_v13  ;;  %v669_v18 = vld [vmem:[%s173_s29 + $0xc] sm:$0xf]  ;;  %s676_s8 = sshll.u32 (%p807_p6), %s747_s11, 4 }
  0x28   : > { %v611_v17 = vor.u32 %v671_v15, %v610_v14  ;;  %v612_v19 = vld [vmem:[%s173_s29 + $0x18] sm:$0xf0]  ;;  %v638_v20 = vld [vmem:[%s173_s29 + $0x28] sm:$0xf]  ;;  %248 = vmatpush.bf16.msra.mxu0 %v603_v12  ;;  %v675_v22 = vld [vmem:[%s173_s29 + $0x34] sm:$0xf0]  ;;  %s463_s16 = scalar_lea.vmem (%p807_p6), %s906_s2, %s676_s8 }
  0x29   : > { %v615_v21 = vor.u32 %v669_v18, %v612_v19  ;;  %v673_v23 = vld [vmem:[%s173_s29 + $0x2c] sm:$0xf]  ;;  %v640_v24 = vld [vmem:[%s173_s29 + $0x38] sm:$0xf0]  ;;  %267 = vmatpush.bf16.msra.mxu1 %v607_v16  ;;  %v639_v25 = vor.u32 %v675_v22, %v638_v20  ;;  %v630_v26 = vld [vmem:[%s173_s29 + $0x20] sm:$0xf] }
  0x2a   : > { %286 = vmatpush.bf16.msra.mxu2 %v611_v17  ;;  %v674_v27 = vld [vmem:[%s173_s29 + $0x2c] sm:$0xf0]  ;;  %v672_v28 = vld [vmem:[%s173_s29 + $0x24] sm:$0xf]  ;;  %v643_v29 = vor.u32 %v673_v23, %v640_v24  ;;  %v632_v31 = vld [vmem:[%s173_s29 + $0x30] sm:$0xf0] }
  0x2b   : > { %305 = vmatpush.bf16.msra.mxu3 %v615_v21  ;;  %v631_v30 = vor.u32 %v674_v27, %v630_v26  ;;  %616 = vmatmul.msk.bf16.vlgmr.msra.gmra.mxu0 %vm234_vm0, %v666_v11  ;;  %v635_v32 = vor.u32 %v672_v28, %v632_v31 }
  0x2c   : > { %618 = vmatmul.msk.bf16.vlgmr.msra.gmra.mxu1 %vm234_vm0, %v666_v11 }
  0x2d   : > { %620 = vmatmul.msk.bf16.vlgmr.msra.gmra.mxu2 %vm234_vm0, %v666_v11  ;;  %365 = vmatpush.bf16.msrb.mxu0 %v631_v30 }
  0x2e   : > { %403 = vmatpush.bf16.msrb.mxu2 %v639_v25  ;;  %622 = vmatmul.msk.bf16.vlgmr.msra.gmra.mxu3 %vm234_vm0, %v666_v11 }
  0x2f   : > { %422 = vmatpush.bf16.msrb.mxu3 %v643_v29  ;;  %384 = vmatpush.bf16.msrb.mxu1 %v635_v32 }
  0x3b   : > { %617 = vmatmul.msk.bf16.gmra.mxu0 %vm234_vm0, %v667_v33 }
  0x3c   : > { %619 = vmatmul.msk.bf16.gmra.mxu1 %vm234_vm0, %v667_v33 }
  0x3d   : > { %621 = vmatmul.msk.bf16.gmra.mxu2 %vm234_vm0, %v667_v33 }
  0x3e   : > { %623 = vmatmul.msk.bf16.gmra.mxu3 %vm234_vm0, %v667_v33 }
  0x4b   : > { %644 = vmatmul.msk.bf16.vlgmr.msrb.gmra.mxu0 %vm234_vm0, %v666_v11 }
  0x4c   : > { %646 = vmatmul.msk.bf16.vlgmr.msrb.gmra.mxu1 %vm234_vm0, %v666_v11 }
  0x4d   : > { %648 = vmatmul.msk.bf16.vlgmr.msrb.gmra.mxu2 %vm234_vm0, %v666_v11 }
  0x4e   : > { %650 = vmatmul.msk.bf16.vlgmr.msrb.gmra.mxu3 %vm234_vm0, %v666_v11 }
  0x5b   : > { %645 = vmatmul.msk.bf16.gmra.mxu0 %vm234_vm0, %v667_v33 }
  0x5c   : > { %647 = vmatmul.msk.bf16.gmra.mxu1 %vm234_vm0, %v667_v33 }
  0x5d   : > { %649 = vmatmul.msk.bf16.gmra.mxu2 %vm234_vm0, %v667_v33 }
  0x5e   : > { %651 = vmatmul.msk.bf16.gmra.mxu3 %vm234_vm0, %v667_v33 }
  0xa8   : > { %v250_v34 = vpop.f32.mrf.mxu0 }
  0xa9   : > { %v269_v35 = vpop.f32.mrf.mxu1 }
  0xaa   : > { %v317_v36 = vpack.c.bf16 %v269_v35, %v250_v34 }
  0xac   : > { %325 = vst [vmem:[%s849_s7] sm:$0xff] %v317_v36 }
  0xb0   : > { %v288_v37 = vpop.f32.mrf.mxu2  ;;  %v252_v39 = vpop.f32.mrf.mxu0 }
  0xb1   : > { %v307_v38 = vpop.f32.mrf.mxu3  ;;  %v271_v41 = vpop.f32.mrf.mxu1 }
  0xb2   : > { %v318_v40 = vpack.c.bf16 %v307_v38, %v288_v37  ;;  %v319_v42 = vpack.c.bf16 %v271_v41, %v252_v39 }
  0xb3   : > { %v476_v18 = vld [vmem:[%s849_s7] sm:$0xff] (%p807_p6) }
  0xb4   : > { %326 = vst [vmem:[%s849_s7 + $0x8] sm:$0xff] %v318_v40 }
  0xb5   : > { %327 = vst [vmem:[%s849_s7 + $0x10] sm:$0xff] %v319_v42 }
  0xb6   : > { %477 = vst [vmem:[%s463_s16] sm:$0xff] (%p807_p6), %v476_v18 }
  0xb8   : > { %v290_v43 = vpop.f32.mrf.mxu2  ;;  %v255_v45 = vpop.f32.mrf.mxu0 }
  0xb9   : > { %v309_v44 = vpop.f32.mrf.mxu3  ;;  %v274_v47 = vpop.f32.mrf.mxu1 }
  0xba   : > { %v320_v46 = vpack.c.bf16 %v309_v44, %v290_v43  ;;  %v321_v48 = vpack.c.bf16 %v274_v47, %v255_v45 }
  0xbb   : > { %v478_v19 = vld [vmem:[%s849_s7 + $0x8] sm:$0xff] (%p807_p6) }
  0xbc   : > { %328 = vst [vmem:[%s849_s7 + $0x18] sm:$0xff] %v320_v46  ;;  %v480_v20 = vld [vmem:[%s849_s7 + $0x10] sm:$0xff] (%p807_p6) }
  0xbd   : > { %329 = vst [vmem:[%s849_s7 + $0x20] sm:$0xff] %v321_v48 }
  0xbe   : > { %479 = vst [vmem:[%s463_s16 + $0x8] sm:$0xff] (%p807_p6), %v478_v19 }
  0xbf   : > { %481 = vst [vmem:[%s463_s16 + $0x100] sm:$0xff] (%p807_p6), %v480_v20 }
  0xc0   : > { %v293_v49 = vpop.f32.mrf.mxu2  ;;  %v257_v51 = vpop.f32.mrf.mxu0 }
  0xc1   : > { %v312_v50 = vpop.f32.mrf.mxu3  ;;  %v276_v53 = vpop.f32.mrf.mxu1 }
  0xc2   : > { %v322_v52 = vpack.c.bf16 %v312_v50, %v293_v49  ;;  %v323_v54 = vpack.c.bf16 %v276_v53, %v257_v51 }
  0xc3   : > { %v482_v21 = vld [vmem:[%s849_s7 + $0x18] sm:$0xff] (%p807_p6) }
  0xc4   : > { %330 = vst [vmem:[%s849_s7 + $0x28] sm:$0xff] %v322_v52  ;;  %v484_v22 = vld [vmem:[%s849_s7 + $0x20] sm:$0xff] (%p807_p6) }
  0xc5   : > { %331 = vst [vmem:[%s849_s7 + $0x30] sm:$0xff] %v323_v54 }
  0xc6   : > { %483 = vst [vmem:[%s463_s16 + $0x108] sm:$0xff] (%p807_p6), %v482_v21 }
  0xc7   : > { %485 = vst [vmem:[%s463_s16 + $0x200] sm:$0xff] (%p807_p6), %v484_v22 }
  0xc8   : > { %v295_v55 = vpop.f32.mrf.mxu2  ;;  %v367_v57 = vpop.f32.mrf.mxu0 }
  0xc9   : > { %v314_v56 = vpop.f32.mrf.mxu3  ;;  %v386_v59 = vpop.f32.mrf.mxu1 }
  0xca   : > { %v324_v58 = vpack.c.bf16 %v314_v56, %v295_v55  ;;  %v434_v60 = vpack.c.bf16 %v386_v59, %v367_v57 }
  0xcb   : > { %v486_v23 = vld [vmem:[%s849_s7 + $0x28] sm:$0xff] (%p807_p6) }
  0xcc   : > { %332 = vst [vmem:[%s849_s7 + $0x38] sm:$0xff] %v324_v58  ;;  %v488_v24 = vld [vmem:[%s849_s7 + $0x30] sm:$0xff] (%p807_p6) }
  0xcd   : > { %652 = vst [vmem:[%s849_s7 + $0x40] sm:$0xff] %v434_v60 }
  0xce   : > { %487 = vst [vmem:[%s463_s16 + $0x208] sm:$0xff] (%p807_p6), %v486_v23 }
  0xcf   : > { %489 = vst [vmem:[%s463_s16 + $0x300] sm:$0xff] (%p807_p6), %v488_v24 }
  0xd0   : > { %v405_v61 = vpop.f32.mrf.mxu2  ;;  %v369_v63 = vpop.f32.mrf.mxu0 }
  0xd1   : > { %v424_v62 = vpop.f32.mrf.mxu3  ;;  %v388_v1 = vpop.f32.mrf.mxu1 }
  0xd2   : > { %v435_v0 = vpack.c.bf16 %v424_v62, %v405_v61  ;;  %v436_v2 = vpack.c.bf16 %v388_v1, %v369_v63 }
  0xd3   : > { %v490_v25 = vld [vmem:[%s849_s7 + $0x38] sm:$0xff] (%p807_p6) }
  0xd4   : > { %653 = vst [vmem:[%s849_s7 + $0x48] sm:$0xff] %v435_v0  ;;  %v492_v26 = vld [vmem:[%s849_s7 + $0x40] sm:$0xff] (%p807_p6) }
  0xd5   : > { %654 = vst [vmem:[%s849_s7 + $0x50] sm:$0xff] %v436_v2 }
  0xd6   : > { %491 = vst [vmem:[%s463_s16 + $0x308] sm:$0xff] (%p807_p6), %v490_v25 }
  0xd7   : > { %493 = vst [vmem:[%s463_s16 + $0x400] sm:$0xff] (%p807_p6), %v492_v26 }
  0xd8   : > { %v407_v3 = vpop.f32.mrf.mxu2  ;;  %v372_v5 = vpop.f32.mrf.mxu0 }
  0xd9   : > { %v426_v4 = vpop.f32.mrf.mxu3  ;;  %v391_v7 = vpop.f32.mrf.mxu1 }
  0xda   : > { %v437_v6 = vpack.c.bf16 %v426_v4, %v407_v3  ;;  %v438_v8 = vpack.c.bf16 %v391_v7, %v372_v5 }
  0xdb   : > { %v494_v27 = vld [vmem:[%s849_s7 + $0x48] sm:$0xff] (%p807_p6) }
  0xdc   : > { %655 = vst [vmem:[%s849_s7 + $0x58] sm:$0xff] %v437_v6  ;;  %v496_v28 = vld [vmem:[%s849_s7 + $0x50] sm:$0xff] (%p807_p6) }
  0xdd   : > { %656 = vst [vmem:[%s849_s7 + $0x60] sm:$0xff] %v438_v8 }
  0xde   : > { %495 = vst [vmem:[%s463_s16 + $0x408] sm:$0xff] (%p807_p6), %v494_v27 }
  0xdf   : > { %497 = vst [vmem:[%s463_s16 + $0x500] sm:$0xff] (%p807_p6), %v496_v28 }
  0xe0   : > { %v410_v9 = vpop.f32.mrf.mxu2  ;;  %v374_v11 = vpop.f32.mrf.mxu0 }
  0xe1   : > { %v429_v10 = vpop.f32.mrf.mxu3  ;;  %v393_v13 = vpop.f32.mrf.mxu1 }
  0xe2   : > { %v439_v12 = vpack.c.bf16 %v429_v10, %v410_v9  ;;  %v440_v14 = vpack.c.bf16 %v393_v13, %v374_v11 }
  0xe3   : > { %v498_v29 = vld [vmem:[%s849_s7 + $0x58] sm:$0xff] (%p807_p6) }
  0xe4   : > { %657 = vst [vmem:[%s849_s7 + $0x68] sm:$0xff] %v439_v12  ;;  %v500_v30 = vld [vmem:[%s849_s7 + $0x60] sm:$0xff] (%p807_p6) }
  0xe5   : > { %658 = vst [vmem:[%s849_s7 + $0x70] sm:$0xff] %v440_v14 }
  0xe6   : > { %499 = vst [vmem:[%s463_s16 + $0x508] sm:$0xff] (%p807_p6), %v498_v29 }
  0xe7   : > { %501 = vst [vmem:[%s463_s16 + $0x600] sm:$0xff] (%p807_p6), %v500_v30 }
  0xe8   : > { %v412_v15 = vpop.f32.mrf.mxu2  ;;  %457 = sbr.rel (!%p807_p6) target bundleno = 245 (0xf5), region = 55 }
  0xe9   : > { %v431_v16 = vpop.f32.mrf.mxu3 }
  0xea   : > { %v441_v17 = vpack.c.bf16 %v431_v16, %v412_v15 }
  0xeb   : > { %v502_v31 = vld [vmem:[%s849_s7 + $0x68] sm:$0xff] (%p807_p6) }
  0xec   : > { %659 = vst [vmem:[%s849_s7 + $0x78] sm:$0xff] %v441_v17  ;;  %v504_v32 = vld [vmem:[%s849_s7 + $0x70] sm:$0xff] (%p807_p6) }
  0xed   : > { %503 = vst [vmem:[%s463_s16 + $0x608] sm:$0xff] %v502_v31 }
  0xee   : > { %505 = vst [vmem:[%s463_s16 + $0x700] sm:$0xff] %v504_v32 }
  0xf3   : > { %v506_v33 = vld [vmem:[%s849_s7 + $0x78] sm:$0xff] }
  0xf4   : > { %507 = vst [vmem:[%s463_s16 + $0x708] sm:$0xff] %v506_v33 }
  0xf5 PF: > { %s12_s13 = sadd.s32 1, %s755_s13   ;;  %s908_s9 = smov %s743_s10 }
  0xf6   : > { %p9_p11 = scmp.ge.s32.totalorder %s12_s13, 18   ;;  %s909_s10 = smov %s812_s19 }
  0xf7   : > { %s910_s11 = smov %s751_s12  ;;  %s911_s12 = smov %s913_s14 }
  0xf8   :  { %11 = sbr.rel (!%p9_p11) target bundleno = 3 (0x3), region = 111 }

// kernel: lseg_forward.35
= control target key start
LH: loop header
LB: loop body
LE: loop exit
PB: predicated region body
PF: predicated region fallthrough
CT: control target
= control target key end

     0   :  { %s2946_s12 = smov 0   ;;  %s2948_s13 = smov 0   ;;  %s4102_s0 = inlined_call_operand.vmem [shape: bf16[512,32], index: 0, kind: input, shape index: {}]   ;;  %s4103_s1 = inlined_call_operand.vmem [shape: bf16[32,512], index: 1, kind: input, shape index: {}]   ;;  %s4104_s2 = inlined_call_operand.vmem [shape: f32[1,512], index: 2, kind: input, shape index: {}]   ;;  %s4105_s3 = inlined_call_operand.vmem [shape: f32[512,512], index: 3, kind: output, shape index: {}]  }
   0x1   :  { %s2950_s14 = smov 0  }
   0x2 LB: > { %s32_s15 = sadd.s32 1, %s2920_s13  ;;  %p2621_p0 = scmp.ge.s32.totalorder %s2924_s14, 1  ;;  %s2924_s14 = sphi %s2950_s14, %s13_s14   ;;  %s2920_s13 = sphi %s2948_s13, %s4254_s13   ;;  %s2916_s12 = sphi %s2946_s12, %s4253_s12  }
   0x3   : > { %p34_p1 = scmp.ge.s32.totalorder %s32_s15, 2  ;;  %p193_p2 = scmp.lt.s32.totalorder %s2924_s14, 3 }
   0x5   : > { %s4256_s15 = smov (%p34_p1, %s32_s15), 0  ;;  %p194_p3 = pnand %p2621_p0, %p193_p2 }
   0x7   : > { %197 = sbr.rel (%p194_p3) target bundleno = 555 (0x22b), region = 32 }
   0xc   : > { %v2709_v0 = vld [vmem:[%s4103_s1 + $0x20] sm:$0xf]  ;;  %v2812_v1 = vld [vmem:[%s4103_s1 + $0x2c] sm:$0xf0]  ;;  %v2810_v2 = vld [vmem:[%s4103_s1 + $0x24] sm:$0xf] }
   0xd   : > { %v2710_v3 = vor.u32 %v2812_v1, %v2709_v0  ;;  %v2711_v4 = vld [vmem:[%s4103_s1 + $0x30] sm:$0xf0]  ;;  %v2717_v5 = vld [vmem:[%s4103_s1 + $0x28] sm:$0xf]  ;;  %v2813_v6 = vld [vmem:[%s4103_s1 + $0x34] sm:$0xf0] }
   0xe   : > { %v2714_v7 = vor.u32 %v2810_v2, %v2711_v4  ;;  %v2718_v8 = vor.u32 %v2813_v6, %v2717_v5  ;;  %v2811_v9 = vld [vmem:[%s4103_s1 + $0x2c] sm:$0xf]  ;;  %v2719_v10 = vld [vmem:[%s4103_s1 + $0x38] sm:$0xf0]  ;;  %v2693_v11 = vld [vmem:[%s4103_s1] sm:$0xf] }
   0xf   : > { %753 = vmatpush.bf16.msra.mxu0 %v2710_v3  ;;  %v2722_v12 = vor.u32 %v2811_v9, %v2719_v10  ;;  %v2808_v13 = vld [vmem:[%s4103_s1 + $0xc] sm:$0xf0]  ;;  %v2806_v14 = vld [vmem:[%s4103_s1 + $0x4] sm:$0xf]  ;;  %v2695_v15 = vld [vmem:[%s4103_s1 + $0x10] sm:$0xf0] }
  0x10   : > { %842 = vmatpush.bf16.msra.mxu1 %v2714_v7  ;;  %931 = vmatpush.bf16.msra.mxu2 %v2718_v8  ;;  %v2694_v16 = vor.u32 %v2808_v13, %v2693_v11  ;;  %v2698_v17 = vor.u32 %v2806_v14, %v2695_v15  ;;  %v2701_v18 = vld [vmem:[%s4103_s1 + $0x8] sm:$0xf]  ;;  %v2809_v19 = vld [vmem:[%s4103_s1 + $0x14] sm:$0xf0]  ;;  %v2807_v20 = vld [vmem:[%s4103_s1 + $0xc] sm:$0xf] }
  0x11   : > { %1020 = vmatpush.bf16.msra.mxu3 %v2722_v12  ;;  %v2702_v21 = vor.u32 %v2809_v19, %v2701_v18  ;;  %v2703_v22 = vld [vmem:[%s4103_s1 + $0x18] sm:$0xf0]  ;;  %s2622_s25 = sshll.u32 %s2916_s12, 5  ;;  %vm698_vm0 = vcmask 261120   ;;  %v1490_v32 = vld [vmem:[%s4104_s2] sm:$0xf] }
  0x12   : > { %v2706_v23 = vor.u32 %v2807_v20, %v2703_v22  ;;  %p240_p4 = scmp.lt.s32.totalorder %s2622_s25, 63  ;;  %v3066_v33 = vperm.slane %v1490_v32, 0  ;;  %v3068_v34 = vperm.slane %v1490_v32, 1  ;;  %v3085_v42 = vperm.slane %v1490_v32, 2 }
  0x13   : > { %754 = vmatpush.bf16.msra.mxu0 %v2694_v16  ;;  %v3087_v43 = vperm.slane %v1490_v32, 3 }
  0x14   : > { %843 = vmatpush.bf16.msra.mxu1 %v2698_v17  ;;  %932 = vmatpush.bf16.msra.mxu2 %v2702_v21  ;;  %s4258_s25 = smov (!%p240_p4, %s2622_s25), 63 }
  0x15   : > { %1021 = vmatpush.bf16.msra.mxu3 %v2706_v23  ;;  %s2623_s26 = sshll.u32 %s4258_s25, 2  ;;  %s2789_s4 = sshll.u32 %s4258_s25, 5 }
  0x16   : > { %s3021_s29 = scalar_lea.vmem %s4102_s0, %s2623_s26  ;;  %s3494_s7 = scalar_lea.vmem %s4105_s3, %s2789_s4 }
  0x17   : > { %v2790_v24 = vld [vmem:[%s3021_s29] sm:$0xff]  ;;  %v2791_v25 = vld [vmem:[%s3021_s29 + $0x8] sm:$0xff]  ;;  %v2792_v26 = vld [vmem:[%s3021_s29 + $0x10] sm:$0xff] }
  0x18   : > { %2723 = vmatmul.msk.bf16.vlgmr.msra.gmra.mxu0 %vm698_vm0, %v2790_v24  ;;  %2739 = vmatmul.msk.bf16.vlgmr.msra.gmra.mxu1 %vm698_vm0, %v2790_v24  ;;  %v2793_v27 = vld [vmem:[%s3021_s29 + $0x18] sm:$0xff]  ;;  %v2794_v28 = vld [vmem:[%s3021_s29 + $0x20] sm:$0xff]  ;;  %v2795_v29 = vld [vmem:[%s3021_s29 + $0x28] sm:$0xff] }
  0x19   : > { %2755 = vmatmul.msk.bf16.vlgmr.msra.gmra.mxu2 %vm698_vm0, %v2790_v24  ;;  %2771 = vmatmul.msk.bf16.vlgmr.msra.gmra.mxu3 %vm698_vm0, %v2790_v24  ;;  %v2796_v30 = vld [vmem:[%s3021_s29 + $0x30] sm:$0xff]  ;;  %v2797_v31 = vld [vmem:[%s3021_s29 + $0x38] sm:$0xff]  ;;  %v2798_v35 = vld [vmem:[%s3021_s29 + $0x40] sm:$0xff] }
  0x1a   : > { %v2799_v61 = vld [vmem:[%s3021_s29 + $0x48] sm:$0xff] }
  0x28   : > { %2724 = vmatmul.msk.bf16.gmra.mxu0 %vm698_vm0, %v2791_v25  ;;  %2740 = vmatmul.msk.bf16.gmra.mxu1 %vm698_vm0, %v2791_v25 }
  0x29   : > { %2756 = vmatmul.msk.bf16.gmra.mxu2 %vm698_vm0, %v2791_v25  ;;  %2772 = vmatmul.msk.bf16.gmra.mxu3 %vm698_vm0, %v2791_v25 }
  0x38   : > { %2725 = vmatmul.msk.bf16.gmra.mxu0 %vm698_vm0, %v2792_v26  ;;  %2741 = vmatmul.msk.bf16.gmra.mxu1 %vm698_vm0, %v2792_v26 }
  0x39   : > { %2757 = vmatmul.msk.bf16.gmra.mxu2 %vm698_vm0, %v2792_v26  ;;  %2773 = vmatmul.msk.bf16.gmra.mxu3 %vm698_vm0, %v2792_v26 }
  0x48   : > { %2726 = vmatmul.msk.bf16.gmra.mxu0 %vm698_vm0, %v2793_v27  ;;  %2742 = vmatmul.msk.bf16.gmra.mxu1 %vm698_vm0, %v2793_v27 }
  0x49   : > { %2758 = vmatmul.msk.bf16.gmra.mxu2 %vm698_vm0, %v2793_v27  ;;  %2774 = vmatmul.msk.bf16.gmra.mxu3 %vm698_vm0, %v2793_v27 }
  0x58   : > { %2727 = vmatmul.msk.bf16.gmra.mxu0 %vm698_vm0, %v2794_v28  ;;  %2743 = vmatmul.msk.bf16.gmra.mxu1 %vm698_vm0, %v2794_v28 }
  0x59   : > { %2759 = vmatmul.msk.bf16.gmra.mxu2 %vm698_vm0, %v2794_v28  ;;  %2775 = vmatmul.msk.bf16.gmra.mxu3 %vm698_vm0, %v2794_v28  ;;  %v2800_v28 = vld [vmem:[%s3021_s29 + $0x50] sm:$0xff] }
  0x68   : > { %2728 = vmatmul.msk.bf16.gmra.mxu0 %vm698_vm0, %v2795_v29  ;;  %2744 = vmatmul.msk.bf16.gmra.mxu1 %vm698_vm0, %v2795_v29 }
  0x69   : > { %2760 = vmatmul.msk.bf16.gmra.mxu2 %vm698_vm0, %v2795_v29  ;;  %2776 = vmatmul.msk.bf16.gmra.mxu3 %vm698_vm0, %v2795_v29 }
  0x78   : > { %2729 = vmatmul.msk.bf16.gmra.mxu0 %vm698_vm0, %v2796_v30  ;;  %2745 = vmatmul.msk.bf16.gmra.mxu1 %vm698_vm0, %v2796_v30 }
  0x79   : > { %2761 = vmatmul.msk.bf16.gmra.mxu2 %vm698_vm0, %v2796_v30  ;;  %2777 = vmatmul.msk.bf16.gmra.mxu3 %vm698_vm0, %v2796_v30 }
  0x88   : > { %2730 = vmatmul.msk.bf16.gmra.mxu0 %vm698_vm0, %v2797_v31  ;;  %2746 = vmatmul.msk.bf16.gmra.mxu1 %vm698_vm0, %v2797_v31 }
  0x89   : > { %2762 = vmatmul.msk.bf16.gmra.mxu2 %vm698_vm0, %v2797_v31  ;;  %2778 = vmatmul.msk.bf16.gmra.mxu3 %vm698_vm0, %v2797_v31 }
  0x95   : > { %v756_v36 = vpop.f32.mrf.mxu0  ;;  %v845_v37 = vpop.f32.mrf.mxu1 }
  0x96   : > { %v3072_v38 = vadd.f32 %v3066_v33, %v756_v36  ;;  %v3075_v39 = vadd.f32 %v3068_v34, %v845_v37 }
  0x98   : > { %2731 = vmatmul.msk.bf16.gmra.mxu0 %vm698_vm0, %v2798_v35  ;;  %2747 = vmatmul.msk.bf16.gmra.mxu1 %vm698_vm0, %v2798_v35  ;;  %v1628_v40 = vmul.f32 %v3072_v38, %v3072_v38  ;;  %v1629_v41 = vmul.f32 %v3075_v39, %v3075_v39 }
  0x99   : > { %2763 = vmatmul.msk.bf16.gmra.mxu2 %vm698_vm0, %v2798_v35  ;;  %2779 = vmatmul.msk.bf16.gmra.mxu3 %vm698_vm0, %v2798_v35 }
  0x9a   : > { %v1756_v50 = vadd.f32 %v1629_v41, %v1628_v40 }
  0x9c   : > { %v934_v44 = vpop.f32.mrf.mxu2  ;;  %v1023_v45 = vpop.f32.mrf.mxu3 }
  0x9d   : > { %v3090_v46 = vadd.f32 %v3085_v42, %v934_v44  ;;  %v3093_v47 = vadd.f32 %v3087_v43, %v1023_v45  ;;  %v758_v48 = vpop.f32.mrf.mxu0  ;;  %v847_v49 = vpop.f32.mrf.mxu1 }
  0x9e   : > { %v3098_v52 = vadd.f32 %v3066_v33, %v758_v48  ;;  %v3101_v53 = vadd.f32 %v3068_v34, %v847_v49 }
  0x9f   : > { %v1630_v51 = vmul.f32 %v3090_v46, %v3090_v46  ;;  %v1631_v54 = vmul.f32 %v3093_v47, %v3093_v47 }
  0xa0   : > { %v1632_v56 = vmul.f32 %v3098_v52, %v3098_v52  ;;  %v1633_v57 = vmul.f32 %v3101_v53, %v3101_v53 }
  0xa1   : > { %v1757_v55 = vadd.f32 %v1756_v50, %v1630_v51 }
  0xa2   : > { %v1761_v5 = vadd.f32 %v1633_v57, %v1632_v56 }
  0xa3   : > { %v1758_v58 = vadd.f32 %v1757_v55, %v1631_v54 }
  0xa4   : > { %v936_v59 = vpop.f32.mrf.mxu2  ;;  %v1025_v60 = vpop.f32.mrf.mxu3 }
  0xa5   : > { %v3111_v62 = vadd.f32 %v3085_v42, %v936_v59  ;;  %v3114_v63 = vadd.f32 %v3087_v43, %v1025_v60  ;;  %1759 = vadd.xlane.f32.xlu0 %v1758_v58  ;;  %v761_v0 = vpop.f32.mrf.mxu0  ;;  %v850_v1 = vpop.f32.mrf.mxu1 }
  0xa6   : > { %v3117_v2 = vadd.f32 %v3066_v33, %v761_v0  ;;  %v3120_v3 = vadd.f32 %v3068_v34, %v850_v1 }
  0xa7   : > { %v1634_v4 = vmul.f32 %v3111_v62, %v3111_v62  ;;  %v1635_v6 = vmul.f32 %v3114_v63, %v3114_v63 }
  0xa8   : > { %2732 = vmatmul.msk.bf16.gmra.mxu0 %vm698_vm0, %v2799_v61  ;;  %2748 = vmatmul.msk.bf16.gmra.mxu1 %vm698_vm0, %v2799_v61  ;;  %v1636_v7 = vmul.f32 %v3117_v2, %v3117_v2  ;;  %v1637_v8 = vmul.f32 %v3120_v3, %v3120_v3 }
  0xa9   : > { %2764 = vmatmul.msk.bf16.gmra.mxu2 %vm698_vm0, %v2799_v61  ;;  %2780 = vmatmul.msk.bf16.gmra.mxu3 %vm698_vm0, %v2799_v61  ;;  %v1762_v9 = vadd.f32 %v1761_v5, %v1634_v4 }
  0xaa   : > { %v1766_v17 = vadd.f32 %v1637_v8, %v1636_v7 }
  0xab   : > { %v1763_v10 = vadd.f32 %v1762_v9, %v1635_v6  ;;  %v2801_v9 = vld [vmem:[%s3021_s29 + $0x58] sm:$0xff] }
  0xac   : > { %v939_v11 = vpop.f32.mrf.mxu2  ;;  %v1028_v12 = vpop.f32.mrf.mxu3 }
  0xad   : > { %v3135_v13 = vadd.f32 %v3085_v42, %v939_v11  ;;  %v3138_v14 = vadd.f32 %v3087_v43, %v1028_v12  ;;  %1764 = vadd.xlane.f32.xlu0 %v1763_v10  ;;  %v763_v15 = vpop.f32.mrf.mxu0  ;;  %v852_v16 = vpop.f32.mrf.mxu1 }
  0xae   : > { %v3143_v19 = vadd.f32 %v3066_v33, %v763_v15  ;;  %v3146_v20 = vadd.f32 %v3068_v34, %v852_v16 }
  0xaf   : > { %v1638_v18 = vmul.f32 %v3135_v13, %v3135_v13  ;;  %v1639_v21 = vmul.f32 %v3138_v14, %v3138_v14 }
  0xb0   : > { %v1640_v23 = vmul.f32 %v3143_v19, %v3143_v19  ;;  %v1641_v24 = vmul.f32 %v3146_v20, %v3146_v20 }
  0xb1   : > { %v1767_v22 = vadd.f32 %v1766_v17, %v1638_v18 }
  0xb2   : > { %v1771_v40 = vadd.f32 %v1641_v24, %v1640_v23 }
  0xb3   : > { %v1768_v25 = vadd.f32 %v1767_v22, %v1639_v21 }
  0xb4   : > { %v941_v26 = vpop.f32.mrf.mxu2  ;;  %v1030_v27 = vpop.f32.mrf.mxu3 }
  0xb5   : > { %v3156_v29 = vadd.f32 %v3085_v42, %v941_v26  ;;  %v3159_v30 = vadd.f32 %v3087_v43, %v1030_v27  ;;  %1769 = vadd.xlane.f32.xlu1 %v1768_v25  ;;  %v766_v31 = vpop.f32.mrf.mxu0  ;;  %v855_v32 = vpop.f32.mrf.mxu1 }
  0xb6   : > { %v3162_v35 = vadd.f32 %v3066_v33, %v766_v31  ;;  %v3165_v36 = vadd.f32 %v3068_v34, %v855_v32 }
  0xb7   : > { %v1642_v37 = vmul.f32 %v3156_v29, %v3156_v29  ;;  %v1643_v41 = vmul.f32 %v3159_v30, %v3159_v30 }
  0xb8   : > { %2733 = vmatmul.msk.bf16.gmra.mxu0 %vm698_vm0, %v2800_v28  ;;  %2749 = vmatmul.msk.bf16.gmra.mxu1 %vm698_vm0, %v2800_v28  ;;  %v1644_v44 = vmul.f32 %v3162_v35, %v3162_v35  ;;  %v1645_v45 = vmul.f32 %v3165_v36, %v3165_v36 }
  0xb9   : > { %2765 = vmatmul.msk.bf16.gmra.mxu2 %vm698_vm0, %v2800_v28  ;;  %2781 = vmatmul.msk.bf16.gmra.mxu3 %vm698_vm0, %v2800_v28  ;;  %v1772_v48 = vadd.f32 %v1771_v40, %v1642_v37 }
  0xba   : > { %v1776_v58 = vadd.f32 %v1645_v45, %v1644_v44 }
  0xbb   : > { %v1773_v49 = vadd.f32 %v1772_v48, %v1643_v41 }
  0xbc   : > { %v944_v50 = vpop.f32.mrf.mxu2  ;;  %v1033_v51 = vpop.f32.mrf.mxu3 }
  0xbd   : > { %v3180_v54 = vadd.f32 %v3085_v42, %v944_v50  ;;  %v3183_v55 = vadd.f32 %v3087_v43, %v1033_v51  ;;  %1774 = vadd.xlane.f32.xlu1 %v1773_v49  ;;  %v768_v56 = vpop.f32.mrf.mxu0  ;;  %v857_v57 = vpop.f32.mrf.mxu1 }
  0xbe   : > { %v3188_v60 = vadd.f32 %v3066_v33, %v768_v56  ;;  %v3191_v61 = vadd.f32 %v3068_v34, %v857_v57 }
  0xbf   : > { %v1646_v59 = vmul.f32 %v3180_v54, %v3180_v54  ;;  %v1647_v0 = vmul.f32 %v3183_v55, %v3183_v55 }
  0xc0   : > { %v1648_v4 = vmul.f32 %v3188_v60, %v3188_v60  ;;  %v1649_v5 = vmul.f32 %v3191_v61, %v3191_v61 }
  0xc1   : > { %v1777_v1 = vadd.f32 %v1776_v58, %v1646_v59 }
  0xc2   : > { %v1781_v21 = vadd.f32 %v1649_v5, %v1648_v4 }
  0xc3   : > { %v1778_v6 = vadd.f32 %v1777_v1, %v1647_v0  ;;  %v2802_v0 = vld [vmem:[%s3021_s29 + $0x60] sm:$0xff] }
  0xc4   : > { %v946_v7 = vpop.f32.mrf.mxu2  ;;  %v1035_v8 = vpop.f32.mrf.mxu3 }
  0xc5   : > { %v3201_v10 = vadd.f32 %v3085_v42, %v946_v7  ;;  %v3204_v11 = vadd.f32 %v3087_v43, %v1035_v8  ;;  %1779 = vadd.xlane.f32.xlu2 %v1778_v6  ;;  %v771_v12 = vpop.f32.mrf.mxu0  ;;  %v860_v15 = vpop.f32.mrf.mxu1 }
  0xc6   : > { %v3207_v16 = vadd.f32 %v3066_v33, %v771_v12  ;;  %v3210_v17 = vadd.f32 %v3068_v34, %v860_v15 }
  0xc7   : > { %v1650_v18 = vmul.f32 %v3201_v10, %v3201_v10  ;;  %v1651_v22 = vmul.f32 %v3204_v11, %v3204_v11 }
  0xc8   : > { %2734 = vmatmul.msk.bf16.gmra.mxu0 %vm698_vm0, %v2801_v9  ;;  %2750 = vmatmul.msk.bf16.gmra.mxu1 %vm698_vm0, %v2801_v9  ;;  %v1652_v23 = vmul.f32 %v3207_v16, %v3207_v16  ;;  %v1653_v24 = vmul.f32 %v3210_v17, %v3210_v17 }
  0xc9   : > { %2766 = vmatmul.msk.bf16.gmra.mxu2 %vm698_vm0, %v2801_v9  ;;  %2782 = vmatmul.msk.bf16.gmra.mxu3 %vm698_vm0, %v2801_v9  ;;  %v1782_v25 = vadd.f32 %v1781_v21, %v1650_v18 }
  0xca   : > { %v1786_v31 = vadd.f32 %v1653_v24, %v1652_v23 }
  0xcb   : > { %v1783_v26 = vadd.f32 %v1782_v25, %v1651_v22 }
  0xcc   : > { %v949_v27 = vpop.f32.mrf.mxu2  ;;  %v1038_v28 = vpop.f32.mrf.mxu3 }
  0xcd   : > { %v3225_v32 = vadd.f32 %v3085_v42, %v949_v27  ;;  %v3228_v37 = vadd.f32 %v3087_v43, %v1038_v28  ;;  %1784 = vadd.xlane.f32.xlu2 %v1783_v26  ;;  %v773_v40 = vpop.f32.mrf.mxu0  ;;  %v862_v41 = vpop.f32.mrf.mxu1 }
  0xce   : > { %v3235_v48 = vadd.f32 %v3066_v33, %v773_v40  ;;  %v3238_v49 = vadd.f32 %v3068_v34, %v862_v41 }
  0xcf   : > { %v1654_v44 = vmul.f32 %v3225_v32, %v3225_v32  ;;  %v1655_v45 = vmul.f32 %v3228_v37, %v3228_v37 }
  0xd0   : > { %v1656_v51 = vmul.f32 %v3235_v48, %v3235_v48  ;;  %v1657_v56 = vmul.f32 %v3238_v49, %v3238_v49 }
  0xd1   : > { %v1787_v50 = vadd.f32 %v1786_v31, %v1654_v44 }
  0xd2   : > { %v1791_v12 = vadd.f32 %v1657_v56, %v1656_v51 }
  0xd3   : > { %v1788_v57 = vadd.f32 %v1787_v50, %v1655_v45 }
  0xd4   : > { %v951_v58 = vpop.f32.mrf.mxu2  ;;  %v1040_v59 = vpop.f32.mrf.mxu3 }
  0xd5   : > { %v3246_v1 = vadd.f32 %v3085_v42, %v951_v58  ;;  %v3249_v4 = vadd.f32 %v3087_v43, %v1040_v59  ;;  %1789 = vadd.xlane.f32.xlu0 %v1788_v57  ;;  %v776_v5 = vpop.f32.mrf.mxu0  ;;  %v865_v6 = vpop.f32.mrf.mxu1 }
  0xd6   : > { %v3252_v7 = vadd.f32 %v3066_v33, %v776_v5  ;;  %v3255_v8 = vadd.f32 %v3068_v34, %v865_v6  ;;  %v2803_v5 = vld [vmem:[%s3021_s29 + $0x68] sm:$0xff] }
  0xd7   : > { %v1658_v9 = vmul.f32 %v3246_v1, %v3246_v1  ;;  %v1659_v15 = vmul.f32 %v3249_v4, %v3249_v4 }
  0xd8   : > { %2735 = vmatmul.msk.bf16.gmra.mxu0 %vm698_vm0, %v2802_v0  ;;  %2751 = vmatmul.msk.bf16.gmra.mxu1 %vm698_vm0, %v2802_v0  ;;  %v1660_v18 = vmul.f32 %v3252_v7, %v3252_v7  ;;  %v1661_v21 = vmul.f32 %v3255_v8, %v3255_v8 }
  0xd9   : > { %2767 = vmatmul.msk.bf16.gmra.mxu2 %vm698_vm0, %v2802_v0  ;;  %2783 = vmatmul.msk.bf16.gmra.mxu3 %vm698_vm0, %v2802_v0  ;;  %v1792_v22 = vadd.f32 %v1791_v12, %v1658_v9 }
  0xda   : > { %v1796_v26 = vadd.f32 %v1661_v21, %v1660_v18 }
  0xdb   : > { %v1793_v23 = vadd.f32 %v1792_v22, %v1659_v15 }
  0xdc   : > { %v954_v24 = vpop.f32.mrf.mxu2  ;;  %v1043_v25 = vpop.f32.mrf.mxu3 }
  0xdd   : > { %v3270_v27 = vadd.f32 %v3085_v42, %v954_v24  ;;  %v3273_v28 = vadd.f32 %v3087_v43, %v1043_v25  ;;  %1794 = vadd.xlane.f32.xlu1 %v1793_v23  ;;  %v778_v31 = vpop.f32.mrf.mxu0  ;;  %v867_v40 = vpop.f32.mrf.mxu1 }
  0xde   : > { %v3280_v45 = vadd.f32 %v3066_v33, %v778_v31  ;;  %v3283_v50 = vadd.f32 %v3068_v34, %v867_v40 }
  0xdf   : > { %v1662_v41 = vmul.f32 %v3270_v27, %v3270_v27  ;;  %v1663_v44 = vmul.f32 %v3273_v28, %v3273_v28 }
  0xe0   : > { %v1664_v56 = vmul.f32 %v3280_v45, %v3280_v45  ;;  %v1665_v57 = vmul.f32 %v3283_v50, %v3283_v50 }
  0xe1   : > { %v1797_v51 = vadd.f32 %v1796_v26, %v1662_v41 }
  0xe2   : > { %v1801_v22 = vadd.f32 %v1665_v57, %v1664_v56 }
  0xe3   : > { %v1798_v58 = vadd.f32 %v1797_v51, %v1663_v44 }
  0xe4   : > { %v956_v59 = vpop.f32.mrf.mxu2  ;;  %v1045_v0 = vpop.f32.mrf.mxu3 }
  0xe5   : > { %v3291_v6 = vadd.f32 %v3085_v42, %v956_v59  ;;  %v3294_v9 = vadd.f32 %v3087_v43, %v1045_v0  ;;  %1799 = vadd.xlane.f32.xlu2 %v1798_v58  ;;  %v781_v12 = vpop.f32.mrf.mxu0  ;;  %v870_v15 = vpop.f32.mrf.mxu1 }
  0xe6   : > { %v3297_v18 = vadd.f32 %v3066_v33, %v781_v12  ;;  %v3300_v21 = vadd.f32 %v3068_v34, %v870_v15 }
  0xe7   : > { %4155 = vst [vmem:[#allocation3_spill] sm:$0xff] %v3294_v9  ;;  %v1666_v23 = vmul.f32 %v3291_v6, %v3291_v6  ;;  %v1667_v24 = vmul.f32 %v3294_v9, %v3294_v9 }
  0xe8   : > { %4156 = vst [vmem:[#allocation4_spill] sm:$0xff] %v3297_v18  ;;  %2736 = vmatmul.msk.bf16.gmra.mxu0 %vm698_vm0, %v2803_v5  ;;  %2752 = vmatmul.msk.bf16.gmra.mxu1 %vm698_vm0, %v2803_v5  ;;  %v1668_v25 = vmul.f32 %v3297_v18, %v3297_v18  ;;  %v1669_v26 = vmul.f32 %v3300_v21, %v3300_v21 }
  0xe9   : > { %4157 = vst [vmem:[#allocation5_spill] sm:$0xff] %v3300_v21  ;;  %2768 = vmatmul.msk.bf16.gmra.mxu2 %vm698_vm0, %v2803_v5  ;;  %2784 = vmatmul.msk.bf16.gmra.mxu3 %vm698_vm0, %v2803_v5  ;;  %v1802_v31 = vadd.f32 %v1801_v22, %v1666_v23 }
  0xea   : > { %v1806_v51 = vadd.f32 %v1669_v26, %v1668_v25 }
  0xeb   : > { %v1803_v40 = vadd.f32 %v1802_v31, %v1667_v24 }
  0xec   : > { %v959_v41 = vpop.f32.mrf.mxu2  ;;  %v1048_v44 = vpop.f32.mrf.mxu3 }
  0xed   : > { %v3315_v56 = vadd.f32 %v3085_v42, %v959_v41  ;;  %v3318_v57 = vadd.f32 %v3087_v43, %v1048_v44  ;;  %1804 = vadd.xlane.f32.xlu0 %v1803_v40  ;;  %v783_v58 = vpop.f32.mrf.mxu0  ;;  %v872_v59 = vpop.f32.mrf.mxu1  ;;  %v2804_v40 = vld [vmem:[%s3021_s29 + $0x70] sm:$0xff] }
  0xee   : > { %v3325_v12 = vadd.f32 %v3066_v33, %v783_v58  ;;  %v3328_v15 = vadd.f32 %v3068_v34, %v872_v59 }
  0xef   : > { %4158 = vst [vmem:[#allocation6_spill] sm:$0xff] %v3315_v56  ;;  %v1670_v0 = vmul.f32 %v3315_v56, %v3315_v56  ;;  %v1671_v5 = vmul.f32 %v3318_v57, %v3318_v57 }
  0xf0   : > { %4159 = vst [vmem:[#allocation7_spill] sm:$0xff] %v3318_v57  ;;  %v1672_v23 = vmul.f32 %v3325_v12, %v3325_v12  ;;  %v1673_v24 = vmul.f32 %v3328_v15, %v3328_v15 }
  0xf1   : > { %4160 = vst [vmem:[#allocation8_spill] sm:$0xff] %v3325_v12  ;;  %v1807_v22 = vadd.f32 %v1806_v51, %v1670_v0 }
  0xf2   : > { %4161 = vst [vmem:[#allocation9_spill] sm:$0xff] %v3328_v15  ;;  %v1811_v15 = vadd.f32 %v1673_v24, %v1672_v23 }
  0xf3   : > { %v1808_v25 = vadd.f32 %v1807_v22, %v1671_v5 }
  0xf4   : > { %v961_v26 = vpop.f32.mrf.mxu2  ;;  %v1050_v31 = vpop.f32.mrf.mxu3 }
  0xf5   : > { %v3336_v41 = vadd.f32 %v3085_v42, %v961_v26  ;;  %v3339_v44 = vadd.f32 %v3087_v43, %v1050_v31  ;;  %1809 = vadd.xlane.f32.xlu1 %v1808_v25  ;;  %v786_v58 = vpop.f32.mrf.mxu0  ;;  %v875_v59 = vpop.f32.mrf.mxu1 }
  0xf6   : > { %v3342_v51 = vadd.f32 %v3066_v33, %v786_v58  ;;  %v3345_v0 = vadd.f32 %v3068_v34, %v875_v59 }
  0xf7   : > { %4162 = vst [vmem:[#allocation10_spill] sm:$0xff] %v3336_v41  ;;  %v1674_v5 = vmul.f32 %v3336_v41, %v3336_v41  ;;  %v1675_v22 = vmul.f32 %v3339_v44, %v3339_v44 }
  0xf8   : > { %4163 = vst [vmem:[#allocation11_spill] sm:$0xff] %v3339_v44  ;;  %2737 = vmatmul.msk.bf16.gmra.mxu0 %vm698_vm0, %v2804_v40  ;;  %2753 = vmatmul.msk.bf16.gmra.mxu1 %vm698_vm0, %v2804_v40  ;;  %v1676_v25 = vmul.f32 %v3342_v51, %v3342_v51  ;;  %v1677_v26 = vmul.f32 %v3345_v0, %v3345_v0 }
  0xf9   : > { %4164 = vst [vmem:[#allocation12_spill] sm:$0xff] %v3342_v51  ;;  %2769 = vmatmul.msk.bf16.gmra.mxu2 %vm698_vm0, %v2804_v40  ;;  %2785 = vmatmul.msk.bf16.gmra.mxu3 %vm698_vm0, %v2804_v40  ;;  %v1812_v23 = vadd.f32 %v1811_v15, %v1674_v5 }
  0xfa   : > { %4165 = vst [vmem:[#allocation13_spill] sm:$0xff] %v3345_v0  ;;  %v1816_v59 = vadd.f32 %v1677_v26, %v1676_v25 }
  0xfb   : > { %v1813_v24 = vadd.f32 %v1812_v23, %v1675_v22 }
  0xfc   : > { %v964_v31 = vpop.f32.mrf.mxu2  ;;  %v1053_v58 = vpop.f32.mrf.mxu3 }
  0xfd   : > { %v3360_v44 = vadd.f32 %v3085_v42, %v964_v31  ;;  %v3363_v41 = vadd.f32 %v3087_v43, %v1053_v58  ;;  %1814 = vadd.xlane.f32.xlu2 %v1813_v24  ;;  %v788_v51 = vpop.f32.mrf.mxu0  ;;  %v877_v12 = vpop.f32.mrf.mxu1  ;;  %v2805_v58 = vld [vmem:[%s3021_s29 + $0x78] sm:$0xff] }
  0xfe   : > { %v3370_v40 = vadd.f32 %v3066_v33, %v788_v51  ;;  %v3373_v5 = vadd.f32 %v3068_v34, %v877_v12 }
  0xff   : > { %4166 = vst [vmem:[#allocation14_spill] sm:$0xff] %v3360_v44  ;;  %v1678_v0 = vmul.f32 %v3360_v44, %v3360_v44  ;;  %v1679_v15 = vmul.f32 %v3363_v41, %v3363_v41 }
 0x100   : > { %4167 = vst [vmem:[#allocation15_spill] sm:$0xff] %v3363_v41  ;;  %v1680_v25 = vmul.f32 %v3370_v40, %v3370_v40  ;;  %v1681_v26 = vmul.f32 %v3373_v5, %v3373_v5 }
 0x101   : > { %4168 = vst [vmem:[#allocation16_spill] sm:$0xff] %v3370_v40  ;;  %v1817_v22 = vadd.f32 %v1816_v59, %v1678_v0 }
 0x102   : > { %4169 = vst [vmem:[#allocation17_spill] sm:$0xff] %v3373_v5  ;;  %v1821_v5 = vadd.f32 %v1681_v26, %v1680_v25 }
 0x103   : > { %v1818_v23 = vadd.f32 %v1817_v22, %v1679_v15 }
 0x104   : > { %v966_v24 = vpop.f32.mrf.mxu2  ;;  %v1055_v31 = vpop.f32.mrf.mxu3 }
 0x105   : > { %v3381_v44 = vadd.f32 %v3085_v42, %v966_v24  ;;  %v3384_v51 = vadd.f32 %v3087_v43, %v1055_v31  ;;  %1819 = vadd.xlane.f32.xlu0 %v1818_v23  ;;  %v791_v12 = vpop.f32.mrf.mxu0  ;;  %v880_v41 = vpop.f32.mrf.mxu1 }
 0x106   : > { %v3387_v0 = vadd.f32 %v3066_v33, %v791_v12  ;;  %v3390_v59 = vadd.f32 %v3068_v34, %v880_v41 }
 0x107   : > { %4170 = vst [vmem:[#allocation18_spill] sm:$0xff] %v3381_v44  ;;  %v1682_v15 = vmul.f32 %v3381_v44, %v3381_v44  ;;  %v1683_v22 = vmul.f32 %v3384_v51, %v3384_v51 }
 0x108   : > { %4171 = vst [vmem:[#allocation19_spill] sm:$0xff] %v3384_v51  ;;  %2738 = vmatmul.msk.bf16.gmra.mxu0 %vm698_vm0, %v2805_v58  ;;  %2754 = vmatmul.msk.bf16.gmra.mxu1 %vm698_vm0, %v2805_v58  ;;  %v1684_v23 = vmul.f32 %v3387_v0, %v3387_v0  ;;  %v1685_v24 = vmul.f32 %v3390_v59, %v3390_v59 }
 0x109   : > { %4172 = vst [vmem:[#allocation20_spill] sm:$0xff] %v3387_v0  ;;  %2770 = vmatmul.msk.bf16.gmra.mxu2 %vm698_vm0, %v2805_v58  ;;  %2786 = vmatmul.msk.bf16.gmra.mxu3 %vm698_vm0, %v2805_v58  ;;  %v1822_v41 = vadd.f32 %v1821_v5, %v1682_v15 }
 0x10a   : > { %4173 = vst [vmem:[#allocation21_spill] sm:$0xff] %v3390_v59  ;;  %v1826_v12 = vadd.f32 %v1685_v24, %v1684_v23 }
 0x10b   : > { %v1823_v25 = vadd.f32 %v1822_v41, %v1683_v22 }
 0x10c   : > { %v969_v26 = vpop.f32.mrf.mxu2  ;;  %v1058_v31 = vpop.f32.mrf.mxu3 }
 0x10d   : > { %v3405_v51 = vadd.f32 %v3085_v42, %v969_v26  ;;  %v3408_v44 = vadd.f32 %v3087_v43, %v1058_v31  ;;  %1824 = vadd.xlane.f32.xlu1 %v1823_v25  ;;  %v793_v0 = vpop.f32.mrf.mxu0  ;;  %v882_v40 = vpop.f32.mrf.mxu1 }
 0x10e   : > { %v3415_v5 = vadd.f32 %v3066_v33, %v793_v0  ;;  %v3418_v15 = vadd.f32 %v3068_v34, %v882_v40 }
 0x10f   : > { %4174 = vst [vmem:[#allocation22_spill] sm:$0xff] %v3405_v51  ;;  %v1686_v59 = vmul.f32 %v3405_v51, %v3405_v51  ;;  %v1687_v58 = vmul.f32 %v3408_v44, %v3408_v44 }
 0x110   : > { %4175 = vst [vmem:[#allocation23_spill] sm:$0xff] %v3408_v44  ;;  %v1688_v23 = vmul.f32 %v3415_v5, %v3415_v5  ;;  %v1689_v24 = vmul.f32 %v3418_v15, %v3418_v15 }
 0x111   : > { %4176 = vst [vmem:[#allocation24_spill] sm:$0xff] %v3415_v5  ;;  %v1827_v22 = vadd.f32 %v1826_v12, %v1686_v59 }
 0x112   : > { %4177 = vst [vmem:[#allocation25_spill] sm:$0xff] %v3418_v15  ;;  %v1831_v5 = vadd.f32 %v1689_v24, %v1688_v23 }
 0x113   : > { %v1828_v41 = vadd.f32 %v1827_v22, %v1687_v58 }
 0x114   : > { %v971_v25 = vpop.f32.mrf.mxu2  ;;  %v1060_v26 = vpop.f32.mrf.mxu3 }
 0x115   : > { %v3425_v31 = vadd.f32 %v3085_v42, %v971_v25  ;;  %v3428_v44 = vadd.f32 %v3087_v43, %v1060_v26  ;;  %1829 = vadd.xlane.f32.xlu2 %v1828_v41  ;;  %v796_v0 = vpop.f32.mrf.mxu0  ;;  %v885_v40 = vpop.f32.mrf.mxu1 }
 0x116   : > { %v3431_v59 = vadd.f32 %v3066_v33, %v796_v0  ;;  %v3434_v12 = vadd.f32 %v3068_v34, %v885_v40 }
 0x117   : > { %4178 = vst [vmem:[#allocation26_spill] sm:$0xff] %v3425_v31  ;;  %v1690_v58 = vmul.f32 %v3425_v31, %v3425_v31  ;;  %v1691_v22 = vmul.f32 %v3428_v44, %v3428_v44 }
 0x118   : > { %4179 = vst [vmem:[#allocation27_spill] sm:$0xff] %v3428_v44  ;;  %v1760_v25 = vpop.xlane.xlu0 %1759  ;;  %v1692_v26 = vmul.f32 %v3431_v59, %v3431_v59  ;;  %v1693_v41 = vmul.f32 %v3434_v12, %v3434_v12 }
 0x119   : > { %4180 = vst [vmem:[#allocation28_spill] sm:$0xff] %v3431_v59  ;;  %2838 = vrsqrt.f32 %v1760_v25  ;;  %v1832_v0 = vadd.f32 %v1831_v5, %v1690_v58  ;;  %vm1922_vm2 = vweird.f32 %v1760_v25 }
 0x11a   : > { %4181 = vst [vmem:[#allocation29_spill] sm:$0xff] %v3434_v12  ;;  %v1836_v57 = vadd.f32 %v1693_v41, %v1692_v26 }
 0x11b   : > { %v1833_v15 = vadd.f32 %v1832_v0, %v1691_v22 }
 0x11c   : > { %v974_v51 = vpop.f32.mrf.mxu2  ;;  %v1063_v40 = vpop.f32.mrf.mxu3 }
 0x11d   : > { %v3445_v23 = vadd.f32 %v3085_v42, %v974_v51  ;;  %v3448_v24 = vadd.f32 %v3087_v43, %v1063_v40  ;;  %1834 = vadd.xlane.f32.xlu0 %v1833_v15  ;;  %v798_v44 = vpop.f32.mrf.mxu0  ;;  %v887_v31 = vpop.f32.mrf.mxu1 }
 0x11e   : > { %v3455_v58 = vadd.f32 %v3066_v33, %v798_v44  ;;  %v3458_v22 = vadd.f32 %v3068_v34, %v887_v31 }
 0x11f   : > { %4182 = vst [vmem:[#allocation30_spill] sm:$0xff] %v3445_v23  ;;  %v2839_v56 = vpop.eup %2838  ;;  %v1694_v59 = vmul.f32 %v3445_v23, %v3445_v23  ;;  %v1695_v5 = vmul.f32 %v3448_v24, %v3448_v24 }
 0x120   : > { %4183 = vst [vmem:[#allocation31_spill] sm:$0xff] %v3448_v24  ;;  %v1917_v51 = vmul.f32 %v2839_v56, %v1760_v25  ;;  %v3460_v26 = vpop.xlane.xlu0 %1764  ;;  %v1696_v0 = vmul.f32 %v3455_v58, %v3455_v58  ;;  %v1697_v40 = vmul.f32 %v3458_v22, %v3458_v22  ;;  %vm1923_vm1 = vweird.f32 %v2839_v56 }
 0x121   : > { %4184 = vst [vmem:[#allocation32_spill] sm:$0xff] %v3455_v58  ;;  %2840 = vrsqrt.f32 %v3460_v26  ;;  %v1837_v15 = vadd.f32 %v1836_v57, %v1694_v59  ;;  %vm1924_vm3 = vmor %vm1922_vm2, %vm1923_vm1  ;;  %vm1932_vm5 = vweird.f32 %v3460_v26 }
 0x122   : > { %4185 = vst [vmem:[#allocation33_spill] sm:$0xff] %v3458_v22  ;;  %v1918_v41 = vmul.f32 %v2839_v56, %v1917_v51 }
 0x123   : > { %v1838_v24 = vadd.f32 %v1837_v15, %v1695_v5  ;;  %v1841_v15 = vadd.f32 %v1697_v40, %v1696_v0 }
 0x124   : > { %v1919_v44 = vmul.f32 0.5, %v1918_v41  ;;  %v976_v23 = vpop.f32.mrf.mxu2  ;;  %v1065_v12 = vpop.f32.mrf.mxu3 }
 0x125   : > { %v3468_v31 = vadd.f32 %v3085_v42, %v976_v23  ;;  %1839 = vadd.xlane.f32.xlu1 %v1838_v24  ;;  %v801_v21 = vpop.f32.mrf.mxu0  ;;  %v890_v18 = vpop.f32.mrf.mxu1  ;;  %v3471_v59 = vadd.f32 %v3087_v43, %v1065_v12 }
 0x126   : > { %v1920_v57 = vsub.f32 1.5, %v1919_v44  ;;  %v3474_v51 = vadd.f32 %v3066_v33, %v801_v21  ;;  %v3477_v22 = vadd.f32 %v3068_v34, %v890_v18 }
 0x127   : > { %4186 = vst [vmem:[#allocation34_spill] sm:$0xff] %v3468_v31  ;;  %v2841_v5 = vpop.eup %2840  ;;  %v1698_v23 = vmul.f32 %v3468_v31, %v3468_v31  ;;  %v1699_v40 = vmul.f32 %v3471_v59, %v3471_v59 }
 0x128   : > { %4187 = vst [vmem:[#allocation35_spill] sm:$0xff] %v3474_v51  ;;  %v1921_v41 = vmul.f32 %v2839_v56, %v1920_v57  ;;  %v1927_v24 = vmul.f32 %v2841_v5, %v3460_v26  ;;  %v3483_v44 = vpop.xlane.xlu1 %1769  ;;  %v1700_v21 = vmul.f32 %v3474_v51, %v3474_v51  ;;  %v1701_v18 = vmul.f32 %v3477_v22, %v3477_v22 }
 0x129   : > { %4188 = vst [vmem:[#allocation36_spill] sm:$0xff] %v3477_v22  ;;  %2842 = vrsqrt.f32 %v3483_v44  ;;  %v1842_v12 = vadd.f32 %v1841_v15, %v1698_v23  ;;  %vm1933_vm4 = vweird.f32 %v2841_v5  ;;  %vm1942_vm8 = vweird.f32 %v3483_v44 }
 0x12a   : > { %v1925_v25 = vsel %vm1924_vm3, %v2839_v56, %v1921_v41  ;;  %v1928_v0 = vmul.f32 %v2841_v5, %v1927_v24  ;;  %v1846_v56 = vadd.f32 %v1701_v18, %v1700_v21  ;;  %vm1934_vm6 = vmor %vm1932_vm5, %vm1933_vm4 }
 0x12b   : > { %v2236_v57 = vmul.f32 %v1925_v25, %v3072_v38  ;;  %v2237_v51 = vmul.f32 %v1925_v25, %v3075_v39  ;;  %v2238_v22 = vmul.f32 %v1925_v25, %v3090_v46  ;;  %v2239_v15 = vmul.f32 %v1925_v25, %v3093_v47 }
 0x12c   : > { %v1929_v23 = vmul.f32 0.5, %v1928_v0  ;;  %v979_v31 = vpop.f32.mrf.mxu2  ;;  %v1068_v58 = vpop.f32.mrf.mxu3  ;;  %v1843_v9 = vadd.f32 %v1842_v12, %v1699_v40 }
 0x12d   : > { %2364 = vst [vmem:[%s3494_s7] sm:$0xff] %v2236_v57  ;;  %v3504_v41 = vadd.f32 %v3085_v42, %v979_v31  ;;  %v3507_v24 = vadd.f32 %v3087_v43, %v1068_v58  ;;  %v803_v38 = vpop.f32.mrf.mxu0  ;;  %v892_v39 = vpop.f32.mrf.mxu1 }
 0x12e   : > { %2365 = vst [vmem:[%s3494_s7 + $0x8] sm:$0xff] %v2237_v51  ;;  %v1930_v46 = vsub.f32 1.5, %v1929_v23  ;;  %1844 = vadd.xlane.f32.xlu2 %v1843_v9  ;;  %v3511_v47 = vadd.f32 %v3066_v33, %v803_v38  ;;  %v3517_v31 = vadd.f32 %v3068_v34, %v892_v39 }
 0x12f   : > { %v2843_v25 = vpop.eup %2842  ;;  %2366 = vst [vmem:[%s3494_s7 + $0x10] sm:$0xff] %v2238_v22  ;;  %v1702_v21 = vmul.f32 %v3504_v41, %v3504_v41  ;;  %v1703_v9 = vmul.f32 %v3507_v24, %v3507_v24 }
 0x130   : > { %2367 = vst [vmem:[%s3494_s7 + $0x18] sm:$0xff] %v2239_v15  ;;  %v1931_v58 = vmul.f32 %v2841_v5, %v1930_v46  ;;  %v1937_v51 = vmul.f32 %v2843_v25, %v3483_v44  ;;  %v3524_v18 = vpop.xlane.xlu1 %1774  ;;  %v1704_v40 = vmul.f32 %v3511_v47, %v3511_v47  ;;  %v1705_v23 = vmul.f32 %v3517_v31, %v3517_v31 }
 0x131   : > { %2844 = vrsqrt.f32 %v3524_v18  ;;  %v1847_v22 = vadd.f32 %v1846_v56, %v1702_v21  ;;  %vm1943_vm7 = vweird.f32 %v2843_v25  ;;  %vm1952_vm11 = vweird.f32 %v3524_v18 }
 0x132   : > { %v1935_v12 = vsel %vm1934_vm6, %v2841_v5, %v1931_v58  ;;  %v1938_v0 = vmul.f32 %v2843_v25, %v1937_v51  ;;  %vm1944_vm9 = vmor %vm1942_vm8, %vm1943_vm7 }
 0x133   : > { %v2240_v26 = vmul.f32 %v1935_v12, %v3098_v52  ;;  %v2241_v57 = vmul.f32 %v1935_v12, %v3101_v53  ;;  %v2242_v15 = vmul.f32 %v1935_v12, %v3111_v62  ;;  %v2243_v38 = vmul.f32 %v1935_v12, %v3114_v63 }
 0x134   : > { %v1939_v39 = vmul.f32 0.5, %v1938_v0  ;;  %v981_v56 = vpop.f32.mrf.mxu2  ;;  %v1070_v5 = vpop.f32.mrf.mxu3  ;;  %v1848_v46 = vadd.f32 %v1847_v22, %v1703_v9  ;;  %v1851_v22 = vadd.f32 %v1705_v23, %v1704_v40 }
 0x135   : > { %2368 = vst [vmem:[%s3494_s7 + $0x20] sm:$0xff] %v2240_v26  ;;  %v3537_v21 = vadd.f32 %v3085_v42, %v981_v56  ;;  %v806_v52 = vpop.f32.mrf.mxu0  ;;  %v895_v53 = vpop.f32.mrf.mxu1  ;;  %v3541_v58 = vadd.f32 %v3087_v43, %v1070_v5 }
 0x136   : > { %2369 = vst [vmem:[%s3494_s7 + $0x28] sm:$0xff] %v2241_v57  ;;  %v1940_v62 = vsub.f32 1.5, %v1939_v39  ;;  %1849 = vadd.xlane.f32.xlu0 %v1848_v46  ;;  %v3544_v63 = vadd.f32 %v3066_v33, %v806_v52  ;;  %v3547_v51 = vadd.f32 %v3068_v34, %v895_v53 }
 0x137   : > { %v2845_v9 = vpop.eup %2844  ;;  %2370 = vst [vmem:[%s3494_s7 + $0x30] sm:$0xff] %v2242_v15  ;;  %v1706_v12 = vmul.f32 %v3537_v21, %v3537_v21  ;;  %v1707_v44 = vmul.f32 %v3541_v58, %v3541_v58 }
 0x138   : > { %4189 = vst [vmem:[#allocation37_spill] sm:$0xff] %v3544_v63  ;;  %v1941_v0 = vmul.f32 %v2843_v25, %v1940_v62  ;;  %v1947_v26 = vmul.f32 %v2845_v9, %v3524_v18  ;;  %v3555_v57 = vpop.xlane.xlu2 %1779  ;;  %v1708_v39 = vmul.f32 %v3544_v63, %v3544_v63  ;;  %v1709_v40 = vmul.f32 %v3547_v51, %v3547_v51 }
 0x139   : > { %4190 = vst [vmem:[#allocation38_spill] sm:$0xff] %v3547_v51  ;;  %2846 = vrsqrt.f32 %v3555_v57  ;;  %v1852_v15 = vadd.f32 %v1851_v22, %v1706_v12  ;;  %vm1953_vm10 = vweird.f32 %v2845_v9  ;;  %vm1962_vm14 = vweird.f32 %v3555_v57 }
 0x13a   : > { %2371 = vst [vmem:[%s3494_s7 + $0x38] sm:$0xff] %v2243_v38  ;;  %v1945_v23 = vsel %vm1944_vm9, %v2843_v25, %v1941_v0  ;;  %v1948_v38 = vmul.f32 %v2845_v9, %v1947_v26  ;;  %v1856_v25 = vadd.f32 %v1709_v40, %v1708_v39  ;;  %vm1954_vm12 = vmor %vm1952_vm11, %vm1953_vm10 }
 0x13b   : > { %v2244_v56 = vmul.f32 %v1945_v23, %v3117_v2  ;;  %v2245_v5 = vmul.f32 %v1945_v23, %v3120_v3  ;;  %v2246_v46 = vmul.f32 %v1945_v23, %v3135_v13  ;;  %v2247_v52 = vmul.f32 %v1945_v23, %v3138_v14 }
 0x13c   : > { %v1949_v53 = vmul.f32 0.5, %v1948_v38  ;;  %v984_v62 = vpop.f32.mrf.mxu2  ;;  %v1073_v51 = vpop.f32.mrf.mxu3  ;;  %v1853_v63 = vadd.f32 %v1852_v15, %v1707_v44 }
 0x13d   : > { %2372 = vst [vmem:[%s3494_s7 + $0x40] sm:$0xff] %v2244_v56  ;;  %v3571_v22 = vadd.f32 %v3085_v42, %v984_v62  ;;  %v3574_v12 = vadd.f32 %v3087_v43, %v1073_v51  ;;  %v808_v2 = vpop.f32.mrf.mxu0  ;;  %v897_v3 = vpop.f32.mrf.mxu1 }
 0x13e   : > { %2373 = vst [vmem:[%s3494_s7 + $0x48] sm:$0xff] %v2245_v5  ;;  %v1950_v13 = vsub.f32 1.5, %v1949_v53  ;;  %1854 = vadd.xlane.f32.xlu1 %v1853_v63  ;;  %v3578_v14 = vadd.f32 %v3066_v33, %v808_v2  ;;  %v3584_v39 = vadd.f32 %v3068_v34, %v897_v3 }
 0x13f   : > { %v2847_v0 = vpop.eup %2846  ;;  %2374 = vst [vmem:[%s3494_s7 + $0x50] sm:$0xff] %v2246_v46  ;;  %v1710_v26 = vmul.f32 %v3571_v22, %v3571_v22  ;;  %v1711_v63 = vmul.f32 %v3574_v12, %v3574_v12 }
 0x140   : > { %2375 = vst [vmem:[%s3494_s7 + $0x58] sm:$0xff] %v2247_v52  ;;  %v1951_v51 = vmul.f32 %v2845_v9, %v1950_v13  ;;  %v1957_v40 = vmul.f32 %v2847_v0, %v3555_v57  ;;  %v3591_v15 = vpop.xlane.xlu2 %1784  ;;  %v1712_v56 = vmul.f32 %v3578_v14, %v3578_v14  ;;  %v1713_v52 = vmul.f32 %v3584_v39, %v3584_v39 }
 0x141   : > { %2848 = vrsqrt.f32 %v3591_v15  ;;  %v1857_v23 = vadd.f32 %v1856_v25, %v1710_v26  ;;  %vm1963_vm13 = vweird.f32 %v2847_v0  ;;  %vm1972_vm1 = vweird.f32 %v3591_v15 }
 0x142   : > { %v1955_v38 = vsel %vm1954_vm12, %v2845_v9, %v1951_v51  ;;  %v1958_v44 = vmul.f32 %v2847_v0, %v1957_v40  ;;  %v1861_v40 = vadd.f32 %v1713_v52, %v1712_v56  ;;  %vm1964_vm15 = vmor %vm1962_vm14, %vm1963_vm13 }
 0x143   : > { %v2248_v18 = vmul.f32 %v1955_v38, %v3143_v19  ;;  %v2249_v5 = vmul.f32 %v1955_v38, %v3146_v20  ;;  %v2250_v46 = vmul.f32 %v1955_v38, %v3156_v29  ;;  %v2251_v53 = vmul.f32 %v1955_v38, %v3159_v30 }
 0x144   : > { %v1959_v62 = vmul.f32 0.5, %v1958_v44  ;;  %v986_v25 = vpop.f32.mrf.mxu2  ;;  %v1075_v9 = vpop.f32.mrf.mxu3  ;;  %v1858_v2 = vadd.f32 %v1857_v23, %v1711_v63 }
 0x145   : > { %2376 = vst [vmem:[%s3494_s7 + $0x60] sm:$0xff] %v2248_v18  ;;  %v3604_v3 = vadd.f32 %v3085_v42, %v986_v25  ;;  %v811_v19 = vpop.f32.mrf.mxu0  ;;  %v900_v20 = vpop.f32.mrf.mxu1  ;;  %v3608_v13 = vadd.f32 %v3087_v43, %v1075_v9 }
 0x146   : > { %2377 = vst [vmem:[%s3494_s7 + $0x68] sm:$0xff] %v2249_v5  ;;  %v1960_v29 = vsub.f32 1.5, %v1959_v62  ;;  %1859 = vadd.xlane.f32.xlu2 %v1858_v2  ;;  %v3611_v30 = vadd.f32 %v3066_v33, %v811_v19  ;;  %v3614_v26 = vadd.f32 %v3068_v34, %v900_v20 }
 0x147   : > { %v2849_v51 = vpop.eup %2848  ;;  %2378 = vst [vmem:[%s3494_s7 + $0x70] sm:$0xff] %v2250_v46  ;;  %v1714_v63 = vmul.f32 %v3604_v3, %v3604_v3  ;;  %v1715_v57 = vmul.f32 %v3608_v13, %v3608_v13 }
 0x148   : > { %2379 = vst [vmem:[%s3494_s7 + $0x78] sm:$0xff] %v2251_v53  ;;  %v1961_v23 = vmul.f32 %v2847_v0, %v1960_v29  ;;  %v1967_v38 = vmul.f32 %v2849_v51, %v3591_v15  ;;  %v3622_v44 = vpop.xlane.xlu0 %1789  ;;  %v1716_v18 = vmul.f32 %v3611_v30, %v3611_v30  ;;  %v1717_v56 = vmul.f32 %v3614_v26, %v3614_v26 }
 0x149   : > { %2850 = vrsqrt.f32 %v3622_v44  ;;  %v1862_v5 = vadd.f32 %v1861_v40, %v1714_v63  ;;  %vm1973_vm0 = vweird.f32 %v2849_v51  ;;  %vm1982_vm4 = vweird.f32 %v3622_v44 }
 0x14a   : > { %v1965_v46 = vsel %vm1964_vm15, %v2847_v0, %v1961_v23  ;;  %v1968_v52 = vmul.f32 %v2849_v51, %v1967_v38  ;;  %v1866_v0 = vadd.f32 %v1717_v56, %v1716_v18  ;;  %vm1974_vm2 = vmor %vm1972_vm1, %vm1973_vm0 }
 0x14b   : > { %v2252_v53 = vmul.f32 %v1965_v46, %v3162_v35  ;;  %v2253_v62 = vmul.f32 %v1965_v46, %v3165_v36  ;;  %v2254_v25 = vmul.f32 %v1965_v46, %v3180_v54  ;;  %v2255_v9 = vmul.f32 %v1965_v46, %v3183_v55 }
 0x14c   : > { %v1969_v2 = vmul.f32 0.5, %v1968_v52  ;;  %v989_v19 = vpop.f32.mrf.mxu2  ;;  %v1078_v20 = vpop.f32.mrf.mxu3  ;;  %v1863_v29 = vadd.f32 %v1862_v5, %v1715_v57 }
 0x14d   : > { %2380 = vst [vmem:[%s3494_s7 + $0x80] sm:$0xff] %v2252_v53  ;;  %v3638_v40 = vadd.f32 %v3085_v42, %v989_v19  ;;  %v3641_v63 = vadd.f32 %v3087_v43, %v1078_v20  ;;  %v813_v35 = vpop.f32.mrf.mxu0  ;;  %v902_v36 = vpop.f32.mrf.mxu1 }
 0x14e   : > { %2381 = vst [vmem:[%s3494_s7 + $0x88] sm:$0xff] %v2253_v62  ;;  %v1970_v54 = vsub.f32 1.5, %v1969_v2  ;;  %1864 = vadd.xlane.f32.xlu0 %v1863_v29  ;;  %v3645_v55 = vadd.f32 %v3066_v33, %v813_v35  ;;  %v3651_v18 = vadd.f32 %v3068_v34, %v902_v36 }
 0x14f   : > { %v2851_v23 = vpop.eup %2850  ;;  %2382 = vst [vmem:[%s3494_s7 + $0x90] sm:$0xff] %v2254_v25  ;;  %v1718_v38 = vmul.f32 %v3638_v40, %v3638_v40  ;;  %v1719_v46 = vmul.f32 %v3641_v63, %v3641_v63 }
 0x150   : > { %2383 = vst [vmem:[%s3494_s7 + $0x98] sm:$0xff] %v2255_v9  ;;  %v1971_v56 = vmul.f32 %v2849_v51, %v1970_v54  ;;  %v1977_v5 = vmul.f32 %v2851_v23, %v3622_v44  ;;  %v3658_v52 = vpop.xlane.xlu1 %1794  ;;  %v1720_v25 = vmul.f32 %v3645_v55, %v3645_v55  ;;  %v1721_v19 = vmul.f32 %v3651_v18, %v3651_v18 }
 0x151   : > { %2852 = vrsqrt.f32 %v3658_v52  ;;  %v1867_v57 = vadd.f32 %v1866_v0, %v1718_v38  ;;  %vm1983_vm3 = vweird.f32 %v2851_v23  ;;  %vm1992_vm7 = vweird.f32 %v3658_v52 }
 0x152   : > { %v1975_v53 = vsel %vm1974_vm2, %v2849_v51, %v1971_v56  ;;  %v1978_v62 = vmul.f32 %v2851_v23, %v1977_v5  ;;  %v1871_v5 = vadd.f32 %v1721_v19, %v1720_v25  ;;  %vm1984_vm5 = vmor %vm1982_vm4, %vm1983_vm3 }
 0x153   : > { %v2256_v15 = vmul.f32 %v1975_v53, %v3188_v60  ;;  %v2257_v9 = vmul.f32 %v1975_v53, %v3191_v61  ;;  %v2258_v2 = vmul.f32 %v1975_v53, %v3201_v10  ;;  %v2259_v20 = vmul.f32 %v1975_v53, %v3204_v11 }
 0x154   : > { %v1979_v29 = vmul.f32 0.5, %v1978_v62  ;;  %v991_v0 = vpop.f32.mrf.mxu2  ;;  %v1080_v51 = vpop.f32.mrf.mxu3  ;;  %v1868_v35 = vadd.f32 %v1867_v57, %v1719_v46 }
 0x155   : > { %2384 = vst [vmem:[%s3494_s7 + $0xa0] sm:$0xff] %v2256_v15  ;;  %v3671_v36 = vadd.f32 %v3085_v42, %v991_v0  ;;  %v816_v60 = vpop.f32.mrf.mxu0  ;;  %v905_v61 = vpop.f32.mrf.mxu1  ;;  %v3675_v54 = vadd.f32 %v3087_v43, %v1080_v51 }
 0x156   : > { %2385 = vst [vmem:[%s3494_s7 + $0xa8] sm:$0xff] %v2257_v9  ;;  %v1980_v10 = vsub.f32 1.5, %v1979_v29  ;;  %1869 = vadd.xlane.f32.xlu1 %v1868_v35  ;;  %v3678_v11 = vadd.f32 %v3066_v33, %v816_v60  ;;  %v3681_v38 = vadd.f32 %v3068_v34, %v905_v61 }
 0x157   : > { %v2853_v56 = vpop.eup %2852  ;;  %2386 = vst [vmem:[%s3494_s7 + $0xb0] sm:$0xff] %v2258_v2  ;;  %v1722_v46 = vmul.f32 %v3671_v36, %v3671_v36  ;;  %v1723_v44 = vmul.f32 %v3675_v54, %v3675_v54 }
 0x158   : > { %2387 = vst [vmem:[%s3494_s7 + $0xb8] sm:$0xff] %v2259_v20  ;;  %v1981_v57 = vmul.f32 %v2851_v23, %v1980_v10  ;;  %v1987_v53 = vmul.f32 %v2853_v56, %v3658_v52  ;;  %v3689_v62 = vpop.xlane.xlu2 %1799  ;;  %v1724_v15 = vmul.f32 %v3678_v11, %v3678_v11  ;;  %v1725_v25 = vmul.f32 %v3681_v38, %v3681_v38 }
 0x159   : > { %2854 = vrsqrt.f32 %v3689_v62  ;;  %v1872_v9 = vadd.f32 %v1871_v5, %v1722_v46  ;;  %vm1993_vm6 = vweird.f32 %v2853_v56  ;;  %vm2002_vm10 = vweird.f32 %v3689_v62 }
 0x15a   : > { %v1985_v2 = vsel %vm1984_vm5, %v2851_v23, %v1981_v57  ;;  %v1988_v19 = vmul.f32 %v2853_v56, %v1987_v53  ;;  %v1876_v23 = vadd.f32 %v1725_v25, %v1724_v15  ;;  %vm1994_vm8 = vmor %vm1992_vm7, %vm1993_vm6 }
 0x15b   : > { %v2260_v20 = vmul.f32 %v1985_v2, %v3207_v16  ;;  %v2261_v29 = vmul.f32 %v1985_v2, %v3210_v17  ;;  %v2262_v0 = vmul.f32 %v1985_v2, %v3225_v32  ;;  %v2263_v51 = vmul.f32 %v1985_v2, %v3228_v37 }
 0x15c   : > { %v1989_v35 = vmul.f32 0.5, %v1988_v19  ;;  %v994_v60 = vpop.f32.mrf.mxu2  ;;  %v1083_v61 = vpop.f32.mrf.mxu3  ;;  %v1873_v10 = vadd.f32 %v1872_v9, %v1723_v44 }
 0x15d   : > { %2388 = vst [vmem:[%s3494_s7 + $0xc0] sm:$0xff] %v2260_v20  ;;  %v3705_v5 = vadd.f32 %v3085_v42, %v994_v60  ;;  %v3708_v46 = vadd.f32 %v3087_v43, %v1083_v61  ;;  %v818_v16 = vpop.f32.mrf.mxu0  ;;  %v907_v17 = vpop.f32.mrf.mxu1 }
 0x15e   : > { %2389 = vst [vmem:[%s3494_s7 + $0xc8] sm:$0xff] %v2261_v29  ;;  %v1990_v32 = vsub.f32 1.5, %v1989_v35  ;;  %1874 = vadd.xlane.f32.xlu2 %v1873_v10  ;;  %v3712_v37 = vadd.f32 %v3066_v33, %v818_v16  ;;  %v3718_v15 = vadd.f32 %v3068_v34, %v907_v17 }
 0x15f   : > { %v2855_v57 = vpop.eup %2854  ;;  %2390 = vst [vmem:[%s3494_s7 + $0xd0] sm:$0xff] %v2262_v0  ;;  %v1726_v53 = vmul.f32 %v3705_v5, %v3705_v5  ;;  %v1727_v2 = vmul.f32 %v3708_v46, %v3708_v46 }
 0x160   : > { %2391 = vst [vmem:[%s3494_s7 + $0xd8] sm:$0xff] %v2263_v51  ;;  %v1991_v25 = vmul.f32 %v2853_v56, %v1990_v32  ;;  %v1997_v9 = vmul.f32 %v2855_v57, %v3689_v62  ;;  %v3725_v19 = vpop.xlane.xlu0 %1804  ;;  %v1728_v0 = vmul.f32 %v3712_v37, %v3712_v37  ;;  %v1729_v60 = vmul.f32 %v3718_v15, %v3718_v15 }
 0x161   : > { %2856 = vrsqrt.f32 %v3725_v19  ;;  %v1877_v44 = vadd.f32 %v1876_v23, %v1726_v53  ;;  %vm2003_vm9 = vweird.f32 %v2855_v57  ;;  %vm2012_vm13 = vweird.f32 %v3725_v19 }
 0x162   : > { %v1995_v20 = vsel %vm1994_vm8, %v2853_v56, %v1991_v25  ;;  %v1998_v29 = vmul.f32 %v2855_v57, %v1997_v9  ;;  %v1881_v9 = vadd.f32 %v1729_v60, %v1728_v0  ;;  %vm2004_vm11 = vmor %vm2002_vm10, %vm2003_vm9 }
 0x163   : > { %v2264_v52 = vmul.f32 %v1995_v20, %v3235_v48  ;;  %v2265_v51 = vmul.f32 %v1995_v20, %v3238_v49  ;;  %v2266_v35 = vmul.f32 %v1995_v20, %v3246_v1  ;;  %v2267_v61 = vmul.f32 %v1995_v20, %v3249_v4 }
 0x164   : > { %v1999_v10 = vmul.f32 0.5, %v1998_v29  ;;  %v996_v23 = vpop.f32.mrf.mxu2  ;;  %v1085_v56 = vpop.f32.mrf.mxu3  ;;  %v1878_v16 = vadd.f32 %v1877_v44, %v1727_v2 }
 0x165   : > { %2392 = vst [vmem:[%s3494_s7 + $0xe0] sm:$0xff] %v2264_v52  ;;  %v3738_v17 = vadd.f32 %v3085_v42, %v996_v23  ;;  %v821_v48 = vpop.f32.mrf.mxu0  ;;  %v910_v49 = vpop.f32.mrf.mxu1  ;;  %v3742_v32 = vadd.f32 %v3087_v43, %v1085_v56 }
 0x166   : > { %2393 = vst [vmem:[%s3494_s7 + $0xe8] sm:$0xff] %v2265_v51  ;;  %v2000_v1 = vsub.f32 1.5, %v1999_v10  ;;  %1879 = vadd.xlane.f32.xlu0 %v1878_v16  ;;  %v3745_v4 = vadd.f32 %v3066_v33, %v821_v48  ;;  %v3748_v53 = vadd.f32 %v3068_v34, %v910_v49 }
 0x167   : > { %v2857_v25 = vpop.eup %2856  ;;  %2394 = vst [vmem:[%s3494_s7 + $0xf0] sm:$0xff] %v2266_v35  ;;  %v1730_v2 = vmul.f32 %v3738_v17, %v3738_v17  ;;  %v1731_v62 = vmul.f32 %v3742_v32, %v3742_v32 }
 0x168   : > { %2395 = vst [vmem:[%s3494_s7 + $0xf8] sm:$0xff] %v2267_v61  ;;  %v2001_v44 = vmul.f32 %v2855_v57, %v2000_v1  ;;  %v2007_v20 = vmul.f32 %v2857_v25, %v3725_v19  ;;  %v3756_v29 = vpop.xlane.xlu1 %1809  ;;  %v1732_v52 = vmul.f32 %v3745_v4, %v3745_v4  ;;  %v1733_v0 = vmul.f32 %v3748_v53, %v3748_v53 }
 0x169   : > { %2858 = vrsqrt.f32 %v3756_v29  ;;  %v1882_v51 = vadd.f32 %v1881_v9, %v1730_v2  ;;  %vm2013_vm12 = vweird.f32 %v2857_v25  ;;  %vm2022_vm0 = vweird.f32 %v3756_v29 }
 0x16a   : > { %v2005_v35 = vsel %vm2004_vm11, %v2855_v57, %v2001_v44  ;;  %v2008_v60 = vmul.f32 %v2857_v25, %v2007_v20  ;;  %v1886_v57 = vadd.f32 %v1733_v0, %v1732_v52  ;;  %vm2014_vm14 = vmor %vm2012_vm13, %vm2013_vm12 }
 0x16b   : > { %v2268_v61 = vmul.f32 %v2005_v35, %v3252_v7  ;;  %v2269_v10 = vmul.f32 %v2005_v35, %v3255_v8  ;;  %v2270_v23 = vmul.f32 %v2005_v35, %v3270_v27  ;;  %v2271_v56 = vmul.f32 %v2005_v35, %v3273_v28 }
 0x16c   : > { %v2009_v16 = vmul.f32 0.5, %v2008_v60  ;;  %v999_v48 = vpop.f32.mrf.mxu2  ;;  %v1088_v49 = vpop.f32.mrf.mxu3  ;;  %v1883_v1 = vadd.f32 %v1882_v51, %v1731_v62 }
 0x16d   : > { %2396 = vst [vmem:[%s3494_s7 + $0x100] sm:$0xff] %v2268_v61  ;;  %v3772_v9 = vadd.f32 %v3085_v42, %v999_v48  ;;  %v3775_v2 = vadd.f32 %v3087_v43, %v1088_v49  ;;  %v823_v7 = vpop.f32.mrf.mxu0  ;;  %v912_v8 = vpop.f32.mrf.mxu1  ;;  %v4193_v49 = vld [vmem:[#allocation3_spill] sm:$0xff] }
 0x16e   : > { %2397 = vst [vmem:[%s3494_s7 + $0x108] sm:$0xff] %v2269_v10  ;;  %v2010_v27 = vsub.f32 1.5, %v2009_v16  ;;  %1884 = vadd.xlane.f32.xlu1 %v1883_v1  ;;  %v3779_v28 = vadd.f32 %v3066_v33, %v823_v7  ;;  %v3785_v52 = vadd.f32 %v3068_v34, %v912_v8 }
 0x16f   : > { %v2859_v44 = vpop.eup %2858  ;;  %2398 = vst [vmem:[%s3494_s7 + $0x110] sm:$0xff] %v2270_v23  ;;  %v1734_v20 = vmul.f32 %v3772_v9, %v3772_v9  ;;  %v1735_v35 = vmul.f32 %v3775_v2, %v3775_v2 }
 0x170   : > { %4191 = vst [vmem:[#allocation39_spill] sm:$0xff] %v3779_v28  ;;  %v2011_v0 = vmul.f32 %v2857_v25, %v2010_v27  ;;  %v2017_v51 = vmul.f32 %v2859_v44, %v3756_v29  ;;  %v3792_v60 = vpop.xlane.xlu2 %1814  ;;  %v1736_v23 = vmul.f32 %v3779_v28, %v3779_v28  ;;  %v1737_v48 = vmul.f32 %v3785_v52, %v3785_v52 }
 0x171   : > { %4192 = vst [vmem:[#allocation40_spill] sm:$0xff] %v3785_v52  ;;  %2860 = vrsqrt.f32 %v3792_v60  ;;  %v1887_v62 = vadd.f32 %v1886_v57, %v1734_v20  ;;  %vm2023_vm15 = vweird.f32 %v2859_v44  ;;  %vm2032_vm3 = vweird.f32 %v3792_v60 }
 0x172   : > { %2399 = vst [vmem:[%s3494_s7 + $0x118] sm:$0xff] %v2271_v56  ;;  %v2015_v61 = vsel %vm2014_vm14, %v2857_v25, %v2011_v0  ;;  %v2018_v10 = vmul.f32 %v2859_v44, %v2017_v51  ;;  %vm2024_vm1 = vmor %vm2022_vm0, %vm2023_vm15 }
 0x173   : > { %v2272_v19 = vmul.f32 %v2015_v61, %v3280_v45  ;;  %v2273_v56 = vmul.f32 %v2015_v61, %v3283_v50  ;;  %v2274_v16 = vmul.f32 %v2015_v61, %v3291_v6  ;;  %v2275_v1 = vmul.f32 %v2015_v61, %v4193_v49 }
 0x174   : > { %v2019_v7 = vmul.f32 0.5, %v2018_v10  ;;  %v1001_v57 = vpop.f32.mrf.mxu2  ;;  %v1090_v25 = vpop.f32.mrf.mxu3  ;;  %v1888_v8 = vadd.f32 %v1887_v62, %v1735_v35  ;;  %v1891_v62 = vadd.f32 %v1737_v48, %v1736_v23 }
 0x175   : > { %2400 = vst [vmem:[%s3494_s7 + $0x120] sm:$0xff] %v2272_v19  ;;  %v3805_v27 = vadd.f32 %v3085_v42, %v1001_v57  ;;  %v826_v45 = vpop.f32.mrf.mxu0  ;;  %v915_v50 = vpop.f32.mrf.mxu1  ;;  %v3809_v20 = vadd.f32 %v3087_v43, %v1090_v25  ;;  %v4199_v25 = vld [vmem:[#allocation5_spill] sm:$0xff] }
 0x176   : > { %2401 = vst [vmem:[%s3494_s7 + $0x128] sm:$0xff] %v2273_v56  ;;  %v2020_v6 = vsub.f32 1.5, %v2019_v7  ;;  %1889 = vadd.xlane.f32.xlu2 %v1888_v8  ;;  %v3812_v0 = vadd.f32 %v3066_v33, %v826_v45  ;;  %v3815_v51 = vadd.f32 %v3068_v34, %v915_v50  ;;  %v4198_v7 = vld [vmem:[#allocation4_spill] sm:$0xff]  ;;  %v4200_v45 = vld [vmem:[#allocation6_spill] sm:$0xff] }
 0x177   : > { %4194 = vst [vmem:[#allocation3_spill] sm:$0xff] %v3805_v27  ;;  %v2861_v35 = vpop.eup %2860  ;;  %v1738_v61 = vmul.f32 %v3805_v27, %v3805_v27  ;;  %v1739_v29 = vmul.f32 %v3809_v20, %v3809_v20 }
 0x178   : > { %4195 = vst [vmem:[#allocation41_spill] sm:$0xff] %v3809_v20  ;;  %v2021_v10 = vmul.f32 %v2859_v44, %v2020_v6  ;;  %v2027_v19 = vmul.f32 %v2861_v35, %v3792_v60  ;;  %v3823_v56 = vpop.xlane.xlu0 %1819  ;;  %v1740_v49 = vmul.f32 %v3812_v0, %v3812_v0  ;;  %v1741_v23 = vmul.f32 %v3815_v51, %v3815_v51  ;;  %v4201_v6 = vld [vmem:[#allocation7_spill] sm:$0xff] }
 0x179   : > { %4196 = vst [vmem:[#allocation42_spill] sm:$0xff] %v3812_v0  ;;  %2862 = vrsqrt.f32 %v3823_v56  ;;  %vm2033_vm2 = vweird.f32 %v2861_v35  ;;  %vm2042_vm6 = vweird.f32 %v3823_v56 }
 0x17a   : > { %4197 = vst [vmem:[#allocation43_spill] sm:$0xff] %v3815_v51  ;;  %v2025_v48 = vsel %vm2024_vm1, %v2859_v44, %v2021_v10  ;;  %v1896_v44 = vadd.f32 %v1741_v23, %v1740_v49  ;;  %vm2034_vm4 = vmor %vm2032_vm3, %vm2033_vm2 }
 0x17b   : > { %2402 = vst [vmem:[%s3494_s7 + $0x130] sm:$0xff] %v2274_v16  ;;  %v1892_v16 = vadd.f32 %v1891_v62, %v1738_v61  ;;  %v2276_v57 = vmul.f32 %v2025_v48, %v4198_v7  ;;  %v2277_v8 = vmul.f32 %v2025_v48, %v4199_v25  ;;  %v2278_v50 = vmul.f32 %v2025_v48, %v4200_v45  ;;  %v4206_v25 = vld [vmem:[#allocation8_spill] sm:$0xff] }
 0x17c   : > { %2403 = vst [vmem:[%s3494_s7 + $0x138] sm:$0xff] %v2275_v1  ;;  %v2028_v1 = vmul.f32 %v2861_v35, %v2027_v19  ;;  %v2279_v0 = vmul.f32 %v2025_v48, %v4201_v6  ;;  %v1004_v51 = vpop.f32.mrf.mxu2  ;;  %v1093_v52 = vpop.f32.mrf.mxu3 }
 0x17d   : > { %v1893_v28 = vadd.f32 %v1892_v16, %v1739_v29  ;;  %2404 = vst [vmem:[%s3494_s7 + $0x140] sm:$0xff] %v2276_v57  ;;  %v3839_v62 = vadd.f32 %v3085_v42, %v1004_v51  ;;  %v3842_v61 = vadd.f32 %v3087_v43, %v1093_v52  ;;  %v828_v10 = vpop.f32.mrf.mxu0  ;;  %v917_v19 = vpop.f32.mrf.mxu1 }
 0x17e   : > { %v2029_v27 = vmul.f32 0.5, %v2028_v1  ;;  %2405 = vst [vmem:[%s3494_s7 + $0x148] sm:$0xff] %v2277_v8  ;;  %v3846_v48 = vadd.f32 %v3066_v33, %v828_v10  ;;  %v3852_v51 = vadd.f32 %v3068_v34, %v917_v19  ;;  %v4207_v8 = vld [vmem:[#allocation9_spill] sm:$0xff]  ;;  %v4209_v19 = vld [vmem:[#allocation11_spill] sm:$0xff] }
 0x17f   : > { %4202 = vst [vmem:[#allocation4_spill] sm:$0xff] %v3839_v62  ;;  %1894 = vadd.xlane.f32.xlu0 %v1893_v28  ;;  %v2863_v1 = vpop.eup %2862  ;;  %v1742_v49 = vmul.f32 %v3839_v62, %v3839_v62  ;;  %v1743_v28 = vmul.f32 %v3842_v61, %v3842_v61 }
 0x180   : > { %4203 = vst [vmem:[#allocation5_spill] sm:$0xff] %v3842_v61  ;;  %v2030_v7 = vsub.f32 1.5, %v2029_v27  ;;  %v2037_v23 = vmul.f32 %v2863_v1, %v3823_v56  ;;  %v3859_v27 = vpop.xlane.xlu1 %1824  ;;  %v1745_v10 = vmul.f32 %v3852_v51, %v3852_v51  ;;  %vm2043_vm5 = vweird.f32 %v2863_v1 }
 0x181   : > { %4204 = vst [vmem:[#allocation6_spill] sm:$0xff] %v3846_v48  ;;  %2864 = vrsqrt.f32 %v3859_v27  ;;  %v1897_v16 = vadd.f32 %v1896_v44, %v1742_v49  ;;  %vm2044_vm7 = vmor %vm2042_vm6, %vm2043_vm5  ;;  %vm2052_vm9 = vweird.f32 %v3859_v27 }
 0x182   : > { %2406 = vst [vmem:[%s3494_s7 + $0x150] sm:$0xff] %v2278_v50  ;;  %v2031_v52 = vmul.f32 %v2861_v35, %v2030_v7  ;;  %v2038_v57 = vmul.f32 %v2863_v1, %v2037_v23  ;;  %v4208_v50 = vld [vmem:[#allocation10_spill] sm:$0xff] }
 0x183   : > { %4205 = vst [vmem:[#allocation7_spill] sm:$0xff] %v3852_v51  ;;  %v1898_v49 = vadd.f32 %v1897_v16, %v1743_v28  ;;  %v4216_v51 = vld [vmem:[#allocation15_spill] sm:$0xff] }
 0x184   : > { %2407 = vst [vmem:[%s3494_s7 + $0x158] sm:$0xff] %v2279_v0  ;;  %v2035_v29 = vsel %vm2034_vm4, %v2861_v35, %v2031_v52  ;;  %v1744_v0 = vmul.f32 %v3846_v48, %v3846_v48  ;;  %v2039_v61 = vmul.f32 0.5, %v2038_v57  ;;  %v1006_v44 = vpop.f32.mrf.mxu2  ;;  %v1095_v35 = vpop.f32.mrf.mxu3 }
 0x185   : > { %v2280_v60 = vmul.f32 %v2035_v29, %v4206_v25  ;;  %v2281_v45 = vmul.f32 %v2035_v29, %v4207_v8  ;;  %v2282_v6 = vmul.f32 %v2035_v29, %v4208_v50  ;;  %v2283_v7 = vmul.f32 %v2035_v29, %v4209_v19  ;;  %v831_v23 = vpop.f32.mrf.mxu0  ;;  %v920_v25 = vpop.f32.mrf.mxu1  ;;  %1899 = vadd.xlane.f32.xlu1 %v1898_v49 }
 0x186   : > { %v3872_v52 = vadd.f32 %v3085_v42, %v1006_v44  ;;  %v2040_v8 = vsub.f32 1.5, %v2039_v61  ;;  %v3876_v50 = vadd.f32 %v3087_v43, %v1095_v35  ;;  %v3879_v29 = vadd.f32 %v3066_v33, %v831_v23  ;;  %v4213_v35 = vld [vmem:[#allocation12_spill] sm:$0xff]  ;;  %v4214_v23 = vld [vmem:[#allocation13_spill] sm:$0xff] }
 0x187   : > { %2408 = vst [vmem:[%s3494_s7 + $0x160] sm:$0xff] %v2280_v60  ;;  %v3882_v57 = vadd.f32 %v3068_v34, %v920_v25  ;;  %v2865_v28 = vpop.eup %2864  ;;  %v1901_v16 = vadd.f32 %v1745_v10, %v1744_v0 }
 0x188   : > { %4210 = vst [vmem:[#allocation8_spill] sm:$0xff] %v3872_v52  ;;  %v1746_v60 = vmul.f32 %v3872_v52, %v3872_v52  ;;  %v2041_v19 = vmul.f32 %v2863_v1, %v2040_v8  ;;  %v2047_v61 = vmul.f32 %v2865_v28, %v3859_v27  ;;  %v1748_v44 = vmul.f32 %v3879_v29, %v3879_v29  ;;  %v4215_v8 = vld [vmem:[#allocation14_spill] sm:$0xff] }
 0x189   : > { %2409 = vst [vmem:[%s3494_s7 + $0x168] sm:$0xff] %v2281_v45  ;;  %v3890_v45 = vpop.xlane.xlu2 %1829  ;;  %v1749_v0 = vmul.f32 %v3882_v57, %v3882_v57  ;;  %v1747_v56 = vmul.f32 %v3876_v50, %v3876_v50  ;;  %vm2053_vm8 = vweird.f32 %v2865_v28 }
 0x18a   : > { %4211 = vst [vmem:[#allocation9_spill] sm:$0xff] %v3879_v29  ;;  %2866 = vrsqrt.f32 %v3890_v45  ;;  %v2045_v10 = vsel %vm2044_vm7, %v2863_v1, %v2041_v19  ;;  %vm2054_vm10 = vmor %vm2052_vm9, %vm2053_vm8  ;;  %vm2062_vm12 = vweird.f32 %v3890_v45 }
 0x18b   : > { %4212 = vst [vmem:[#allocation10_spill] sm:$0xff] %v3882_v57  ;;  %v2284_v49 = vmul.f32 %v2045_v10, %v4213_v35  ;;  %v2285_v25 = vmul.f32 %v2045_v10, %v4214_v23  ;;  %v2286_v52 = vmul.f32 %v2045_v10, %v4215_v8  ;;  %v2287_v29 = vmul.f32 %v2045_v10, %v4216_v51  ;;  %v4220_v8 = vld [vmem:[#allocation19_spill] sm:$0xff] }
 0x18c   : > { %2410 = vst [vmem:[%s3494_s7 + $0x170] sm:$0xff] %v2282_v6  ;;  %v1902_v6 = vadd.f32 %v1901_v16, %v1746_v60  ;;  %v1009_v57 = vpop.f32.mrf.mxu2  ;;  %v1098_v62 = vpop.f32.mrf.mxu3  ;;  %v1906_v1 = vadd.f32 %v1749_v0, %v1748_v44 }
 0x18d   : > { %2411 = vst [vmem:[%s3494_s7 + $0x178] sm:$0xff] %v2283_v7  ;;  %v2048_v7 = vmul.f32 %v2865_v28, %v2047_v61  ;;  %v3906_v16 = vadd.f32 %v3085_v42, %v1009_v57  ;;  %v3909_v60 = vadd.f32 %v3087_v43, %v1098_v62  ;;  %v833_v19 = vpop.f32.mrf.mxu0  ;;  %v922_v61 = vpop.f32.mrf.mxu1 }
 0x18e   : > { %v1903_v20 = vadd.f32 %v1902_v6, %v1747_v56  ;;  %2412 = vst [vmem:[%s3494_s7 + $0x180] sm:$0xff] %v2284_v49  ;;  %v3913_v51 = vadd.f32 %v3066_v33, %v833_v19  ;;  %v3919_v57 = vadd.f32 %v3068_v34, %v922_v61  ;;  %v4218_v56 = vld [vmem:[#allocation17_spill] sm:$0xff]  ;;  %v4219_v49 = vld [vmem:[#allocation18_spill] sm:$0xff] }
 0x18f   : > { %v2049_v48 = vmul.f32 0.5, %v2048_v7  ;;  %2413 = vst [vmem:[%s3494_s7 + $0x188] sm:$0xff] %v2285_v25  ;;  %v1750_v44 = vmul.f32 %v3906_v16, %v3906_v16 }
 0x190   : > { %1904 = vadd.xlane.f32.xlu2 %v1903_v20  ;;  %v2867_v10 = vpop.eup %2866  ;;  %2414 = vst [vmem:[%s3494_s7 + $0x190] sm:$0xff] %v2286_v52  ;;  %v1751_v20 = vmul.f32 %v3909_v60, %v3909_v60  ;;  %v1752_v34 = vmul.f32 %v3913_v51, %v3913_v51  ;;  %v1753_v25 = vmul.f32 %v3919_v57, %v3919_v57 }
 0x191   : > { %v2050_v35 = vsub.f32 1.5, %v2049_v48  ;;  %2415 = vst [vmem:[%s3494_s7 + $0x198] sm:$0xff] %v2287_v29  ;;  %v2057_v0 = vmul.f32 %v2867_v10, %v3890_v45  ;;  %v1835_v48 = vpop.xlane.xlu0 %1834  ;;  %v1907_v33 = vadd.f32 %v1906_v1, %v1750_v44  ;;  %v4217_v29 = vld [vmem:[#allocation16_spill] sm:$0xff]  ;;  %vm2063_vm11 = vweird.f32 %v2867_v10  ;;  %v4224_v45 = vld [vmem:[#allocation23_spill] sm:$0xff] }
 0x192   : > { %2868 = vrsqrt.f32 %v1835_v48  ;;  %vm2064_vm13 = vmor %vm2062_vm12, %vm2063_vm11  ;;  %vm2072_vm15 = vweird.f32 %v1835_v48 }
 0x193   : > { %v2051_v62 = vmul.f32 %v2865_v28, %v2050_v35  ;;  %v2058_v6 = vmul.f32 %v2867_v10, %v2057_v0  ;;  %v1908_v35 = vadd.f32 %v1907_v33, %v1751_v20 }
 0x194   : > { %v1011_v1 = vpop.f32.mrf.mxu2 }
 0x195   : > { %v2055_v52 = vsel %vm2054_vm10, %v2865_v28, %v2051_v62  ;;  %v2059_v61 = vmul.f32 0.5, %v2058_v6  ;;  %v1100_v28 = vpop.f32.mrf.mxu3  ;;  %v3936_v44 = vadd.f32 %v3085_v42, %v1011_v1  ;;  %1909 = vadd.xlane.f32.xlu0 %v1908_v35 }
 0x196   : > { %v2288_v7 = vmul.f32 %v2055_v52, %v4217_v29  ;;  %v2289_v27 = vmul.f32 %v2055_v52, %v4218_v56  ;;  %v2290_v23 = vmul.f32 %v2055_v52, %v4219_v49  ;;  %v2291_v19 = vmul.f32 %v2055_v52, %v4220_v8  ;;  %v4223_v8 = vld [vmem:[#allocation22_spill] sm:$0xff] }
 0x197   : > { %v2060_v62 = vsub.f32 1.5, %v2059_v61  ;;  %v3940_v0 = vadd.f32 %v3087_v43, %v1100_v28  ;;  %v1911_v56 = vadd.f32 %v1753_v25, %v1752_v34  ;;  %v1754_v52 = vmul.f32 %v3936_v44, %v3936_v44 }
 0x198   : > { %2416 = vst [vmem:[%s3494_s7 + $0x1a0] sm:$0xff] %v2288_v7  ;;  %v2869_v29 = vpop.eup %2868  ;;  %v1840_v20 = vpop.xlane.xlu1 %1839 }
 0x199   : > { %2417 = vst [vmem:[%s3494_s7 + $0x1a8] sm:$0xff] %v2289_v27  ;;  %v2061_v6 = vmul.f32 %v2867_v10, %v2060_v62  ;;  %v2067_v42 = vmul.f32 %v2869_v29, %v1835_v48  ;;  %2870 = vrsqrt.f32 %v1840_v20  ;;  %v1912_v33 = vadd.f32 %v1911_v56, %v1754_v52  ;;  %v4221_v27 = vld [vmem:[#allocation20_spill] sm:$0xff] }
 0x19a   : > { %2418 = vst [vmem:[%s3494_s7 + $0x1b0] sm:$0xff] %v2290_v23  ;;  %v1755_v34 = vmul.f32 %v3940_v0, %v3940_v0  ;;  %v4222_v23 = vld [vmem:[#allocation21_spill] sm:$0xff]  ;;  %vm2073_vm14 = vweird.f32 %v2869_v29  ;;  %vm2082_vm2 = vweird.f32 %v1840_v20 }
 0x19b   : > { %2419 = vst [vmem:[%s3494_s7 + $0x1b8] sm:$0xff] %v2291_v19  ;;  %v2065_v43 = vsel %vm2064_vm13, %v2867_v10, %v2061_v6  ;;  %v2068_v7 = vmul.f32 %v2869_v29, %v2067_v42  ;;  %vm2074_vm0 = vmor %vm2072_vm15, %vm2073_vm14 }
 0x19c   : > { %v2292_v49 = vmul.f32 %v2065_v43, %v4221_v27  ;;  %v2293_v25 = vmul.f32 %v2065_v43, %v4222_v23  ;;  %v2294_v19 = vmul.f32 %v2065_v43, %v4223_v8  ;;  %v2295_v61 = vmul.f32 %v2065_v43, %v4224_v45  ;;  %v4227_v27 = vld [vmem:[#allocation26_spill] sm:$0xff]  ;;  %v4228_v23 = vld [vmem:[#allocation27_spill] sm:$0xff] }
 0x19d   : > { %v2069_v1 = vmul.f32 0.5, %v2068_v7  ;;  %v1913_v28 = vadd.f32 %v1912_v33, %v1755_v34  ;;  %v4225_v33 = vld [vmem:[#allocation24_spill] sm:$0xff]  ;;  %v4226_v7 = vld [vmem:[#allocation25_spill] sm:$0xff] }
 0x19e   : > { %2420 = vst [vmem:[%s3494_s7 + $0x1c0] sm:$0xff] %v2292_v49 }
 0x19f   : > { %2421 = vst [vmem:[%s3494_s7 + $0x1c8] sm:$0xff] %v2293_v25  ;;  %v2070_v35 = vsub.f32 1.5, %v2069_v1  ;;  %1914 = vadd.xlane.f32.xlu1 %v1913_v28  ;;  %v2871_v10 = vpop.eup %2870  ;;  %v4229_v28 = vld [vmem:[#allocation28_spill] sm:$0xff] }
 0x1a0   : > { %2422 = vst [vmem:[%s3494_s7 + $0x1d0] sm:$0xff] %v2294_v19  ;;  %v2077_v56 = vmul.f32 %v2871_v10, %v1840_v20  ;;  %vm2083_vm1 = vweird.f32 %v2871_v10 }
 0x1a1   : > { %2423 = vst [vmem:[%s3494_s7 + $0x1d8] sm:$0xff] %v2295_v61  ;;  %v2071_v62 = vmul.f32 %v2869_v29, %v2070_v35  ;;  %v1845_v52 = vpop.xlane.xlu2 %1844  ;;  %vm2084_vm3 = vmor %vm2082_vm2, %vm2083_vm1 }
 0x1a2   : > { %v2078_v42 = vmul.f32 %v2871_v10, %v2077_v56  ;;  %2872 = vrsqrt.f32 %v1845_v52  ;;  %vm2092_vm5 = vweird.f32 %v1845_v52 }
 0x1a3   : > { %v2075_v6 = vsel %vm2074_vm0, %v2869_v29, %v2071_v62  ;;  %v4230_v62 = vld [vmem:[#allocation29_spill] sm:$0xff] }
 0x1a4   : > { %v2296_v43 = vmul.f32 %v2075_v6, %v4225_v33  ;;  %v2297_v34 = vmul.f32 %v2075_v6, %v4226_v7  ;;  %v2298_v49 = vmul.f32 %v2075_v6, %v4227_v27  ;;  %v2299_v25 = vmul.f32 %v2075_v6, %v4228_v23  ;;  %v4231_v6 = vld [vmem:[#allocation30_spill] sm:$0xff]  ;;  %v4232_v33 = vld [vmem:[#allocation31_spill] sm:$0xff] }
 0x1a5   : > { %v2079_v8 = vmul.f32 0.5, %v2078_v42 }
 0x1a6   : > { %2424 = vst [vmem:[%s3494_s7 + $0x1e0] sm:$0xff] %v2296_v43 }
 0x1a7   : > { %2425 = vst [vmem:[%s3494_s7 + $0x1e8] sm:$0xff] %v2297_v34  ;;  %v2080_v48 = vsub.f32 1.5, %v2079_v8 }
 0x1a8   : > { %2426 = vst [vmem:[%s3494_s7 + $0x1f0] sm:$0xff] %v2298_v49  ;;  %v2873_v19 = vpop.eup %2872 }
 0x1a9   : > { %2427 = vst [vmem:[%s3494_s7 + $0x1f8] sm:$0xff] %v2299_v25  ;;  %v2081_v29 = vmul.f32 %v2871_v10, %v2080_v48  ;;  %v2087_v45 = vmul.f32 %v2873_v19, %v1845_v52  ;;  %v1850_v61 = vpop.xlane.xlu0 %1849  ;;  %vm2093_vm4 = vweird.f32 %v2873_v19  ;;  %v4233_v48 = vld [vmem:[#allocation32_spill] sm:$0xff] }
 0x1aa   : > { %2874 = vrsqrt.f32 %v1850_v61  ;;  %vm2094_vm6 = vmor %vm2092_vm5, %vm2093_vm4  ;;  %vm2102_vm8 = vweird.f32 %v1850_v61 }
 0x1ab   : > { %v2085_v1 = vsel %vm2084_vm3, %v2871_v10, %v2081_v29  ;;  %v2088_v7 = vmul.f32 %v2873_v19, %v2087_v45  ;;  %v4234_v45 = vld [vmem:[#allocation33_spill] sm:$0xff] }
 0x1ac   : > { %v2300_v35 = vmul.f32 %v2085_v1, %v4229_v28  ;;  %v2301_v56 = vmul.f32 %v2085_v1, %v4230_v62  ;;  %v2302_v42 = vmul.f32 %v2085_v1, %v4231_v6  ;;  %v2303_v43 = vmul.f32 %v2085_v1, %v4232_v33  ;;  %v4235_v28 = vld [vmem:[#allocation34_spill] sm:$0xff] }
 0x1ad   : > { %v2089_v34 = vmul.f32 0.5, %v2088_v7  ;;  %v4236_v7 = vld [vmem:[#allocation35_spill] sm:$0xff] }
 0x1ae   : > { %2428 = vst [vmem:[%s3494_s7 + $0x200] sm:$0xff] %v2300_v35 }
 0x1af   : > { %2429 = vst [vmem:[%s3494_s7 + $0x208] sm:$0xff] %v2301_v56  ;;  %v2090_v27 = vsub.f32 1.5, %v2089_v34 }
 0x1b0   : > { %2430 = vst [vmem:[%s3494_s7 + $0x210] sm:$0xff] %v2302_v42  ;;  %v2875_v20 = vpop.eup %2874 }
 0x1b1   : > { %2431 = vst [vmem:[%s3494_s7 + $0x218] sm:$0xff] %v2303_v43  ;;  %v2097_v10 = vmul.f32 %v2875_v20, %v1850_v61  ;;  %v1855_v49 = vpop.xlane.xlu1 %1854  ;;  %v2091_v23 = vmul.f32 %v2873_v19, %v2090_v27  ;;  %vm2103_vm7 = vweird.f32 %v2875_v20  ;;  %v4237_v27 = vld [vmem:[#allocation36_spill] sm:$0xff] }
 0x1b2   : > { %2876 = vrsqrt.f32 %v1855_v49  ;;  %vm2104_vm9 = vmor %vm2102_vm8, %vm2103_vm7  ;;  %vm2112_vm11 = vweird.f32 %v1855_v49 }
 0x1b3   : > { %v2098_v25 = vmul.f32 %v2875_v20, %v2097_v10  ;;  %v2095_v8 = vsel %vm2094_vm6, %v2873_v19, %v2091_v23 }
 0x1b4   : > { %v2304_v29 = vmul.f32 %v2095_v8, %v4233_v48  ;;  %v2305_v1 = vmul.f32 %v2095_v8, %v4234_v45  ;;  %v2306_v35 = vmul.f32 %v2095_v8, %v4235_v28  ;;  %v2307_v62 = vmul.f32 %v2095_v8, %v3471_v59 }
 0x1b5   : > { %v2099_v56 = vmul.f32 0.5, %v2098_v25 }
 0x1b6   : > { %2432 = vst [vmem:[%s3494_s7 + $0x220] sm:$0xff] %v2304_v29 }
 0x1b7   : > { %2433 = vst [vmem:[%s3494_s7 + $0x228] sm:$0xff] %v2305_v1  ;;  %v2100_v42 = vsub.f32 1.5, %v2099_v56 }
 0x1b8   : > { %v2877_v6 = vpop.eup %2876  ;;  %2434 = vst [vmem:[%s3494_s7 + $0x230] sm:$0xff] %v2306_v35 }
 0x1b9   : > { %v2107_v52 = vmul.f32 %v2877_v6, %v1855_v49  ;;  %v1860_v33 = vpop.xlane.xlu2 %1859  ;;  %2435 = vst [vmem:[%s3494_s7 + $0x238] sm:$0xff] %v2307_v62  ;;  %v2101_v19 = vmul.f32 %v2875_v20, %v2100_v42  ;;  %vm2113_vm10 = vweird.f32 %v2877_v6 }
 0x1ba   : > { %2878 = vrsqrt.f32 %v1860_v33  ;;  %vm2114_vm12 = vmor %vm2112_vm11, %vm2113_vm10  ;;  %vm2122_vm14 = vweird.f32 %v1860_v33 }
 0x1bb   : > { %v2108_v43 = vmul.f32 %v2877_v6, %v2107_v52  ;;  %v2105_v59 = vsel %vm2104_vm9, %v2875_v20, %v2101_v19 }
 0x1bc   : > { %v2308_v34 = vmul.f32 %v2105_v59, %v4236_v7  ;;  %v2309_v10 = vmul.f32 %v2105_v59, %v4237_v27  ;;  %v2310_v23 = vmul.f32 %v2105_v59, %v3504_v41  ;;  %v2311_v25 = vmul.f32 %v2105_v59, %v3507_v24 }
 0x1bd   : > { %v2109_v8 = vmul.f32 0.5, %v2108_v43  ;;  %v4239_v43 = vld [vmem:[#allocation38_spill] sm:$0xff] }
 0x1be   : > { %2436 = vst [vmem:[%s3494_s7 + $0x240] sm:$0xff] %v2308_v34 }
 0x1bf   : > { %2437 = vst [vmem:[%s3494_s7 + $0x248] sm:$0xff] %v2309_v10  ;;  %v2110_v29 = vsub.f32 1.5, %v2109_v8 }
 0x1c0   : > { %v2879_v48 = vpop.eup %2878  ;;  %2438 = vst [vmem:[%s3494_s7 + $0x250] sm:$0xff] %v2310_v23 }
 0x1c1   : > { %v2117_v61 = vmul.f32 %v2879_v48, %v1860_v33  ;;  %v1865_v45 = vpop.xlane.xlu0 %1864  ;;  %2439 = vst [vmem:[%s3494_s7 + $0x258] sm:$0xff] %v2311_v25  ;;  %v2111_v20 = vmul.f32 %v2877_v6, %v2110_v29  ;;  %vm2123_vm13 = vweird.f32 %v2879_v48 }
 0x1c2   : > { %2880 = vrsqrt.f32 %v1865_v45  ;;  %vm2124_vm15 = vmor %vm2122_vm14, %vm2123_vm13  ;;  %vm2132_vm1 = vweird.f32 %v1865_v45 }
 0x1c3   : > { %v2118_v41 = vmul.f32 %v2879_v48, %v2117_v61  ;;  %v2115_v24 = vsel %vm2114_vm12, %v2877_v6, %v2111_v20 }
 0x1c4   : > { %v2312_v1 = vmul.f32 %v2115_v24, %v3511_v47  ;;  %v2313_v28 = vmul.f32 %v2115_v24, %v3517_v31  ;;  %v2314_v35 = vmul.f32 %v2115_v24, %v3537_v21  ;;  %v2315_v62 = vmul.f32 %v2115_v24, %v3541_v58  ;;  %v4238_v21 = vld [vmem:[#allocation37_spill] sm:$0xff] }
 0x1c5   : > { %v2119_v56 = vmul.f32 0.5, %v2118_v41 }
 0x1c6   : > { %2440 = vst [vmem:[%s3494_s7 + $0x260] sm:$0xff] %v2312_v1 }
 0x1c7   : > { %2441 = vst [vmem:[%s3494_s7 + $0x268] sm:$0xff] %v2313_v28  ;;  %v2120_v52 = vsub.f32 1.5, %v2119_v56 }
 0x1c8   : > { %v2881_v42 = vpop.eup %2880  ;;  %2442 = vst [vmem:[%s3494_s7 + $0x270] sm:$0xff] %v2314_v35 }
 0x1c9   : > { %v2127_v49 = vmul.f32 %v2881_v42, %v1865_v45  ;;  %v1870_v19 = vpop.xlane.xlu1 %1869  ;;  %2443 = vst [vmem:[%s3494_s7 + $0x278] sm:$0xff] %v2315_v62  ;;  %v2121_v6 = vmul.f32 %v2879_v48, %v2120_v52  ;;  %vm2133_vm0 = vweird.f32 %v2881_v42 }
 0x1ca   : > { %2882 = vrsqrt.f32 %v1870_v19  ;;  %vm2134_vm2 = vmor %vm2132_vm1, %vm2133_vm0  ;;  %vm2142_vm4 = vweird.f32 %v1870_v19 }
 0x1cb   : > { %v2128_v47 = vmul.f32 %v2881_v42, %v2127_v49  ;;  %v2125_v31 = vsel %vm2124_vm15, %v2879_v48, %v2121_v6 }
 0x1cc   : > { %v2316_v58 = vmul.f32 %v2125_v31, %v4238_v21  ;;  %v2317_v59 = vmul.f32 %v2125_v31, %v4239_v43  ;;  %v2318_v7 = vmul.f32 %v2125_v31, %v3571_v22  ;;  %v2319_v34 = vmul.f32 %v2125_v31, %v3574_v12 }
 0x1cd   : > { %v2129_v27 = vmul.f32 0.5, %v2128_v47 }
 0x1ce   : > { %2444 = vst [vmem:[%s3494_s7 + $0x280] sm:$0xff] %v2316_v58 }
 0x1cf   : > { %2445 = vst [vmem:[%s3494_s7 + $0x288] sm:$0xff] %v2317_v59  ;;  %v2130_v23 = vsub.f32 1.5, %v2129_v27 }
 0x1d0   : > { %v2883_v10 = vpop.eup %2882  ;;  %2446 = vst [vmem:[%s3494_s7 + $0x290] sm:$0xff] %v2318_v7 }
 0x1d1   : > { %v2137_v33 = vmul.f32 %v2883_v10, %v1870_v19  ;;  %v1875_v25 = vpop.xlane.xlu2 %1874  ;;  %2447 = vst [vmem:[%s3494_s7 + $0x298] sm:$0xff] %v2319_v34  ;;  %v2131_v8 = vmul.f32 %v2881_v42, %v2130_v23  ;;  %vm2143_vm3 = vweird.f32 %v2883_v10 }
 0x1d2   : > { %2884 = vrsqrt.f32 %v1875_v25  ;;  %vm2144_vm5 = vmor %vm2142_vm4, %vm2143_vm3  ;;  %vm2152_vm7 = vweird.f32 %v1875_v25 }
 0x1d3   : > { %v2138_v22 = vmul.f32 %v2883_v10, %v2137_v33  ;;  %v2135_v12 = vsel %vm2134_vm2, %v2881_v42, %v2131_v8 }
 0x1d4   : > { %v2320_v48 = vmul.f32 %v2135_v12, %v3578_v14  ;;  %v2321_v29 = vmul.f32 %v2135_v12, %v3584_v39  ;;  %v2322_v61 = vmul.f32 %v2135_v12, %v3604_v3  ;;  %v2323_v20 = vmul.f32 %v2135_v12, %v3608_v13 }
 0x1d5   : > { %v2139_v41 = vmul.f32 0.5, %v2138_v22 }
 0x1d6   : > { %2448 = vst [vmem:[%s3494_s7 + $0x2a0] sm:$0xff] %v2320_v48 }
 0x1d7   : > { %2449 = vst [vmem:[%s3494_s7 + $0x2a8] sm:$0xff] %v2321_v29  ;;  %v2140_v1 = vsub.f32 1.5, %v2139_v41 }
 0x1d8   : > { %v2885_v24 = vpop.eup %2884  ;;  %2450 = vst [vmem:[%s3494_s7 + $0x2b0] sm:$0xff] %v2322_v61 }
 0x1d9   : > { %v2147_v45 = vmul.f32 %v2885_v24, %v1875_v25  ;;  %v1880_v28 = vpop.xlane.xlu0 %1879  ;;  %2451 = vst [vmem:[%s3494_s7 + $0x2b8] sm:$0xff] %v2323_v20  ;;  %v2141_v35 = vmul.f32 %v2883_v10, %v2140_v1  ;;  %vm2153_vm6 = vweird.f32 %v2885_v24 }
 0x1da   : > { %2886 = vrsqrt.f32 %v1880_v28  ;;  %vm2154_vm8 = vmor %vm2152_vm7, %vm2153_vm6  ;;  %vm2162_vm10 = vweird.f32 %v1880_v28 }
 0x1db   : > { %v2148_v14 = vmul.f32 %v2885_v24, %v2147_v45  ;;  %v2145_v39 = vsel %vm2144_vm5, %v2883_v10, %v2141_v35 }
 0x1dc   : > { %v2324_v3 = vmul.f32 %v2145_v39, %v3611_v30  ;;  %v2325_v13 = vmul.f32 %v2145_v39, %v3614_v26  ;;  %v2326_v62 = vmul.f32 %v2145_v39, %v3638_v40  ;;  %v2327_v56 = vmul.f32 %v2145_v39, %v3641_v63 }
 0x1dd   : > { %v2149_v42 = vmul.f32 0.5, %v2148_v14 }
 0x1de   : > { %2452 = vst [vmem:[%s3494_s7 + $0x2c0] sm:$0xff] %v2324_v3 }
 0x1df   : > { %2453 = vst [vmem:[%s3494_s7 + $0x2c8] sm:$0xff] %v2325_v13  ;;  %v2150_v49 = vsub.f32 1.5, %v2149_v42 }
 0x1e0   : > { %v2887_v52 = vpop.eup %2886  ;;  %2454 = vst [vmem:[%s3494_s7 + $0x2d0] sm:$0xff] %v2326_v62 }
 0x1e1   : > { %v2157_v19 = vmul.f32 %v2887_v52, %v1880_v28  ;;  %v1885_v6 = vpop.xlane.xlu1 %1884  ;;  %2455 = vst [vmem:[%s3494_s7 + $0x2d8] sm:$0xff] %v2327_v56  ;;  %v2151_v47 = vmul.f32 %v2885_v24, %v2150_v49  ;;  %vm2163_vm9 = vweird.f32 %v2887_v52 }
 0x1e2   : > { %2888 = vrsqrt.f32 %v1885_v6  ;;  %vm2164_vm11 = vmor %vm2162_vm10, %vm2163_vm9  ;;  %vm2172_vm13 = vweird.f32 %v1885_v6 }
 0x1e3   : > { %v2158_v30 = vmul.f32 %v2887_v52, %v2157_v19  ;;  %v2155_v26 = vsel %vm2154_vm8, %v2885_v24, %v2151_v47  ;;  %v4242_v19 = vld [vmem:[#allocation3_spill] sm:$0xff]  ;;  %v4243_v47 = vld [vmem:[#allocation41_spill] sm:$0xff] }
 0x1e4   : > { %v2328_v40 = vmul.f32 %v2155_v26, %v3645_v55  ;;  %v2329_v63 = vmul.f32 %v2155_v26, %v3651_v18  ;;  %v2330_v31 = vmul.f32 %v2155_v26, %v3671_v36  ;;  %v2331_v21 = vmul.f32 %v2155_v26, %v3675_v54 }
 0x1e5   : > { %v2159_v58 = vmul.f32 0.5, %v2158_v30 }
 0x1e6   : > { %2456 = vst [vmem:[%s3494_s7 + $0x2e0] sm:$0xff] %v2328_v40 }
 0x1e7   : > { %2457 = vst [vmem:[%s3494_s7 + $0x2e8] sm:$0xff] %v2329_v63  ;;  %v2160_v59 = vsub.f32 1.5, %v2159_v58 }
 0x1e8   : > { %v2889_v43 = vpop.eup %2888  ;;  %2458 = vst [vmem:[%s3494_s7 + $0x2f0] sm:$0xff] %v2330_v31 }
 0x1e9   : > { %v2167_v7 = vmul.f32 %v2889_v43, %v1885_v6  ;;  %v1890_v34 = vpop.xlane.xlu2 %1889  ;;  %2459 = vst [vmem:[%s3494_s7 + $0x2f8] sm:$0xff] %v2331_v21  ;;  %v2161_v27 = vmul.f32 %v2887_v52, %v2160_v59  ;;  %vm2173_vm12 = vweird.f32 %v2889_v43 }
 0x1ea   : > { %2890 = vrsqrt.f32 %v1890_v34  ;;  %vm2174_vm14 = vmor %vm2172_vm13, %vm2173_vm12  ;;  %vm2182_vm0 = vweird.f32 %v1890_v34 }
 0x1eb   : > { %v2168_v55 = vmul.f32 %v2889_v43, %v2167_v7  ;;  %v2165_v18 = vsel %vm2164_vm11, %v2887_v52, %v2161_v27  ;;  %v4241_v52 = vld [vmem:[#allocation40_spill] sm:$0xff]  ;;  %v4244_v7 = vld [vmem:[#allocation42_spill] sm:$0xff]  ;;  %v4245_v27 = vld [vmem:[#allocation43_spill] sm:$0xff] }
 0x1ec   : > { %v2332_v36 = vmul.f32 %v2165_v18, %v3678_v11  ;;  %v2333_v54 = vmul.f32 %v2165_v18, %v3681_v38  ;;  %v2334_v10 = vmul.f32 %v2165_v18, %v3705_v5  ;;  %v2335_v23 = vmul.f32 %v2165_v18, %v3708_v46  ;;  %v4246_v18 = vld [vmem:[#allocation4_spill] sm:$0xff] }
 0x1ed   : > { %v2169_v33 = vmul.f32 0.5, %v2168_v55 }
 0x1ee   : > { %2460 = vst [vmem:[%s3494_s7 + $0x300] sm:$0xff] %v2332_v36 }
 0x1ef   : > { %2461 = vst [vmem:[%s3494_s7 + $0x308] sm:$0xff] %v2333_v54  ;;  %v2170_v8 = vsub.f32 1.5, %v2169_v33  ;;  %v4247_v54 = vld [vmem:[#allocation5_spill] sm:$0xff] }
 0x1f0   : > { %v2891_v25 = vpop.eup %2890  ;;  %2462 = vst [vmem:[%s3494_s7 + $0x310] sm:$0xff] %v2334_v10 }
 0x1f1   : > { %v2177_v22 = vmul.f32 %v2891_v25, %v1890_v34  ;;  %2463 = vst [vmem:[%s3494_s7 + $0x318] sm:$0xff] %v2335_v23  ;;  %v2171_v48 = vmul.f32 %v2889_v43, %v2170_v8  ;;  %vm2183_vm15 = vweird.f32 %v2891_v25 }
 0x1f2   : > { %v1895_v12 = vpop.xlane.xlu0 %1894  ;;  %vm2184_vm1 = vmor %vm2182_vm0, %vm2183_vm15 }
 0x1f3   : > { %2892 = vrsqrt.f32 %v1895_v12  ;;  %v2178_v11 = vmul.f32 %v2891_v25, %v2177_v22  ;;  %v2175_v38 = vsel %vm2174_vm14, %v2889_v43, %v2171_v48  ;;  %vm2192_vm3 = vweird.f32 %v1895_v12 }
 0x1f4   : > { %v2336_v5 = vmul.f32 %v2175_v38, %v3712_v37  ;;  %v2337_v46 = vmul.f32 %v2175_v38, %v3718_v15  ;;  %v2338_v29 = vmul.f32 %v2175_v38, %v3738_v17  ;;  %v2339_v61 = vmul.f32 %v2175_v38, %v3742_v32  ;;  %v4248_v38 = vld [vmem:[#allocation6_spill] sm:$0xff] }
 0x1f5   : > { %v2179_v20 = vmul.f32 0.5, %v2178_v11 }
 0x1f6   : > { %2464 = vst [vmem:[%s3494_s7 + $0x320] sm:$0xff] %v2336_v5 }
 0x1f7   : > { %2465 = vst [vmem:[%s3494_s7 + $0x328] sm:$0xff] %v2337_v46  ;;  %v2180_v24 = vsub.f32 1.5, %v2179_v20  ;;  %v4249_v46 = vld [vmem:[#allocation7_spill] sm:$0xff] }
 0x1f8   : > { %2466 = vst [vmem:[%s3494_s7 + $0x330] sm:$0xff] %v2338_v29  ;;  %v1900_v45 = vpop.xlane.xlu1 %1899 }
 0x1f9   : > { %v2893_v41 = vpop.eup %2892  ;;  %2467 = vst [vmem:[%s3494_s7 + $0x338] sm:$0xff] %v2339_v61  ;;  %v2181_v28 = vmul.f32 %v2891_v25, %v2180_v24  ;;  %2894 = vrsqrt.f32 %v1900_v45  ;;  %vm2202_vm6 = vweird.f32 %v1900_v45  ;;  %v4250_v61 = vld [vmem:[#allocation8_spill] sm:$0xff] }
 0x1fa   : > { %v2187_v1 = vmul.f32 %v2893_v41, %v1895_v12  ;;  %vm2193_vm2 = vweird.f32 %v2893_v41 }
 0x1fb   : > { %v2185_v15 = vsel %vm2184_vm1, %v2891_v25, %v2181_v28  ;;  %vm2194_vm4 = vmor %vm2192_vm3, %vm2193_vm2 }
 0x1fc   : > { %v2188_v37 = vmul.f32 %v2893_v41, %v2187_v1  ;;  %v2340_v17 = vmul.f32 %v2185_v15, %v3745_v4  ;;  %v2341_v32 = vmul.f32 %v2185_v15, %v3748_v53  ;;  %v2342_v35 = vmul.f32 %v2185_v15, %v3772_v9  ;;  %v4240_v9 = vld [vmem:[#allocation39_spill] sm:$0xff] }
 0x1fd   : > { %v2343_v14 = vmul.f32 %v2185_v15, %v3775_v2 }
 0x1fe   : > { %v2189_v39 = vmul.f32 0.5, %v2188_v37  ;;  %2468 = vst [vmem:[%s3494_s7 + $0x340] sm:$0xff] %v2340_v17 }
 0x1ff   : > { %v2895_v3 = vpop.eup %2894  ;;  %2469 = vst [vmem:[%s3494_s7 + $0x348] sm:$0xff] %v2341_v32  ;;  %v4251_v32 = vld [vmem:[#allocation9_spill] sm:$0xff] }
 0x200   : > { %v2190_v13 = vsub.f32 1.5, %v2189_v39  ;;  %2470 = vst [vmem:[%s3494_s7 + $0x350] sm:$0xff] %v2342_v35  ;;  %v2197_v62 = vmul.f32 %v2895_v3, %v1900_v45  ;;  %vm2203_vm5 = vweird.f32 %v2895_v3  ;;  %v4252_v35 = vld [vmem:[#allocation10_spill] sm:$0xff] }
 0x201   : > { %2471 = vst [vmem:[%s3494_s7 + $0x358] sm:$0xff] %v2343_v14  ;;  %vm2204_vm7 = vmor %vm2202_vm6, %vm2203_vm5 }
 0x202   : > { %v2191_v42 = vmul.f32 %v2893_v41, %v2190_v13  ;;  %v2198_v4 = vmul.f32 %v2895_v3, %v2197_v62 }
 0x203   : > { %v1905_v56 = vpop.xlane.xlu2 %1904 }
 0x204   : > { %2896 = vrsqrt.f32 %v1905_v56  ;;  %v2195_v53 = vsel %vm2194_vm4, %v2893_v41, %v2191_v42  ;;  %v2199_v26 = vmul.f32 0.5, %v2198_v4  ;;  %vm2212_vm9 = vweird.f32 %v1905_v56 }
 0x205   : > { %v2344_v2 = vmul.f32 %v2195_v53, %v4240_v9  ;;  %v2345_v49 = vmul.f32 %v2195_v53, %v4241_v52  ;;  %v2346_v6 = vmul.f32 %v2195_v53, %v4242_v19  ;;  %v2347_v30 = vmul.f32 %v2195_v53, %v4243_v47 }
 0x206   : > { %v2200_v63 = vsub.f32 1.5, %v2199_v26 }
 0x207   : > { %2472 = vst [vmem:[%s3494_s7 + $0x360] sm:$0xff] %v2344_v2 }
 0x208   : > { %2473 = vst [vmem:[%s3494_s7 + $0x368] sm:$0xff] %v2345_v49  ;;  %v1910_v21 = vpop.xlane.xlu0 %1909  ;;  %v2201_v58 = vmul.f32 %v2895_v3, %v2200_v63 }
 0x209   : > { %2474 = vst [vmem:[%s3494_s7 + $0x370] sm:$0xff] %v2346_v6  ;;  %2898 = vrsqrt.f32 %v1910_v21  ;;  %vm2222_vm12 = vweird.f32 %v1910_v21 }
 0x20a   : > { %v2897_v40 = vpop.eup %2896  ;;  %2475 = vst [vmem:[%s3494_s7 + $0x378] sm:$0xff] %v2347_v30  ;;  %v2205_v59 = vsel %vm2204_vm7, %v2895_v3, %v2201_v58 }
 0x20b   : > { %v2207_v31 = vmul.f32 %v2897_v40, %v1905_v56  ;;  %v2348_v34 = vmul.f32 %v2205_v59, %v4244_v7  ;;  %v2349_v55 = vmul.f32 %v2205_v59, %v4245_v27  ;;  %v2350_v36 = vmul.f32 %v2205_v59, %v4246_v18 }
 0x20c   : > { %v2351_v10 = vmul.f32 %v2205_v59, %v4247_v54  ;;  %vm2213_vm8 = vweird.f32 %v2897_v40 }
 0x20d   : > { %v2208_v43 = vmul.f32 %v2897_v40, %v2207_v31  ;;  %2476 = vst [vmem:[%s3494_s7 + $0x380] sm:$0xff] %v2348_v34  ;;  %vm2214_vm10 = vmor %vm2212_vm9, %vm2213_vm8 }
 0x20e   : > { %2477 = vst [vmem:[%s3494_s7 + $0x388] sm:$0xff] %v2349_v55 }
 0x20f   : > { %v2209_v23 = vmul.f32 0.5, %v2208_v43  ;;  %v2899_v33 = vpop.eup %2898  ;;  %2478 = vst [vmem:[%s3494_s7 + $0x390] sm:$0xff] %v2350_v36 }
 0x210   : > { %v2217_v8 = vmul.f32 %v2899_v33, %v1910_v21  ;;  %2479 = vst [vmem:[%s3494_s7 + $0x398] sm:$0xff] %v2351_v10  ;;  %vm2223_vm11 = vweird.f32 %v2899_v33 }
 0x211   : > { %v2210_v25 = vsub.f32 1.5, %v2209_v23  ;;  %vm2224_vm13 = vmor %vm2222_vm12, %vm2223_vm11 }
 0x212   : > { %v1915_v22 = vpop.xlane.xlu1 %1914  ;;  %v2218_v48 = vmul.f32 %v2899_v33, %v2217_v8 }
 0x213   : > { %v2211_v12 = vmul.f32 %v2897_v40, %v2210_v25  ;;  %2900 = vrsqrt.f32 %v1915_v22  ;;  %vm2232_vm15 = vweird.f32 %v1915_v22 }
 0x214   : > { %v2219_v24 = vmul.f32 0.5, %v2218_v48 }
 0x215   : > { %v2215_v11 = vsel %vm2214_vm10, %v2897_v40, %v2211_v12 }
 0x216   : > { %v2352_v5 = vmul.f32 %v2215_v11, %v4248_v38  ;;  %v2353_v29 = vmul.f32 %v2215_v11, %v4249_v46  ;;  %v2354_v20 = vmul.f32 %v2215_v11, %v4250_v61  ;;  %v2355_v41 = vmul.f32 %v2215_v11, %v3876_v50 }
 0x217   : > { %v2220_v45 = vsub.f32 1.5, %v2219_v24 }
 0x218   : > { %2480 = vst [vmem:[%s3494_s7 + $0x3a0] sm:$0xff] %v2352_v5 }
 0x219   : > { %v2901_v1 = vpop.eup %2900  ;;  %2481 = vst [vmem:[%s3494_s7 + $0x3a8] sm:$0xff] %v2353_v29  ;;  %v2221_v37 = vmul.f32 %v2899_v33, %v2220_v45 }
 0x21a   : > { %2482 = vst [vmem:[%s3494_s7 + $0x3b0] sm:$0xff] %v2354_v20  ;;  %v2227_v28 = vmul.f32 %v2901_v1, %v1915_v22  ;;  %vm2233_vm14 = vweird.f32 %v2901_v1 }
 0x21b   : > { %2483 = vst [vmem:[%s3494_s7 + $0x3b8] sm:$0xff] %v2355_v41  ;;  %v2225_v17 = vsel %vm2224_vm13, %v2899_v33, %v2221_v37  ;;  %vm2234_vm0 = vmor %vm2232_vm15, %vm2233_vm14 }
 0x21c   : > { %v2228_v15 = vmul.f32 %v2901_v1, %v2227_v28  ;;  %v2356_v50 = vmul.f32 %v2225_v17, %v4251_v32  ;;  %v2357_v14 = vmul.f32 %v2225_v17, %v4252_v35  ;;  %v2358_v39 = vmul.f32 %v2225_v17, %v3906_v16 }
 0x21d   : > { %v2359_v3 = vmul.f32 %v2225_v17, %v3909_v60 }
 0x21e   : > { %v2229_v13 = vmul.f32 0.5, %v2228_v15  ;;  %2484 = vst [vmem:[%s3494_s7 + $0x3c0] sm:$0xff] %v2356_v50 }
 0x21f   : > { %2485 = vst [vmem:[%s3494_s7 + $0x3c8] sm:$0xff] %v2357_v14 }
 0x220   : > { %v2230_v62 = vsub.f32 1.5, %v2229_v13  ;;  %2486 = vst [vmem:[%s3494_s7 + $0x3d0] sm:$0xff] %v2358_v39 }
 0x221   : > { %2487 = vst [vmem:[%s3494_s7 + $0x3d8] sm:$0xff] %v2359_v3 }
 0x222   : > { %v2231_v56 = vmul.f32 %v2901_v1, %v2230_v62 }
 0x224   : > { %v2235_v42 = vsel %vm2234_vm0, %v2901_v1, %v2231_v56 }
 0x225   : > { %v2360_v4 = vmul.f32 %v2235_v42, %v3913_v51  ;;  %v2361_v16 = vmul.f32 %v2235_v42, %v3919_v57  ;;  %v2362_v60 = vmul.f32 %v2235_v42, %v3936_v44  ;;  %v2363_v53 = vmul.f32 %v2235_v42, %v3940_v0 }
 0x227   : > { %2488 = vst [vmem:[%s3494_s7 + $0x3e0] sm:$0xff] %v2360_v4 }
 0x228   : > { %2489 = vst [vmem:[%s3494_s7 + $0x3e8] sm:$0xff] %v2361_v16 }
 0x229   : > { %2490 = vst [vmem:[%s3494_s7 + $0x3f0] sm:$0xff] %v2362_v60 }
 0x22a   : > { %2491 = vst [vmem:[%s3494_s7 + $0x3f8] sm:$0xff] %v2363_v53 }
 0x22b PF: > { %s13_s14 = sadd.s32 1, %s2924_s14   ;;  %s4253_s12 = smov %s2920_s13 }
 0x22c   : > { %p10_p5 = scmp.ge.s32.totalorder %s13_s14, 4   ;;  %s4254_s13 = smov %s4256_s15 }
 0x22e   :  { %12 = sbr.rel (!%p10_p5) target bundleno = 2 (0x2), region = 76 }

// kernel: lseg_forward.37
= control target key start
LH: loop header
LB: loop body
LE: loop exit
PB: predicated region body
PF: predicated region fallthrough
CT: control target
= control target key end

     0   :  { %7 = vsyncpa [#allocation3], 0  ;;  %s1380_s0 = inlined_call_operand.vmem [shape: bf16[32,16], index: 0, kind: input, shape index: {}]   ;;  %s1381_s1 = inlined_call_operand.vmem [shape: bf16[64,16,512], index: 1, kind: input, shape index: {}]   ;;  %s1382_s2 = inlined_call_operand.hbm [shape: f32[64,32,512], index: 2, kind: output, shape index: {}]  }
   0x1   :  { %9 = vsyncpa [#allocation3 + $0x1], 0  ;;  %s1123_s9 = smov 0   ;;  %s1125_s10 = smov 0  }
   0x2   :  { %s1127_s11 = smov 0   ;;  %s1129_s12 = smov 0  }
   0x3   :  { %s1131_s13 = smov 0   ;;  %s1133_s14 = smov 0  }
   0x4 LB: > { %s769_s15 = sadd.s32 4294967295, %s1104_s14   ;;  %s770_s16 = sadd.s32 4294967294, %s1104_s14   ;;  %s1104_s14 = sphi %s1133_s14, %s15_s14   ;;  %s1100_s13 = sphi %s1131_s13, %s1389_s13   ;;  %s1096_s12 = sphi %s1129_s12, %s1388_s12   ;;  %s1092_s11 = sphi %s1127_s11, %s1387_s11   ;;  %s1088_s10 = sphi %s1125_s10, %s1386_s10   ;;  %s1084_s9 = sphi %s1123_s9, %s1385_s9  }
   0x5   : > { %s27_s17 = sadd.s32 1, %s1100_s13  ;;  %s85_s18 = sadd.s32 1, %s1092_s11 }
   0x6   : > { %p29_p0 = scmp.ge.s32.totalorder %s27_s17, 16  ;;  %p95_p1 = scmp.ne.s32.totalorder %s1092_s11, %s1088_s10 }
   0x7   : > { %p96_p2 = scmp.eq.s32.totalorder %s769_s15, 15  ;;  %p101_p3 = scmp.ne.s32.totalorder %s1088_s10, %s1084_s9 }
   0x8   : > { %s1391_s17 = smov (%p29_p0, %s27_s17), 0  ;;  %p102_p5 = scmp.eq.s32.totalorder %s770_s16, 15 }
   0x9   : > { %p1163_p4 = por %p96_p2, %p95_p1  ;;  %s80_s20 = ssub.s32 %s1100_s13, %s1391_s17 }
   0xa   : > { %p773_p6 = scmp.ge.s32.totalorder %s1104_s14, 1  ;;  %p83_p7 = scmp.eq.s32.totalorder %s80_s20, 0 }
   0xb   : > { %p1170_p8 = por %p102_p5, %p101_p3  ;;  %p138_p9 = scmp.lt.s32.totalorder %s1104_s14, 17 }
   0xc   : > { %s1176_s22 = scalar_select %p83_p7, %s1092_s11, %s85_s18  }
   0xd   : > { %p139_p10 = pnand %p773_p6, %p138_p9 }
   0xe   : > { %s775_s23 = sshll.u32 (!%p139_p10), %s1096_s12, 2  ;;  %s162_s4 = sand.u32 (!%p139_p10), 1, %s1088_s10  }
   0xf   : > { %142 = sbr.rel (%p139_p10) target bundleno = 287 (0x11f), region = 28  ;;  %p167_p11 = scmp.lt.s32.totalorder (!%p139_p10), %s775_s23, 63 }
  0x10   : > { %s774_s5 = sshll.u32 (!%p139_p10), %s162_s4, 9  ;;  %s968_s7 = sshll.u32 (!%p139_p10), %s1096_s12, 9 }
  0x11   : > { %s1275_s6 = scalar_lea.vmem (!%p139_p10), [#allocation2], %s774_s5  ;;  %s686_s16 = scalar_lea.hbm (!%p139_p10), %s1382_s2, %s968_s7 }
  0x12   : > { %s687_s18 = sshll.u32 (!%p139_p10), %s1275_s6, 4  ;;  %s689_s20 = sshll.u32 (!%p139_p10), %s686_s16, 4  ;;  %s688_s18 = int_to_ptr.vmem [resolvable:$true] %s687_s18  ;;  %s690_s20 = int_to_ptr.hbm [resolvable:$true] %s689_s20 }
  0x13   : > { %s672_s12 = scalar_lea.sflag (!%p139_p10), [#allocation3], %s162_s4 }
  0x14   : > { %s1393_s23 = smov (!%p167_p11, %s775_s23), 63  ;;  %vm218_vm0 = vcmask 130048   ;;  %v1190_v3 = vld [vmem:[%s1380_s0] sm:$0xff]  ;;  %v950_v37 = vld [vmem:[%s1380_s0 + $0x8] sm:$0xff] }
  0x15   : > { %s948_s24 = sshll.u32 %s1393_s23, 5  ;;  %s1040_s23 = sshra.s32 %s690_s20, 4  ;;  %s1041_s23 = int_to_ptr.hbm [resolvable:$true] %s1040_s23 }
  0x16   : > { %s1182_s27 = scalar_lea.vmem %s1381_s1, %s948_s24  ;;  %s1042_s24 = scalar_lea.hbm %s1041_s23, 512 }
  0x17   : > { %v788_v0 = vld [vmem:[%s1182_s27] sm:$0xf]  ;;  %v953_v1 = vld [vmem:[%s1182_s27 + $0xc] sm:$0xf0]  ;;  %v951_v2 = vld [vmem:[%s1182_s27 + $0x4] sm:$0xf]  ;;  %p1043_p12 = scmp.ne.s32.totalorder %s1041_s23, %s1042_s24  ;;  %p1047_p1 = scmp.lt.s32.totalorder %s1041_s23, %s1382_s2 }
  0x18   : > { %v789_v4 = vor.u32 %v953_v1, %v788_v0  ;;  %v790_v5 = vld [vmem:[%s1182_s27 + $0x10] sm:$0xf0]  ;;  %v796_v6 = vld [vmem:[%s1182_s27 + $0x8] sm:$0xf]  ;;  %v954_v7 = vld [vmem:[%s1182_s27 + $0x14] sm:$0xf0] }
  0x19   : > { %v793_v8 = vor.u32 %v951_v2, %v790_v5  ;;  %v797_v9 = vor.u32 %v954_v7, %v796_v6  ;;  %v952_v10 = vld [vmem:[%s1182_s27 + $0xc] sm:$0xf]  ;;  %v798_v11 = vld [vmem:[%s1182_s27 + $0x18] sm:$0xf0]  ;;  %v824_v12 = vld [vmem:[%s1182_s27 + $0x28] sm:$0xf]  ;;  %p1044_p13 = pnand %p1043_p12, %p1163_p4 }
  0x1a   : > { %232 = vmatpush.bf16.msra.mxu0 %v789_v4  ;;  %v801_v13 = vor.u32 %v952_v10, %v798_v11  ;;  %v958_v14 = vld [vmem:[%s1182_s27 + $0x34] sm:$0xf0]  ;;  %v956_v15 = vld [vmem:[%s1182_s27 + $0x2c] sm:$0xf]  ;;  %v826_v16 = vld [vmem:[%s1182_s27 + $0x38] sm:$0xf0] }
  0x1b   : > { %251 = vmatpush.bf16.msra.mxu1 %v793_v8  ;;  %270 = vmatpush.bf16.msra.mxu2 %v797_v9  ;;  %v825_v17 = vor.u32 %v958_v14, %v824_v12  ;;  %v816_v18 = vld [vmem:[%s1182_s27 + $0x20] sm:$0xf]  ;;  %v957_v19 = vld [vmem:[%s1182_s27 + $0x2c] sm:$0xf0]  ;;  %v955_v20 = vld [vmem:[%s1182_s27 + $0x24] sm:$0xf]  ;;  %v829_v21 = vor.u32 %v956_v15, %v826_v16  ;;  %p1045_p0 = pneg %p1044_p13 }
  0x1c   : > { %289 = vmatpush.bf16.msra.mxu3 %v801_v13  ;;  %v817_v22 = vor.u32 %v957_v19, %v816_v18  ;;  %v818_v23 = vld [vmem:[%s1182_s27 + $0x30] sm:$0xf0]  ;;  %v868_v25 = vld [vmem:[%s1182_s27 + $0x48] sm:$0xf]  ;;  %v962_v26 = vld [vmem:[%s1182_s27 + $0x54] sm:$0xf0] }
  0x1d   : > { %802 = vmatmul.msk.bf16.vlgmr.msra.gmra.mxu0 %vm218_vm0, %v1190_v3  ;;  %v821_v24 = vor.u32 %v955_v20, %v818_v23  ;;  %v960_v27 = vld [vmem:[%s1182_s27 + $0x4c] sm:$0xf]  ;;  %v869_v28 = vor.u32 %v962_v26, %v868_v25  ;;  %v870_v29 = vld [vmem:[%s1182_s27 + $0x58] sm:$0xf0]  ;;  %v860_v30 = vld [vmem:[%s1182_s27 + $0x40] sm:$0xf] }
  0x1e   : > { %804 = vmatmul.msk.bf16.vlgmr.msra.gmra.mxu1 %vm218_vm0, %v1190_v3  ;;  %806 = vmatmul.msk.bf16.vlgmr.msra.gmra.mxu2 %vm218_vm0, %v1190_v3  ;;  %v961_v31 = vld [vmem:[%s1182_s27 + $0x4c] sm:$0xf0]  ;;  %v873_v32 = vor.u32 %v960_v27, %v870_v29  ;;  %v959_v34 = vld [vmem:[%s1182_s27 + $0x44] sm:$0xf]  ;;  %v862_v35 = vld [vmem:[%s1182_s27 + $0x50] sm:$0xf0] }
  0x1f   : > { %387 = vmatpush.bf16.msrb.mxu2 %v825_v17  ;;  %808 = vmatmul.msk.bf16.vlgmr.msra.gmra.mxu3 %vm218_vm0, %v1190_v3  ;;  %v861_v33 = vor.u32 %v961_v31, %v860_v30  ;;  %v865_v36 = vor.u32 %v959_v34, %v862_v35  ;;  %v912_v38 = vld [vmem:[%s1182_s27 + $0x68] sm:$0xf]  ;;  %v966_v39 = vld [vmem:[%s1182_s27 + $0x74] sm:$0xf0]  ;;  %v964_v40 = vld [vmem:[%s1182_s27 + $0x6c] sm:$0xf] }
  0x20   : > { %349 = vmatpush.bf16.msrb.mxu0 %v817_v22  ;;  %406 = vmatpush.bf16.msrb.mxu3 %v829_v21  ;;  %v913_v41 = vor.u32 %v966_v39, %v912_v38  ;;  %v914_v42 = vld [vmem:[%s1182_s27 + $0x78] sm:$0xf0]  ;;  %v904_v43 = vld [vmem:[%s1182_s27 + $0x60] sm:$0xf]  ;;  %v965_v44 = vld [vmem:[%s1182_s27 + $0x6c] sm:$0xf0] }
  0x21   : > { %368 = vmatpush.bf16.msrb.mxu1 %v821_v24  ;;  %v917_v45 = vor.u32 %v964_v40, %v914_v42  ;;  %v905_v46 = vor.u32 %v965_v44, %v904_v43  ;;  %v963_v47 = vld [vmem:[%s1182_s27 + $0x64] sm:$0xf]  ;;  %v906_v48 = vld [vmem:[%s1182_s27 + $0x70] sm:$0xf0]  ;;  %s1046_s27 = scalar_lea.hbm %s1382_s2, 8192 }
  0x22   : > { %v909_v49 = vor.u32 %v963_v47, %v906_v48  ;;  %p1048_p2 = scmp.lt.s32.totalorder %s1046_s27, %s1042_s24 }
  0x23   : > { %505 = vmatpush.bf16.msra.mxu2 %v869_v28 }
  0x24   : > { %524 = vmatpush.bf16.msra.mxu3 %v873_v32  ;;  %467 = vmatpush.bf16.msra.mxu0 %v861_v33  ;;  %p1049_p3 = por %p1048_p2, %p1047_p1 }
  0x25   : > { %486 = vmatpush.bf16.msra.mxu1 %v865_v36 }
  0x26   : > { %p1050_p5 = pnand %p1049_p3, %p1045_p0 }
  0x2d   : > { %803 = vmatmul.msk.bf16.gmra.mxu0 %vm218_vm0, %v950_v37 }
  0x2e   : > { %805 = vmatmul.msk.bf16.gmra.mxu1 %vm218_vm0, %v950_v37  ;;  %807 = vmatmul.msk.bf16.gmra.mxu2 %vm218_vm0, %v950_v37 }
  0x2f   : > { %809 = vmatmul.msk.bf16.gmra.mxu3 %vm218_vm0, %v950_v37 }
  0x3d   : > { %830 = vmatmul.msk.bf16.vlgmr.msrb.gmra.mxu0 %vm218_vm0, %v1190_v3 }
  0x3e   : > { %832 = vmatmul.msk.bf16.vlgmr.msrb.gmra.mxu1 %vm218_vm0, %v1190_v3  ;;  %834 = vmatmul.msk.bf16.vlgmr.msrb.gmra.mxu2 %vm218_vm0, %v1190_v3 }
  0x3f   : > { %836 = vmatmul.msk.bf16.vlgmr.msrb.gmra.mxu3 %vm218_vm0, %v1190_v3  ;;  %623 = vmatpush.bf16.msrb.mxu2 %v913_v41 }
  0x40   : > { %642 = vmatpush.bf16.msrb.mxu3 %v917_v45  ;;  %585 = vmatpush.bf16.msrb.mxu0 %v905_v46 }
  0x41   : > { %604 = vmatpush.bf16.msrb.mxu1 %v909_v49 }
  0x4d   : > { %831 = vmatmul.msk.bf16.gmra.mxu0 %vm218_vm0, %v950_v37 }
  0x4e   : > { %833 = vmatmul.msk.bf16.gmra.mxu1 %vm218_vm0, %v950_v37  ;;  %835 = vmatmul.msk.bf16.gmra.mxu2 %vm218_vm0, %v950_v37 }
  0x4f   : > { %837 = vmatmul.msk.bf16.gmra.mxu3 %vm218_vm0, %v950_v37 }
  0x5d   : > { %874 = vmatmul.msk.bf16.vlgmr.msra.gmra.mxu0 %vm218_vm0, %v1190_v3 }
  0x5e   : > { %876 = vmatmul.msk.bf16.vlgmr.msra.gmra.mxu1 %vm218_vm0, %v1190_v3  ;;  %878 = vmatmul.msk.bf16.vlgmr.msra.gmra.mxu2 %vm218_vm0, %v1190_v3 }
  0x5f   : > { %880 = vmatmul.msk.bf16.vlgmr.msra.gmra.mxu3 %vm218_vm0, %v1190_v3 }
  0x6d   : > { %875 = vmatmul.msk.bf16.gmra.mxu0 %vm218_vm0, %v950_v37 }
  0x6e   : > { %877 = vmatmul.msk.bf16.gmra.mxu1 %vm218_vm0, %v950_v37  ;;  %879 = vmatmul.msk.bf16.gmra.mxu2 %vm218_vm0, %v950_v37 }
  0x6f   : > { %881 = vmatmul.msk.bf16.gmra.mxu3 %vm218_vm0, %v950_v37 }
  0x7d   : > { %918 = vmatmul.msk.bf16.vlgmr.msrb.gmra.mxu0 %vm218_vm0, %v1190_v3 }
  0x7e   : > { %920 = vmatmul.msk.bf16.vlgmr.msrb.gmra.mxu1 %vm218_vm0, %v1190_v3  ;;  %922 = vmatmul.msk.bf16.vlgmr.msrb.gmra.mxu2 %vm218_vm0, %v1190_v3 }
  0x7f   : > { %924 = vmatmul.msk.bf16.vlgmr.msrb.gmra.mxu3 %vm218_vm0, %v1190_v3 }
  0x8d   : > { %919 = vmatmul.msk.bf16.gmra.mxu0 %vm218_vm0, %v950_v37 }
  0x8e   : > { %921 = vmatmul.msk.bf16.gmra.mxu1 %vm218_vm0, %v950_v37  ;;  %923 = vmatmul.msk.bf16.gmra.mxu2 %vm218_vm0, %v950_v37 }
  0x8f   : > { %925 = vmatmul.msk.bf16.gmra.mxu3 %vm218_vm0, %v950_v37 }
  0x9a   : > { %v234_v50 = vpop.f32.mrf.mxu0 }
  0x9b   : > { %301 = vst [vmem:[%s1275_s6] sm:$0xff] %v234_v50  ;;  %v253_v51 = vpop.f32.mrf.mxu1 }
  0x9c   : > { %302 = vst [vmem:[%s1275_s6 + $0x8] sm:$0xff] %v253_v51 }
  0xa1   : > { %v272_v52 = vpop.f32.mrf.mxu2 }
  0xa2   : > { %303 = vst [vmem:[%s1275_s6 + $0x10] sm:$0xff] %v272_v52  ;;  %v291_v53 = vpop.f32.mrf.mxu3  ;;  %v236_v54 = vpop.f32.mrf.mxu0 }
  0xa3   : > { %304 = vst [vmem:[%s1275_s6 + $0x18] sm:$0xff] %v291_v53  ;;  %v255_v55 = vpop.f32.mrf.mxu1 }
  0xa4   : > { %305 = vst [vmem:[%s1275_s6 + $0x20] sm:$0xff] %v236_v54 }
  0xa5   : > { %306 = vst [vmem:[%s1275_s6 + $0x28] sm:$0xff] %v255_v55 }
  0xa9   : > { %v274_v56 = vpop.f32.mrf.mxu2 }
  0xaa   : > { %307 = vst [vmem:[%s1275_s6 + $0x30] sm:$0xff] %v274_v56  ;;  %v293_v57 = vpop.f32.mrf.mxu3  ;;  %v239_v58 = vpop.f32.mrf.mxu0 }
  0xab   : > { %308 = vst [vmem:[%s1275_s6 + $0x38] sm:$0xff] %v293_v57  ;;  %v258_v59 = vpop.f32.mrf.mxu1 }
  0xac   : > { %309 = vst [vmem:[%s1275_s6 + $0x40] sm:$0xff] %v239_v58 }
  0xad   : > { %310 = vst [vmem:[%s1275_s6 + $0x48] sm:$0xff] %v258_v59 }
  0xb1   : > { %v277_v60 = vpop.f32.mrf.mxu2 }
  0xb2   : > { %311 = vst [vmem:[%s1275_s6 + $0x50] sm:$0xff] %v277_v60  ;;  %v296_v61 = vpop.f32.mrf.mxu3  ;;  %v241_v62 = vpop.f32.mrf.mxu0 }
  0xb3   : > { %312 = vst [vmem:[%s1275_s6 + $0x58] sm:$0xff] %v296_v61  ;;  %v260_v63 = vpop.f32.mrf.mxu1 }
  0xb4   : > { %313 = vst [vmem:[%s1275_s6 + $0x60] sm:$0xff] %v241_v62 }
  0xb5   : > { %314 = vst [vmem:[%s1275_s6 + $0x68] sm:$0xff] %v260_v63 }
  0xb9   : > { %v279_v0 = vpop.f32.mrf.mxu2 }
  0xba   : > { %315 = vst [vmem:[%s1275_s6 + $0x70] sm:$0xff] %v279_v0  ;;  %v298_v1 = vpop.f32.mrf.mxu3  ;;  %v351_v2 = vpop.f32.mrf.mxu0 }
  0xbb   : > { %316 = vst [vmem:[%s1275_s6 + $0x78] sm:$0xff] %v298_v1  ;;  %v370_v3 = vpop.f32.mrf.mxu1 }
  0xbc   : > { %838 = vst [vmem:[%s1275_s6 + $0x80] sm:$0xff] %v351_v2 }
  0xbd   : > { %839 = vst [vmem:[%s1275_s6 + $0x88] sm:$0xff] %v370_v3 }
  0xc1   : > { %v389_v4 = vpop.f32.mrf.mxu2 }
  0xc2   : > { %840 = vst [vmem:[%s1275_s6 + $0x90] sm:$0xff] %v389_v4  ;;  %v408_v5 = vpop.f32.mrf.mxu3  ;;  %v353_v6 = vpop.f32.mrf.mxu0 }
  0xc3   : > { %841 = vst [vmem:[%s1275_s6 + $0x98] sm:$0xff] %v408_v5  ;;  %v372_v7 = vpop.f32.mrf.mxu1 }
  0xc4   : > { %842 = vst [vmem:[%s1275_s6 + $0xa0] sm:$0xff] %v353_v6 }
  0xc5   : > { %843 = vst [vmem:[%s1275_s6 + $0xa8] sm:$0xff] %v372_v7 }
  0xc9   : > { %v391_v8 = vpop.f32.mrf.mxu2 }
  0xca   : > { %844 = vst [vmem:[%s1275_s6 + $0xb0] sm:$0xff] %v391_v8  ;;  %v410_v9 = vpop.f32.mrf.mxu3  ;;  %v356_v10 = vpop.f32.mrf.mxu0 }
  0xcb   : > { %845 = vst [vmem:[%s1275_s6 + $0xb8] sm:$0xff] %v410_v9  ;;  %v375_v11 = vpop.f32.mrf.mxu1 }
  0xcc   : > { %846 = vst [vmem:[%s1275_s6 + $0xc0] sm:$0xff] %v356_v10 }
  0xcd   : > { %847 = vst [vmem:[%s1275_s6 + $0xc8] sm:$0xff] %v375_v11 }
  0xd1   : > { %v394_v12 = vpop.f32.mrf.mxu2 }
  0xd2   : > { %848 = vst [vmem:[%s1275_s6 + $0xd0] sm:$0xff] %v394_v12  ;;  %v413_v13 = vpop.f32.mrf.mxu3  ;;  %v358_v14 = vpop.f32.mrf.mxu0 }
  0xd3   : > { %849 = vst [vmem:[%s1275_s6 + $0xd8] sm:$0xff] %v413_v13  ;;  %v377_v15 = vpop.f32.mrf.mxu1 }
  0xd4   : > { %850 = vst [vmem:[%s1275_s6 + $0xe0] sm:$0xff] %v358_v14 }
  0xd5   : > { %851 = vst [vmem:[%s1275_s6 + $0xe8] sm:$0xff] %v377_v15 }
  0xd9   : > { %v396_v16 = vpop.f32.mrf.mxu2 }
  0xda   : > { %852 = vst [vmem:[%s1275_s6 + $0xf0] sm:$0xff] %v396_v16  ;;  %v415_v17 = vpop.f32.mrf.mxu3  ;;  %v469_v18 = vpop.f32.mrf.mxu0 }
  0xdb   : > { %853 = vst [vmem:[%s1275_s6 + $0xf8] sm:$0xff] %v415_v17  ;;  %v488_v19 = vpop.f32.mrf.mxu1 }
  0xdc   : > { %882 = vst [vmem:[%s1275_s6 + $0x100] sm:$0xff] %v469_v18 }
  0xdd   : > { %883 = vst [vmem:[%s1275_s6 + $0x108] sm:$0xff] %v488_v19 }
  0xe1   : > { %v507_v20 = vpop.f32.mrf.mxu2 }
  0xe2   : > { %884 = vst [vmem:[%s1275_s6 + $0x110] sm:$0xff] %v507_v20  ;;  %v526_v21 = vpop.f32.mrf.mxu3  ;;  %v471_v22 = vpop.f32.mrf.mxu0 }
  0xe3   : > { %885 = vst [vmem:[%s1275_s6 + $0x118] sm:$0xff] %v526_v21  ;;  %v490_v23 = vpop.f32.mrf.mxu1 }
  0xe4   : > { %886 = vst [vmem:[%s1275_s6 + $0x120] sm:$0xff] %v471_v22 }
  0xe5   : > { %887 = vst [vmem:[%s1275_s6 + $0x128] sm:$0xff] %v490_v23 }
  0xe9   : > { %v509_v24 = vpop.f32.mrf.mxu2 }
  0xea   : > { %888 = vst [vmem:[%s1275_s6 + $0x130] sm:$0xff] %v509_v24  ;;  %v528_v25 = vpop.f32.mrf.mxu3  ;;  %v474_v26 = vpop.f32.mrf.mxu0 }
  0xeb   : > { %889 = vst [vmem:[%s1275_s6 + $0x138] sm:$0xff] %v528_v25  ;;  %v493_v27 = vpop.f32.mrf.mxu1 }
  0xec   : > { %890 = vst [vmem:[%s1275_s6 + $0x140] sm:$0xff] %v474_v26 }
  0xed   : > { %891 = vst [vmem:[%s1275_s6 + $0x148] sm:$0xff] %v493_v27 }
  0xf1   : > { %v512_v28 = vpop.f32.mrf.mxu2 }
  0xf2   : > { %892 = vst [vmem:[%s1275_s6 + $0x150] sm:$0xff] %v512_v28  ;;  %v531_v29 = vpop.f32.mrf.mxu3  ;;  %v476_v30 = vpop.f32.mrf.mxu0 }
  0xf3   : > { %893 = vst [vmem:[%s1275_s6 + $0x158] sm:$0xff] %v531_v29  ;;  %v495_v31 = vpop.f32.mrf.mxu1 }
  0xf4   : > { %894 = vst [vmem:[%s1275_s6 + $0x160] sm:$0xff] %v476_v30 }
  0xf5   : > { %895 = vst [vmem:[%s1275_s6 + $0x168] sm:$0xff] %v495_v31 }
  0xf9   : > { %v514_v32 = vpop.f32.mrf.mxu2 }
  0xfa   : > { %896 = vst [vmem:[%s1275_s6 + $0x170] sm:$0xff] %v514_v32  ;;  %v533_v33 = vpop.f32.mrf.mxu3  ;;  %v587_v34 = vpop.f32.mrf.mxu0 }
  0xfb   : > { %897 = vst [vmem:[%s1275_s6 + $0x178] sm:$0xff] %v533_v33  ;;  %v606_v35 = vpop.f32.mrf.mxu1 }
  0xfc   : > { %926 = vst [vmem:[%s1275_s6 + $0x180] sm:$0xff] %v587_v34 }
  0xfd   : > { %927 = vst [vmem:[%s1275_s6 + $0x188] sm:$0xff] %v606_v35 }
 0x101   : > { %v625_v36 = vpop.f32.mrf.mxu2 }
 0x102   : > { %928 = vst [vmem:[%s1275_s6 + $0x190] sm:$0xff] %v625_v36  ;;  %v644_v37 = vpop.f32.mrf.mxu3  ;;  %v589_v38 = vpop.f32.mrf.mxu0 }
 0x103   : > { %929 = vst [vmem:[%s1275_s6 + $0x198] sm:$0xff] %v644_v37  ;;  %v608_v39 = vpop.f32.mrf.mxu1 }
 0x104   : > { %930 = vst [vmem:[%s1275_s6 + $0x1a0] sm:$0xff] %v589_v38 }
 0x105   : > { %931 = vst [vmem:[%s1275_s6 + $0x1a8] sm:$0xff] %v608_v39 }
 0x109   : > { %v627_v40 = vpop.f32.mrf.mxu2 }
 0x10a   : > { %932 = vst [vmem:[%s1275_s6 + $0x1b0] sm:$0xff] %v627_v40  ;;  %v646_v41 = vpop.f32.mrf.mxu3  ;;  %v592_v42 = vpop.f32.mrf.mxu0 }
 0x10b   : > { %933 = vst [vmem:[%s1275_s6 + $0x1b8] sm:$0xff] %v646_v41  ;;  %v611_v43 = vpop.f32.mrf.mxu1 }
 0x10c   : > { %934 = vst [vmem:[%s1275_s6 + $0x1c0] sm:$0xff] %v592_v42 }
 0x10d   : > { %935 = vst [vmem:[%s1275_s6 + $0x1c8] sm:$0xff] %v611_v43 }
 0x111   : > { %v630_v44 = vpop.f32.mrf.mxu2 }
 0x112   : > { %936 = vst [vmem:[%s1275_s6 + $0x1d0] sm:$0xff] %v630_v44  ;;  %v649_v45 = vpop.f32.mrf.mxu3  ;;  %v594_v46 = vpop.f32.mrf.mxu0 }
 0x113   : > { %937 = vst [vmem:[%s1275_s6 + $0x1d8] sm:$0xff] %v649_v45  ;;  %v613_v47 = vpop.f32.mrf.mxu1 }
 0x114   : > { %938 = vst [vmem:[%s1275_s6 + $0x1e0] sm:$0xff] %v594_v46 }
 0x115   : > { %939 = vst [vmem:[%s1275_s6 + $0x1e8] sm:$0xff] %v613_v47 }
 0x119   : > { %v632_v48 = vpop.f32.mrf.mxu2 }
 0x11a   : > { %940 = vst [vmem:[%s1275_s6 + $0x1f0] sm:$0xff] %v632_v48  ;;  %v651_v49 = vpop.f32.mrf.mxu3 }
 0x11b   : > { %941 = vst [vmem:[%s1275_s6 + $0x1f8] sm:$0xff] %v651_v49 }
 0x11c   : > { %1053 = shalt.err (!%p1050_p5)
}
 0x11d   : > { %s1106_s30 = smov 512   ;;  %s1107_s3 = smov 32  }
 0x11e   : > { %969 = dma.vmem_to_hbm [thread:$0]  (%p1163_p4), %s688_s18, 8192, %s690_s20, %s672_s12, %s1106_s30, %s1106_s30, %s1107_s3  }
 0x11f PF: > { %p975_p6 = scmp.ge.s32.totalorder %s1104_s14, 2  ;;  %s704_s4 = sand.u32 1, %s1084_s9  }
 0x120   : > { %s705_s5 = scalar_lea.sflag [#allocation3], %s704_s4 }
 0x121   : > { %p972_p7 = pnand %p975_p6, %p1170_p8 }
 0x123   : > { %p973_p9 = pneg %p972_p7 }
 0x125   : > { %1079 = dma.done.wait (%p973_p9), %s705_s5, 8192  }
 0x126   : > { %1081 = vsyncadd (%p973_p9), %s705_s5, 4294959104  ;;  %s15_s14 = sadd.s32 1, %s1104_s14   ;;  %s1385_s9 = smov %s1088_s10 }
 0x127   : > { %p12_p10 = scmp.ge.s32.totalorder %s15_s14, 18   ;;  %s1386_s10 = smov %s1092_s11 }
 0x128   : > { %s1387_s11 = smov %s1176_s22  ;;  %s1388_s12 = smov %s1100_s13 }
 0x129   : > { %s1389_s13 = smov %s1391_s17  ;;  %14 = sbr.rel (!%p12_p10) target bundleno = 4 (0x4), region = 69 }
 0x12e   :  { %711 = vsyncpa [#allocation3], 1 }
 0x12f   :  { %713 = vsyncpa [#allocation3 + $0x1], 1 }

</bundles_post_ra>
